<compile_context>
chip_gen: v7x
topology: tpu7x:2x2x1
jax: 0.10.0
libtpu: 0.0.40
codegen_flags: <defaults>
</compile_context>

<pallas_src>
import math
import jax
import jax.numpy as jnp
from jax.experimental import pallas as pl
from jax.experimental.pallas import tpu as pltpu


_SCALE = 4.0 / 180.0 * math.pi
_SHIFT = 2.0 / 180.0 * math.pi
# sigmoid(z)*S + T == (S/2)*tanh(z/2) + (S/2 + T)
_HALF_SCALE = 0.5 * _SCALE
_TANH_SHIFT = 0.5 * _SCALE + _SHIFT


def _round_up(n, m):
    return ((n + m - 1) // m) * m


def _ceil_div(a, b):
    return -(-a // b)


def _pad2(a, rows, cols):
    r, c = a.shape
    return jnp.pad(a, ((0, rows - r), (0, cols - c)))


def _num_tensorcores():
    """How many TensorCores the 'parallel' grid axis shards across (2 on v7x)."""
    try:
        kind = jax.devices()[0].device_kind.lower()
    except Exception:
        return 1
    return 2 if "v7" in kind else 1


def mlp_kernel(x_ref, w1_ref, b1_ref, w2_ref, b2_ref, w3_ref, b3_ref,
               w4_ref, b4_ref, o_ref):
    # x arrives f32 (no wrapper pad/cast pass); cast to bf16 for the MXU.
    # Matmuls accumulate in f32; bias add + ReLU + epilogue stay f32.
    x = x_ref[...].astype(jnp.bfloat16)
    h = jnp.dot(x, w1_ref[...], preferred_element_type=jnp.float32) + b1_ref[...]
    h = jnp.maximum(h, 0.0).astype(jnp.bfloat16)
    h = jnp.dot(h, w2_ref[...], preferred_element_type=jnp.float32) + b2_ref[...]
    h = jnp.maximum(h, 0.0).astype(jnp.bfloat16)
    h = jnp.dot(h, w3_ref[...], preferred_element_type=jnp.float32) + b3_ref[...]
    h = jnp.maximum(h, 0.0).astype(jnp.bfloat16)
    z = jnp.dot(h, w4_ref[...], preferred_element_type=jnp.float32) + b4_ref[...]
    # sigmoid(z)*S + T rewritten as a single tanh (one EUP op on the tail).
    o_ref[...] = (_HALF_SCALE * jnp.tanh(0.5 * z) + _TANH_SHIFT).astype(o_ref.dtype)


def mlp_forward(x, params, *, max_batch_tile=512, compute_dtype=jnp.bfloat16,
                num_cores=None):
    """x: (B, D_in) float32. params: (in,out) weights (PyTorch weight.T) and (1,out) biases."""
    B, D_in = x.shape
    w1, b1 = params["w1"], params["b1"]
    w2, b2 = params["w2"], params["b2"]
    w3, b3 = params["w3"], params["b3"]
    w4, b4 = params["w4"], params["b4"]
    H1, H2, D_out = w1.shape[1], w2.shape[1], w4.shape[1]

    if num_cores is None:
        num_cores = _num_tensorcores()
    max_batch_tile = max(16, _round_up(max_batch_tile, 16))

    # Batch-aware tile selection: minimal number of steps that keeps tiles
    # <= max_batch_tile; on multi-TC chips keep the step count a multiple of
    # num_cores (splitting a single tile in two) once there is enough work.
    n_steps = max(1, _ceil_div(B, max_batch_tile))
    if num_cores > 1 and B >= 16 * num_cores:
        n_steps = _round_up(max(n_steps, num_cores), num_cores)
    bt = _round_up(_ceil_div(B, n_steps), 16)     # bf16 packs 16 rows/vreg
    B_p = n_steps * bt                            # last tile may read OOB rows

    # Lane-align hidden/output feature dims (multiples of 128). Zero-padding
    # is exact: padded hidden units get w=0, b=0 -> relu(0)=0 and feed zero
    # weight rows downstream; padded output columns are sliced off.  The
    # input feature dim stays at D_in (full-dim block; no pad pass over x).
    H1_p = _round_up(H1, 128)
    H2_p = _round_up(H2, 128)
    D_out_p = _round_up(D_out, 128)

    w1p = _pad2(w1, D_in, H1_p).astype(compute_dtype)
    w2p = _pad2(w2, H1_p, H2_p).astype(compute_dtype)
    w3p = _pad2(w3, H2_p, H1_p).astype(compute_dtype)
    w4p = _pad2(w4, H1_p, D_out_p).astype(compute_dtype)
    b1p = _pad2(b1, 1, H1_p).astype(jnp.float32)
    b2p = _pad2(b2, 1, H2_p).astype(jnp.float32)
    b3p = _pad2(b3, 1, H1_p).astype(jnp.float32)
    b4p = _pad2(b4, 1, D_out_p).astype(jnp.float32)

    full = lambda shape: pl.BlockSpec(shape, lambda i: (0, 0))

    flops = 2 * B_p * (D_in * H1_p + H1_p * H2_p + H2_p * H1_p + H1_p * D_out_p)
    bytes_accessed = (
        B * D_in * x.dtype.itemsize
        + sum(a.size * a.dtype.itemsize
              for a in (w1p, b1p, w2p, b2p, w3p, b3p, w4p, b4p))
        + B_p * D_out_p * 2)                      # bf16 output writeback
    cost = pl.CostEstimate(flops=flops,
                           transcendentals=B_p * D_out_p,
                           bytes_accessed=bytes_accessed)

    out = pl.pallas_call(
        mlp_kernel,
        out_shape=jax.ShapeDtypeStruct((B_p, D_out_p), jnp.bfloat16),
        grid_spec=pltpu.PrefetchScalarGridSpec(
            num_scalar_prefetch=0,
            grid=(n_steps,),
            in_specs=[
                pl.BlockSpec((bt, D_in), lambda i: (i, 0)),   # x tile (f32)
                full((D_in, H1_p)), full((1, H1_p)),          # fc1
                full((H1_p, H2_p)), full((1, H2_p)),          # fc2
                full((H2_p, H1_p)), full((1, H1_p)),          # fc3
                full((H1_p, D_out_p)), full((1, D_out_p)),    # fc4
            ],
            out_specs=pl.BlockSpec((bt, D_out_p), lambda i: (i, 0)),
        ),
        compiler_params=pltpu.CompilerParams(
            dimension_semantics=("parallel",)),
        cost_estimate=cost,
    )(x, w1p, b1p, w2p, b2p, w3p, b3p, w4p, b4p)

    return out[:B, :D_out].astype(jnp.float32)


def init_params(key, input_size=620, hidden1=300, hidden2=100, output_size=620):
    """Deterministic init mimicking nn.Linear's uniform(-1/sqrt(fan_in), ...).
    Weights are stored as (in, out) = PyTorch weight.T so the kernel does x @ W."""
    dims = [(input_size, hidden1), (hidden1, hidden2),
            (hidden2, hidden1), (hidden1, output_size)]
    params = {}
    keys = jax.random.split(key, 8)
    for n, (fan_in, fan_out) in enumerate(dims, start=1):
        bound = 1.0 / math.sqrt(fan_in)
        params[f"w{n}"] = jax.random.uniform(
            keys[2 * (n - 1)], (fan_in, fan_out), jnp.float32, -bound, bound)
        params[f"b{n}"] = jax.random.uniform(
            keys[2 * (n - 1) + 1], (1, fan_out), jnp.float32, -bound, bound)
    return params


def mlp_reference_f32(x, p):
    h = jnp.maximum(x @ p["w1"] + p["b1"], 0.0)
    h = jnp.maximum(h @ p["w2"] + p["b2"], 0.0)
    h = jnp.maximum(h @ p["w3"] + p["b3"], 0.0)
    z = h @ p["w4"] + p["b4"]
    return jax.nn.sigmoid(z) * _SCALE + _SHIFT


def mlp_reference_mixed(x, p, compute_dtype=jnp.bfloat16):
    """Same mixed precision as the kernel (bf16 matmul inputs, f32 accumulation)."""
    def dense(h, w, b):
        return jnp.dot(h.astype(compute_dtype), w.astype(compute_dtype),
                       preferred_element_type=jnp.float32) + b.astype(jnp.float32)
    h = jnp.maximum(dense(x, p["w1"], p["b1"]), 0.0)
    h = jnp.maximum(dense(h, p["w2"], p["b2"]), 0.0)
    h = jnp.maximum(dense(h, p["w3"], p["b3"]), 0.0)
    z = dense(h, p["w4"], p["b4"])
    return jax.nn.sigmoid(z) * _SCALE + _SHIFT


if __name__ == "__main__":
    key = jax.random.PRNGKey(0)
    k_params, k_x = jax.random.split(key)

    # Non-trivial batch: not a multiple of 16 (exercises the partial last tile)
    # and big enough to exercise the batch-aware tile selection.
    B, D_in = 300, 620
    params = init_params(k_params, input_size=D_in)
    x = jax.random.normal(k_x, (B, D_in), jnp.float32)

    out = jax.jit(mlp_forward)(x, params)
    out = jax.block_until_ready(out)

    assert out.shape == (B, 620)

    ref_mixed = mlp_reference_mixed(x, params)
    ref_f32 = mlp_reference_f32(x, params)
    # atol=1e-3 absorbs the bf16 output rounding (~4e-4 max at these magnitudes)
    # plus MXU-vs-XLA accumulation-order differences.
    assert jnp.allclose(out, ref_mixed, atol=1e-3, rtol=1e-2), \
        "mismatch vs bf16 mixed-precision reference"
    assert jnp.allclose(out, ref_f32, atol=5e-3, rtol=5e-2), \
        "mismatch vs f32 reference beyond bf16 tolerance"

    print("KERNEL_OK")
</pallas_src>

<mosaic_0001>
module attributes {stable_mosaic.version = 11 : i64} {
  func.func @mlp_kernel(%arg0: i32, %arg1: memref<304x620xf32, #tpu.memory_space<vmem>>, %arg2: memref<620x384xbf16, #tpu.memory_space<vmem>>, %arg3: memref<1x384xf32, #tpu.memory_space<vmem>>, %arg4: memref<384x128xbf16, #tpu.memory_space<vmem>>, %arg5: memref<1x128xf32, #tpu.memory_space<vmem>>, %arg6: memref<128x384xbf16, #tpu.memory_space<vmem>>, %arg7: memref<1x384xf32, #tpu.memory_space<vmem>>, %arg8: memref<384x640xbf16, #tpu.memory_space<vmem>>, %arg9: memref<1x640xf32, #tpu.memory_space<vmem>>, %arg10: memref<304x640xbf16, #tpu.memory_space<vmem>>) attributes {dimension_semantics = [#tpu.dimension_semantics<parallel>], iteration_bounds = array<i64: 1>, scalar_prefetch = 0 : i64, scratch_operands = 0 : i64, tpu.core_type = #tpu.core_type<tc>, window_params = [{transform_indices = @transform_0, window_bounds = array<i64: 304, 620>}, {pipeline_mode = #tpu.pipeline_mode<synchronous>, transform_indices = @transform_1, window_bounds = array<i64: 620, 384>}, {pipeline_mode = #tpu.pipeline_mode<synchronous>, transform_indices = @transform_2, window_bounds = array<i64: 1, 384>}, {pipeline_mode = #tpu.pipeline_mode<synchronous>, transform_indices = @transform_3, window_bounds = array<i64: 384, 128>}, {pipeline_mode = #tpu.pipeline_mode<synchronous>, transform_indices = @transform_4, window_bounds = array<i64: 1, 128>}, {pipeline_mode = #tpu.pipeline_mode<synchronous>, transform_indices = @transform_5, window_bounds = array<i64: 128, 384>}, {pipeline_mode = #tpu.pipeline_mode<synchronous>, transform_indices = @transform_6, window_bounds = array<i64: 1, 384>}, {pipeline_mode = #tpu.pipeline_mode<synchronous>, transform_indices = @transform_7, window_bounds = array<i64: 384, 640>}, {pipeline_mode = #tpu.pipeline_mode<synchronous>, transform_indices = @transform_8, window_bounds = array<i64: 1, 640>}, {transform_indices = @transform_9, window_bounds = array<i64: 304, 640>}]} {
    %c0 = arith.constant 0 : index
    %c0_0 = arith.constant 0 : index
    %0 = vector.load %arg1[%c0, %c0_0] : memref<304x620xf32, #tpu.memory_space<vmem>>, vector<304x620xf32>
    %1 = arith.truncf %0 : vector<304x620xf32> to vector<304x620xbf16>
    %c0_1 = arith.constant 0 : index
    %c0_2 = arith.constant 0 : index
    %2 = vector.load %arg2[%c0_1, %c0_2] : memref<620x384xbf16, #tpu.memory_space<vmem>>, vector<620x384xbf16>
    %cst = arith.constant dense<0.000000e+00> : vector<304x384xf32>
    %3 = tpu.matmul %1, %2, %cst {dimension_numbers = #tpu.dot_dimension_numbers<[1], [0], [0], [1], [0, 0, 1, 1], [], []>} : vector<304x620xbf16>, vector<620x384xbf16>, vector<304x384xf32> -> vector<304x384xf32>
    %c0_3 = arith.constant 0 : index
    %c0_4 = arith.constant 0 : index
    %4 = vector.load %arg3[%c0_3, %c0_4] : memref<1x384xf32, #tpu.memory_space<vmem>>, vector<1x384xf32>
    %5 = vector.broadcast %4 : vector<1x384xf32> to vector<304x384xf32>
    %6 = arith.addf %3, %5 : vector<304x384xf32>
    %cst_5 = arith.constant 0.000000e+00 : f32
    %7 = vector.broadcast %cst_5 : f32 to vector<304x384xf32>
    %8 = arith.maximumf %6, %7 : vector<304x384xf32>
    %9 = arith.truncf %8 : vector<304x384xf32> to vector<304x384xbf16>
    %c0_6 = arith.constant 0 : index
    %c0_7 = arith.constant 0 : index
    %10 = vector.load %arg4[%c0_6, %c0_7] : memref<384x128xbf16, #tpu.memory_space<vmem>>, vector<384x128xbf16>
    %cst_8 = arith.constant dense<0.000000e+00> : vector<304x128xf32>
    %11 = tpu.matmul %9, %10, %cst_8 {dimension_numbers = #tpu.dot_dimension_numbers<[1], [0], [0], [1], [0, 0, 1, 1], [], []>} : vector<304x384xbf16>, vector<384x128xbf16>, vector<304x128xf32> -> vector<304x128xf32>
    %c0_9 = arith.constant 0 : index
    %c0_10 = arith.constant 0 : index
    %12 = vector.load %arg5[%c0_9, %c0_10] : memref<1x128xf32, #tpu.memory_space<vmem>>, vector<1x128xf32>
    %13 = vector.broadcast %12 : vector<1x128xf32> to vector<304x128xf32>
    %14 = arith.addf %11, %13 : vector<304x128xf32>
    %cst_11 = arith.constant 0.000000e+00 : f32
    %15 = vector.broadcast %cst_11 : f32 to vector<304x128xf32>
    %16 = arith.maximumf %14, %15 : vector<304x128xf32>
    %17 = arith.truncf %16 : vector<304x128xf32> to vector<304x128xbf16>
    %c0_12 = arith.constant 0 : index
    %c0_13 = arith.constant 0 : index
    %18 = vector.load %arg6[%c0_12, %c0_13] : memref<128x384xbf16, #tpu.memory_space<vmem>>, vector<128x384xbf16>
    %cst_14 = arith.constant dense<0.000000e+00> : vector<304x384xf32>
    %19 = tpu.matmul %17, %18, %cst_14 {dimension_numbers = #tpu.dot_dimension_numbers<[1], [0], [0], [1], [0, 0, 1, 1], [], []>} : vector<304x128xbf16>, vector<128x384xbf16>, vector<304x384xf32> -> vector<304x384xf32>
    %c0_15 = arith.constant 0 : index
    %c0_16 = arith.constant 0 : index
    %20 = vector.load %arg7[%c0_15, %c0_16] : memref<1x384xf32, #tpu.memory_space<vmem>>, vector<1x384xf32>
    %21 = vector.broadcast %20 : vector<1x384xf32> to vector<304x384xf32>
    %22 = arith.addf %19, %21 : vector<304x384xf32>
    %cst_17 = arith.constant 0.000000e+00 : f32
    %23 = vector.broadcast %cst_17 : f32 to vector<304x384xf32>
    %24 = arith.maximumf %22, %23 : vector<304x384xf32>
    %25 = arith.truncf %24 : vector<304x384xf32> to vector<304x384xbf16>
    %c0_18 = arith.constant 0 : index
    %c0_19 = arith.constant 0 : index
    %26 = vector.load %arg8[%c0_18, %c0_19] : memref<384x640xbf16, #tpu.memory_space<vmem>>, vector<384x640xbf16>
    %cst_20 = arith.constant dense<0.000000e+00> : vector<304x640xf32>
    %27 = tpu.matmul %25, %26, %cst_20 {dimension_numbers = #tpu.dot_dimension_numbers<[1], [0], [0], [1], [0, 0, 1, 1], [], []>} : vector<304x384xbf16>, vector<384x640xbf16>, vector<304x640xf32> -> vector<304x640xf32>
    %c0_21 = arith.constant 0 : index
    %c0_22 = arith.constant 0 : index
    %28 = vector.load %arg9[%c0_21, %c0_22] : memref<1x640xf32, #tpu.memory_space<vmem>>, vector<1x640xf32>
    %29 = vector.broadcast %28 : vector<1x640xf32> to vector<304x640xf32>
    %30 = arith.addf %27, %29 : vector<304x640xf32>
    %cst_23 = arith.constant 5.000000e-01 : f32
    %31 = vector.broadcast %cst_23 : f32 to vector<304x640xf32>
    %32 = arith.mulf %31, %30 : vector<304x640xf32>
    %33 = math.tanh %32 : vector<304x640xf32>
    %cst_24 = arith.constant 0.0349065848 : f32
    %34 = vector.broadcast %cst_24 : f32 to vector<304x640xf32>
    %35 = arith.mulf %34, %33 : vector<304x640xf32>
    %cst_25 = arith.constant 0.0698131695 : f32
    %36 = vector.broadcast %cst_25 : f32 to vector<304x640xf32>
    %37 = arith.addf %35, %36 : vector<304x640xf32>
    %38 = arith.truncf %37 : vector<304x640xf32> to vector<304x640xbf16>
    %c0_26 = arith.constant 0 : index
    %c0_27 = arith.constant 0 : index
    %39 = vector.load %arg10[%c0_26, %c0_27] : memref<304x640xbf16, #tpu.memory_space<vmem>>, vector<304x640xbf16>
    tpu.vector_store %arg10[%c0_26, %c0_27], %38 {strides = array<i32>} : memref<304x640xbf16, #tpu.memory_space<vmem>>, vector<304x640xbf16>,
    return
  }
  func.func @transform_0(%arg0: i32) -> (i32, i32) {
    %c0_i32 = arith.constant 0 : i32
    %c0_i32_0 = arith.constant 0 : i32
    return %arg0, %c0_i32 : i32, i32
  }
  func.func @transform_1(%arg0: i32) -> (i32, i32) {
    %c0_i32 = arith.constant 0 : i32
    %c0_i32_0 = arith.constant 0 : i32
    %c0_i32_1 = arith.constant 0 : i32
    return %c0_i32, %c0_i32_0 : i32, i32
  }
  func.func @transform_2(%arg0: i32) -> (i32, i32) {
    %c0_i32 = arith.constant 0 : i32
    %c0_i32_0 = arith.constant 0 : i32
    %c0_i32_1 = arith.constant 0 : i32
    return %c0_i32, %c0_i32_0 : i32, i32
  }
  func.func @transform_3(%arg0: i32) -> (i32, i32) {
    %c0_i32 = arith.constant 0 : i32
    %c0_i32_0 = arith.constant 0 : i32
    %c0_i32_1 = arith.constant 0 : i32
    return %c0_i32, %c0_i32_0 : i32, i32
  }
  func.func @transform_4(%arg0: i32) -> (i32, i32) {
    %c0_i32 = arith.constant 0 : i32
    %c0_i32_0 = arith.constant 0 : i32
    %c0_i32_1 = arith.constant 0 : i32
    return %c0_i32, %c0_i32_0 : i32, i32
  }
  func.func @transform_5(%arg0: i32) -> (i32, i32) {
    %c0_i32 = arith.constant 0 : i32
    %c0_i32_0 = arith.constant 0 : i32
    %c0_i32_1 = arith.constant 0 : i32
    return %c0_i32, %c0_i32_0 : i32, i32
  }
  func.func @transform_6(%arg0: i32) -> (i32, i32) {
    %c0_i32 = arith.constant 0 : i32
    %c0_i32_0 = arith.constant 0 : i32
    %c0_i32_1 = arith.constant 0 : i32
    return %c0_i32, %c0_i32_0 : i32, i32
  }
  func.func @transform_7(%arg0: i32) -> (i32, i32) {
    %c0_i32 = arith.constant 0 : i32
    %c0_i32_0 = arith.constant 0 : i32
    %c0_i32_1 = arith.constant 0 : i32
    return %c0_i32, %c0_i32_0 : i32, i32
  }
  func.func @transform_8(%arg0: i32) -> (i32, i32) {
    %c0_i32 = arith.constant 0 : i32
    %c0_i32_0 = arith.constant 0 : i32
    %c0_i32_1 = arith.constant 0 : i32
    return %c0_i32, %c0_i32_0 : i32, i32
  }
  func.func @transform_9(%arg0: i32) -> (i32, i32) {
    %c0_i32 = arith.constant 0 : i32
    %c0_i32_0 = arith.constant 0 : i32
    return %arg0, %c0_i32 : i32, i32
  }
}

</mosaic_0001>

<bundles_post_ra>
// kernel: mlp_forward.1
= control target key start
LH: loop header
LB: loop body
LE: loop exit
PB: predicated region body
PF: predicated region fallthrough
CT: control target
= control target key end

     0   :  { %vm1170_vm0 = vcmask 1045504   ;;  %vm1112_vm1 = vcmask 883712   ;;  %vm10243_vm2 = vmmov 0   ;;  %s14111_s1 = inlined_call_operand.vmem [shape: bf16[620,384], index: 1, kind: input, shape index: {}]   ;;  %s14112_s0 = inlined_call_operand.vmem [shape: f32[300,620], index: 0, kind: input, shape index: {}]   ;;  %s14113_s3 = inlined_call_operand.vmem [shape: bf16[384,128], index: 3, kind: input, shape index: {}]   ;;  %s14114_s2 = inlined_call_operand.vmem [shape: f32[1,384], index: 2, kind: input, shape index: {}]   ;;  %s14115_s5 = inlined_call_operand.vmem [shape: bf16[128,384], index: 5, kind: input, shape index: {}]   ;;  %s14116_s7 = inlined_call_operand.vmem [shape: bf16[384,640], index: 7, kind: input, shape index: {}]   ;;  %s14117_s4 = inlined_call_operand.vmem [shape: f32[1,128], index: 4, kind: input, shape index: {}]   ;;  %s14118_s6 = inlined_call_operand.vmem [shape: f32[1,384], index: 6, kind: input, shape index: {}]   ;;  %s14119_s8 = inlined_call_operand.vmem [shape: f32[1,640], index: 8, kind: input, shape index: {}]   ;;  %s14120_s9 = inlined_call_operand.vmem [shape: bf16[304,640], index: 9, kind: output, shape index: {}]  }
   0x1   :  { %v9479_v0 = vld [vmem:[%s14111_s1 + $0x4] ss:$12 sps:$4 sm:$0xff]   ;;  %v9483_v2 = vld [vmem:[%s14111_s1] ss:$12 sps:$4 sm:$0xff]   ;;  %v9485_v4 = vld [vmem:[%s14111_s1 + $0x1c] ss:$12 sps:$4 sm:$0xff]  }
   0x2   :  { %v9481_v1 = vld [vmem:[%s14111_s1 + $0x184] ss:$12 sps:$4 sm:$0xff]   ;;  %1180 = vmatprep.subr.bf16.mxu1 %v9479_v0  ;;  %v9484_v3 = vld [vmem:[%s14111_s1 + $0x180] ss:$12 sps:$4 sm:$0xff]   ;;  %v9487_v5 = vld [vmem:[%s14111_s1 + $0x19c] ss:$12 sps:$4 sm:$0xff]  }
   0x3   :  { %1403 = vmatprep.subr.bf16.mxu0 %v9481_v1  ;;  %1181 = vmatpush1.bf16.msra.mxu1 %v9483_v2  ;;  %v9489_v6 = vld [vmem:[%s14111_s1 + $0x18] ss:$12 sps:$4 sm:$0xff]   ;;  %v9491_v8 = vld [vmem:[%s14111_s1 + $0x34] ss:$12 sps:$4 sm:$0xff]   ;;  %v9495_v10 = vld [vmem:[%s14111_s1 + $0x30] ss:$12 sps:$4 sm:$0xff]  }
   0x4   :  { %1404 = vmatpush1.bf16.msra.mxu0 %v9484_v3  ;;  %1182 = vmatprep.subr.bf16.mxu1 %v9485_v4  ;;  %v9490_v7 = vld [vmem:[%s14111_s1 + $0x198] ss:$12 sps:$4 sm:$0xff]   ;;  %v9493_v9 = vld [vmem:[%s14111_s1 + $0x1b4] ss:$12 sps:$4 sm:$0xff]   ;;  %v9496_v11 = vld [vmem:[%s14111_s1 + $0x1b0] ss:$12 sps:$4 sm:$0xff]  }
   0x5   :  { %1405 = vmatprep.subr.bf16.mxu0 %v9487_v5  ;;  %v9497_v12 = vld [vmem:[%s14111_s1 + $0x4c] ss:$12 sps:$4 sm:$0xff]   ;;  %v9501_v14 = vld [vmem:[%s14111_s1 + $0x48] ss:$12 sps:$4 sm:$0xff]   ;;  %v9503_v16 = vld [vmem:[%s14111_s1 + $0x64] ss:$12 sps:$4 sm:$0xff]  }
   0x6   :  { %v9499_v13 = vld [vmem:[%s14111_s1 + $0x1cc] ss:$12 sps:$4 sm:$0xff]   ;;  %v9502_v15 = vld [vmem:[%s14111_s1 + $0x1c8] ss:$12 sps:$4 sm:$0xff]   ;;  %v9505_v17 = vld [vmem:[%s14111_s1 + $0x1e4] ss:$12 sps:$4 sm:$0xff]  }
   0x7   :  { %1183 = vmatpush1.bf16.msra.mxu1 %v9489_v6  ;;  %v9507_v18 = vld [vmem:[%s14111_s1 + $0x60] ss:$12 sps:$4 sm:$0xff]   ;;  %v9509_v20 = vld [vmem:[%s14111_s1 + $0x7c] ss:$12 sps:$4 sm:$0xff]   ;;  %v9513_v22 = vld [vmem:[%s14111_s1 + $0x78] ss:$12 sps:$4 sm:$0xff]  }
   0x8   :  { %1406 = vmatpush1.bf16.msra.mxu0 %v9490_v7  ;;  %1184 = vmatprep.subr.bf16.mxu1 %v9491_v8  ;;  %v9508_v19 = vld [vmem:[%s14111_s1 + $0x1e0] ss:$12 sps:$4 sm:$0xff]   ;;  %v9511_v21 = vld [vmem:[%s14111_s1 + $0x1fc] ss:$12 sps:$4 sm:$0xff]   ;;  %v9514_v23 = vld [vmem:[%s14111_s1 + $0x1f8] ss:$12 sps:$4 sm:$0xff]  }
   0x9   :  { %1407 = vmatprep.subr.bf16.mxu0 %v9493_v9  ;;  %v9515_v24 = vld [vmem:[%s14111_s1 + $0x94] ss:$12 sps:$4 sm:$0xff]   ;;  %v9519_v26 = vld [vmem:[%s14111_s1 + $0x90] ss:$12 sps:$4 sm:$0xff]   ;;  %v9521_v28 = vld [vmem:[%s14111_s1 + $0xac] ss:$12 sps:$4 sm:$0xff]  }
   0xa   :  { %v9517_v25 = vld [vmem:[%s14111_s1 + $0x214] ss:$12 sps:$4 sm:$0xff]   ;;  %v9520_v27 = vld [vmem:[%s14111_s1 + $0x210] ss:$12 sps:$4 sm:$0xff]   ;;  %v9523_v29 = vld [vmem:[%s14111_s1 + $0x22c] ss:$12 sps:$4 sm:$0xff]  }
   0xb   :  { %1185 = vmatpush1.bf16.msra.mxu1 %v9495_v10  ;;  %v9525_v30 = vld [vmem:[%s14111_s1 + $0xa8] ss:$12 sps:$4 sm:$0xff]   ;;  %v9527_v32 = vld [vmem:[%s14111_s1 + $0xc4] ss:$12 sps:$4 sm:$0xff]   ;;  %v9531_v34 = vld [vmem:[%s14111_s1 + $0xc0] ss:$12 sps:$4 sm:$0xff]  }
   0xc   :  { %1408 = vmatpush1.bf16.msra.mxu0 %v9496_v11  ;;  %1186 = vmatprep.subr.bf16.mxu1 %v9497_v12  ;;  %v9526_v31 = vld [vmem:[%s14111_s1 + $0x228] ss:$12 sps:$4 sm:$0xff]   ;;  %v9529_v33 = vld [vmem:[%s14111_s1 + $0x244] ss:$12 sps:$4 sm:$0xff]   ;;  %v9532_v35 = vld [vmem:[%s14111_s1 + $0x240] ss:$12 sps:$4 sm:$0xff]  }
   0xd   :  { %1409 = vmatprep.subr.bf16.mxu0 %v9499_v13  ;;  %v9533_v36 = vld [vmem:[%s14111_s1 + $0xdc] ss:$12 sps:$4 sm:$0xff]   ;;  %v9537_v38 = vld [vmem:[%s14111_s1 + $0xd8] ss:$12 sps:$4 sm:$0xff]   ;;  %v9539_v40 = vld [vmem:[%s14111_s1 + $0xf4] ss:$12 sps:$4 sm:$0xff]  }
   0xe   :  { %v9535_v37 = vld [vmem:[%s14111_s1 + $0x25c] ss:$12 sps:$4 sm:$0xff]   ;;  %v9538_v39 = vld [vmem:[%s14111_s1 + $0x258] ss:$12 sps:$4 sm:$0xff]   ;;  %v9541_v41 = vld [vmem:[%s14111_s1 + $0x274] ss:$12 sps:$4 sm:$0xff]  }
   0xf   :  { %1187 = vmatpush1.bf16.msra.mxu1 %v9501_v14  ;;  %v9543_v42 = vld [vmem:[%s14111_s1 + $0xf0] ss:$12 sps:$4 sm:$0xff]   ;;  %v9545_v44 = vld [vmem:[%s14111_s1 + $0x10c] ss:$12 sps:$4 sm:$0xff]   ;;  %v41_v49 = vld [vmem:[%s14112_s0 + $0x40] sm:$0xff] }
  0x10   :  { %1410 = vmatpush1.bf16.msra.mxu0 %v9502_v15  ;;  %1188 = vmatprep.subr.bf16.mxu1 %v9503_v16  ;;  %v9544_v43 = vld [vmem:[%s14111_s1 + $0x270] ss:$12 sps:$4 sm:$0xff]   ;;  %v9547_v45 = vld [vmem:[%s14111_s1 + $0x28c] ss:$12 sps:$4 sm:$0xff]   ;;  %v9549_v50 = vld [vmem:[%s14111_s1 + $0x108] ss:$12 sps:$4 sm:$0xff]  }
  0x11   :  { %1411 = vmatprep.subr.bf16.mxu0 %v9505_v17  ;;  %v34_v46 = vld [vmem:[%s14112_s0 + $0x8] sm:$0xff]  ;;  %v39_v47 = vld [vmem:[%s14112_s0 + $0x30] sm:$0xff]  ;;  %v36_v48 = vld [vmem:[%s14112_s0 + $0x18] sm:$0xff] }
  0x12   :  { %v9550_v51 = vld [vmem:[%s14111_s1 + $0x288] ss:$12 sps:$4 sm:$0xff]   ;;  %v9551_v52 = vld [vmem:[%s14111_s1 + $0x124] ss:$12 sps:$4 sm:$0xff]   ;;  %v10453_v53 = vpack.c.bf16 %v39_v47, %v34_v46  ;;  %v10455_v54 = vpack.c.bf16 %v41_v49, %v36_v48  ;;  %v9555_v56 = vld [vmem:[%s14111_s1 + $0x120] ss:$12 sps:$4 sm:$0xff]  }
  0x13   :  { %1189 = vmatpush1.bf16.msra.mxu1 %v9507_v18  ;;  %v9553_v55 = vld [vmem:[%s14111_s1 + $0x2a4] ss:$12 sps:$4 sm:$0xff]   ;;  %v9556_v57 = vld [vmem:[%s14111_s1 + $0x2a0] ss:$12 sps:$4 sm:$0xff]   ;;  %v9557_v58 = vld [vmem:[%s14111_s1 + $0x13c] ss:$12 sps:$4 sm:$0xff]  }
  0x14   :  { %1412 = vmatpush1.bf16.msra.mxu0 %v9508_v19  ;;  %1190 = vmatprep.subr.bf16.mxu1 %v9509_v20  ;;  %v9559_v59 = vld [vmem:[%s14111_s1 + $0x2bc] ss:$12 sps:$4 sm:$0xff]   ;;  %v9561_v60 = vld [vmem:[%s14111_s1 + $0x138] ss:$12 sps:$4 sm:$0xff]   ;;  %v9563_v62 = vld [vmem:[%s14111_s1 + $0x154] ss:$12 sps:$4 sm:$0xff]  }
  0x15   :  { %1413 = vmatprep.subr.bf16.mxu0 %v9511_v21  ;;  %1212 = vmatprep.mubr.bf16.mxu1 %v10453_v53  ;;  %v9562_v61 = vld [vmem:[%s14111_s1 + $0x2b8] ss:$12 sps:$4 sm:$0xff]   ;;  %v9565_v63 = vld [vmem:[%s14111_s1 + $0x2d4] ss:$12 sps:$4 sm:$0xff]   ;;  %v9567_v0 = vld [vmem:[%s14111_s1 + $0x150] ss:$12 sps:$4 sm:$0xff]  }
  0x16   :  { %1435 = vmatprep.mubr.bf16.mxu0 %v10455_v54  ;;  %v9568_v1 = vld [vmem:[%s14111_s1 + $0x2d0] ss:$12 sps:$4 sm:$0xff]   ;;  %v9569_v2 = vld [vmem:[%s14111_s1 + $0x16c] ss:$12 sps:$4 sm:$0xff]   ;;  %v9573_v4 = vld [vmem:[%s14111_s1 + $0x168] ss:$12 sps:$4 sm:$0xff]  }
  0x17   :  { %1191 = vmatpush1.bf16.msra.mxu1 %v9513_v22  ;;  %v9571_v3 = vld [vmem:[%s14111_s1 + $0x2ec] ss:$12 sps:$4 sm:$0xff]   ;;  %v9574_v5 = vld [vmem:[%s14111_s1 + $0x2e8] ss:$12 sps:$4 sm:$0xff]   ;;  %v33_v6 = vld [vmem:[%s14112_s0] sm:$0xff]  ;;  %v14121_v18 = vmov 0  }
  0x18   :  { %1414 = vmatpush1.bf16.msra.mxu0 %v9514_v23  ;;  %1192 = vmatprep.subr.bf16.mxu1 %v9515_v24  ;;  %v38_v7 = vld [vmem:[%s14112_s0 + $0x28] sm:$0xff]  ;;  %v35_v8 = vld [vmem:[%s14112_s0 + $0x10] sm:$0xff]  ;;  %v40_v9 = vld [vmem:[%s14112_s0 + $0x38] sm:$0xff] }
  0x19   :  { %1415 = vmatprep.subr.bf16.mxu0 %v9517_v25  ;;  %v44_v10 = vld [vmem:[%s14112_s0 + $0x58] sm:$0xff]  ;;  %v49_v11 = vld [vmem:[%s14112_s0 + $0x80] sm:$0xff]  ;;  %v46_v12 = vld [vmem:[%s14112_s0 + $0x68] sm:$0xff]  ;;  %v10528_v14 = vpack.c.bf16 %v38_v7, %v33_v6  ;;  %v10530_v15 = vpack.c.bf16 %v40_v9, %v35_v8 }
  0x1a   :  { %v51_v13 = vld [vmem:[%s14112_s0 + $0x90] sm:$0xff]  ;;  %v10535_v17 = vpack.c.bf16 %v49_v11, %v44_v10  ;;  %v48_v21 = vld [vmem:[%s14112_s0 + $0x78] sm:$0xff]  ;;  %v45_v22 = vld [vmem:[%s14112_s0 + $0x60] sm:$0xff] }
  0x1b   :  { %1193 = vmatpush1.bf16.msra.mxu1 %v9519_v26  ;;  %v9575_v16 = vld [vmem:[%s14111_s1 + $0x8] ss:$12 sps:$4 sm:$0xff]   ;;  %v10538_v19 = vpack.c.bf16 %v51_v13, %v46_v12  ;;  %v9576_v24 = vld [vmem:[%s14111_s1 + $0x20] ss:$12 sps:$4 sm:$0xff]   ;;  %v68_v49 = vld [vmem:[%s14112_s0 + $0x118] sm:$0xff] }
  0x1c   :  { %1416 = vmatpush1.bf16.msra.mxu0 %v9520_v27  ;;  %1194 = vmatprep.subr.bf16.mxu1 %v9521_v28  ;;  %v43_v20 = vld [vmem:[%s14112_s0 + $0x50] sm:$0xff]  ;;  %v50_v23 = vld [vmem:[%s14112_s0 + $0x88] sm:$0xff]  ;;  %v56_v27 = vld [vmem:[%s14112_s0 + $0xb8] sm:$0xff] }
  0x1d   :  { %1417 = vmatprep.subr.bf16.mxu0 %v9523_v29  ;;  %v54_v25 = vld [vmem:[%s14112_s0 + $0xa8] sm:$0xff]  ;;  %v59_v26 = vld [vmem:[%s14112_s0 + $0xd0] sm:$0xff]  ;;  %v61_v28 = vld [vmem:[%s14112_s0 + $0xe0] sm:$0xff]  ;;  %v10572_v29 = vpack.c.bf16 %v48_v21, %v43_v20 }
  0x1e   :  { %v9579_v47 = vld [vmem:[%s14111_s1 + $0x68] ss:$12 sps:$4 sm:$0xff]   ;;  %v9582_v8 = vld [vmem:[%s14111_s1 + $0xb0] ss:$12 sps:$4 sm:$0xff]   ;;  %v85_v21 = vld [vmem:[%s14112_s0 + $0x1a0] sm:$0xff] }
  0x1f   :  { %1195 = vmatpush1.bf16.msra.mxu1 %v9525_v30  ;;  %v10574_v30 = vpack.c.bf16 %v50_v23, %v45_v22  ;;  %v63_v48 = vld [vmem:[%s14112_s0 + $0xf0] sm:$0xff]  ;;  %v86_v6 = vld [vmem:[%s14112_s0 + $0x1a8] sm:$0xff]  ;;  %v88_v20 = vld [vmem:[%s14112_s0 + $0x1b8] sm:$0xff] }
  0x20   :  { %1418 = vmatpush1.bf16.msra.mxu0 %v9526_v31  ;;  %1196 = vmatprep.subr.bf16.mxu1 %v9527_v32  ;;  %v10576_v31 = vpack.c.bf16 %v59_v26, %v54_v25  ;;  %v10578_v32 = vpack.c.bf16 %v61_v28, %v56_v27  ;;  %v91_v7 = vld [vmem:[%s14112_s0 + $0x1d0] sm:$0xff]  ;;  %v90_v22 = vld [vmem:[%s14112_s0 + $0x1c8] sm:$0xff]  ;;  %v96_v27 = vld [vmem:[%s14112_s0 + $0x1f8] sm:$0xff] }
  0x21   :  { %1419 = vmatprep.subr.bf16.mxu0 %v9529_v33  ;;  %v9577_v33 = vld [vmem:[%s14111_s1 + $0x38] ss:$12 sps:$4 sm:$0xff]   ;;  %v10710_v12 = vpack.c.bf16 %v91_v7, %v86_v6  ;;  %v9583_v13 = vld [vmem:[%s14111_s1 + $0xc8] ss:$12 sps:$4 sm:$0xff]   ;;  %v9588_v23 = vld [vmem:[%s14111_s1 + $0x300] ss:$12 sps:$4 sm:$0xff]  }
  0x22   :  { %v94_v25 = vld [vmem:[%s14112_s0 + $0x1e8] sm:$0xff]  ;;  %v99_v26 = vld [vmem:[%s14112_s0 + $0x210] sm:$0xff]  ;;  %v101_v28 = vld [vmem:[%s14112_s0 + $0x220] sm:$0xff] }
  0x23   :  { %1197 = vmatpush1.bf16.msra.mxu1 %v9531_v34  ;;  %v53_v34 = vld [vmem:[%s14112_s0 + $0xa0] sm:$0xff]  ;;  %v108_v6 = vld [vmem:[%s14112_s0 + $0x258] sm:$0xff] }
  0x24   :  { %1420 = vmatpush1.bf16.msra.mxu0 %v9532_v35  ;;  %1198 = vmatprep.subr.bf16.mxu1 %v9533_v36  ;;  %v58_v35 = vld [vmem:[%s14112_s0 + $0xc8] sm:$0xff]  ;;  %v55_v36 = vld [vmem:[%s14112_s0 + $0xb0] sm:$0xff]  ;;  %v105_v7 = vld [vmem:[%s14112_s0 + $0x240] sm:$0xff] }
  0x25   :  { %1421 = vmatprep.subr.bf16.mxu0 %v9535_v37  ;;  %v60_v37 = vld [vmem:[%s14112_s0 + $0xd8] sm:$0xff] }
  0x27   :  { %1199 = vmatpush1.bf16.msra.mxu1 %v9537_v38  ;;  %v64_v38 = vld [vmem:[%s14112_s0 + $0xf8] sm:$0xff] }
  0x28   :  { %1422 = vmatpush1.bf16.msra.mxu0 %v9538_v39  ;;  %1200 = vmatprep.subr.bf16.mxu1 %v9539_v40  ;;  %v69_v39 = vld [vmem:[%s14112_s0 + $0x120] sm:$0xff]  ;;  %v66_v40 = vld [vmem:[%s14112_s0 + $0x108] sm:$0xff] }
  0x29   :  { %1423 = vmatprep.subr.bf16.mxu0 %v9541_v41  ;;  %v71_v41 = vld [vmem:[%s14112_s0 + $0x130] sm:$0xff] }
  0x2a   :  { %v10622_v46 = vpack.c.bf16 %v71_v41, %v66_v40  ;;  %v9592_v40 = vld [vmem:[%s14111_s1 + $0x318] ss:$12 sps:$4 sm:$0xff]  }
  0x2b   :  { %1201 = vmatpush1.bf16.msra.mxu1 %v9543_v42  ;;  %v9578_v42 = vld [vmem:[%s14111_s1 + $0x50] ss:$12 sps:$4 sm:$0xff]   ;;  %v93_v41 = vld [vmem:[%s14112_s0 + $0x1e0] sm:$0xff] }
  0x2c   :  { %1424 = vmatpush1.bf16.msra.mxu0 %v9544_v43  ;;  %1202 = vmatprep.subr.bf16.mxu1 %v9545_v44  ;;  %v10616_v43 = vpack.c.bf16 %v58_v35, %v53_v34  ;;  %v10618_v44 = vpack.c.bf16 %v60_v37, %v55_v36  ;;  %v10756_v35 = vpack.c.bf16 %v90_v22, %v85_v21  ;;  %v116_v21 = vld [vmem:[%s14112_s0 + $0x298] sm:$0xff]  ;;  %v121_v22 = vld [vmem:[%s14112_s0 + $0x2c0] sm:$0xff] }
  0x2d   :  { %1425 = vmatprep.subr.bf16.mxu0 %v9547_v45  ;;  %v10620_v45 = vpack.c.bf16 %v69_v39, %v64_v38  ;;  %v10758_v36 = vpack.c.bf16 %v99_v26, %v94_v25  ;;  %v10760_v37 = vpack.c.bf16 %v101_v28, %v96_v27  ;;  %v9594_v38 = vld [vmem:[%s14111_s1 + $0x31c] ss:$12 sps:$4 sm:$0xff]   ;;  %v9585_v39 = vld [vmem:[%s14111_s1 + $0xf8] ss:$12 sps:$4 sm:$0xff]  }
  0x2e   :  { %v9607_v25 = vld [vmem:[%s14111_s1 + $0x37c] ss:$12 sps:$4 sm:$0xff]  }
  0x2f   :  { %1203 = vmatpush1.bf16.msra.mxu1 %v9549_v50  ;;  %v65_v50 = vld [vmem:[%s14112_s0 + $0x100] sm:$0xff] }
  0x30   :  { %1426 = vmatpush1.bf16.msra.mxu0 %v9550_v51  ;;  %1204 = vmatprep.subr.bf16.mxu1 %v9551_v52  ;;  %v70_v51 = vld [vmem:[%s14112_s0 + $0x128] sm:$0xff] }
  0x31   :  { %1427 = vmatprep.subr.bf16.mxu0 %v9553_v55  ;;  %v74_v52 = vld [vmem:[%s14112_s0 + $0x148] sm:$0xff]  ;;  %v79_v55 = vld [vmem:[%s14112_s0 + $0x170] sm:$0xff] }
  0x33   :  { %1205 = vmatpush1.bf16.msra.mxu1 %v9555_v56  ;;  %v76_v56 = vld [vmem:[%s14112_s0 + $0x158] sm:$0xff] }
  0x34   :  { %1428 = vmatpush1.bf16.msra.mxu0 %v9556_v57  ;;  %1206 = vmatprep.subr.bf16.mxu1 %v9557_v58  ;;  %v81_v57 = vld [vmem:[%s14112_s0 + $0x180] sm:$0xff] }
  0x35   :  { %1429 = vmatprep.subr.bf16.mxu0 %v9559_v59  ;;  %v9580_v58 = vld [vmem:[%s14111_s1 + $0x80] ss:$12 sps:$4 sm:$0xff]   ;;  %v10660_v59 = vpack.c.bf16 %v68_v49, %v63_v48  ;;  %v95_v48 = vld [vmem:[%s14112_s0 + $0x1f0] sm:$0xff]  ;;  %v100_v49 = vld [vmem:[%s14112_s0 + $0x218] sm:$0xff] }
  0x37   :  { %1207 = vmatpush1.bf16.msra.mxu1 %v9561_v60  ;;  %v10662_v60 = vpack.c.bf16 %v70_v51, %v65_v50  ;;  %v104_v50 = vld [vmem:[%s14112_s0 + $0x238] sm:$0xff]  ;;  %v109_v51 = vld [vmem:[%s14112_s0 + $0x260] sm:$0xff] }
  0x38   :  { %1430 = vmatpush1.bf16.msra.mxu0 %v9562_v61  ;;  %1208 = vmatprep.subr.bf16.mxu1 %v9563_v62  ;;  %v10664_v61 = vpack.c.bf16 %v79_v55, %v74_v52  ;;  %v10666_v62 = vpack.c.bf16 %v81_v57, %v76_v56  ;;  %v106_v52 = vld [vmem:[%s14112_s0 + $0x248] sm:$0xff]  ;;  %v111_v55 = vld [vmem:[%s14112_s0 + $0x270] sm:$0xff] }
  0x39   :  { %1431 = vmatprep.subr.bf16.mxu0 %v9565_v63  ;;  %v9581_v63 = vld [vmem:[%s14111_s1 + $0x98] ss:$12 sps:$4 sm:$0xff]   ;;  %v9586_v56 = vld [vmem:[%s14111_s1 + $0x110] ss:$12 sps:$4 sm:$0xff]  }
  0x3a   :  { %v9595_v57 = vld [vmem:[%s14111_s1 + $0x330] ss:$12 sps:$4 sm:$0xff]  }
  0x3b   :  { %1209 = vmatpush1.bf16.msra.mxu1 %v9567_v0  ;;  %v73_v0 = vld [vmem:[%s14112_s0 + $0x140] sm:$0xff] }
  0x3c   :  { %1432 = vmatpush1.bf16.msra.mxu0 %v9568_v1  ;;  %1210 = vmatprep.subr.bf16.mxu1 %v9569_v2  ;;  %v78_v1 = vld [vmem:[%s14112_s0 + $0x168] sm:$0xff]  ;;  %v75_v2 = vld [vmem:[%s14112_s0 + $0x150] sm:$0xff] }
  0x3d   :  { %1433 = vmatprep.subr.bf16.mxu0 %v9571_v3  ;;  %v80_v3 = vld [vmem:[%s14112_s0 + $0x178] sm:$0xff]  ;;  %v10704_v9 = vpack.c.bf16 %v78_v1, %v73_v0  ;;  %v10815_v0 = vpack.c.bf16 %v100_v49, %v95_v48  ;;  %v10817_v1 = vpack.c.bf16 %v109_v51, %v104_v50  ;;  %v9609_v48 = vld [vmem:[%s14111_s1 + $0x394] ss:$12 sps:$4 sm:$0x3f]  }
  0x3e   :  { %v10706_v10 = vpack.c.bf16 %v80_v3, %v75_v2  ;;  %v10819_v2 = vpack.c.bf16 %v111_v55, %v106_v52  ;;  %v9587_v3 = vld [vmem:[%s14111_s1 + $0x128] ss:$12 sps:$4 sm:$0xff]   ;;  %v9611_v49 = vld [vmem:[%s14111_s1 + $0x390] ss:$12 sps:$4 sm:$0x3f]   ;;  %v129_v51 = vld [vmem:[%s14112_s0 + $0x300] sm:$0xff] }
  0x3f   :  { %1211 = vmatpush1.bf16.msra.mxu1 %v9573_v4  ;;  %v84_v4 = vld [vmem:[%s14112_s0 + $0x198] sm:$0xff]  ;;  %v126_v52 = vld [vmem:[%s14112_s0 + $0x2e8] sm:$0xff]  ;;  %v131_v55 = vld [vmem:[%s14112_s0 + $0x310] sm:$0xff] }
  0x40   :  { %1434 = vmatpush1.bf16.msra.mxu0 %v9574_v5  ;;  %1849 = vmatprep.subr.bf16.mxu1 %v14121_v18  ;;  %v89_v5 = vld [vmem:[%s14112_s0 + $0x1c0] sm:$0xff]  ;;  %v124_v50 = vld [vmem:[%s14112_s0 + $0x2d8] sm:$0xff] }
  0x41   :  { %v10708_v11 = vpack.c.bf16 %v89_v5, %v84_v4  ;;  %v9599_v4 = vld [vmem:[%s14111_s1 + $0x348] ss:$12 sps:$4 sm:$0xff]  }
  0x42   :  { %1213 = vmatmul.mubr.bf16.vlgmr.msra.gmra.mrb[0].mxu1 %v10528_v14  ;;  %v103_v5 = vld [vmem:[%s14112_s0 + $0x230] sm:$0xff] }
  0x43   :  { %1436 = vmatmul.mubr.bf16.vlgmr.msra.gmra.mrb[0].mxu0 %v10530_v15  ;;  %1850 = vmatpush1.bf16.msra.mxu1 %v9575_v16  ;;  %v83_v16 = vld [vmem:[%s14112_s0 + $0x190] sm:$0xff]  ;;  %v10869_v26 = vpack.c.bf16 %v108_v6, %v103_v5  ;;  %v10930_v5 = vpack.c.bf16 %v131_v55, %v126_v52 }
  0x44   :  { %1222 = vmatprep.mubr.bf16.mxu1 %v10535_v17  ;;  %1445 = vmatprep.mubr.bf16.mxu0 %v10538_v19  ;;  %v10754_v34 = vpack.c.bf16 %v88_v20, %v83_v16  ;;  %v114_v16 = vld [vmem:[%s14112_s0 + $0x288] sm:$0xff]  ;;  %v119_v20 = vld [vmem:[%s14112_s0 + $0x2b0] sm:$0xff] }
  0x45   :  { %1851 = vmatprep.subr.bf16.mxu1 %v14121_v18  ;;  %v10873_v28 = vpack.c.bf16 %v119_v20, %v114_v16  ;;  %14183 = vst [vmem:[#allocation4_spill] sm:$0xff] %v10930_v5  ;;  %v123_v6 = vld [vmem:[%s14112_s0 + $0x2d0] sm:$0xff]  ;;  %v134_v16 = vld [vmem:[%s14112_s0 + $0x328] sm:$0xff] }
  0x46   :  { %v139_v20 = vld [vmem:[%s14112_s0 + $0x350] sm:$0xff] }
  0x47   :  { %1852 = vmatpush1.bf16.msra.mxu1 %v9576_v24  ;;  %v9590_v24 = vld [vmem:[%s14111_s1 + $0x304] ss:$12 sps:$4 sm:$0xff]  }
  0x48   :  { %1853 = vmatprep.subr.bf16.mxu1 %v14121_v18  ;;  %1626 = vmatprep.subr.bf16.mxu0 %v9590_v24  ;;  %v9602_v24 = vld [vmem:[%s14111_s1 + $0x360] ss:$12 sps:$4 sm:$0xff]  }
  0x49   :  { %1627 = vmatpush1.bf16.msra.mxu0 %v9588_v23  ;;  %v9591_v23 = vld [vmem:[%s14111_s1 + $0x140] ss:$12 sps:$4 sm:$0xff]  }
  0x4a   :  { %1223 = vmatmul.mubr.bf16.gmra.mrb[4].mxu1 %v10572_v29  ;;  %1628 = vmatprep.subr.bf16.mxu0 %v9594_v38  ;;  %v9598_v38 = vld [vmem:[%s14111_s1 + $0x158] ss:$12 sps:$4 sm:$0xff]  }
  0x4b   :  { %1446 = vmatmul.mubr.bf16.gmra.mrb[4].mxu0 %v10574_v30  ;;  %1232 = vmatprep.mubr.bf16.mxu1 %v10576_v31 }
  0x4c   :  { %1455 = vmatprep.mubr.bf16.mxu0 %v10578_v32  ;;  %1854 = vmatpush1.bf16.msra.mxu1 %v9577_v33  ;;  %v9584_v33 = vld [vmem:[%s14111_s1 + $0xe0] ss:$12 sps:$4 sm:$0xff]  }
  0x4d   :  { %1855 = vmatprep.subr.bf16.mxu1 %v14121_v18  ;;  %1629 = vmatpush1.bf16.msra.mxu0 %v9592_v40  ;;  %v113_v40 = vld [vmem:[%s14112_s0 + $0x280] sm:$0xff] }
  0x50   :  { %1856 = vmatpush1.bf16.msra.mxu1 %v9578_v42  ;;  %v98_v42 = vld [vmem:[%s14112_s0 + $0x208] sm:$0xff] }
  0x51   :  { %1857 = vmatprep.subr.bf16.mxu1 %v14121_v18 }
  0x52   :  { %1233 = vmatmul.mubr.bf16.gmra.mrb[8].mxu1 %v10616_v43 }
  0x53   :  { %1456 = vmatmul.mubr.bf16.gmra.mrb[8].mxu0 %v10618_v44  ;;  %1242 = vmatprep.mubr.bf16.mxu1 %v10620_v45 }
  0x54   :  { %1465 = vmatprep.mubr.bf16.mxu0 %v10622_v46  ;;  %1858 = vmatpush1.bf16.msra.mxu1 %v9579_v47  ;;  %v9597_v47 = vld [vmem:[%s14111_s1 + $0x334] ss:$12 sps:$4 sm:$0xff]  }
  0x55   :  { %1859 = vmatprep.subr.bf16.mxu1 %v14121_v18  ;;  %1630 = vmatprep.subr.bf16.mxu0 %v9597_v47  ;;  %v120_v47 = vld [vmem:[%s14112_s0 + $0x2b8] sm:$0xff] }
  0x56   :  { %1631 = vmatpush1.bf16.msra.mxu0 %v9595_v57  ;;  %v1172_v57 = vsel %vm1170_vm0, %v9611_v49, 0  ;;  %v146_v49 = vld [vmem:[%s14112_s0 + $0x388] sm:$0xff] }
  0x58   :  { %1860 = vmatpush1.bf16.msra.mxu1 %v9580_v58  ;;  %v9601_v58 = vld [vmem:[%s14111_s1 + $0x34c] ss:$12 sps:$4 sm:$0xff]  }
  0x59   :  { %1861 = vmatprep.subr.bf16.mxu1 %v14121_v18  ;;  %1632 = vmatprep.subr.bf16.mxu0 %v9601_v58 }
  0x5a   :  { %1243 = vmatmul.mubr.bf16.gmra.mrb[12].mxu1 %v10660_v59  ;;  %1633 = vmatpush1.bf16.msra.mxu0 %v9599_v4  ;;  %v10928_v4 = vpack.c.bf16 %v129_v51, %v124_v50  ;;  %v151_v50 = vld [vmem:[%s14112_s0 + $0x3b0] sm:$0xff] }
  0x5b   :  { %1466 = vmatmul.mubr.bf16.gmra.mrb[12].mxu0 %v10662_v60  ;;  %1252 = vmatprep.mubr.bf16.mxu1 %v10664_v61 }
  0x5c   :  { %1475 = vmatprep.mubr.bf16.mxu0 %v10666_v62  ;;  %1862 = vmatpush1.bf16.msra.mxu1 %v9581_v63  ;;  %v10813_v63 = vpack.c.bf16 %v98_v42, %v93_v41  ;;  %v118_v41 = vld [vmem:[%s14112_s0 + $0x2a8] sm:$0xff]  ;;  %v115_v42 = vld [vmem:[%s14112_s0 + $0x290] sm:$0xff] }
  0x5d   :  { %1863 = vmatprep.subr.bf16.mxu1 %v14121_v18  ;;  %v10924_v58 = vpack.c.bf16 %v118_v41, %v113_v40  ;;  %v138_v40 = vld [vmem:[%s14112_s0 + $0x348] sm:$0xff]  ;;  %v135_v41 = vld [vmem:[%s14112_s0 + $0x330] sm:$0xff] }
  0x60   :  { %1864 = vmatpush1.bf16.msra.mxu1 %v9582_v8  ;;  %v110_v8 = vld [vmem:[%s14112_s0 + $0x268] sm:$0xff] }
  0x61   :  { %1865 = vmatprep.subr.bf16.mxu1 %v14121_v18  ;;  %v10871_v27 = vpack.c.bf16 %v110_v8, %v105_v7  ;;  %v128_v7 = vld [vmem:[%s14112_s0 + $0x2f8] sm:$0xff]  ;;  %v125_v8 = vld [vmem:[%s14112_s0 + $0x2e0] sm:$0xff] }
  0x62   :  { %1253 = vmatmul.mubr.bf16.gmra.mrb[16].mxu1 %v10704_v9 }
  0x63   :  { %1476 = vmatmul.mubr.bf16.gmra.mrb[16].mxu0 %v10706_v10  ;;  %1262 = vmatprep.mubr.bf16.mxu1 %v10708_v11 }
  0x64   :  { %1485 = vmatprep.mubr.bf16.mxu0 %v10710_v12  ;;  %1866 = vmatpush1.bf16.msra.mxu1 %v9583_v13  ;;  %v9604_v13 = vld [vmem:[%s14111_s1 + $0x364] ss:$12 sps:$4 sm:$0xff]  }
  0x65   :  { %1867 = vmatprep.subr.bf16.mxu1 %v14121_v18  ;;  %1634 = vmatprep.subr.bf16.mxu0 %v9604_v13  ;;  %v130_v13 = vld [vmem:[%s14112_s0 + $0x308] sm:$0xff] }
  0x66   :  { %1635 = vmatpush1.bf16.msra.mxu0 %v9602_v24  ;;  %v10964_v24 = vpack.c.bf16 %v130_v13, %v125_v8  ;;  %v150_v8 = vld [vmem:[%s14112_s0 + $0x3a8] sm:$0xff] }
  0x67   :  { %1636 = vmatprep.subr.bf16.mxu0 %v9607_v25  ;;  %v10966_v25 = vpack.c.bf16 %v139_v20, %v134_v16  ;;  %v154_v13 = vld [vmem:[%s14112_s0 + $0x3c8] sm:$0xff]  ;;  %v159_v16 = vld [vmem:[%s14112_s0 + $0x3f0] sm:$0xff]  ;;  %v156_v20 = vld [vmem:[%s14112_s0 + $0x3d8] sm:$0xff] }
  0x68   :  { %1868 = vmatpush1.bf16.msra.mxu1 %v9584_v33  ;;  %v10875_v33 = vpack.c.bf16 %v121_v22, %v116_v21  ;;  %v136_v21 = vld [vmem:[%s14112_s0 + $0x338] sm:$0xff]  ;;  %v141_v22 = vld [vmem:[%s14112_s0 + $0x360] sm:$0xff]  ;;  %14184 = vst [vmem:[#allocation5_spill] sm:$0xff] %v10964_v24 }
  0x69   :  { %1869 = vmatprep.subr.bf16.mxu1 %v14121_v18 }
  0x6a   :  { %1263 = vmatmul.mubr.bf16.gmra.mrb[20].mxu1 %v10754_v34  ;;  %14181 = vst [vmem:[#allocation2_spill] sm:$0xff] %v10875_v33 }
  0x6b   :  { %1486 = vmatmul.mubr.bf16.gmra.mrb[20].mxu0 %v10756_v35  ;;  %1272 = vmatprep.mubr.bf16.mxu1 %v10758_v36 }
  0x6c   :  { %1495 = vmatprep.mubr.bf16.mxu0 %v10760_v37  ;;  %1870 = vmatpush1.bf16.msra.mxu1 %v9585_v39  ;;  %v9605_v39 = vld [vmem:[%s14111_s1 + $0x378] ss:$12 sps:$4 sm:$0xff]  }
  0x6d   :  { %1871 = vmatprep.subr.bf16.mxu1 %v14121_v18  ;;  %1637 = vmatpush1.bf16.msra.mxu0 %v9605_v39  ;;  %v133_v39 = vld [vmem:[%s14112_s0 + $0x320] sm:$0xff] }
  0x6e   :  { %7617 = vmatprep.subr.msk.bf16.mxu0 %vm1170_vm0, %v9609_v48  ;;  %v149_v48 = vld [vmem:[%s14112_s0 + $0x3a0] sm:$0xff]  ;;  %v10998_v51 = vpack.c.bf16 %v138_v40, %v133_v39  ;;  %v11038_v40 = vpack.c.bf16 %v159_v16, %v154_v13 }
  0x70   :  { %1872 = vmatpush1.bf16.msra.mxu1 %v9586_v56  ;;  %v9608_v56 = vld [vmem:[%s14111_s1 + $0x170] ss:$12 sps:$4 sm:$0xff]  }
  0x71   :  { %1873 = vmatprep.subr.bf16.mxu1 %v14121_v18  ;;  %1639 = vmatpush1.bf16.msra.mxu0 %v1172_v57  ;;  %v143_v57 = vld [vmem:[%s14112_s0 + $0x370] sm:$0xff] }
  0x72   :  { %1273 = vmatmul.mubr.bf16.gmra.mrb[24].mxu1 %v10813_v63  ;;  %2774 = vmatprep.subr.bf16.mxu0 %v14121_v18 }
  0x73   :  { %1496 = vmatmul.mubr.bf16.gmra.mrb[24].mxu0 %v10815_v0  ;;  %1282 = vmatprep.mubr.bf16.mxu1 %v10817_v1 }
  0x74   :  { %1505 = vmatprep.mubr.bf16.mxu0 %v10819_v2  ;;  %1874 = vmatpush1.bf16.msra.mxu1 %v9587_v3  ;;  %v10926_v3 = vpack.c.bf16 %v120_v47, %v115_v42  ;;  %v140_v42 = vld [vmem:[%s14112_s0 + $0x358] sm:$0xff] }
  0x75   :  { %1875 = vmatprep.subr.bf16.mxu1 %v14121_v18  ;;  %v144_v47 = vld [vmem:[%s14112_s0 + $0x378] sm:$0xff]  ;;  %v11000_v52 = vpack.c.bf16 %v140_v42, %v135_v41  ;;  %v153_v42 = vld [vmem:[%s14112_s0 + $0x3c0] sm:$0xff] }
  0x76   :  { %14182 = vst [vmem:[#allocation3_spill] sm:$0xff] %v10926_v3  ;;  %v11002_v55 = vpack.c.bf16 %v149_v48, %v144_v47  ;;  %v158_v47 = vld [vmem:[%s14112_s0 + $0x3e8] sm:$0xff]  ;;  %v155_v48 = vld [vmem:[%s14112_s0 + $0x3d0] sm:$0xff] }
  0x77   :  { %14186 = vst [vmem:[#allocation7_spill] sm:$0xff] %v11000_v52 }
  0x78   :  { %1876 = vmatpush1.bf16.msra.mxu1 %v9591_v23  ;;  %v10962_v23 = vpack.c.bf16 %v128_v7, %v123_v6  ;;  %v148_v6 = vld [vmem:[%s14112_s0 + $0x398] sm:$0xff]  ;;  %v145_v7 = vld [vmem:[%s14112_s0 + $0x380] sm:$0xff] }
  0x79   :  { %1877 = vmatprep.subr.bf16.mxu1 %v14121_v18  ;;  %v11036_v39 = vpack.c.bf16 %v150_v8, %v145_v7  ;;  %v171_v7 = vld [vmem:[%s14112_s0 + $0x450] sm:$0xff]  ;;  %v11070_v8 = vpack.c.bf16 %v158_v47, %v153_v42  ;;  %v165_v42 = vld [vmem:[%s14112_s0 + $0x420] sm:$0xff]  ;;  %v170_v47 = vld [vmem:[%s14112_s0 + $0x448] sm:$0xff] }
  0x7a   :  { %1283 = vmatmul.mubr.bf16.gmra.mrb[28].mxu1 %v10869_v26 }
  0x7b   :  { %1506 = vmatmul.mubr.bf16.gmra.mrb[28].mxu0 %v10871_v27  ;;  %1292 = vmatprep.mubr.bf16.mxu1 %v10873_v28  ;;  %14188 = vst [vmem:[#allocation9_spill] sm:$0xff] %v11036_v39 }
  0x7c   :  { %1515 = vmatprep.mubr.bf16.mxu0 %v10875_v33  ;;  %1878 = vmatpush1.bf16.msra.mxu1 %v9598_v38  ;;  %v10968_v38 = vpack.c.bf16 %v141_v22, %v136_v21  ;;  %v161_v21 = vld [vmem:[%s14112_s0 + $0x400] sm:$0xff]  ;;  %v11034_v22 = vpack.c.bf16 %v148_v6, %v143_v57  ;;  %v166_v6 = vld [vmem:[%s14112_s0 + $0x428] sm:$0xff] }
  0x7d   :  { %1879 = vmatprep.subr.bf16.mxu1 %v14121_v18  ;;  %v11040_v41 = vpack.c.bf16 %v161_v21, %v156_v20  ;;  %v169_v57 = vld [vmem:[%s14112_s0 + $0x440] sm:$0xff]  ;;  %v11076_v20 = vpack.c.bf16 %v171_v7, %v166_v6  ;;  %v163_v21 = vld [vmem:[%s14112_s0 + $0x410] sm:$0xff]  ;;  %v11108_v7 = vpack.c.bf16 %v170_v47, %v165_v42  ;;  %v184_v42 = vld [vmem:[%s14112_s0 + $0x4b8] sm:$0xff] }
  0x7e   :  { %14185 = vst [vmem:[#allocation6_spill] sm:$0xff] %v10968_v38  ;;  %v189_v47 = vld [vmem:[%s14112_s0 + $0x4e0] sm:$0xff] }
  0x7f   :  { %14189 = vst [vmem:[#allocation10_spill] sm:$0xff] %v11040_v41  ;;  %14191 = vst [vmem:[#allocation12_spill] sm:$0xff] %v11076_v20  ;;  %v213_v33 = vld [vmem:[%s14112_s0 + $0x5a0] sm:$0xff] }
  0x80   :  { %1880 = vmatpush1.bf16.msra.mxu1 %v9608_v56  ;;  %v11004_v56 = vpack.c.bf16 %v151_v50, %v146_v49  ;;  %v160_v49 = vld [vmem:[%s14112_s0 + $0x3f8] sm:$0xff]  ;;  %14192 = vst [vmem:[#allocation13_spill] sm:$0xff] %v11108_v7 }
  0x81   :  { %2034 = vmatprep.subr.bf16.mxu1 %v14121_v18  ;;  %v164_v50 = vld [vmem:[%s14112_s0 + $0x418] sm:$0xff]  ;;  %v11072_v13 = vpack.c.bf16 %v160_v49, %v155_v48  ;;  %v174_v48 = vld [vmem:[%s14112_s0 + $0x468] sm:$0xff]  ;;  %v179_v49 = vld [vmem:[%s14112_s0 + $0x490] sm:$0xff] }
  0x82   :  { %1293 = vmatmul.mubr.bf16.gmra.mrb[32].mxu1 %v10924_v58  ;;  %14187 = vst [vmem:[#allocation8_spill] sm:$0xff] %v11004_v56  ;;  %v11074_v16 = vpack.c.bf16 %v169_v57, %v164_v50  ;;  %v168_v18 = vld [vmem:[%s14112_s0 + $0x438] sm:$0xff]  ;;  %v181_v57 = vld [vmem:[%s14112_s0 + $0x4a0] sm:$0xff] }
  0x83   :  { %1516 = vmatmul.mubr.bf16.gmra.mrb[32].mxu0 %v10926_v3  ;;  %1302 = vmatprep.mubr.bf16.mxu1 %v10928_v4  ;;  %14190 = vst [vmem:[#allocation11_spill] sm:$0xff] %v11072_v13  ;;  %v176_v50 = vld [vmem:[%s14112_s0 + $0x478] sm:$0xff]  ;;  %v11106_v6 = vpack.c.bf16 %v168_v18, %v163_v21  ;;  %v175_v18 = vld [vmem:[%s14112_s0 + $0x470] sm:$0xff] }
  0x84   :  { %1525 = vmatprep.mubr.bf16.mxu0 %v10930_v5  ;;  %v180_v21 = vld [vmem:[%s14112_s0 + $0x498] sm:$0xff]  ;;  %v203_v5 = vld [vmem:[%s14112_s0 + $0x550] sm:$0xff] }
  0x85   :  { %v208_v3 = vld [vmem:[%s14112_s0 + $0x578] sm:$0xff] }
  0x8a   :  { %1303 = vmatmul.mubr.bf16.gmra.mrb[36].mxu1 %v10962_v23 }
  0x8b   :  { %1526 = vmatmul.mubr.bf16.gmra.mrb[36].mxu0 %v10964_v24  ;;  %1312 = vmatprep.mubr.bf16.mxu1 %v10966_v25  ;;  %v198_v24 = vld [vmem:[%s14112_s0 + $0x528] sm:$0xff] }
  0x8c   :  { %1535 = vmatprep.mubr.bf16.mxu0 %v10968_v38  ;;  %v193_v38 = vld [vmem:[%s14112_s0 + $0x500] sm:$0xff] }
  0x92   :  { %1313 = vmatmul.mubr.bf16.gmra.mrb[40].mxu1 %v10998_v51 }
  0x93   :  { %1536 = vmatmul.mubr.bf16.gmra.mrb[40].mxu0 %v11000_v52  ;;  %1322 = vmatprep.mubr.bf16.mxu1 %v11002_v55  ;;  %v188_v52 = vld [vmem:[%s14112_s0 + $0x4d8] sm:$0xff] }
  0x94   :  { %1545 = vmatprep.mubr.bf16.mxu0 %v11004_v56  ;;  %v183_v56 = vld [vmem:[%s14112_s0 + $0x4b0] sm:$0xff] }
  0x9a   :  { %1323 = vmatmul.mubr.bf16.gmra.mrb[44].mxu1 %v11034_v22 }
  0x9b   :  { %1546 = vmatmul.mubr.bf16.gmra.mrb[44].mxu0 %v11036_v39  ;;  %1332 = vmatprep.mubr.bf16.mxu1 %v11038_v40  ;;  %v178_v39 = vld [vmem:[%s14112_s0 + $0x488] sm:$0xff] }
  0x9c   :  { %1555 = vmatprep.mubr.bf16.mxu0 %v11040_v41  ;;  %v173_v41 = vld [vmem:[%s14112_s0 + $0x460] sm:$0xff] }
  0xa2   :  { %1333 = vmatmul.mubr.bf16.gmra.mrb[48].mxu1 %v11070_v8 }
  0xa3   :  { %1556 = vmatmul.mubr.bf16.gmra.mrb[48].mxu0 %v11072_v13  ;;  %1342 = vmatprep.mubr.bf16.mxu1 %v11074_v16  ;;  %v11112_v13 = vpack.c.bf16 %v181_v57, %v176_v50  ;;  %v11142_v50 = vpack.c.bf16 %v178_v39, %v173_v41  ;;  %v11144_v57 = vpack.c.bf16 %v180_v21, %v175_v18  ;;  %v185_v39 = vld [vmem:[%s14112_s0 + $0x4c0] sm:$0xff]  ;;  %v190_v41 = vld [vmem:[%s14112_s0 + $0x4e8] sm:$0xff]  ;;  %v199_v21 = vld [vmem:[%s14112_s0 + $0x530] sm:$0xff] }
  0xa4   :  { %1565 = vmatprep.mubr.bf16.mxu0 %v11076_v20  ;;  %v11110_v20 = vpack.c.bf16 %v179_v49, %v174_v48  ;;  %v186_v48 = vld [vmem:[%s14112_s0 + $0x4c8] sm:$0xff]  ;;  %v191_v49 = vld [vmem:[%s14112_s0 + $0x4f0] sm:$0xff] }
  0xa5   :  { %14193 = vst [vmem:[#allocation14_spill] sm:$0xff] %v11112_v13  ;;  %14194 = vst [vmem:[#allocation15_spill] sm:$0xff] %v11144_v57  ;;  %v194_v18 = vld [vmem:[%s14112_s0 + $0x508] sm:$0xff] }
  0xaa   :  { %1343 = vmatmul.mubr.bf16.gmra.mrb[52].mxu1 %v11106_v6 }
  0xab   :  { %1566 = vmatmul.mubr.bf16.gmra.mrb[52].mxu0 %v11108_v7  ;;  %1352 = vmatprep.mubr.bf16.mxu1 %v11110_v20  ;;  %v11148_v7 = vpack.c.bf16 %v191_v49, %v186_v48  ;;  %v11178_v48 = vpack.c.bf16 %v188_v52, %v183_v56  ;;  %v11180_v49 = vpack.c.bf16 %v190_v41, %v185_v39  ;;  %v195_v52 = vld [vmem:[%s14112_s0 + $0x510] sm:$0xff]  ;;  %v200_v56 = vld [vmem:[%s14112_s0 + $0x538] sm:$0xff]  ;;  %v209_v41 = vld [vmem:[%s14112_s0 + $0x580] sm:$0xff] }
  0xac   :  { %1575 = vmatprep.mubr.bf16.mxu0 %v11112_v13  ;;  %v11146_v13 = vpack.c.bf16 %v189_v47, %v184_v42  ;;  %v196_v42 = vld [vmem:[%s14112_s0 + $0x518] sm:$0xff]  ;;  %v201_v47 = vld [vmem:[%s14112_s0 + $0x540] sm:$0xff] }
  0xad   :  { %14195 = vst [vmem:[#allocation16_spill] sm:$0xff] %v11148_v7  ;;  %14196 = vst [vmem:[#allocation17_spill] sm:$0xff] %v11180_v49  ;;  %v204_v39 = vld [vmem:[%s14112_s0 + $0x558] sm:$0xff] }
  0xb2   :  { %1353 = vmatmul.mubr.bf16.gmra.mrb[56].mxu1 %v11142_v50 }
  0xb3   :  { %1576 = vmatmul.mubr.bf16.gmra.mrb[56].mxu0 %v11144_v57  ;;  %1362 = vmatprep.mubr.bf16.mxu1 %v11146_v13  ;;  %v11184_v57 = vpack.c.bf16 %v201_v47, %v196_v42  ;;  %v11214_v42 = vpack.c.bf16 %v198_v24, %v193_v38  ;;  %v11216_v47 = vpack.c.bf16 %v200_v56, %v195_v52  ;;  %v205_v24 = vld [vmem:[%s14112_s0 + $0x560] sm:$0xff]  ;;  %v210_v38 = vld [vmem:[%s14112_s0 + $0x588] sm:$0xff]  ;;  %v219_v56 = vld [vmem:[%s14112_s0 + $0x5d0] sm:$0xff] }
  0xb4   :  { %1585 = vmatprep.mubr.bf16.mxu0 %v11148_v7  ;;  %v11182_v7 = vpack.c.bf16 %v199_v21, %v194_v18  ;;  %v206_v18 = vld [vmem:[%s14112_s0 + $0x568] sm:$0xff]  ;;  %v211_v21 = vld [vmem:[%s14112_s0 + $0x590] sm:$0xff] }
  0xb5   :  { %14197 = vst [vmem:[#allocation18_spill] sm:$0xff] %v11184_v57  ;;  %14198 = vst [vmem:[#allocation19_spill] sm:$0xff] %v11216_v47  ;;  %v214_v52 = vld [vmem:[%s14112_s0 + $0x5a8] sm:$0xff] }
  0xba   :  { %1363 = vmatmul.mubr.bf16.gmra.mrb[60].mxu1 %v11178_v48 }
  0xbb   :  { %1586 = vmatmul.mubr.bf16.gmra.mrb[60].mxu0 %v11180_v49  ;;  %1372 = vmatprep.mubr.bf16.mxu1 %v11182_v7  ;;  %v11220_v49 = vpack.c.bf16 %v211_v21, %v206_v18  ;;  %v11250_v18 = vpack.c.bf16 %v208_v3, %v203_v5  ;;  %v11252_v21 = vpack.c.bf16 %v210_v38, %v205_v24  ;;  %v218_v3 = vld [vmem:[%s14112_s0 + $0x5c8] sm:$0xff]  ;;  %v215_v5 = vld [vmem:[%s14112_s0 + $0x5b0] sm:$0xff]  ;;  %v220_v24 = vld [vmem:[%s14112_s0 + $0x5d8] sm:$0xff] }
  0xbc   :  { %1595 = vmatprep.mubr.bf16.mxu0 %v11184_v57  ;;  %v11218_v57 = vpack.c.bf16 %v209_v41, %v204_v39  ;;  %v216_v39 = vld [vmem:[%s14112_s0 + $0x5b8] sm:$0xff]  ;;  %v221_v41 = vld [vmem:[%s14112_s0 + $0x5e0] sm:$0xff]  ;;  %v11274_v38 = vpack.c.bf16 %v218_v3, %v213_v33  ;;  %v9612_v3 = vld [vmem:[%s14111_s1 + $0x188] ss:$12 sps:$4 sm:$0xff]  }
  0xbd   :  { %14199 = vst [vmem:[#allocation20_spill] sm:$0xff] %v11220_v49  ;;  %14200 = vst [vmem:[#allocation21_spill] sm:$0xff] %v11252_v21 }
  0xc2   :  { %1373 = vmatmul.mubr.bf16.gmra.mrb[64].mxu1 %v11214_v42 }
  0xc3   :  { %1596 = vmatmul.mubr.bf16.gmra.mrb[64].mxu0 %v11216_v47  ;;  %1382 = vmatprep.mubr.bf16.mxu1 %v11218_v57  ;;  %v11256_v47 = vpack.c.bf16 %v221_v41, %v216_v39  ;;  %v37_v39 = vld [vmem:[%s14112_s0 + $0x20] sm:$0xff]  ;;  %v42_v41 = vld [vmem:[%s14112_s0 + $0x48] sm:$0xff] }
  0xc4   :  { %1605 = vmatprep.mubr.bf16.mxu0 %v11220_v49  ;;  %v11254_v49 = vpack.c.bf16 %v219_v56, %v214_v52  ;;  %v11276_v52 = vpack.c.bf16 %v220_v24, %v215_v5  ;;  %v14203_v56 = vmov 0   ;;  %v11288_v33 = vpack.c.bf16 %v42_v41, %v37_v39  ;;  %v52_v5 = vld [vmem:[%s14112_s0 + $0x98] sm:$0xff]  ;;  %v9613_v24 = vld [vmem:[%s14111_s1 + $0x1a0] ss:$12 sps:$4 sm:$0xff]  }
  0xc5   :  { %14201 = vst [vmem:[#allocation22_spill] sm:$0xff] %v11256_v47  ;;  %v9614_v39 = vld [vmem:[%s14111_s1 + $0x1b8] ss:$12 sps:$4 sm:$0xff]   ;;  %v62_v41 = vld [vmem:[%s14112_s0 + $0xe8] sm:$0xff] }
  0xc6   :  { %14202 = vst [vmem:[#allocation23_spill] sm:$0xff] %v11276_v52  ;;  %14204 = vst [vmem:[#allocation24_spill] sm:$0xff] %v11288_v33 }
  0xca   :  { %1383 = vmatmul.mubr.bf16.gmra.mrb[68].mxu1 %v11250_v18 }
  0xcb   :  { %1606 = vmatmul.mubr.bf16.gmra.mrb[68].mxu0 %v11252_v21  ;;  %1392 = vmatprep.mubr.bf16.mxu1 %v11254_v49 }
  0xcc   :  { %1615 = vmatprep.mubr.bf16.mxu0 %v11256_v47 }
  0xd2   :  { %1393 = vmatmul.mubr.bf16.gmra.mrb[72].mxu1 %v11274_v38 }
  0xd3   :  { %1616 = vmatmul.mubr.bf16.gmra.mrb[72].mxu0 %v11276_v52  ;;  %1881 = vmatprep.mubr.bf16.mxu1 %v10453_v53  ;;  %v47_v53 = vld [vmem:[%s14112_s0 + $0x70] sm:$0xff] }
  0xd4   :  { %1658 = vmatprep.mubr.bf16.mxu0 %v14203_v56 }
  0xda   :  { %1882 = vmatmul.mubr.bf16.vlgmr.msra.gmra.mrb[76].mxu1 %v10528_v14  ;;  %v11308_v14 = vpack.c.bf16 %v52_v5, %v47_v53  ;;  %v67_v53 = vld [vmem:[%s14112_s0 + $0x110] sm:$0xff]  ;;  %v72_v5 = vld [vmem:[%s14112_s0 + $0x138] sm:$0xff] }
  0xdb   :  { %7618 = vmatmul.mubr.msk.bf16.vlgmr.msra.gmra.mrb[0].mxu0 %vm1112_vm1, %v11288_v33  ;;  %2035 = vmatpush1.bf16.msra.mxu1 %v9612_v3  ;;  %v9615_v3 = vld [vmem:[%s14111_s1 + $0x1d0] ss:$12 sps:$4 sm:$0xff]  }
  0xdc   :  { %1668 = vmatprep.mubr.bf16.mxu0 %v14203_v56  ;;  %1889 = vmatprep.mubr.bf16.mxu1 %v10535_v17  ;;  %14205 = vst [vmem:[#allocation25_spill] sm:$0xff] %v11308_v14  ;;  %v57_v17 = vld [vmem:[%s14112_s0 + $0xc0] sm:$0xff] }
  0xdd   :  { %2036 = vmatprep.subr.bf16.mxu1 %v14203_v56 }
  0xdf   :  { %2037 = vmatpush1.bf16.msra.mxu1 %v9613_v24  ;;  %v9617_v24 = vld [vmem:[%s14111_s1 + $0x200] ss:$12 sps:$4 sm:$0xff]  }
  0xe0   :  { %2038 = vmatprep.subr.bf16.mxu1 %v14203_v56 }
  0xe2   :  { %1890 = vmatmul.mubr.bf16.gmra.mrb[80].mxu1 %v10572_v29  ;;  %v11329_v29 = vpack.c.bf16 %v62_v41, %v57_v17  ;;  %v82_v17 = vld [vmem:[%s14112_s0 + $0x188] sm:$0xff]  ;;  %v9619_v41 = vld [vmem:[%s14111_s1 + $0x230] ss:$12 sps:$4 sm:$0xff]  }
  0xe3   :  { %7619 = vmatmul.mubr.msk.bf16.gmra.mrb[4].mxu0 %vm1112_vm1, %v11308_v14  ;;  %1897 = vmatprep.mubr.bf16.mxu1 %v10576_v31  ;;  %v9616_v31 = vld [vmem:[%s14111_s1 + $0x1e8] ss:$12 sps:$4 sm:$0xff]  }
  0xe4   :  { %1678 = vmatprep.mubr.bf16.mxu0 %v14203_v56  ;;  %2039 = vmatpush1.bf16.msra.mxu1 %v9614_v39  ;;  %14206 = vst [vmem:[#allocation26_spill] sm:$0xff] %v11329_v29  ;;  %v77_v39 = vld [vmem:[%s14112_s0 + $0x160] sm:$0xff] }
  0xe5   :  { %2040 = vmatprep.subr.bf16.mxu1 %v14203_v56 }
  0xe8   :  { %2041 = vmatpush1.bf16.msra.mxu1 %v9615_v3  ;;  %v9629_v3 = vld [vmem:[%s14113_s3] sm:$0xff]  }
  0xe9   :  { %2042 = vmatprep.subr.bf16.mxu1 %v14203_v56  ;;  %2775 = vmatpush1.bf16.msra.mxu0 %v9629_v3 }
  0xea   :  { %1898 = vmatmul.mubr.bf16.gmra.mrb[84].mxu1 %v10616_v43  ;;  %v11350_v43 = vpack.c.bf16 %v72_v5, %v67_v53  ;;  %v92_v53 = vld [vmem:[%s14112_s0 + $0x1d8] sm:$0xff]  ;;  %v9621_v5 = vld [vmem:[%s14111_s1 + $0x260] ss:$12 sps:$4 sm:$0xff]   ;;  %2776 = vmatprep.subr.bf16.mxu0 %v14203_v56 }
  0xeb   :  { %7620 = vmatmul.mubr.msk.bf16.gmra.mrb[8].mxu0 %vm1112_vm1, %v11329_v29  ;;  %1905 = vmatprep.mubr.bf16.mxu1 %v10620_v45  ;;  %v9618_v45 = vld [vmem:[%s14111_s1 + $0x218] ss:$12 sps:$4 sm:$0xff]  }
  0xec   :  { %1688 = vmatprep.mubr.bf16.mxu0 %v14203_v56  ;;  %2043 = vmatpush1.bf16.msra.mxu1 %v9616_v31  ;;  %14207 = vst [vmem:[#allocation27_spill] sm:$0xff] %v11350_v43  ;;  %v87_v31 = vld [vmem:[%s14112_s0 + $0x1b0] sm:$0xff] }
  0xed   :  { %2044 = vmatprep.subr.bf16.mxu1 %v14203_v56 }
  0xf0   :  { %2045 = vmatpush1.bf16.msra.mxu1 %v9617_v24  ;;  %v9630_v24 = vld [vmem:[%s14113_s3 + $0x8] sm:$0xff]  }
  0xf1   :  { %2046 = vmatprep.subr.bf16.mxu1 %v14203_v56  ;;  %2777 = vmatpush1.bf16.msra.mxu0 %v9630_v24  ;;  %v9636_v24 = vld [vmem:[%s14113_s3 + $0x30] sm:$0xff]  }
  0xf2   :  { %1906 = vmatmul.mubr.bf16.gmra.mrb[88].mxu1 %v10660_v59  ;;  %v11371_v59 = vpack.c.bf16 %v82_v17, %v77_v39  ;;  %2778 = vmatprep.subr.bf16.mxu0 %v14203_v56  ;;  %v97_v39 = vld [vmem:[%s14112_s0 + $0x200] sm:$0xff]  ;;  %v102_v17 = vld [vmem:[%s14112_s0 + $0x228] sm:$0xff] }
  0xf3   :  { %7621 = vmatmul.mubr.msk.bf16.gmra.mrb[12].mxu0 %vm1112_vm1, %v11350_v43  ;;  %1913 = vmatprep.mubr.bf16.mxu1 %v10664_v61  ;;  %v9620_v61 = vld [vmem:[%s14111_s1 + $0x248] ss:$12 sps:$4 sm:$0xff]   ;;  %v11428_v3 = vpack.c.bf16 %v102_v17, %v97_v39  ;;  %v9637_v17 = vld [vmem:[%s14113_s3 + $0x38] sm:$0xff]  }
  0xf4   :  { %1698 = vmatprep.mubr.bf16.mxu0 %v14203_v56  ;;  %2047 = vmatpush1.bf16.msra.mxu1 %v9618_v45  ;;  %14208 = vst [vmem:[#allocation28_spill] sm:$0xff] %v11371_v59  ;;  %v11399_v45 = vpack.c.bf16 %v92_v53, %v87_v31  ;;  %v107_v31 = vld [vmem:[%s14112_s0 + $0x250] sm:$0xff]  ;;  %v112_v53 = vld [vmem:[%s14112_s0 + $0x278] sm:$0xff]  ;;  %v122_v39 = vld [vmem:[%s14112_s0 + $0x2c8] sm:$0xff] }
  0xf5   :  { %2048 = vmatprep.subr.bf16.mxu1 %v14203_v56  ;;  %14210 = vst [vmem:[#allocation30_spill] sm:$0xff] %v11428_v3 }
  0xf6   :  { %14209 = vst [vmem:[#allocation29_spill] sm:$0xff] %v11399_v45 }
  0xf8   :  { %2049 = vmatpush1.bf16.msra.mxu1 %v9619_v41  ;;  %v9623_v41 = vld [vmem:[%s14111_s1 + $0x290] ss:$12 sps:$4 sm:$0xff]  }
  0xf9   :  { %2050 = vmatprep.subr.bf16.mxu1 %v14203_v56 }
  0xfa   :  { %1914 = vmatmul.mubr.bf16.gmra.mrb[92].mxu1 %v10704_v9  ;;  %v9622_v9 = vld [vmem:[%s14111_s1 + $0x278] ss:$12 sps:$4 sm:$0xff]  }
  0xfb   :  { %7622 = vmatmul.mubr.msk.bf16.gmra.mrb[16].mxu0 %vm1112_vm1, %v11371_v59  ;;  %1921 = vmatprep.mubr.bf16.mxu1 %v10708_v11  ;;  %v9631_v11 = vld [vmem:[%s14113_s3 + $0x10] sm:$0xff]  }
  0xfc   :  { %1708 = vmatprep.mubr.bf16.mxu0 %v14203_v56  ;;  %2051 = vmatpush1.bf16.msra.mxu1 %v9620_v61  ;;  %v9632_v61 = vld [vmem:[%s14113_s3 + $0x18] sm:$0xff]  }
  0xfd   :  { %2052 = vmatprep.subr.bf16.mxu1 %v14203_v56  ;;  %2779 = vmatpush1.bf16.msra.mxu0 %v9631_v11  ;;  %v117_v11 = vld [vmem:[%s14112_s0 + $0x2a0] sm:$0xff] }
  0xfe   :  { %2780 = vmatprep.subr.bf16.mxu0 %v14203_v56 }
 0x100   :  { %2053 = vmatpush1.bf16.msra.mxu1 %v9621_v5  ;;  %v9635_v5 = vld [vmem:[%s14113_s3 + $0x28] sm:$0xff]  }
 0x101   :  { %2054 = vmatprep.subr.bf16.mxu1 %v14203_v56  ;;  %2781 = vmatpush1.bf16.msra.mxu0 %v9632_v61  ;;  %v11490_v61 = vpack.c.bf16 %v122_v39, %v117_v11  ;;  %v9641_v39 = vld [vmem:[%s14113_s3 + $0x50] sm:$0xff]  }
 0x102   :  { %1922 = vmatmul.mubr.bf16.gmra.mrb[96].mxu1 %v10754_v34  ;;  %2782 = vmatprep.subr.bf16.mxu0 %v14203_v56  ;;  %v9634_v34 = vld [vmem:[%s14113_s3 + $0x20] sm:$0xff]  }
 0x103   :  { %7623 = vmatmul.mubr.msk.bf16.gmra.mrb[20].mxu0 %vm1112_vm1, %v11399_v45  ;;  %1929 = vmatprep.mubr.bf16.mxu1 %v10758_v36  ;;  %v9624_v36 = vld [vmem:[%s14111_s1 + $0x2a8] ss:$12 sps:$4 sm:$0xff]   ;;  %14212 = vst [vmem:[#allocation32_spill] sm:$0xff] %v11490_v61 }
 0x104   :  { %1718 = vmatprep.mubr.bf16.mxu0 %v14203_v56  ;;  %2055 = vmatpush1.bf16.msra.mxu1 %v9622_v9  ;;  %v9626_v9 = vld [vmem:[%s14111_s1 + $0x2d8] ss:$12 sps:$4 sm:$0xff]  }
 0x105   :  { %2056 = vmatprep.subr.bf16.mxu1 %v14203_v56  ;;  %2783 = vmatpush1.bf16.msra.mxu0 %v9634_v34 }
 0x106   :  { %2784 = vmatprep.subr.bf16.mxu0 %v14203_v56 }
 0x108   :  { %2057 = vmatpush1.bf16.msra.mxu1 %v9623_v41 }
 0x109   :  { %2058 = vmatprep.subr.bf16.mxu1 %v14203_v56  ;;  %2785 = vmatpush1.bf16.msra.mxu0 %v9635_v5  ;;  %v127_v5 = vld [vmem:[%s14112_s0 + $0x2f0] sm:$0xff] }
 0x10a   :  { %1930 = vmatmul.mubr.bf16.gmra.mrb[100].mxu1 %v10813_v63  ;;  %v9625_v63 = vld [vmem:[%s14111_s1 + $0x2c0] ss:$12 sps:$4 sm:$0xff]   ;;  %2786 = vmatprep.subr.bf16.mxu0 %v14203_v56 }
 0x10b   :  { %7624 = vmatmul.mubr.msk.bf16.gmra.mrb[24].mxu0 %vm1112_vm1, %v11428_v3  ;;  %1937 = vmatprep.mubr.bf16.mxu1 %v10817_v1  ;;  %v11457_v1 = vpack.c.bf16 %v112_v53, %v107_v31  ;;  %v14142_v53 = vmov 0.0  }
 0x10c   :  { %1728 = vmatprep.mubr.bf16.mxu0 %v14203_v56  ;;  %2059 = vmatpush1.bf16.msra.mxu1 %v9624_v36  ;;  %v9638_v36 = vld [vmem:[%s14113_s3 + $0x40] sm:$0xff]  }
 0x10d   :  { %2060 = vmatprep.subr.bf16.mxu1 %v14203_v56  ;;  %14211 = vst [vmem:[#allocation31_spill] sm:$0xff] %v11457_v1  ;;  %2787 = vmatpush1.bf16.msra.mxu0 %v9636_v24  ;;  %v9639_v24 = vld [vmem:[%s14113_s3 + $0x48] sm:$0xff]  }
 0x10e   :  { %2788 = vmatprep.subr.bf16.mxu0 %v14203_v56 }
 0x110   :  { %2061 = vmatpush1.bf16.msra.mxu1 %v9625_v63  ;;  %v132_v63 = vld [vmem:[%s14112_s0 + $0x318] sm:$0xff] }
 0x111   :  { %2062 = vmatprep.subr.bf16.mxu1 %v14203_v56  ;;  %2789 = vmatpush1.bf16.msra.mxu0 %v9637_v17 }
 0x112   :  { %1938 = vmatmul.mubr.bf16.gmra.mrb[104].mxu1 %v10869_v26  ;;  %v9627_v26 = vld [vmem:[%s14111_s1 + $0x2f0] ss:$12 sps:$4 sm:$0xff]   ;;  %2790 = vmatprep.subr.bf16.mxu0 %v14203_v56 }
 0x113   :  { %7625 = vmatmul.mubr.msk.bf16.gmra.mrb[28].mxu0 %vm1112_vm1, %v11457_v1  ;;  %1945 = vmatprep.mubr.bf16.mxu1 %v10873_v28 }
 0x114   :  { %1738 = vmatprep.mubr.bf16.mxu0 %v14203_v56  ;;  %2063 = vmatpush1.bf16.msra.mxu1 %v9626_v9 }
 0x115   :  { %v11485_v28 = vpop.f32.mrb[0].mxu1  ;;  %2064 = vmatprep.subr.bf16.mxu1 %v14203_v56  ;;  %2791 = vmatpush1.bf16.msra.mxu0 %v9638_v36  ;;  %v142_v36 = vld [vmem:[%s14112_s0 + $0x368] sm:$0xff] }
 0x116   :  { %v11488_v41 = vpop.f32.mrb[1].mxu1  ;;  %2792 = vmatprep.subr.bf16.mxu0 %v14203_v56 }
 0x117   :  { %v11493_v34 = vpop.f32.mrb[2].mxu1 }
 0x118   :  { %v11498_v31 = vpop.f32.mrb[3].mxu1  ;;  %2065 = vmatpush1.bf16.msra.mxu1 %v9627_v26  ;;  %v137_v26 = vld [vmem:[%s14112_s0 + $0x340] sm:$0xff] }
 0x119   :  { %8160 = vmatprep.subr.bf16.mxu1 %v14142_v53  ;;  %2793 = vmatpush1.bf16.msra.mxu0 %v9639_v24 }
 0x11a   :  { %1946 = vmatmul.mubr.bf16.gmra.mrb[108].mxu1 %v10924_v58  ;;  %2794 = vmatprep.subr.bf16.mxu0 %v14203_v56 }
 0x11b   :  { %7626 = vmatmul.mubr.msk.bf16.gmra.mrb[32].mxu0 %vm1112_vm1, %v11490_v61  ;;  %1953 = vmatprep.mubr.bf16.mxu1 %v10928_v4  ;;  %v11520_v4 = vpack.c.bf16 %v132_v63, %v127_v5  ;;  %v9642_v5 = vld [vmem:[%s14113_s3 + $0x58] sm:$0xff]  }
 0x11c   :  { %1748 = vmatprep.mubr.bf16.mxu0 %v14203_v56 }
 0x11d   :  { %v11516_v9 = vpop.f32.mrb[4].mxu1  ;;  %14213 = vst [vmem:[#allocation33_spill] sm:$0xff] %v11520_v4  ;;  %2795 = vmatpush1.bf16.msra.mxu0 %v9641_v39  ;;  %v9643_v39 = vld [vmem:[%s14113_s3 + $0x60] sm:$0xff]  }
 0x11e   :  { %v11518_v58 = vpop.f32.mrb[5].mxu1  ;;  %2796 = vmatprep.subr.bf16.mxu0 %v14203_v56 }
 0x11f   :  { %v11523_v11 = vpop.f32.mrb[6].mxu1 }
 0x120   :  { %v11528_v17 = vpop.f32.mrb[7].mxu1 }
 0x121   :  { %2797 = vmatpush1.bf16.msra.mxu0 %v9642_v5  ;;  %v9644_v5 = vld [vmem:[%s14113_s3 + $0x68] sm:$0xff]  }
 0x122   :  { %1954 = vmatmul.mubr.bf16.gmra.mrb[112].mxu1 %v10962_v23  ;;  %2798 = vmatprep.subr.bf16.mxu0 %v14203_v56 }
 0x123   :  { %7627 = vmatmul.mubr.msk.bf16.gmra.mrb[36].mxu0 %vm1112_vm1, %v11520_v4  ;;  %1961 = vmatprep.mubr.bf16.mxu1 %v10966_v25  ;;  %v11549_v25 = vpack.c.bf16 %v142_v36, %v137_v26  ;;  %v147_v26 = vld [vmem:[%s14112_s0 + $0x390] sm:$0xff]  ;;  %v152_v36 = vld [vmem:[%s14112_s0 + $0x3b8] sm:$0xff] }
 0x124   :  { %1758 = vmatprep.mubr.bf16.mxu0 %v14203_v56  ;;  %v9645_v4 = vld [vmem:[%s14113_s3 + $0x70] sm:$0xff]  }
 0x125   :  { %v11545_v63 = vpop.f32.mrb[8].mxu1  ;;  %14214 = vst [vmem:[#allocation34_spill] sm:$0xff] %v11549_v25  ;;  %2799 = vmatpush1.bf16.msra.mxu0 %v9643_v39 }
 0x126   :  { %v11547_v23 = vpop.f32.mrb[9].mxu1  ;;  %2800 = vmatprep.subr.bf16.mxu0 %v14203_v56 }
 0x127   :  { %v11552_v24 = vpop.f32.mrb[10].mxu1 }
 0x128   :  { %v11557_v53 = vpop.f32.mrb[11].mxu1 }
 0x129   :  { %2801 = vmatpush1.bf16.msra.mxu0 %v9644_v5 }
 0x12a   :  { %1962 = vmatmul.mubr.bf16.gmra.mrb[116].mxu1 %v10998_v51  ;;  %2802 = vmatprep.subr.bf16.mxu0 %v14203_v56 }
 0x12b   :  { %7628 = vmatmul.mubr.msk.bf16.gmra.mrb[40].mxu0 %vm1112_vm1, %v11549_v25  ;;  %1969 = vmatprep.mubr.bf16.mxu1 %v11002_v55  ;;  %v11578_v55 = vpack.c.bf16 %v152_v36, %v147_v26  ;;  %v157_v26 = vld [vmem:[%s14112_s0 + $0x3e0] sm:$0xff]  ;;  %v162_v36 = vld [vmem:[%s14112_s0 + $0x408] sm:$0xff] }
 0x12c   :  { %1768 = vmatprep.mubr.bf16.mxu0 %v14203_v56 }
 0x12d   :  { %v11574_v39 = vpop.f32.mrb[12].mxu1  ;;  %14215 = vst [vmem:[#allocation35_spill] sm:$0xff] %v11578_v55  ;;  %2803 = vmatpush1.bf16.msra.mxu0 %v9645_v4  ;;  %v9647_v4 = vld [vmem:[%s14113_s3 + $0x78] sm:$0xff]  }
 0x12e   :  { %v11576_v51 = vpop.f32.mrb[13].mxu1  ;;  %2804 = vmatprep.subr.bf16.mxu0 %v14203_v56 }
 0x12f   :  { %v11581_v25 = vpop.f32.mrb[14].mxu1 }
 0x130   :  { %v11586_v61 = vpop.f32.mrb[15].mxu1 }
 0x131   :  { %2805 = vmatpush1.bf16.msra.mxu0 %v9647_v4 }
 0x132   :  { %1970 = vmatmul.mubr.bf16.gmra.mrb[120].mxu1 %v11034_v22 }
 0x133   :  { %7629 = vmatmul.mubr.msk.bf16.gmra.mrb[44].mxu0 %vm1112_vm1, %v11578_v55  ;;  %1977 = vmatprep.mubr.bf16.mxu1 %v11038_v40  ;;  %v11607_v40 = vpack.c.bf16 %v162_v36, %v157_v26  ;;  %v14217_v55 = vmov 0.0   ;;  %v167_v26 = vld [vmem:[%s14112_s0 + $0x430] sm:$0xff]  ;;  %v172_v36 = vld [vmem:[%s14112_s0 + $0x458] sm:$0xff] }
 0x134   :  { %1778 = vmatprep.mubr.bf16.mxu0 %v14203_v56  ;;  %8250 = vmatprep.subr.bf16.mxu0 %v14217_v55  ;;  %v11629_v59 = vpack.c.bf16 %v172_v36, %v167_v26  ;;  %v182_v26 = vld [vmem:[%s14112_s0 + $0x4a8] sm:$0xff] }
 0x135   :  { %v11603_v5 = vpop.f32.mrb[16].mxu1  ;;  %14216 = vst [vmem:[#allocation36_spill] sm:$0xff] %v11607_v40 }
 0x136   :  { %v11605_v22 = vpop.f32.mrb[17].mxu1  ;;  %14218 = vst [vmem:[#allocation37_spill] sm:$0xff] %v11629_v59 }
 0x137   :  { %v11610_v1 = vpop.f32.mrb[18].mxu1 }
 0x138   :  { %v11612_v3 = vpop.f32.mrb[19].mxu1 }
 0x13a   :  { %1978 = vmatmul.mubr.bf16.gmra.mrb[124].mxu1 %v11070_v8 }
 0x13b   :  { %7630 = vmatmul.mubr.msk.bf16.gmra.mrb[48].mxu0 %vm1112_vm1, %v11607_v40  ;;  %1985 = vmatprep.mubr.bf16.mxu1 %v11074_v16  ;;  %v177_v16 = vld [vmem:[%s14112_s0 + $0x480] sm:$0xff] }
 0x13c   :  { %1788 = vmatprep.mubr.bf16.mxu0 %v14203_v56  ;;  %v11650_v29 = vpack.c.bf16 %v182_v26, %v177_v16  ;;  %v192_v16 = vld [vmem:[%s14112_s0 + $0x4f8] sm:$0xff] }
 0x13d   :  { %v11625_v4 = vpop.f32.mrb[20].mxu1 }
 0x13e   :  { %v11627_v45 = vpop.f32.mrb[21].mxu1  ;;  %14219 = vst [vmem:[#allocation38_spill] sm:$0xff] %v11650_v29 }
 0x13f   :  { %v11631_v40 = vpop.f32.mrb[22].mxu1 }
 0x140   :  { %v11633_v8 = vpop.f32.mrb[23].mxu1 }
 0x142   :  { %1986 = vmatmul.mubr.bf16.gmra.mrb[128].mxu1 %v11106_v6 }
 0x143   :  { %7631 = vmatmul.mubr.msk.bf16.gmra.mrb[52].mxu0 %vm1112_vm1, %v11629_v59  ;;  %1993 = vmatprep.mubr.bf16.mxu1 %v11110_v20  ;;  %v187_v20 = vld [vmem:[%s14112_s0 + $0x4d0] sm:$0xff] }
 0x144   :  { %1798 = vmatprep.mubr.bf16.mxu0 %v14203_v56  ;;  %v11671_v33 = vpack.c.bf16 %v192_v16, %v187_v20  ;;  %v202_v20 = vld [vmem:[%s14112_s0 + $0x548] sm:$0xff] }
 0x145   :  { %v11646_v36 = vpop.f32.mrb[24].mxu1 }
 0x146   :  { %v11648_v43 = vpop.f32.mrb[25].mxu1  ;;  %14220 = vst [vmem:[#allocation39_spill] sm:$0xff] %v11671_v33 }
 0x147   :  { %v11652_v59 = vpop.f32.mrb[26].mxu1 }
 0x148   :  { %v11654_v6 = vpop.f32.mrb[27].mxu1 }
 0x14a   :  { %1994 = vmatmul.mubr.bf16.gmra.mrb[132].mxu1 %v11142_v50 }
 0x14b   :  { %7632 = vmatmul.mubr.msk.bf16.gmra.mrb[56].mxu0 %vm1112_vm1, %v11650_v29  ;;  %2001 = vmatprep.mubr.bf16.mxu1 %v11146_v13  ;;  %v197_v13 = vld [vmem:[%s14112_s0 + $0x520] sm:$0xff] }
 0x14c   :  { %1808 = vmatprep.mubr.bf16.mxu0 %v14203_v56  ;;  %v11692_v47 = vpack.c.bf16 %v202_v20, %v197_v13  ;;  %v212_v13 = vld [vmem:[%s14112_s0 + $0x598] sm:$0xff] }
 0x14d   :  { %v11667_v26 = vpop.f32.mrb[28].mxu1 }
 0x14e   :  { %v11669_v14 = vpop.f32.mrb[29].mxu1  ;;  %14221 = vst [vmem:[#allocation40_spill] sm:$0xff] %v11692_v47 }
 0x14f   :  { %v11673_v29 = vpop.f32.mrb[30].mxu1 }
 0x150   :  { %v11675_v50 = vpop.f32.mrb[31].mxu1 }
 0x152   :  { %2002 = vmatmul.mubr.bf16.gmra.mrb[136].mxu1 %v11178_v48 }
 0x153   :  { %7633 = vmatmul.mubr.msk.bf16.gmra.mrb[60].mxu0 %vm1112_vm1, %v11671_v33  ;;  %2009 = vmatprep.mubr.bf16.mxu1 %v11182_v7  ;;  %v207_v7 = vld [vmem:[%s14112_s0 + $0x570] sm:$0xff] }
 0x154   :  { %1818 = vmatprep.mubr.bf16.mxu0 %v14203_v56 }
 0x155   :  { %v11688_v16 = vpop.f32.mrb[32].mxu1 }
 0x156   :  { %v11690_v52 = vpop.f32.mrb[33].mxu1 }
 0x157   :  { %v11694_v33 = vpop.f32.mrb[34].mxu1 }
 0x158   :  { %v11696_v48 = vpop.f32.mrb[35].mxu1 }
 0x159   :  { %14222 = vst [vmem:[#allocation41_spill] sm:$0xff] %v11696_v48  ;;  %v11713_v48 = vpack.c.bf16 %v212_v13, %v207_v7  ;;  %v222_v7 = vld [vmem:[%s14112_s0 + $0x5e8] sm:$0xff] }
 0x15a   :  { %2010 = vmatmul.mubr.bf16.gmra.mrb[140].mxu1 %v11214_v42 }
 0x15b   :  { %7634 = vmatmul.mubr.msk.bf16.gmra.mrb[64].mxu0 %vm1112_vm1, %v11692_v47  ;;  %2017 = vmatprep.mubr.bf16.mxu1 %v11218_v57  ;;  %14223 = vst [vmem:[#allocation42_spill] sm:$0xff] %v11713_v48  ;;  %v217_v57 = vld [vmem:[%s14112_s0 + $0x5c0] sm:$0xff] }
 0x15c   :  { %1828 = vmatprep.mubr.bf16.mxu0 %v14203_v56 }
 0x15d   :  { %v11709_v20 = vpop.f32.mrb[36].mxu1 }
 0x15e   :  { %v11711_v21 = vpop.f32.mrb[37].mxu1 }
 0x15f   :  { %v11715_v47 = vpop.f32.mrb[38].mxu1 }
 0x160   :  { %14224 = vst [vmem:[#allocation43_spill] sm:$0xff] %v11715_v47  ;;  %v11717_v42 = vpop.f32.mrb[39].mxu1  ;;  %v11734_v47 = vpack.c.bf16 %v222_v7, %v217_v57  ;;  %v9628_v57 = vld [vmem:[%s14111_s1 + $0x308] ss:$12 sps:$4 sm:$0xff]  }
 0x161   :  { %14225 = vst [vmem:[#allocation44_spill] sm:$0xff] %v11717_v42 }
 0x162   :  { %2018 = vmatmul.mubr.bf16.gmra.mrb[144].mxu1 %v11250_v18  ;;  %14227 = vst [vmem:[#allocation46_spill] sm:$0xff] %v11734_v47 }
 0x163   :  { %7635 = vmatmul.mubr.msk.bf16.gmra.mrb[68].mxu0 %vm1112_vm1, %v11713_v48  ;;  %2025 = vmatprep.mubr.bf16.mxu1 %v11254_v49 }
 0x164   :  { %1838 = vmatprep.mubr.bf16.mxu0 %v14203_v56 }
 0x165   :  { %v11730_v13 = vpop.f32.mrb[40].mxu1 }
 0x166   :  { %14226 = vst [vmem:[#allocation45_spill] sm:$0xff] %v11730_v13  ;;  %v11732_v42 = vpop.f32.mrb[41].mxu1 }
 0x167   :  { %v11736_v48 = vpop.f32.mrb[42].mxu1 }
 0x168   :  { %v11738_v18 = vpop.f32.mrb[43].mxu1 }
 0x16a   :  { %2026 = vmatmul.mubr.bf16.gmra.mrb[148].mxu1 %v11274_v38 }
 0x16b   :  { %7636 = vmatmul.mubr.msk.bf16.gmra.mrb[72].mxu0 %vm1112_vm1, %v11734_v47  ;;  %2066 = vmatprep.mubr.bf16.mxu1 %v10455_v54  ;;  %v9633_v54 = vld [vmem:[%s14111_s1 + $0x320] ss:$12 sps:$4 sm:$0xff]  }
 0x16d   :  { %v11744_v49 = vpop.f32.mrb[44].mxu1 }
 0x16e   :  { %v11746_v56 = vpop.f32.mrb[45].mxu1 }
 0x16f   :  { %v11748_v13 = vpop.f32.mrb[46].mxu1 }
 0x170   :  { %14228 = vst [vmem:[#allocation47_spill] sm:$0xff] %v11748_v13  ;;  %v11753_v7 = vpop.f32.mrb[47].mxu1 }
 0x172   :  { %2067 = vmatmul.mubr.bf16.vlgmr.msra.gmra.mrb[76].mxu1 %v10530_v15  ;;  %v9640_v15 = vld [vmem:[%s14111_s1 + $0x338] ss:$12 sps:$4 sm:$0xff]  }
 0x173   :  { %8161 = vmatpush3.bf16.msra.mxu1 %v9628_v57  ;;  %2074 = vmatprep.mubr.bf16.mxu1 %v10538_v19  ;;  %v9646_v19 = vld [vmem:[%s14111_s1 + $0x350] ss:$12 sps:$4 sm:$0xff]  }
 0x174   :  { %8162 = vmatprep.subr.bf16.mxu1 %v14217_v55 }
 0x175   :  { %v11761_v38 = vpop.f32.mrb[48].mxu1 }
 0x176   :  { %v11763_v47 = vpop.f32.mrb[49].mxu1 }
 0x177   :  { %14229 = vst [vmem:[#allocation48_spill] sm:$0xff] %v11763_v47  ;;  %v11765_v13 = vpop.f32.mrb[50].mxu1  ;;  %8163 = vmatpush3.bf16.msra.mxu1 %v9633_v54 }
 0x178   :  { %14230 = vst [vmem:[#allocation49_spill] sm:$0xff] %v11765_v13  ;;  %v11770_v57 = vpop.f32.mrb[51].mxu1  ;;  %8164 = vmatprep.subr.bf16.mxu1 %v14217_v55 }
 0x179   :  { %14231 = vst [vmem:[#allocation50_spill] sm:$0xff] %v11770_v57 }
 0x17a   :  { %2075 = vmatmul.mubr.bf16.gmra.mrb[80].mxu1 %v10574_v30  ;;  %v9648_v30 = vld [vmem:[%s14111_s1 + $0x368] ss:$12 sps:$4 sm:$0xff]  }
 0x17b   :  { %2082 = vmatprep.mubr.bf16.mxu1 %v10578_v32  ;;  %8165 = vmatpush3.bf16.msra.mxu1 %v9640_v15  ;;  %v9649_v32 = vld [vmem:[%s14111_s1 + $0x380] ss:$12 sps:$4 sm:$0xff]   ;;  %v9650_v15 = vld [vmem:[%s14111_s1 + $0x398] ss:$12 sps:$4 sm:$0x3f]  }
 0x17c   :  { %8166 = vmatprep.subr.bf16.mxu1 %v14217_v55 }
 0x17d   :  { %v11779_v54 = vpop.f32.mrb[52].mxu1 }
 0x17e   :  { %v11781_v13 = vpop.f32.mrb[53].mxu1 }
 0x17f   :  { %14232 = vst [vmem:[#allocation51_spill] sm:$0xff] %v11781_v13  ;;  %v11783_v47 = vpop.f32.mrb[54].mxu1  ;;  %8167 = vmatpush3.bf16.msra.mxu1 %v9646_v19 }
 0x180   :  { %14233 = vst [vmem:[#allocation52_spill] sm:$0xff] %v11783_v47  ;;  %v11788_v57 = vpop.f32.mrb[55].mxu1  ;;  %8168 = vmatprep.subr.bf16.mxu1 %v14217_v55 }
 0x181   :  { %14234 = vst [vmem:[#allocation53_spill] sm:$0xff] %v11788_v57 }
 0x182   :  { %2083 = vmatmul.mubr.bf16.gmra.mrb[84].mxu1 %v10618_v44 }
 0x183   :  { %2090 = vmatprep.mubr.bf16.mxu1 %v10622_v46  ;;  %8169 = vmatpush3.bf16.msra.mxu1 %v9648_v30  ;;  %v1178_v46 = vsel %vm1170_vm0, %v9650_v15, 0 }
 0x184   :  { %8170 = vmatprep.subr.bf16.mxu1 %v14217_v55 }
 0x185   :  { %v11800_v19 = vpop.f32.mrb[56].mxu1 }
 0x186   :  { %14235 = vst [vmem:[#allocation54_spill] sm:$0xff] %v11800_v19  ;;  %v11802_v57 = vpop.f32.mrb[57].mxu1 }
 0x187   :  { %14236 = vst [vmem:[#allocation55_spill] sm:$0xff] %v11802_v57  ;;  %v11804_v47 = vpop.f32.mrb[58].mxu1  ;;  %8171 = vmatpush3.bf16.msra.mxu1 %v9649_v32 }
 0x188   :  { %14237 = vst [vmem:[#allocation56_spill] sm:$0xff] %v11804_v47  ;;  %v11806_v44 = vpop.f32.mrb[59].mxu1  ;;  %8172 = vmatprep.subr.bf16.mxu1 %v14217_v55  ;;  %v14260_v47 = vld [vmem:[#allocation4_spill] sm:$0xff] }
 0x189   :  { %14238 = vst [vmem:[#allocation57_spill] sm:$0xff] %v11806_v44 }
 0x18a   :  { %2091 = vmatmul.mubr.bf16.gmra.mrb[88].mxu1 %v10662_v60 }
 0x18b   :  { %2098 = vmatprep.mubr.bf16.mxu1 %v10666_v62  ;;  %8173 = vmatpush3.bf16.msra.mxu1 %v1178_v46  ;;  %v476_v46 = vlaneseq }
 0x18d   :  { %v11812_v30 = vpop.f32.mrb[60].mxu1 }
 0x18e   :  { %14239 = vst [vmem:[#allocation58_spill] sm:$0xff] %v11812_v30  ;;  %v11814_v13 = vpop.f32.mrb[61].mxu1 }
 0x18f   :  { %14240 = vst [vmem:[#allocation59_spill] sm:$0xff] %v11814_v13  ;;  %v11816_v19 = vpop.f32.mrb[62].mxu1 }
 0x190   :  { %14241 = vst [vmem:[#allocation60_spill] sm:$0xff] %v11816_v19  ;;  %v11818_v57 = vpop.f32.mrb[63].mxu1 }
 0x191   :  { %14242 = vst [vmem:[#allocation61_spill] sm:$0xff] %v11818_v57 }
 0x192   :  { %2099 = vmatmul.mubr.bf16.gmra.mrb[92].mxu1 %v10706_v10 }
 0x193   :  { %2106 = vmatprep.mubr.bf16.mxu1 %v10710_v12  ;;  %v11838_v12 = vshrl.u32 %v476_v46, 7 }
 0x195   :  { %v11822_v32 = vpop.f32.mrb[64].mxu1  ;;  %14250 = vst [vmem:[#allocation69_spill] sm:$0xff] %v11838_v12 }
 0x196   :  { %14243 = vst [vmem:[#allocation62_spill] sm:$0xff] %v11822_v32  ;;  %v11824_v15 = vpop.f32.mrb[65].mxu1 }
 0x197   :  { %14244 = vst [vmem:[#allocation63_spill] sm:$0xff] %v11824_v15  ;;  %v11826_v60 = vpop.f32.mrb[66].mxu1 }
 0x198   :  { %14245 = vst [vmem:[#allocation64_spill] sm:$0xff] %v11826_v60  ;;  %v11828_v62 = vpop.f32.mrb[67].mxu1 }
 0x199   :  { %14246 = vst [vmem:[#allocation65_spill] sm:$0xff] %v11828_v62  ;;  %v11845_v62 = vsub.s32 0, %v11838_v12 }
 0x19a   :  { %2107 = vmatmul.mubr.bf16.gmra.mrb[96].mxu1 %v10756_v35  ;;  %v474_v35 = vld [vmem:[%s14114_s2] sm:$0x7] }
 0x19b   :  { %2114 = vmatprep.mubr.bf16.mxu1 %v10760_v37  ;;  %14252 = vst [vmem:[#allocation71_spill] sm:$0xff] %v11845_v62  ;;  %v11851_v37 = vsub.s32 1, %v11838_v12 }
 0x19d   :  { %v11832_v19 = vpop.f32.mrb[68].mxu1  ;;  %14253 = vst [vmem:[#allocation72_spill] sm:$0xff] %v11851_v37 }
 0x19e   :  { %14247 = vst [vmem:[#allocation66_spill] sm:$0xff] %v11832_v19  ;;  %v11834_v57 = vpop.f32.mrb[69].mxu1  ;;  %v14258_v19 = vld [vmem:[#allocation2_spill] sm:$0xff] }
 0x19f   :  { %14248 = vst [vmem:[#allocation67_spill] sm:$0xff] %v11834_v57  ;;  %v11836_v10 = vpop.f32.mrb[70].mxu1 }
 0x1a0   :  { %14249 = vst [vmem:[#allocation68_spill] sm:$0xff] %v11836_v10  ;;  %v11840_v32 = vpop.f32.mrb[71].mxu1 }
 0x1a1   :  { %14251 = vst [vmem:[#allocation70_spill] sm:$0xff] %v11840_v32  ;;  %v11865_v32 = vrot.slane %v474_v35, %v11851_v37 }
 0x1a2   :  { %2115 = vmatmul.mubr.bf16.gmra.mrb[100].mxu1 %v10815_v0  ;;  %v11860_v0 = vrot.slane %v474_v35, %v11845_v62 }
 0x1a3   :  { %2122 = vmatprep.mubr.bf16.mxu1 %v10819_v2  ;;  %v1221_v35 = vadd.f32 %v11498_v31, %v11865_v32  ;;  %v1227_v31 = vadd.f32 %v11518_v58, %v11865_v32 }
 0x1a4   :  { %v1215_v12 = vadd.f32 %v11485_v28, %v11860_v0  ;;  %v1219_v62 = vadd.f32 %v11493_v34, %v11860_v0  ;;  %v14259_v28 = vld [vmem:[#allocation3_spill] sm:$0xff]  ;;  %v1225_v34 = vadd.f32 %v11516_v9, %v11860_v0 }
 0x1a5   :  { %v11853_v57 = vpop.f32.mrb[72].mxu1 }
 0x1a6   :  { %14254 = vst [vmem:[#allocation73_spill] sm:$0xff] %v11853_v57  ;;  %v11855_v46 = vpop.f32.mrb[73].mxu1 }
 0x1a7   :  { %14255 = vst [vmem:[#allocation74_spill] sm:$0xff] %v11855_v46  ;;  %v11857_v10 = vpop.f32.mrb[74].mxu1  ;;  %v1217_v46 = vadd.f32 %v11488_v41, %v11865_v32 }
 0x1a8   :  { %14256 = vst [vmem:[#allocation75_spill] sm:$0xff] %v11857_v10  ;;  %v11862_v2 = vpop.f32.mrb[75].mxu1 }
 0x1a9   :  { %14257 = vst [vmem:[#allocation76_spill] sm:$0xff] %v11862_v2 }
 0x1aa   :  { %2123 = vmatmul.mubr.bf16.gmra.mrb[104].mxu1 %v10871_v27 }
 0x1ab   :  { %2130 = vmatprep.mubr.bf16.mxu1 %v14258_v19 }
 0x1ae   :  { %v1660_v57 = vpop.f32.mrb[0].mxu0 }
 0x1af   :  { %v8527_v10 = vadd.f32 %v1660_v57, %v1215_v12  ;;  %v1662_v60 = vpop.f32.mrb[1].mxu0 }
 0x1b0   :  { %v8529_v37 = vadd.f32 %v1662_v60, %v1217_v46  ;;  %v1664_v2 = vpop.f32.mrb[2].mxu0 }
 0x1b1   :  { %v8531_v27 = vadd.f32 %v1664_v2, %v1219_v62  ;;  %v1666_v15 = vpop.f32.mrb[3].mxu0  ;;  %v2404_v13 = vmax.f32 %v8527_v10, 0.0 }
 0x1b2   :  { %v8533_v19 = vadd.f32 %v1666_v15, %v1221_v35  ;;  %2131 = vmatmul.mubr.bf16.gmra.mrb[108].mxu1 %v14259_v28  ;;  %v2405_v44 = vmax.f32 %v8529_v37, 0.0  ;;  %v1229_v15 = vadd.f32 %v11523_v11, %v11860_v0  ;;  %v1231_v37 = vadd.f32 %v11528_v17, %v11865_v32 }
 0x1b3   :  { %v2407_v30 = vmax.f32 %v8531_v27, 0.0  ;;  %2138 = vmatprep.mubr.bf16.mxu1 %v14260_v47  ;;  %v1235_v11 = vadd.f32 %v11545_v63, %v11860_v0  ;;  %v1237_v17 = vadd.f32 %v11547_v23, %v11865_v32 }
 0x1b4   :  { %v2408_v41 = vmax.f32 %v8533_v19, 0.0  ;;  %v14262_v19 = vld [vmem:[#allocation6_spill] sm:$0xff] }
 0x1b5   :  { %v2518_v57 = vpack.c.bf16 %v2407_v30, %v2404_v13  ;;  %v14261_v13 = vld [vmem:[#allocation5_spill] sm:$0xff] }
 0x1b6   :  { %v1670_v60 = vpop.f32.mrb[4].mxu0  ;;  %v2519_v12 = vpack.c.bf16 %v2408_v41, %v2405_v44 }
 0x1b7   :  { %v8535_v62 = vadd.f32 %v1670_v60, %v1225_v34  ;;  %v1672_v10 = vpop.f32.mrb[5].mxu0 }
 0x1b8   :  { %v8537_v46 = vadd.f32 %v1672_v10, %v1227_v31  ;;  %v1674_v2 = vpop.f32.mrb[6].mxu0  ;;  %2806 = vmatprep.mubr.bf16.mxu0 %v2519_v12  ;;  %v1241_v12 = vadd.f32 %v11557_v53, %v11865_v32  ;;  %v1247_v53 = vadd.f32 %v11576_v51, %v11865_v32 }
 0x1b9   :  { %v8539_v47 = vadd.f32 %v1674_v2, %v1229_v15  ;;  %v1676_v35 = vpop.f32.mrb[7].mxu0  ;;  %2807 = vmatmul.mubr.bf16.vlgmr.msra.gmra.mrb[76].mxu0 %v2518_v57  ;;  %v2410_v58 = vmax.f32 %v8535_v62, 0.0  ;;  %v1239_v57 = vadd.f32 %v11552_v24, %v11860_v0  ;;  %v1245_v24 = vadd.f32 %v11574_v39, %v11860_v0 }
 0x1ba   :  { %v8541_v9 = vadd.f32 %v1676_v35, %v1231_v37  ;;  %2139 = vmatmul.mubr.bf16.gmra.mrb[112].mxu1 %v14261_v13  ;;  %v2411_v44 = vmax.f32 %v8537_v46, 0.0  ;;  %v14263_v46 = vld [vmem:[#allocation7_spill] sm:$0xff] }
 0x1bb   :  { %v2413_v30 = vmax.f32 %v8539_v47, 0.0  ;;  %2146 = vmatprep.mubr.bf16.mxu1 %v14262_v19 }
 0x1bc   :  { %v2414_v27 = vmax.f32 %v8541_v9, 0.0  ;;  %v14264_v9 = vld [vmem:[#allocation8_spill] sm:$0xff] }
 0x1bd   :  { %v2521_v28 = vpack.c.bf16 %v2413_v30, %v2410_v58 }
 0x1be   :  { %v1680_v41 = vpop.f32.mrb[8].mxu0  ;;  %v2522_v34 = vpack.c.bf16 %v2414_v27, %v2411_v44  ;;  %v1249_v44 = vadd.f32 %v11581_v25, %v11860_v0  ;;  %v9651_v25 = vld [vmem:[%s14113_s3 + $0x80] sm:$0xff]  }
 0x1bf   :  { %v8543_v31 = vadd.f32 %v1680_v41, %v1235_v11  ;;  %v1682_v60 = vpop.f32.mrb[9].mxu0  ;;  %v1251_v11 = vadd.f32 %v11586_v61, %v11865_v32  ;;  %v1255_v61 = vadd.f32 %v11603_v5, %v11860_v0  ;;  %8251 = vmatpush3.bf16.msra.mxu0 %v9651_v25 }
 0x1c0   :  { %v8545_v15 = vadd.f32 %v1682_v60, %v1237_v17  ;;  %v1684_v62 = vpop.f32.mrb[10].mxu0  ;;  %2814 = vmatprep.mubr.bf16.mxu0 %v2522_v34  ;;  %8252 = vmatprep.subr.bf16.mxu0 %v14217_v55 }
 0x1c1   :  { %v8547_v10 = vadd.f32 %v1684_v62, %v1239_v57  ;;  %v1686_v37 = vpop.f32.mrb[11].mxu0  ;;  %2815 = vmatmul.mubr.bf16.gmra.mrb[80].mxu0 %v2521_v28  ;;  %v2416_v23 = vmax.f32 %v8543_v31, 0.0  ;;  %v14265_v57 = vld [vmem:[#allocation9_spill] sm:$0xff] }
 0x1c2   :  { %v8549_v63 = vadd.f32 %v1686_v37, %v1241_v12  ;;  %2147 = vmatmul.mubr.bf16.gmra.mrb[116].mxu1 %v14263_v46  ;;  %v2417_v47 = vmax.f32 %v8545_v15, 0.0  ;;  %v14266_v15 = vld [vmem:[#allocation10_spill] sm:$0xff]  ;;  %v1259_v46 = vadd.f32 %v11610_v1, %v11860_v0  ;;  %v1265_v1 = vadd.f32 %v11625_v4, %v11860_v0 }
 0x1c3   :  { %v2419_v2 = vmax.f32 %v8547_v10, 0.0  ;;  %2154 = vmatprep.mubr.bf16.mxu1 %v14264_v9  ;;  %v1257_v10 = vadd.f32 %v11605_v22, %v11865_v32  ;;  %v14267_v22 = vld [vmem:[#allocation11_spill] sm:$0xff] }
 0x1c4   :  { %v2420_v35 = vmax.f32 %v8549_v63, 0.0 }
 0x1c5   :  { %v2524_v13 = vpack.c.bf16 %v2419_v2, %v2416_v23 }
 0x1c6   :  { %v1690_v58 = vpop.f32.mrb[12].mxu0  ;;  %v2525_v30 = vpack.c.bf16 %v2420_v35, %v2417_v47  ;;  %v1261_v47 = vadd.f32 %v11612_v3, %v11865_v32  ;;  %v1267_v3 = vadd.f32 %v11627_v45, %v11865_v32 }
 0x1c7   :  { %v8551_v27 = vadd.f32 %v1690_v58, %v1245_v24  ;;  %v1692_v19 = vpop.f32.mrb[13].mxu0 }
 0x1c8   :  { %v8553_v28 = vadd.f32 %v1692_v19, %v1247_v53  ;;  %v1694_v17 = vpop.f32.mrb[14].mxu0  ;;  %2822 = vmatprep.mubr.bf16.mxu0 %v2525_v30 }
 0x1c9   :  { %v8555_v41 = vadd.f32 %v1694_v17, %v1249_v44  ;;  %v1696_v34 = vpop.f32.mrb[15].mxu0  ;;  %2823 = vmatmul.mubr.bf16.gmra.mrb[84].mxu0 %v2524_v13  ;;  %v2422_v51 = vmax.f32 %v8551_v27, 0.0  ;;  %v14268_v27 = vld [vmem:[#allocation12_spill] sm:$0xff]  ;;  %v1269_v17 = vadd.f32 %v11631_v40, %v11860_v0  ;;  %v1275_v40 = vadd.f32 %v11646_v36, %v11860_v0 }
 0x1ca   :  { %v8557_v39 = vadd.f32 %v1696_v34, %v1251_v11  ;;  %2155 = vmatmul.mubr.bf16.gmra.mrb[120].mxu1 %v14265_v57  ;;  %v2423_v60 = vmax.f32 %v8553_v28, 0.0 }
 0x1cb   :  { %v2425_v31 = vmax.f32 %v8555_v41, 0.0  ;;  %2162 = vmatprep.mubr.bf16.mxu1 %v14266_v15 }
 0x1cc   :  { %v2426_v12 = vmax.f32 %v8557_v39, 0.0  ;;  %v1271_v39 = vadd.f32 %v11633_v8, %v11865_v32  ;;  %v1277_v8 = vadd.f32 %v11648_v43, %v11865_v32 }
 0x1cd   :  { %v2527_v62 = vpack.c.bf16 %v2425_v31, %v2422_v51 }
 0x1ce   :  { %v1700_v37 = vpop.f32.mrb[16].mxu0  ;;  %v2528_v63 = vpack.c.bf16 %v2426_v12, %v2423_v60  ;;  %v14269_v60 = vld [vmem:[#allocation13_spill] sm:$0xff] }
 0x1cf   :  { %v8559_v23 = vadd.f32 %v1700_v37, %v1255_v61  ;;  %v1702_v2 = vpop.f32.mrb[17].mxu0 }
 0x1d0   :  { %v8561_v35 = vadd.f32 %v1702_v2, %v1257_v10  ;;  %v1704_v9 = vpop.f32.mrb[18].mxu0  ;;  %2830 = vmatprep.mubr.bf16.mxu0 %v2528_v63 }
 0x1d1   :  { %v8563_v5 = vadd.f32 %v1704_v9, %v1259_v46  ;;  %v1706_v24 = vpop.f32.mrb[19].mxu0  ;;  %2831 = vmatmul.mubr.bf16.gmra.mrb[88].mxu0 %v2527_v62  ;;  %v2428_v53 = vmax.f32 %v8559_v23, 0.0  ;;  %v14270_v62 = vld [vmem:[#allocation14_spill] sm:$0xff]  ;;  %v1279_v46 = vadd.f32 %v11652_v59, %v11860_v0  ;;  %v9652_v59 = vld [vmem:[%s14113_s3 + $0x88] sm:$0xff]  }
 0x1d2   :  { %v8565_v13 = vadd.f32 %v1706_v24, %v1261_v47  ;;  %2163 = vmatmul.mubr.bf16.gmra.mrb[124].mxu1 %v14267_v22  ;;  %v2429_v30 = vmax.f32 %v8561_v35, 0.0  ;;  %v1281_v47 = vadd.f32 %v11654_v6, %v11865_v32  ;;  %v1285_v6 = vadd.f32 %v11667_v26, %v11860_v0  ;;  %8253 = vmatpush3.bf16.msra.mxu0 %v9652_v59  ;;  %v14278_v59 = vld [vmem:[#allocation43_spill] sm:$0xff] }
 0x1d3   :  { %v2431_v58 = vmax.f32 %v8563_v5, 0.0  ;;  %2170 = vmatprep.mubr.bf16.mxu1 %v14268_v27  ;;  %v1287_v27 = vadd.f32 %v11669_v14, %v11865_v32  ;;  %8254 = vmatprep.subr.bf16.mxu0 %v14217_v55  ;;  %v14273_v14 = vld [vmem:[#allocation17_spill] sm:$0xff] }
 0x1d4   :  { %v2432_v44 = vmax.f32 %v8565_v13, 0.0  ;;  %v14271_v13 = vld [vmem:[#allocation15_spill] sm:$0xff] }
 0x1d5   :  { %v2530_v19 = vpack.c.bf16 %v2431_v58, %v2428_v53 }
 0x1d6   :  { %v1710_v11 = vpop.f32.mrb[20].mxu0  ;;  %v2531_v28 = vpack.c.bf16 %v2432_v44, %v2429_v30  ;;  %v14272_v30 = vld [vmem:[#allocation16_spill] sm:$0xff] }
 0x1d7   :  { %v8567_v41 = vadd.f32 %v1710_v11, %v1265_v1  ;;  %v1712_v34 = vpop.f32.mrb[21].mxu0 }
 0x1d8   :  { %v8569_v57 = vadd.f32 %v1712_v34, %v1267_v3  ;;  %v1714_v51 = vpop.f32.mrb[22].mxu0  ;;  %2838 = vmatprep.mubr.bf16.mxu0 %v2531_v28  ;;  %v1289_v3 = vadd.f32 %v11673_v29, %v11860_v0  ;;  %v1295_v29 = vadd.f32 %v11688_v16, %v11860_v0 }
 0x1d9   :  { %v8571_v31 = vadd.f32 %v1714_v51, %v1269_v17  ;;  %v1716_v25 = vpop.f32.mrb[23].mxu0  ;;  %2839 = vmatmul.mubr.bf16.gmra.mrb[92].mxu0 %v2530_v19  ;;  %v2434_v45 = vmax.f32 %v8567_v41, 0.0  ;;  %v1291_v17 = vadd.f32 %v11675_v50, %v11865_v32  ;;  %v1297_v50 = vadd.f32 %v11690_v52, %v11865_v32 }
 0x1da   :  { %v8573_v4 = vadd.f32 %v1716_v25, %v1271_v39  ;;  %2171 = vmatmul.mubr.bf16.gmra.mrb[128].mxu1 %v14269_v60  ;;  %v2435_v15 = vmax.f32 %v8569_v57, 0.0  ;;  %v14274_v60 = vld [vmem:[#allocation18_spill] sm:$0xff] }
 0x1db   :  { %v2437_v12 = vmax.f32 %v8571_v31, 0.0  ;;  %2178 = vmatprep.mubr.bf16.mxu1 %v14270_v62 }
 0x1dc   :  { %v2438_v61 = vmax.f32 %v8573_v4, 0.0 }
 0x1dd   :  { %v2533_v10 = vpack.c.bf16 %v2437_v12, %v2434_v45 }
 0x1de   :  { %v1720_v37 = vpop.f32.mrb[24].mxu0  ;;  %v2534_v63 = vpack.c.bf16 %v2438_v61, %v2435_v15  ;;  %v1299_v61 = vadd.f32 %v11694_v33, %v11860_v0  ;;  %v9653_v33 = vld [vmem:[%s14113_s3 + $0x90] sm:$0xff]  }
 0x1df   :  { %v8575_v23 = vadd.f32 %v1720_v37, %v1275_v40  ;;  %v1722_v2 = vpop.f32.mrb[25].mxu0  ;;  %8255 = vmatpush3.bf16.msra.mxu0 %v9653_v33  ;;  %v1331_v33 = vadd.f32 %v11753_v7, %v11865_v32  ;;  %v1335_v7 = vadd.f32 %v11761_v38, %v11860_v0 }
 0x1e0   :  { %v8577_v35 = vadd.f32 %v1722_v2, %v1277_v8  ;;  %v1724_v9 = vpop.f32.mrb[26].mxu0  ;;  %2846 = vmatprep.mubr.bf16.mxu0 %v2534_v63  ;;  %v14276_v2 = vld [vmem:[#allocation19_spill] sm:$0xff]  ;;  %8256 = vmatprep.subr.bf16.mxu0 %v14217_v55 }
 0x1e1   :  { %v8579_v5 = vadd.f32 %v1724_v9, %v1279_v46  ;;  %v1726_v24 = vpop.f32.mrb[27].mxu0  ;;  %2847 = vmatmul.mubr.bf16.gmra.mrb[96].mxu0 %v2533_v10  ;;  %v2440_v43 = vmax.f32 %v8575_v23, 0.0  ;;  %v14275_v10 = vld [vmem:[#allocation41_spill] sm:$0xff] }
 0x1e2   :  { %v8581_v36 = vadd.f32 %v1726_v24, %v1281_v47  ;;  %2179 = vmatmul.mubr.bf16.gmra.mrb[132].mxu1 %v14271_v13  ;;  %v2441_v53 = vmax.f32 %v8577_v35, 0.0  ;;  %v1301_v8 = vadd.f32 %v14275_v10, %v11865_v32  ;;  %v1305_v24 = vadd.f32 %v11709_v20, %v11860_v0 }
 0x1e3   :  { %v2443_v22 = vmax.f32 %v8579_v5, 0.0  ;;  %2186 = vmatprep.mubr.bf16.mxu1 %v14272_v30  ;;  %v14277_v5 = vld [vmem:[#allocation20_spill] sm:$0xff]  ;;  %v1307_v13 = vadd.f32 %v11711_v21, %v11865_v32  ;;  %v14280_v21 = vld [vmem:[#allocation21_spill] sm:$0xff] }
 0x1e4   :  { %v2444_v58 = vmax.f32 %v8581_v36, 0.0 }
 0x1e5   :  { %v2536_v44 = vpack.c.bf16 %v2443_v22, %v2440_v43 }
 0x1e6   :  { %v1730_v1 = vpop.f32.mrb[28].mxu0  ;;  %v2537_v19 = vpack.c.bf16 %v2444_v58, %v2441_v53  ;;  %v1309_v53 = vadd.f32 %v14278_v59, %v11860_v0 }
 0x1e7   :  { %v8583_v11 = vadd.f32 %v1730_v1, %v1285_v6  ;;  %v1732_v28 = vpop.f32.mrb[29].mxu0  ;;  %v14279_v6 = vld [vmem:[#allocation44_spill] sm:$0xff] }
 0x1e8   :  { %v8585_v41 = vadd.f32 %v1732_v28, %v1287_v27  ;;  %v1734_v34 = vpop.f32.mrb[30].mxu0  ;;  %2854 = vmatprep.mubr.bf16.mxu0 %v2537_v19 }
 0x1e9   :  { %v8587_v26 = vadd.f32 %v1734_v34, %v1289_v3  ;;  %v1736_v39 = vpop.f32.mrb[31].mxu0  ;;  %2855 = vmatmul.mubr.bf16.gmra.mrb[100].mxu0 %v2536_v44  ;;  %v2446_v51 = vmax.f32 %v8583_v11, 0.0  ;;  %v1311_v44 = vadd.f32 %v14279_v6, %v11865_v32  ;;  %v14281_v34 = vld [vmem:[#allocation22_spill] sm:$0xff] }
 0x1ea   :  { %v8589_v57 = vadd.f32 %v1736_v39, %v1291_v17  ;;  %2187 = vmatmul.mubr.bf16.gmra.mrb[136].mxu1 %v14273_v14  ;;  %v2447_v25 = vmax.f32 %v8585_v41, 0.0  ;;  %v1317_v14 = vadd.f32 %v11732_v42, %v11865_v32 }
 0x1eb   :  { %v2449_v31 = vmax.f32 %v8587_v26, 0.0  ;;  %2194 = vmatprep.mubr.bf16.mxu1 %v14274_v60  ;;  %v14282_v26 = vld [vmem:[#allocation45_spill] sm:$0xff] }
 0x1ec   :  { %v2450_v4 = vmax.f32 %v8589_v57, 0.0  ;;  %v1315_v39 = vadd.f32 %v14282_v26, %v11860_v0  ;;  %v14289_v26 = vld [vmem:[#allocation25_spill] sm:$0xff] }
 0x1ed   :  { %v2539_v45 = vpack.c.bf16 %v2449_v31, %v2446_v51 }
 0x1ee   :  { %v1740_v12 = vpop.f32.mrb[32].mxu0  ;;  %v2540_v15 = vpack.c.bf16 %v2450_v4, %v2447_v25  ;;  %v1319_v25 = vadd.f32 %v11736_v48, %v11860_v0  ;;  %v9654_v48 = vld [vmem:[%s14113_s3 + $0x98] sm:$0xff]  }
 0x1ef   :  { %v8591_v62 = vadd.f32 %v1740_v12, %v1295_v29  ;;  %v1742_v40 = vpop.f32.mrb[33].mxu0  ;;  %v1321_v29 = vadd.f32 %v11738_v18, %v11865_v32  ;;  %v1325_v18 = vadd.f32 %v11744_v49, %v11860_v0  ;;  %8257 = vmatpush3.bf16.msra.mxu0 %v9654_v48 }
 0x1f0   :  { %v8593_v37 = vadd.f32 %v1742_v40, %v1297_v50  ;;  %v1744_v63 = vpop.f32.mrb[34].mxu0  ;;  %2862 = vmatprep.mubr.bf16.mxu0 %v2540_v15  ;;  %8258 = vmatprep.subr.bf16.mxu0 %v14217_v55 }
 0x1f1   :  { %v8595_v46 = vadd.f32 %v1744_v63, %v1299_v61  ;;  %v1746_v23 = vpop.f32.mrb[35].mxu0  ;;  %2863 = vmatmul.mubr.bf16.gmra.mrb[104].mxu0 %v2539_v45  ;;  %v2452_v52 = vmax.f32 %v8591_v62, 0.0  ;;  %v14283_v62 = vld [vmem:[#allocation23_spill] sm:$0xff]  ;;  %v1327_v63 = vadd.f32 %v11746_v56, %v11865_v32  ;;  %v14285_v56 = vld [vmem:[#allocation24_spill] sm:$0xff] }
 0x1f2   :  { %v8597_v16 = vadd.f32 %v1746_v23, %v1301_v8  ;;  %2195 = vmatmul.mubr.bf16.gmra.mrb[140].mxu1 %v14276_v2  ;;  %v2453_v35 = vmax.f32 %v8593_v37, 0.0 }
 0x1f3   :  { %v2455_v47 = vmax.f32 %v8595_v46, 0.0  ;;  %2202 = vmatprep.mubr.bf16.mxu1 %v14277_v5 }
 0x1f4   :  { %v2456_v9 = vmax.f32 %v8597_v16, 0.0  ;;  %v14284_v16 = vld [vmem:[#allocation47_spill] sm:$0xff] }
 0x1f5   :  { %v2542_v36 = vpack.c.bf16 %v2455_v47, %v2452_v52  ;;  %v1329_v2 = vadd.f32 %v14284_v16, %v11860_v0  ;;  %v14294_v16 = vld [vmem:[#allocation54_spill] sm:$0xff] }
 0x1f6   :  { %v1750_v43 = vpop.f32.mrb[36].mxu0  ;;  %v2543_v22 = vpack.c.bf16 %v2456_v9, %v2453_v35 }
 0x1f7   :  { %v8599_v58 = vadd.f32 %v1750_v43, %v1305_v24  ;;  %v1752_v30 = vpop.f32.mrb[37].mxu0 }
 0x1f8   :  { %v8601_v27 = vadd.f32 %v1752_v30, %v1307_v13  ;;  %v1754_v1 = vpop.f32.mrb[38].mxu0  ;;  %2870 = vmatprep.mubr.bf16.mxu0 %v2543_v22 }
 0x1f9   :  { %v8603_v20 = vadd.f32 %v1754_v1, %v1309_v53  ;;  %v1756_v19 = vpop.f32.mrb[39].mxu0  ;;  %2871 = vmatmul.mubr.bf16.gmra.mrb[108].mxu0 %v2542_v36  ;;  %v2458_v11 = vmax.f32 %v8599_v58, 0.0  ;;  %v14286_v58 = vld [vmem:[#allocation48_spill] sm:$0xff]  ;;  %v14287_v1 = vld [vmem:[#allocation49_spill] sm:$0xff] }
 0x1fa   :  { %v8605_v3 = vadd.f32 %v1756_v19, %v1311_v44  ;;  %2203 = vmatmul.mubr.bf16.gmra.mrb[144].mxu1 %v14280_v21  ;;  %v2459_v17 = vmax.f32 %v8601_v27, 0.0  ;;  %v1337_v30 = vadd.f32 %v14286_v58, %v11865_v32  ;;  %v14288_v21 = vld [vmem:[#allocation50_spill] sm:$0xff]  ;;  %v9657_v58 = vld [vmem:[%s14113_s3 + $0xb0] sm:$0xff]  }
 0x1fb   :  { %v2461_v28 = vmax.f32 %v8603_v20, 0.0  ;;  %2210 = vmatprep.mubr.bf16.mxu1 %v14281_v34  ;;  %v1339_v20 = vadd.f32 %v14287_v1, %v11860_v0 }
 0x1fc   :  { %v2462_v41 = vmax.f32 %v8605_v3, 0.0 }
 0x1fd   :  { %v2545_v57 = vpack.c.bf16 %v2461_v28, %v2458_v11  ;;  %v1341_v11 = vadd.f32 %v14288_v21, %v11865_v32 }
 0x1fe   :  { %v1760_v51 = vpop.f32.mrb[40].mxu0  ;;  %v2546_v31 = vpack.c.bf16 %v2462_v41, %v2459_v17 }
 0x1ff   :  { %v8607_v4 = vadd.f32 %v1760_v51, %v1315_v39  ;;  %v1762_v60 = vpop.f32.mrb[41].mxu0  ;;  %v1345_v51 = vadd.f32 %v11779_v54, %v11860_v0 }
 0x200   :  { %v8609_v45 = vadd.f32 %v1762_v60, %v1317_v14  ;;  %v1764_v50 = vpop.f32.mrb[42].mxu0  ;;  %2878 = vmatprep.mubr.bf16.mxu0 %v2546_v31 }
 0x201   :  { %v8611_v12 = vadd.f32 %v1764_v50, %v1319_v25  ;;  %v1766_v15 = vpop.f32.mrb[43].mxu0  ;;  %2879 = vmatmul.mubr.bf16.gmra.mrb[112].mxu0 %v2545_v57  ;;  %v2464_v42 = vmax.f32 %v8607_v4, 0.0  ;;  %v14290_v4 = vld [vmem:[#allocation51_spill] sm:$0xff]  ;;  %v14291_v50 = vld [vmem:[#allocation52_spill] sm:$0xff] }
 0x202   :  { %v8613_v61 = vadd.f32 %v1766_v15, %v1321_v29  ;;  %2211 = vmatmul.mubr.bf16.gmra.mrb[148].mxu1 %v14283_v62  ;;  %v2465_v10 = vmax.f32 %v8609_v45, 0.0  ;;  %v1347_v60 = vadd.f32 %v14290_v4, %v11865_v32  ;;  %v14292_v62 = vld [vmem:[#allocation53_spill] sm:$0xff] }
 0x203   :  { %v2467_v40 = vmax.f32 %v8611_v12, 0.0  ;;  %8174 = vmatprep.mubr.msk.bf16.mxu1 %vm10243_vm2, %v14217_v55  ;;  %v1349_v12 = vadd.f32 %v14291_v50, %v11860_v0  ;;  %v14303_v50 = vld [vmem:[#allocation28_spill] sm:$0xff] }
 0x204   :  { %v2468_v8 = vmax.f32 %v8613_v61, 0.0 }
 0x205   :  { %v2548_v37 = vpack.c.bf16 %v2467_v40, %v2464_v42  ;;  %v1351_v42 = vadd.f32 %v14292_v62, %v11865_v32  ;;  %v14304_v62 = vld [vmem:[#allocation62_spill] sm:$0xff] }
 0x206   :  { %v1770_v46 = vpop.f32.mrb[44].mxu0  ;;  %v2549_v23 = vpack.c.bf16 %v2468_v8, %v2465_v10 }
 0x207   :  { %v8615_v52 = vadd.f32 %v1770_v46, %v1325_v18  ;;  %v1772_v47 = vpop.f32.mrb[45].mxu0  ;;  %v14293_v18 = vld [vmem:[#allocation26_spill] sm:$0xff] }
 0x208   :  { %v8617_v35 = vadd.f32 %v1772_v47, %v1327_v63  ;;  %v1774_v9 = vpop.f32.mrb[46].mxu0  ;;  %2886 = vmatprep.mubr.bf16.mxu0 %v2549_v23 }
 0x209   :  { %v8619_v49 = vadd.f32 %v1774_v9, %v1329_v2  ;;  %v1776_v5 = vpop.f32.mrb[47].mxu0  ;;  %2887 = vmatmul.mubr.bf16.gmra.mrb[116].mxu0 %v2548_v37  ;;  %v2470_v36 = vmax.f32 %v8615_v52, 0.0  ;;  %v9655_v37 = vld [vmem:[%s14113_s3 + $0xa0] sm:$0xff]   ;;  %v1355_v2 = vadd.f32 %v14294_v16, %v11860_v0  ;;  %v9656_v9 = vld [vmem:[%s14113_s3 + $0xa8] sm:$0xff]   ;;  %v14307_v16 = vld [vmem:[#allocation65_spill] sm:$0xff] }
 0x20a   :  { %v8621_v24 = vadd.f32 %v1776_v5, %v1331_v33  ;;  %8175 = vmatmul.mubr.msk.bf16.vlgmr.msra.gmra.mrb[76].mxu1 %vm1112_vm1, %v14285_v56  ;;  %v2471_v43 = vmax.f32 %v8617_v35, 0.0  ;;  %8259 = vmatpush3.bf16.msra.mxu0 %v9655_v37  ;;  %v14295_v33 = vld [vmem:[#allocation55_spill] sm:$0xff]  ;;  %v14306_v37 = vld [vmem:[#allocation64_spill] sm:$0xff] }
 0x20b   :  { %v2473_v13 = vmax.f32 %v8619_v49, 0.0  ;;  %8178 = vmatprep.mubr.msk.bf16.mxu1 %vm10243_vm2, %v14217_v55  ;;  %v1357_v35 = vadd.f32 %v14295_v33, %v11865_v32  ;;  %8260 = vmatprep.subr.bf16.mxu0 %v14217_v55 }
 0x20c   :  { %v2474_v22 = vmax.f32 %v8621_v24, 0.0  ;;  %v14296_v24 = vld [vmem:[#allocation56_spill] sm:$0xff] }
 0x20d   :  { %v2551_v59 = vpack.c.bf16 %v2473_v13, %v2470_v36  ;;  %v1359_v56 = vadd.f32 %v14296_v24, %v11860_v0 }
 0x20e   :  { %v1780_v53 = vpop.f32.mrb[48].mxu0  ;;  %v2552_v6 = vpack.c.bf16 %v2474_v22, %v2471_v43  ;;  %v14297_v43 = vld [vmem:[#allocation57_spill] sm:$0xff]  ;;  %8261 = vmatpush3.bf16.msra.mxu0 %v9656_v9 }
 0x20f   :  { %v8623_v44 = vadd.f32 %v1780_v53, %v1335_v7  ;;  %v1782_v27 = vpop.f32.mrb[49].mxu0  ;;  %v1361_v22 = vadd.f32 %v14297_v43, %v11865_v32  ;;  %8262 = vmatprep.subr.bf16.mxu0 %v14217_v55 }
 0x210   :  { %v8625_v19 = vadd.f32 %v1782_v27, %v1337_v30  ;;  %v1784_v3 = vpop.f32.mrb[50].mxu0  ;;  %2894 = vmatprep.mubr.bf16.mxu0 %v2552_v6 }
 0x211   :  { %v8627_v28 = vadd.f32 %v1784_v3, %v1339_v20  ;;  %v1786_v17 = vpop.f32.mrb[51].mxu0  ;;  %2895 = vmatmul.mubr.bf16.gmra.mrb[120].mxu0 %v2551_v59  ;;  %v2476_v41 = vmax.f32 %v8623_v44, 0.0  ;;  %v14298_v44 = vld [vmem:[#allocation27_spill] sm:$0xff] }
 0x212   :  { %v8629_v38 = vadd.f32 %v1786_v17, %v1341_v11  ;;  %8179 = vmatmul.mubr.msk.bf16.gmra.mrb[80].mxu1 %vm1112_vm1, %v14289_v26  ;;  %v2477_v39 = vmax.f32 %v8625_v19, 0.0  ;;  %v14299_v19 = vld [vmem:[#allocation58_spill] sm:$0xff]  ;;  %8263 = vmatpush3.bf16.msra.mxu0 %v9657_v58  ;;  %v14301_v26 = vld [vmem:[#allocation60_spill] sm:$0xff] }
 0x213   :  { %v2479_v34 = vmax.f32 %v8627_v28, 0.0  ;;  %8182 = vmatprep.mubr.msk.bf16.mxu1 %vm10243_vm2, %v14217_v55  ;;  %v1365_v3 = vadd.f32 %v14299_v19, %v11860_v0  ;;  %v14300_v28 = vld [vmem:[#allocation59_spill] sm:$0xff]  ;;  %8264 = vmatprep.subr.bf16.mxu0 %v14217_v55 }
 0x214   :  { %v2480_v57 = vmax.f32 %v8629_v38, 0.0  ;;  %v1367_v17 = vadd.f32 %v14300_v28, %v11865_v32  ;;  %v9658_v38 = vld [vmem:[%s14113_s3 + $0xb8] sm:$0xff]  }
 0x215   :  { %v2554_v14 = vpack.c.bf16 %v2479_v34, %v2476_v41 }
 0x216   :  { %v2555_v31 = vpack.c.bf16 %v2480_v57, %v2477_v39  ;;  %v1790_v25 = vpop.f32.mrb[52].mxu0  ;;  %v1369_v39 = vadd.f32 %v14301_v26, %v11860_v0  ;;  %8265 = vmatpush3.bf16.msra.mxu0 %v9658_v38  ;;  %v14314_v26 = vld [vmem:[#allocation73_spill] sm:$0xff] }
 0x217   :  { %v8631_v29 = vadd.f32 %v1790_v25, %v1345_v51  ;;  %v1792_v45 = vpop.f32.mrb[53].mxu0  ;;  %v14302_v51 = vld [vmem:[#allocation61_spill] sm:$0xff] }
 0x218   :  { %v8633_v15 = vadd.f32 %v1792_v45, %v1347_v60  ;;  %v1794_v61 = vpop.f32.mrb[54].mxu0  ;;  %2902 = vmatprep.mubr.bf16.mxu0 %v2555_v31  ;;  %v1371_v31 = vadd.f32 %v14302_v51, %v11865_v32  ;;  %v14315_v51 = vld [vmem:[#allocation74_spill] sm:$0xff] }
 0x219   :  { %v8635_v40 = vadd.f32 %v1794_v61, %v1349_v12  ;;  %v1796_v48 = vpop.f32.mrb[55].mxu0  ;;  %2903 = vmatmul.mubr.bf16.gmra.mrb[124].mxu0 %v2554_v14  ;;  %v2482_v10 = vmax.f32 %v8631_v29, 0.0 }
 0x21a   :  { %v8637_v54 = vadd.f32 %v1796_v48, %v1351_v42  ;;  %8183 = vmatmul.mubr.msk.bf16.gmra.mrb[84].mxu1 %vm1112_vm1, %v14293_v18  ;;  %v2483_v63 = vmax.f32 %v8633_v15, 0.0  ;;  %v1375_v42 = vadd.f32 %v14304_v62, %v11860_v0 }
 0x21b   :  { %v2485_v8 = vmax.f32 %v8635_v40, 0.0  ;;  %8186 = vmatprep.mubr.msk.bf16.mxu1 %vm10243_vm2, %v14217_v55 }
 0x21c   :  { %v2486_v46 = vmax.f32 %v8637_v54, 0.0  ;;  %v14305_v54 = vld [vmem:[#allocation63_spill] sm:$0xff] }
 0x21d   :  { %v2557_v23 = vpack.c.bf16 %v2485_v8, %v2482_v10  ;;  %v1377_v10 = vadd.f32 %v14305_v54, %v11865_v32  ;;  %v14318_v54 = vld [vmem:[#allocation31_spill] sm:$0xff] }
 0x21e   :  { %v2558_v52 = vpack.c.bf16 %v2486_v46, %v2483_v63  ;;  %v1800_v47 = vpop.f32.mrb[56].mxu0  ;;  %v1379_v63 = vadd.f32 %v14306_v37, %v11860_v0  ;;  %v14320_v37 = vld [vmem:[#allocation33_spill] sm:$0xff] }
 0x21f   :  { %v8639_v49 = vadd.f32 %v1800_v47, %v1355_v2  ;;  %v1802_v5 = vpop.f32.mrb[57].mxu0  ;;  %v1381_v2 = vadd.f32 %v14307_v16, %v11865_v32  ;;  %v14324_v16 = vld [vmem:[#allocation37_spill] sm:$0xff] }
 0x220   :  { %v8641_v36 = vadd.f32 %v1802_v5, %v1357_v35  ;;  %v1804_v13 = vpop.f32.mrb[58].mxu0  ;;  %2910 = vmatprep.mubr.bf16.mxu0 %v2558_v52 }
 0x221   :  { %v8643_v7 = vadd.f32 %v1804_v13, %v1359_v56  ;;  %v1806_v59 = vpop.f32.mrb[59].mxu0  ;;  %2911 = vmatmul.mubr.bf16.gmra.mrb[128].mxu0 %v2557_v23  ;;  %v2488_v30 = vmax.f32 %v8639_v49, 0.0  ;;  %v14308_v49 = vld [vmem:[#allocation29_spill] sm:$0xff] }
 0x222   :  { %v8645_v53 = vadd.f32 %v1806_v59, %v1361_v22  ;;  %8187 = vmatmul.mubr.msk.bf16.gmra.mrb[88].mxu1 %vm1112_vm1, %v14298_v44  ;;  %v2489_v27 = vmax.f32 %v8641_v36, 0.0  ;;  %v14309_v36 = vld [vmem:[#allocation66_spill] sm:$0xff] }
 0x223   :  { %v2491_v6 = vmax.f32 %v8643_v7, 0.0  ;;  %8190 = vmatprep.mubr.msk.bf16.mxu1 %vm10243_vm2, %v14217_v55  ;;  %v1385_v13 = vadd.f32 %v14309_v36, %v11860_v0  ;;  %v14310_v7 = vld [vmem:[#allocation67_spill] sm:$0xff]  ;;  %v9665_v36 = vld [vmem:[%s14115_s5 + $0x30] ss:$12 sps:$4 sm:$0xff]  }
 0x224   :  { %v2492_v1 = vmax.f32 %v8645_v53, 0.0  ;;  %v1387_v59 = vadd.f32 %v14310_v7, %v11865_v32  ;;  %v10239_v7 = vld [vmem:[%s14114_s2] sm:$0x7] }
 0x225   :  { %v2560_v20 = vpack.c.bf16 %v2491_v6, %v2488_v30  ;;  %v14311_v30 = vld [vmem:[#allocation68_spill] sm:$0xff] }
 0x226   :  { %v2561_v21 = vpack.c.bf16 %v2492_v1, %v2489_v27  ;;  %v1810_v11 = vpop.f32.mrb[60].mxu0  ;;  %v1389_v6 = vadd.f32 %v14311_v30, %v11860_v0  ;;  %v14312_v1 = vld [vmem:[#allocation70_spill] sm:$0xff] }
 0x227   :  { %v8647_v41 = vadd.f32 %v1810_v11, %v1365_v3  ;;  %v1812_v34 = vpop.f32.mrb[61].mxu0 }
 0x228   :  { %v8649_v57 = vadd.f32 %v1812_v34, %v1367_v17  ;;  %v1814_v14 = vpop.f32.mrb[62].mxu0  ;;  %2918 = vmatprep.mubr.bf16.mxu0 %v2561_v21  ;;  %v14313_v17 = vld [vmem:[#allocation30_spill] sm:$0xff] }
 0x229   :  { %v8651_v25 = vadd.f32 %v1814_v14, %v1369_v39  ;;  %v1816_v4 = vpop.f32.mrb[63].mxu0  ;;  %2919 = vmatmul.mubr.bf16.gmra.mrb[132].mxu0 %v2560_v20  ;;  %v2494_v29 = vmax.f32 %v8647_v41, 0.0  ;;  %v1391_v20 = vadd.f32 %v14312_v1, %v11865_v32  ;;  %v1395_v39 = vadd.f32 %v14314_v26, %v11860_v0 }
 0x22a   :  { %v8653_v60 = vadd.f32 %v1816_v4, %v1371_v31  ;;  %8191 = vmatmul.mubr.msk.bf16.gmra.mrb[92].mxu1 %vm1112_vm1, %v14303_v50  ;;  %v2495_v12 = vmax.f32 %v8649_v57, 0.0  ;;  %v1397_v31 = vadd.f32 %v14315_v51, %v11865_v32 }
 0x22b   :  { %v2497_v45 = vmax.f32 %v8651_v25, 0.0  ;;  %8194 = vmatprep.mubr.msk.bf16.mxu1 %vm10243_vm2, %v14217_v55 }
 0x22c   :  { %v2498_v15 = vmax.f32 %v8653_v60, 0.0  ;;  %v14316_v60 = vld [vmem:[#allocation75_spill] sm:$0xff] }
 0x22d   :  { %v2563_v61 = vpack.c.bf16 %v2497_v45, %v2494_v29  ;;  %v1399_v29 = vadd.f32 %v14316_v60, %v11860_v0 }
 0x22e   :  { %v2564_v40 = vpack.c.bf16 %v2498_v15, %v2495_v12  ;;  %v1820_v48 = vpop.f32.mrb[64].mxu0  ;;  %v14317_v12 = vld [vmem:[#allocation76_spill] sm:$0xff] }
 0x22f   :  { %v8655_v8 = vadd.f32 %v1820_v48, %v1375_v42  ;;  %v1822_v18 = vpop.f32.mrb[65].mxu0  ;;  %v1401_v15 = vadd.f32 %v14317_v12, %v11865_v32  ;;  %v14319_v32 = vld [vmem:[#allocation32_spill] sm:$0xff] }
 0x230   :  { %v8657_v46 = vadd.f32 %v1822_v18, %v1377_v10  ;;  %v1824_v23 = vpop.f32.mrb[66].mxu0  ;;  %2926 = vmatprep.mubr.bf16.mxu0 %v2564_v40 }
 0x231   :  { %v8659_v52 = vadd.f32 %v1824_v23, %v1379_v63  ;;  %v1826_v47 = vpop.f32.mrb[67].mxu0  ;;  %2927 = vmatmul.mubr.bf16.gmra.mrb[136].mxu0 %v2563_v61  ;;  %v2500_v35 = vmax.f32 %v8655_v8, 0.0  ;;  %v14321_v63 = vld [vmem:[#allocation34_spill] sm:$0xff]  ;;  %v14323_v23 = vld [vmem:[#allocation36_spill] sm:$0xff] }
 0x232   :  { %v8661_v33 = vadd.f32 %v1826_v47, %v1381_v2  ;;  %8195 = vmatmul.mubr.msk.bf16.gmra.mrb[96].mxu1 %vm1112_vm1, %v14308_v49  ;;  %v2501_v5 = vmax.f32 %v8657_v46, 0.0  ;;  %v14322_v46 = vld [vmem:[#allocation35_spill] sm:$0xff]  ;;  %v14325_v2 = vld [vmem:[#allocation38_spill] sm:$0xff]  ;;  %v14327_v47 = vld [vmem:[#allocation40_spill] sm:$0xff] }
 0x233   :  { %v2503_v9 = vmax.f32 %v8659_v52, 0.0  ;;  %8198 = vmatprep.mubr.msk.bf16.mxu1 %vm10243_vm2, %v14217_v55  ;;  %v14326_v52 = vld [vmem:[#allocation39_spill] sm:$0xff] }
 0x234   :  { %v2504_v24 = vmax.f32 %v8661_v33, 0.0  ;;  %v14328_v33 = vld [vmem:[#allocation42_spill] sm:$0xff] }
 0x235   :  { %v2566_v56 = vpack.c.bf16 %v2503_v9, %v2500_v35  ;;  %v14329_v35 = vld [vmem:[#allocation46_spill] sm:$0xff]  ;;  %v14330_v9 = vmov 0  }
 0x236   :  { %v2567_v43 = vpack.c.bf16 %v2504_v24, %v2501_v5  ;;  %v1830_v22 = vpop.f32.mrb[68].mxu0  ;;  %v9659_v49 = vld [vmem:[%s14115_s5] ss:$12 sps:$4 sm:$0xff]   ;;  %v9661_v5 = vld [vmem:[%s14115_s5 + $0x4] ss:$12 sps:$4 sm:$0xff]  }
 0x237   :  { %v8663_v53 = vadd.f32 %v1830_v22, %v1385_v13  ;;  %v1832_v58 = vpop.f32.mrb[69].mxu0  ;;  %3378 = vmatprep.subr.bf16.mxu1 %v9661_v5  ;;  %v9662_v24 = vld [vmem:[%s14115_s5 + $0x18] ss:$12 sps:$4 sm:$0xff]   ;;  %v9667_v13 = vld [vmem:[%s14115_s5 + $0x34] ss:$12 sps:$4 sm:$0xff]  }
 0x238   :  { %v8665_v44 = vadd.f32 %v1832_v58, %v1387_v59  ;;  %v1834_v27 = vpop.f32.mrb[70].mxu0  ;;  %2934 = vmatprep.mubr.bf16.mxu0 %v2567_v43  ;;  %3379 = vmatpush1.bf16.msra.mxu1 %v9659_v49  ;;  %v14331_v43 = vld [vmem:[#allocation69_spill] sm:$0xff] }
 0x239   :  { %v8667_v19 = vadd.f32 %v1834_v27, %v1389_v6  ;;  %v1836_v3 = vpop.f32.mrb[71].mxu0  ;;  %2935 = vmatmul.mubr.bf16.gmra.mrb[140].mxu0 %v2566_v56  ;;  %v2506_v11 = vmax.f32 %v8663_v53, 0.0  ;;  %v9664_v56 = vld [vmem:[%s14115_s5 + $0x1c] ss:$12 sps:$4 sm:$0xff]   ;;  %v12171_v22 = vsub.s32 2, %v14331_v43 }
 0x23a   :  { %v8669_v21 = vadd.f32 %v1836_v3, %v1391_v20  ;;  %8199 = vmatmul.mubr.msk.bf16.gmra.mrb[100].mxu1 %vm1112_vm1, %v14313_v17  ;;  %v2507_v38 = vmax.f32 %v8665_v44, 0.0  ;;  %3380 = vmatprep.subr.bf16.mxu1 %v9664_v56  ;;  %v9668_v3 = vld [vmem:[%s14115_s5 + $0x48] ss:$12 sps:$4 sm:$0xff]  }
 0x23b   :  { %v2509_v28 = vmax.f32 %v8667_v19, 0.0  ;;  %8202 = vmatprep.mubr.msk.bf16.mxu1 %vm10243_vm2, %v14217_v55  ;;  %14332 = vst [vmem:[#allocation2_spill] sm:$0xff] %v12171_v22  ;;  %v12177_v59 = vrot.slane %v10239_v7, %v12171_v22 }
 0x23c   :  { %v2510_v41 = vmax.f32 %v8669_v21, 0.0  ;;  %3381 = vmatpush1.bf16.msra.mxu1 %v9662_v24  ;;  %v9670_v21 = vld [vmem:[%s14115_s5 + $0x4c] ss:$12 sps:$4 sm:$0xff]  }
 0x23d   :  { %v2569_v34 = vpack.c.bf16 %v2509_v28, %v2506_v11  ;;  %3382 = vmatprep.subr.bf16.mxu1 %v9667_v13 }
 0x23e   :  { %v2570_v57 = vpack.c.bf16 %v2510_v41, %v2507_v38  ;;  %v1840_v14 = vpop.f32.mrb[72].mxu0 }
 0x23f   :  { %v8671_v25 = vadd.f32 %v1840_v14, %v1395_v39  ;;  %v1842_v4 = vpop.f32.mrb[73].mxu0 }
 0x240   :  { %v8673_v45 = vadd.f32 %v1842_v4, %v1397_v31  ;;  %v1844_v50 = vpop.f32.mrb[74].mxu0  ;;  %2942 = vmatprep.mubr.bf16.mxu0 %v2570_v57  ;;  %3383 = vmatpush1.bf16.msra.mxu1 %v9665_v36 }
 0x241   :  { %v8675_v61 = vadd.f32 %v1844_v50, %v1399_v29  ;;  %v1846_v62 = vpop.f32.mrb[75].mxu0  ;;  %2943 = vmatmul.mubr.bf16.gmra.mrb[144].mxu0 %v2569_v34  ;;  %v2512_v40 = vmax.f32 %v8671_v25, 0.0  ;;  %3384 = vmatprep.subr.bf16.mxu1 %v9670_v21 }
 0x242   :  { %v8677_v42 = vadd.f32 %v1846_v62, %v1401_v15  ;;  %8203 = vmatmul.mubr.msk.bf16.gmra.mrb[104].mxu1 %vm1112_vm1, %v14318_v54  ;;  %v2513_v10 = vmax.f32 %v8673_v45, 0.0  ;;  %v9671_v62 = vld [vmem:[%s14115_s5 + $0x60] ss:$12 sps:$4 sm:$0xff]  }
 0x243   :  { %v2515_v48 = vmax.f32 %v8675_v61, 0.0  ;;  %8206 = vmatprep.mubr.msk.bf16.mxu1 %vm10243_vm2, %v14217_v55 }
 0x244   :  { %v2516_v8 = vmax.f32 %v8677_v42, 0.0  ;;  %3385 = vmatpush1.bf16.msra.mxu1 %v9668_v3  ;;  %v9673_v42 = vld [vmem:[%s14115_s5 + $0x64] ss:$12 sps:$4 sm:$0xff]  }
 0x245   :  { %v2572_v0 = vpack.c.bf16 %v2515_v48, %v2512_v40  ;;  %v9676_v48 = vld [vmem:[%s14115_s5 + $0x7c] ss:$12 sps:$4 sm:$0xff]   ;;  %3386 = vmatprep.subr.bf16.mxu1 %v9673_v42 }
 0x246   :  { %v2573_v18 = vpack.c.bf16 %v2516_v8, %v2513_v10  ;;  %v9674_v8 = vld [vmem:[%s14115_s5 + $0x78] ss:$12 sps:$4 sm:$0xff]  }
 0x248   :  { %2950 = vmatprep.mubr.bf16.mxu0 %v2573_v18  ;;  %3387 = vmatpush1.bf16.msra.mxu1 %v9671_v62 }
 0x249   :  { %2951 = vmatmul.mubr.bf16.gmra.mrb[148].mxu0 %v2572_v0  ;;  %3388 = vmatprep.subr.bf16.mxu1 %v9676_v48 }
 0x24a   :  { %8266 = vmatprep.mubr.msk.bf16.mxu0 %vm10243_vm2, %v14217_v55  ;;  %8207 = vmatmul.mubr.msk.bf16.gmra.mrb[108].mxu1 %vm1112_vm1, %v14319_v32  ;;  %v9679_v32 = vld [vmem:[%s14115_s5 + $0x94] ss:$12 sps:$4 sm:$0xff]  }
 0x24b   :  { %8210 = vmatprep.mubr.msk.bf16.mxu1 %vm10243_vm2, %v14217_v55 }
 0x24c   :  { %3389 = vmatpush1.bf16.msra.mxu1 %v9674_v8 }
 0x24d   :  { %3390 = vmatprep.subr.bf16.mxu1 %v9679_v32 }
 0x252   :  { %8211 = vmatmul.mubr.msk.bf16.gmra.mrb[112].mxu1 %vm1112_vm1, %v14320_v37 }
 0x253   :  { %8214 = vmatprep.mubr.msk.bf16.mxu1 %vm10243_vm2, %v14217_v55 }
 0x25a   :  { %8215 = vmatmul.mubr.msk.bf16.gmra.mrb[116].mxu1 %vm1112_vm1, %v14321_v63 }
 0x25b   :  { %8218 = vmatprep.mubr.msk.bf16.mxu1 %vm10243_vm2, %v14217_v55 }
 0x262   :  { %8219 = vmatmul.mubr.msk.bf16.gmra.mrb[120].mxu1 %vm1112_vm1, %v14322_v46  ;;  %v9677_v46 = vld [vmem:[%s14115_s5 + $0x90] ss:$12 sps:$4 sm:$0xff]  }
 0x263   :  { %8222 = vmatprep.mubr.msk.bf16.mxu1 %vm10243_vm2, %v14217_v55  ;;  %3391 = vmatpush1.bf16.msra.mxu1 %v9677_v46 }
 0x26a   :  { %8223 = vmatmul.mubr.msk.bf16.gmra.mrb[124].mxu1 %vm1112_vm1, %v14323_v23 }
 0x26b   :  { %8226 = vmatprep.mubr.msk.bf16.mxu1 %vm10243_vm2, %v14217_v55 }
 0x272   :  { %8227 = vmatmul.mubr.msk.bf16.gmra.mrb[128].mxu1 %vm1112_vm1, %v14324_v16 }
 0x273   :  { %8230 = vmatprep.mubr.msk.bf16.mxu1 %vm10243_vm2, %v14217_v55 }
 0x27a   :  { %8231 = vmatmul.mubr.msk.bf16.gmra.mrb[132].mxu1 %vm1112_vm1, %v14325_v2  ;;  %v9682_v2 = vld [vmem:[%s14115_s5 + $0xac] ss:$12 sps:$4 sm:$0xff]  }
 0x27b   :  { %8234 = vmatprep.mubr.msk.bf16.mxu1 %vm10243_vm2, %v14217_v55  ;;  %3392 = vmatprep.subr.bf16.mxu1 %v9682_v2 }
 0x282   :  { %8235 = vmatmul.mubr.msk.bf16.gmra.mrb[136].mxu1 %vm1112_vm1, %v14326_v52 }
 0x283   :  { %8238 = vmatprep.mubr.msk.bf16.mxu1 %vm10243_vm2, %v14217_v55 }
 0x28a   :  { %8239 = vmatmul.mubr.msk.bf16.gmra.mrb[140].mxu1 %vm1112_vm1, %v14327_v47 }
 0x28b   :  { %8242 = vmatprep.mubr.msk.bf16.mxu1 %vm10243_vm2, %v14217_v55 }
 0x292   :  { %8243 = vmatmul.mubr.msk.bf16.gmra.mrb[144].mxu1 %vm1112_vm1, %v14328_v33 }
 0x293   :  { %8246 = vmatprep.mubr.msk.bf16.mxu1 %vm10243_vm2, %v14217_v55 }
 0x29a   :  { %8247 = vmatmul.mubr.msk.bf16.gmra.mrb[148].mxu1 %vm1112_vm1, %v14329_v35  ;;  %v9680_v35 = vld [vmem:[%s14115_s5 + $0xa8] ss:$12 sps:$4 sm:$0xff]  }
 0x29b   :  { %3410 = vmatprep.mubr.bf16.mxu1 %v14330_v9  ;;  %3393 = vmatpush1.bf16.msra.mxu1 %v9680_v35 }
 0x29c   :  { %8342 = vmatprep.subr.bf16.mxu1 %v14217_v55 }
 0x2dd   :  { %v2253_v53 = vpop.f32.mrb[76].mxu1 }
 0x2de   :  { %v8678_v58 = vadd.f32 %v2253_v53, %v12177_v59  ;;  %v8176_v30 = vpop.f32.mrb[77].mxu1 }
 0x2df   :  { %v2256_v6 = vpop.f32.mrb[78].mxu1 }
 0x2e0   :  { %v8679_v44 = vadd.f32 %v2256_v6, %v12177_v59  ;;  %v8177_v27 = vpop.f32.mrb[79].mxu1  ;;  %v2406_v1 = vmax.f32 %v8678_v58, 0.0 }
 0x2e2   :  { %v2409_v20 = vmax.f32 %v8679_v44, 0.0 }
 0x2e4   :  { %v2520_v19 = vpack.c.bf16 %v2409_v20, %v2406_v1 }
 0x2e5   :  { %v2261_v11 = vpop.f32.mrb[80].mxu1 }
 0x2e6   :  { %v8680_v28 = vadd.f32 %v2261_v11, %v12177_v59  ;;  %v8180_v17 = vpop.f32.mrb[81].mxu1  ;;  %8267 = vmatmul.mubr.bf16.vlgmr.msra.gmra.mrb[76].mxu0 %v2520_v19 }
 0x2e7   :  { %v2264_v38 = vpop.f32.mrb[82].mxu1  ;;  %8270 = vmatprep.mubr.msk.bf16.mxu0 %vm10243_vm2, %v14217_v55 }
 0x2e8   :  { %v8681_v41 = vadd.f32 %v2264_v38, %v12177_v59  ;;  %v8181_v34 = vpop.f32.mrb[83].mxu1  ;;  %v2412_v26 = vmax.f32 %v8680_v28, 0.0 }
 0x2ea   :  { %v2415_v39 = vmax.f32 %v8681_v41, 0.0 }
 0x2ec   :  { %v2523_v57 = vpack.c.bf16 %v2415_v39, %v2412_v26 }
 0x2ed   :  { %v2269_v14 = vpop.f32.mrb[84].mxu1 }
 0x2ee   :  { %v8682_v51 = vadd.f32 %v2269_v14, %v12177_v59  ;;  %v8184_v31 = vpop.f32.mrb[85].mxu1  ;;  %8271 = vmatmul.mubr.bf16.gmra.mrb[80].mxu0 %v2523_v57 }
 0x2ef   :  { %v2272_v25 = vpop.f32.mrb[86].mxu1  ;;  %8274 = vmatprep.mubr.msk.bf16.mxu0 %vm10243_vm2, %v14217_v55 }
 0x2f0   :  { %v8683_v4 = vadd.f32 %v2272_v25, %v12177_v59  ;;  %v8185_v60 = vpop.f32.mrb[87].mxu1  ;;  %v2418_v29 = vmax.f32 %v8682_v51, 0.0 }
 0x2f2   :  { %v2421_v45 = vmax.f32 %v8683_v4, 0.0 }
 0x2f4   :  { %v2526_v50 = vpack.c.bf16 %v2421_v45, %v2418_v29 }
 0x2f5   :  { %v2277_v12 = vpop.f32.mrb[88].mxu1 }
 0x2f6   :  { %v8684_v15 = vadd.f32 %v2277_v12, %v12177_v59  ;;  %v8188_v61 = vpop.f32.mrb[89].mxu1  ;;  %8275 = vmatmul.mubr.bf16.gmra.mrb[84].mxu0 %v2526_v50 }
 0x2f7   :  { %v2280_v40 = vpop.f32.mrb[90].mxu1  ;;  %8278 = vmatprep.mubr.msk.bf16.mxu0 %vm10243_vm2, %v14217_v55 }
 0x2f8   :  { %v8685_v54 = vadd.f32 %v2280_v40, %v12177_v59  ;;  %v8189_v10 = vpop.f32.mrb[91].mxu1  ;;  %v2424_v0 = vmax.f32 %v8684_v15, 0.0 }
 0x2fa   :  { %v2427_v18 = vmax.f32 %v8685_v54, 0.0 }
 0x2fc   :  { %v2529_v37 = vpack.c.bf16 %v2427_v18, %v2424_v0 }
 0x2fd   :  { %v2285_v63 = vpop.f32.mrb[92].mxu1 }
 0x2fe   :  { %v8686_v23 = vadd.f32 %v2285_v63, %v12177_v59  ;;  %v8192_v16 = vpop.f32.mrb[93].mxu1  ;;  %8279 = vmatmul.mubr.bf16.gmra.mrb[88].mxu0 %v2529_v37 }
 0x2ff   :  { %v2288_v52 = vpop.f32.mrb[94].mxu1  ;;  %8282 = vmatprep.mubr.msk.bf16.mxu0 %vm10243_vm2, %v14217_v55 }
 0x300   :  { %v8687_v47 = vadd.f32 %v2288_v52, %v12177_v59  ;;  %v8193_v33 = vpop.f32.mrb[95].mxu1  ;;  %v2430_v49 = vmax.f32 %v8686_v23, 0.0 }
 0x302   :  { %v2433_v5 = vmax.f32 %v8687_v47, 0.0 }
 0x304   :  { %v2532_v24 = vpack.c.bf16 %v2433_v5, %v2430_v49 }
 0x305   :  { %v2293_v56 = vpop.f32.mrb[96].mxu1 }
 0x306   :  { %v8688_v36 = vadd.f32 %v2293_v56, %v12177_v59  ;;  %v8196_v13 = vpop.f32.mrb[97].mxu1  ;;  %8283 = vmatmul.mubr.bf16.gmra.mrb[92].mxu0 %v2532_v24 }
 0x307   :  { %v2296_v7 = vpop.f32.mrb[98].mxu1  ;;  %8286 = vmatprep.mubr.msk.bf16.mxu0 %vm10243_vm2, %v14217_v55 }
 0x308   :  { %v8689_v53 = vadd.f32 %v2296_v7, %v12177_v59  ;;  %v8197_v58 = vpop.f32.mrb[99].mxu1  ;;  %v2436_v30 = vmax.f32 %v8688_v36, 0.0 }
 0x30a   :  { %v2439_v6 = vmax.f32 %v8689_v53, 0.0 }
 0x30c   :  { %v2535_v44 = vpack.c.bf16 %v2439_v6, %v2436_v30 }
 0x30d   :  { %v2301_v27 = vpop.f32.mrb[100].mxu1 }
 0x30e   :  { %v8690_v1 = vadd.f32 %v2301_v27, %v12177_v59  ;;  %v8200_v20 = vpop.f32.mrb[101].mxu1  ;;  %8287 = vmatmul.mubr.bf16.gmra.mrb[96].mxu0 %v2535_v44 }
 0x30f   :  { %v2304_v19 = vpop.f32.mrb[102].mxu1  ;;  %8290 = vmatprep.mubr.msk.bf16.mxu0 %vm10243_vm2, %v14217_v55 }
 0x310   :  { %v8691_v3 = vadd.f32 %v2304_v19, %v12177_v59  ;;  %v8201_v21 = vpop.f32.mrb[103].mxu1  ;;  %v2442_v11 = vmax.f32 %v8690_v1, 0.0 }
 0x312   :  { %v2445_v28 = vmax.f32 %v8691_v3, 0.0 }
 0x314   :  { %v2538_v17 = vpack.c.bf16 %v2445_v28, %v2442_v11 }
 0x315   :  { %v2309_v38 = vpop.f32.mrb[104].mxu1 }
 0x316   :  { %v8692_v41 = vadd.f32 %v2309_v38, %v12177_v59  ;;  %v8204_v34 = vpop.f32.mrb[105].mxu1  ;;  %8291 = vmatmul.mubr.bf16.gmra.mrb[100].mxu0 %v2538_v17 }
 0x317   :  { %v2312_v26 = vpop.f32.mrb[106].mxu1  ;;  %8294 = vmatprep.mubr.msk.bf16.mxu0 %vm10243_vm2, %v14217_v55 }
 0x318   :  { %v8693_v39 = vadd.f32 %v2312_v26, %v12177_v59  ;;  %v8205_v57 = vpop.f32.mrb[107].mxu1  ;;  %v2448_v14 = vmax.f32 %v8692_v41, 0.0 }
 0x31a   :  { %v2451_v51 = vmax.f32 %v8693_v39, 0.0 }
 0x31c   :  { %v2541_v31 = vpack.c.bf16 %v2451_v51, %v2448_v14 }
 0x31d   :  { %v2317_v25 = vpop.f32.mrb[108].mxu1 }
 0x31e   :  { %v8694_v4 = vadd.f32 %v2317_v25, %v12177_v59  ;;  %v8208_v60 = vpop.f32.mrb[109].mxu1  ;;  %8295 = vmatmul.mubr.bf16.gmra.mrb[104].mxu0 %v2541_v31 }
 0x31f   :  { %v2320_v29 = vpop.f32.mrb[110].mxu1  ;;  %8298 = vmatprep.mubr.msk.bf16.mxu0 %vm10243_vm2, %v14217_v55 }
 0x320   :  { %v8695_v45 = vadd.f32 %v2320_v29, %v12177_v59  ;;  %v8209_v50 = vpop.f32.mrb[111].mxu1  ;;  %v2454_v12 = vmax.f32 %v8694_v4, 0.0 }
 0x322   :  { %v2457_v15 = vmax.f32 %v8695_v45, 0.0 }
 0x324   :  { %v2544_v61 = vpack.c.bf16 %v2457_v15, %v2454_v12 }
 0x325   :  { %v2325_v62 = vpop.f32.mrb[112].mxu1 }
 0x326   :  { %v8696_v42 = vadd.f32 %v2325_v62, %v12177_v59  ;;  %v8212_v40 = vpop.f32.mrb[113].mxu1  ;;  %8299 = vmatmul.mubr.bf16.gmra.mrb[108].mxu0 %v2544_v61 }
 0x327   :  { %v2328_v48 = vpop.f32.mrb[114].mxu1  ;;  %8302 = vmatprep.mubr.msk.bf16.mxu0 %vm10243_vm2, %v14217_v55 }
 0x328   :  { %v8697_v54 = vadd.f32 %v2328_v48, %v12177_v59  ;;  %v8213_v10 = vpop.f32.mrb[115].mxu1  ;;  %v2460_v8 = vmax.f32 %v8696_v42, 0.0 }
 0x32a   :  { %v2463_v0 = vmax.f32 %v8697_v54, 0.0 }
 0x32c   :  { %v2547_v18 = vpack.c.bf16 %v2463_v0, %v2460_v8 }
 0x32d   :  { %v2333_v32 = vpop.f32.mrb[116].mxu1 }
 0x32e   :  { %v8698_v37 = vadd.f32 %v2333_v32, %v12177_v59  ;;  %v8216_v63 = vpop.f32.mrb[117].mxu1  ;;  %8303 = vmatmul.mubr.bf16.gmra.mrb[112].mxu0 %v2547_v18 }
 0x32f   :  { %v2336_v46 = vpop.f32.mrb[118].mxu1  ;;  %8306 = vmatprep.mubr.msk.bf16.mxu0 %vm10243_vm2, %v14217_v55 }
 0x330   :  { %v8699_v23 = vadd.f32 %v2336_v46, %v12177_v59  ;;  %v8217_v16 = vpop.f32.mrb[119].mxu1  ;;  %v2466_v2 = vmax.f32 %v8698_v37, 0.0 }
 0x332   :  { %v2469_v52 = vmax.f32 %v8699_v23, 0.0 }
 0x334   :  { %v2550_v47 = vpack.c.bf16 %v2469_v52, %v2466_v2 }
 0x335   :  { %v2341_v33 = vpop.f32.mrb[120].mxu1 }
 0x336   :  { %v8700_v35 = vadd.f32 %v2341_v33, %v12177_v59  ;;  %v8220_v49 = vpop.f32.mrb[121].mxu1  ;;  %8307 = vmatmul.mubr.bf16.gmra.mrb[116].mxu0 %v2550_v47 }
 0x337   :  { %v2344_v5 = vpop.f32.mrb[122].mxu1  ;;  %8310 = vmatprep.mubr.msk.bf16.mxu0 %vm10243_vm2, %v14217_v55 }
 0x338   :  { %v8701_v24 = vadd.f32 %v2344_v5, %v12177_v59  ;;  %v8221_v56 = vpop.f32.mrb[123].mxu1  ;;  %v2472_v36 = vmax.f32 %v8700_v35, 0.0 }
 0x33a   :  { %v2475_v13 = vmax.f32 %v8701_v24, 0.0 }
 0x33c   :  { %v2553_v7 = vpack.c.bf16 %v2475_v13, %v2472_v36 }
 0x33d   :  { %v2349_v53 = vpop.f32.mrb[124].mxu1 }
 0x33e   :  { %v8702_v58 = vadd.f32 %v2349_v53, %v12177_v59  ;;  %v8224_v30 = vpop.f32.mrb[125].mxu1  ;;  %8311 = vmatmul.mubr.bf16.gmra.mrb[120].mxu0 %v2553_v7 }
 0x33f   :  { %v2352_v6 = vpop.f32.mrb[126].mxu1  ;;  %8314 = vmatprep.mubr.msk.bf16.mxu0 %vm10243_vm2, %v14217_v55 }
 0x340   :  { %v8703_v44 = vadd.f32 %v2352_v6, %v12177_v59  ;;  %v8225_v27 = vpop.f32.mrb[127].mxu1  ;;  %v2478_v1 = vmax.f32 %v8702_v58, 0.0 }
 0x341   :  { %v9689_v27 = vld [vmem:[%s14116_s7 + $0x4] ss:$20 sps:$4 sm:$0xff]  }
 0x342   :  { %v2481_v20 = vmax.f32 %v8703_v44, 0.0  ;;  %v9687_v44 = vld [vmem:[%s14116_s7] ss:$20 sps:$4 sm:$0xff]   ;;  %4752 = vmatprep.subr.bf16.mxu0 %v9689_v27 }
 0x343   :  { %4753 = vmatpush1.bf16.msra.mxu0 %v9687_v44  ;;  %v9704_v44 = vld [vmem:[%s14115_s5 + $0x98] ss:$12 sps:$4 sm:$0xff]  }
 0x344   :  { %v2556_v19 = vpack.c.bf16 %v2481_v20, %v2478_v1  ;;  %v9691_v1 = vld [vmem:[%s14116_s7 + $0x28] ss:$20 sps:$4 sm:$0xff]   ;;  %v9694_v20 = vld [vmem:[%s14116_s7 + $0x50] ss:$20 sps:$4 sm:$0xff]  }
 0x345   :  { %v2357_v3 = vpop.f32.mrb[128].mxu1 }
 0x346   :  { %v8704_v21 = vadd.f32 %v2357_v3, %v12177_v59  ;;  %v8228_v11 = vpop.f32.mrb[129].mxu1  ;;  %8315 = vmatmul.mubr.bf16.gmra.mrb[124].mxu0 %v2556_v19  ;;  %v9696_v19 = vld [vmem:[%s14116_s7 + $0x54] ss:$20 sps:$4 sm:$0xff]   ;;  %v9698_v3 = vld [vmem:[%s14116_s7 + $0x78] ss:$20 sps:$4 sm:$0xff]  }
 0x347   :  { %v2360_v28 = vpop.f32.mrb[130].mxu1  ;;  %8318 = vmatprep.mubr.msk.bf16.mxu0 %vm10243_vm2, %v14217_v55  ;;  %v9701_v11 = vld [vmem:[%s14116_s7 + $0xa0] ss:$20 sps:$4 sm:$0xff]  }
 0x348   :  { %v8705_v17 = vadd.f32 %v2360_v28, %v12177_v59  ;;  %v8229_v38 = vpop.f32.mrb[131].mxu1  ;;  %v2484_v41 = vmax.f32 %v8704_v21, 0.0  ;;  %v9700_v21 = vld [vmem:[%s14116_s7 + $0x7c] ss:$20 sps:$4 sm:$0xff]   ;;  %v9703_v28 = vld [vmem:[%s14116_s7 + $0xa4] ss:$20 sps:$4 sm:$0xff]  }
 0x349   :  { %v9705_v38 = vld [vmem:[%s14116_s7 + $0xc8] ss:$20 sps:$4 sm:$0xff]  }
 0x34a   :  { %v2487_v34 = vmax.f32 %v8705_v17, 0.0  ;;  %v12317_v17 = vld [vmem:[%s14117_s4] ss:$0 sm:$0xff] }
 0x34c   :  { %v2559_v26 = vpack.c.bf16 %v2487_v34, %v2484_v41  ;;  %v9707_v41 = vld [vmem:[%s14116_s7 + $0xcc] ss:$20 sps:$4 sm:$0xff]  }
 0x34d   :  { %v2365_v39 = vpop.f32.mrb[132].mxu1 }
 0x34e   :  { %v8706_v57 = vadd.f32 %v2365_v39, %v12177_v59  ;;  %v8232_v14 = vpop.f32.mrb[133].mxu1  ;;  %8319 = vmatmul.mubr.bf16.gmra.mrb[128].mxu0 %v2559_v26 }
 0x34f   :  { %v2368_v51 = vpop.f32.mrb[134].mxu1  ;;  %8322 = vmatprep.mubr.msk.bf16.mxu0 %vm10243_vm2, %v14217_v55 }
 0x350   :  { %v8707_v31 = vadd.f32 %v2368_v51, %v12177_v59  ;;  %v8233_v25 = vpop.f32.mrb[135].mxu1  ;;  %v2490_v4 = vmax.f32 %v8706_v57, 0.0 }
 0x352   :  { %v2493_v60 = vmax.f32 %v8707_v31, 0.0 }
 0x354   :  { %v2562_v29 = vpack.c.bf16 %v2493_v60, %v2490_v4  ;;  %v9683_v4 = vld [vmem:[%s14115_s5 + $0x8] ss:$12 sps:$4 sm:$0xff]  }
 0x355   :  { %v2373_v45 = vpop.f32.mrb[136].mxu1 }
 0x356   :  { %v8708_v50 = vadd.f32 %v2373_v45, %v12177_v59  ;;  %v8236_v12 = vpop.f32.mrb[137].mxu1  ;;  %8323 = vmatmul.mubr.bf16.gmra.mrb[132].mxu0 %v2562_v29 }
 0x357   :  { %v2376_v15 = vpop.f32.mrb[138].mxu1  ;;  %8326 = vmatprep.mubr.msk.bf16.mxu0 %vm10243_vm2, %v14217_v55 }
 0x358   :  { %v8709_v61 = vadd.f32 %v2376_v15, %v12177_v59  ;;  %v8237_v62 = vpop.f32.mrb[139].mxu1  ;;  %v2496_v42 = vmax.f32 %v8708_v50, 0.0  ;;  %v9684_v15 = vld [vmem:[%s14115_s5 + $0x20] ss:$12 sps:$4 sm:$0xff]  }
 0x35a   :  { %v2499_v40 = vmax.f32 %v8709_v61, 0.0 }
 0x35c   :  { %v2565_v48 = vpack.c.bf16 %v2499_v40, %v2496_v42  ;;  %v9708_v42 = vld [vmem:[%s14116_s7 + $0xf0] ss:$20 sps:$4 sm:$0xff]   ;;  %v9710_v40 = vld [vmem:[%s14116_s7 + $0xf4] ss:$20 sps:$4 sm:$0xff]  }
 0x35d   :  { %v2381_v54 = vpop.f32.mrb[140].mxu1 }
 0x35e   :  { %v8710_v10 = vadd.f32 %v2381_v54, %v12177_v59  ;;  %v8240_v8 = vpop.f32.mrb[141].mxu1  ;;  %8327 = vmatmul.mubr.bf16.gmra.mrb[136].mxu0 %v2565_v48 }
 0x35f   :  { %v2384_v0 = vpop.f32.mrb[142].mxu1  ;;  %8330 = vmatprep.mubr.msk.bf16.mxu0 %vm10243_vm2, %v14217_v55 }
 0x360   :  { %v8711_v18 = vadd.f32 %v2384_v0, %v12177_v59  ;;  %v8241_v32 = vpop.f32.mrb[143].mxu1  ;;  %v2502_v37 = vmax.f32 %v8710_v10, 0.0  ;;  %v9685_v10 = vld [vmem:[%s14115_s5 + $0x38] ss:$12 sps:$4 sm:$0xff]  }
 0x362   :  { %v2505_v63 = vmax.f32 %v8711_v18, 0.0 }
 0x364   :  { %v2568_v46 = vpack.c.bf16 %v2505_v63, %v2502_v37  ;;  %v9686_v63 = vld [vmem:[%s14115_s5 + $0x50] ss:$12 sps:$4 sm:$0xff]  }
 0x365   :  { %v2389_v23 = vpop.f32.mrb[144].mxu1 }
 0x366   :  { %v8712_v16 = vadd.f32 %v2389_v23, %v12177_v59  ;;  %v8244_v2 = vpop.f32.mrb[145].mxu1  ;;  %8331 = vmatmul.mubr.bf16.gmra.mrb[140].mxu0 %v2568_v46 }
 0x367   :  { %v2392_v52 = vpop.f32.mrb[146].mxu1  ;;  %8334 = vmatprep.mubr.msk.bf16.mxu0 %vm10243_vm2, %v14217_v55 }
 0x368   :  { %v8713_v47 = vadd.f32 %v2392_v52, %v12177_v59  ;;  %v8245_v33 = vpop.f32.mrb[147].mxu1  ;;  %v2508_v35 = vmax.f32 %v8712_v16, 0.0  ;;  %v9690_v52 = vld [vmem:[%s14115_s5 + $0x68] ss:$12 sps:$4 sm:$0xff]  }
 0x369   :  { %v9712_v33 = vld [vmem:[%s14116_s7 + $0x118] ss:$20 sps:$4 sm:$0xff]  }
 0x36a   :  { %v2511_v49 = vmax.f32 %v8713_v47, 0.0 }
 0x36c   :  { %v2571_v5 = vpack.c.bf16 %v2511_v49, %v2508_v35  ;;  %v9714_v35 = vld [vmem:[%s14116_s7 + $0x11c] ss:$20 sps:$4 sm:$0xff]  }
 0x36d   :  { %v2397_v24 = vpop.f32.mrb[148].mxu1 }
 0x36e   :  { %v8714_v56 = vadd.f32 %v2397_v24, %v12177_v59  ;;  %v8248_v36 = vpop.f32.mrb[149].mxu1  ;;  %8335 = vmatmul.mubr.bf16.gmra.mrb[144].mxu0 %v2571_v5 }
 0x36f   :  { %v2400_v13 = vpop.f32.mrb[150].mxu1  ;;  %8338 = vmatprep.mubr.msk.bf16.mxu0 %vm10243_vm2, %v14217_v55 }
 0x370   :  { %v8715_v7 = vadd.f32 %v2400_v13, %v12177_v59  ;;  %v8249_v53 = vpop.f32.mrb[151].mxu1  ;;  %v2514_v58 = vmax.f32 %v8714_v56, 0.0  ;;  %v9693_v59 = vld [vmem:[%s14116_s7 + $0x2c] ss:$20 sps:$4 sm:$0xff]   ;;  %v9717_v56 = vld [vmem:[%s14116_s7 + $0x144] ss:$20 sps:$4 sm:$0xff]  }
 0x371   :  { %4754 = vmatprep.subr.bf16.mxu0 %v9693_v59  ;;  %v9697_v13 = vld [vmem:[%s14115_s5 + $0x80] ss:$12 sps:$4 sm:$0xff]  }
 0x372   :  { %v2517_v30 = vmax.f32 %v8715_v7, 0.0  ;;  %4755 = vmatpush1.bf16.msra.mxu0 %v9691_v1 }
 0x373   :  { %4756 = vmatprep.subr.bf16.mxu0 %v9696_v19  ;;  %v9718_v19 = vld [vmem:[%s14116_s7 + $0x168] ss:$20 sps:$4 sm:$0xff]  }
 0x374   :  { %v2574_v6 = vpack.c.bf16 %v2517_v30, %v2514_v58  ;;  %v9715_v58 = vld [vmem:[%s14116_s7 + $0x140] ss:$20 sps:$4 sm:$0xff]  }
 0x376   :  { %8339 = vmatmul.mubr.bf16.gmra.mrb[148].mxu0 %v2574_v6 }
 0x377   :  { %4757 = vmatpush1.bf16.msra.mxu0 %v9694_v20 }
 0x378   :  { %4758 = vmatprep.subr.bf16.mxu0 %v9700_v21 }
 0x37b   :  { %4759 = vmatpush1.bf16.msra.mxu0 %v9698_v3  ;;  %v9720_v3 = vld [vmem:[%s14116_s7 + $0x16c] ss:$20 sps:$4 sm:$0xff]  }
 0x37c   :  { %4760 = vmatprep.subr.bf16.mxu0 %v9703_v28 }
 0x37f   :  { %4761 = vmatpush1.bf16.msra.mxu0 %v9701_v11  ;;  %v9711_v11 = vld [vmem:[%s14115_s5 + $0xb0] ss:$12 sps:$4 sm:$0xff]  }
 0x380   :  { %4762 = vmatprep.subr.bf16.mxu0 %v9707_v41 }
 0x383   :  { %4763 = vmatpush1.bf16.msra.mxu0 %v9705_v38 }
 0x384   :  { %4764 = vmatprep.subr.bf16.mxu0 %v9710_v40  ;;  %v9724_v40 = vld [vmem:[%s14116_s7 + $0x1b8] ss:$20 sps:$4 sm:$0xff]  }
 0x387   :  { %4765 = vmatpush1.bf16.msra.mxu0 %v9708_v42 }
 0x388   :  { %4766 = vmatprep.subr.bf16.mxu0 %v9714_v35 }
 0x38b   :  { %4767 = vmatpush1.bf16.msra.mxu0 %v9712_v33 }
 0x38c   :  { %4768 = vmatprep.subr.bf16.mxu0 %v9717_v56  ;;  %v9727_v56 = vld [vmem:[%s14116_s7 + $0x1e0] ss:$20 sps:$4 sm:$0xff]  }
 0x38f   :  { %4769 = vmatpush1.bf16.msra.mxu0 %v9715_v58 }
 0x390   :  { %4770 = vmatprep.subr.bf16.mxu0 %v9720_v3 }
 0x393   :  { %4771 = vmatpush1.bf16.msra.mxu0 %v9718_v19  ;;  %v9732_v19 = vld [vmem:[%s14116_s7 + $0x20c] ss:$20 sps:$4 sm:$0xff]  }
 0x3b9   :  { %v2993_v34 = vpop.f32.mrb[76].mxu0 }
 0x3ba   :  { %v8716_v26 = vadd.f32 %v12317_v17, %v2993_v34  ;;  %v8268_v39 = vpop.f32.mrb[77].mxu0 }
 0x3bb   :  { %v2996_v57 = vpop.f32.mrb[78].mxu0 }
 0x3bc   :  { %v8717_v14 = vadd.f32 %v12317_v17, %v2996_v57  ;;  %v8269_v51 = vpop.f32.mrb[79].mxu0  ;;  %v3144_v31 = vmax.f32 %v8716_v26, 0.0 }
 0x3bd   :  { %v9721_v51 = vld [vmem:[%s14116_s7 + $0x190] ss:$20 sps:$4 sm:$0xff]  }
 0x3be   :  { %v3145_v25 = vmax.f32 %v8717_v14, 0.0 }
 0x3c0   :  { %v12330_v60 = vpack.c.bf16 %v3145_v25, %v3144_v31  ;;  %v9723_v31 = vld [vmem:[%s14116_s7 + $0x194] ss:$20 sps:$4 sm:$0xff]  }
 0x3c1   :  { %v3001_v29 = vpop.f32.mrb[80].mxu0  ;;  %4772 = vmatprep.subr.bf16.mxu0 %v9723_v31 }
 0x3c2   :  { %v8718_v45 = vadd.f32 %v12317_v17, %v3001_v29  ;;  %v8272_v50 = vpop.f32.mrb[81].mxu0  ;;  %3411 = vmatmul.mubr.bf16.vlgmr.msra.gmra.mrb[152].mxu1 %v12330_v60  ;;  %4773 = vmatpush1.bf16.msra.mxu0 %v9721_v51  ;;  %v9735_v51 = vld [vmem:[%s14116_s7 + $0x234] ss:$20 sps:$4 sm:$0xff]  }
 0x3c3   :  { %v3004_v12 = vpop.f32.mrb[82].mxu0  ;;  %8343 = vmatpush3.bf16.msra.mxu1 %v9683_v4  ;;  %3420 = vmatprep.mubr.bf16.mxu1 %v14330_v9 }
 0x3c4   :  { %v8719_v61 = vadd.f32 %v12317_v17, %v3004_v12  ;;  %v8273_v62 = vpop.f32.mrb[83].mxu0  ;;  %8344 = vmatprep.subr.bf16.mxu1 %v14217_v55  ;;  %v3146_v48 = vmax.f32 %v8718_v45, 0.0 }
 0x3c6   :  { %v3147_v54 = vmax.f32 %v8719_v61, 0.0 }
 0x3c7   :  { %8345 = vmatpush3.bf16.msra.mxu1 %v9684_v15 }
 0x3c8   :  { %v12349_v8 = vpack.c.bf16 %v3147_v54, %v3146_v48  ;;  %8346 = vmatprep.subr.bf16.mxu1 %v14217_v55  ;;  %v9726_v48 = vld [vmem:[%s14116_s7 + $0x1bc] ss:$20 sps:$4 sm:$0xff]  }
 0x3c9   :  { %v3009_v0 = vpop.f32.mrb[84].mxu0  ;;  %4774 = vmatprep.subr.bf16.mxu0 %v9726_v48 }
 0x3ca   :  { %v8720_v18 = vadd.f32 %v12317_v17, %v3009_v0  ;;  %v8276_v32 = vpop.f32.mrb[85].mxu0  ;;  %3421 = vmatmul.mubr.bf16.gmra.mrb[156].mxu1 %v12349_v8  ;;  %4775 = vmatpush1.bf16.msra.mxu0 %v9724_v40 }
 0x3cb   :  { %v3012_v37 = vpop.f32.mrb[86].mxu0  ;;  %3430 = vmatprep.mubr.bf16.mxu1 %v14330_v9  ;;  %8347 = vmatpush3.bf16.msra.mxu1 %v9685_v10 }
 0x3cc   :  { %v8721_v46 = vadd.f32 %v12317_v17, %v3012_v37  ;;  %v8277_v23 = vpop.f32.mrb[87].mxu0  ;;  %8348 = vmatprep.subr.bf16.mxu1 %v14217_v55  ;;  %v3148_v16 = vmax.f32 %v8720_v18, 0.0 }
 0x3ce   :  { %v3149_v2 = vmax.f32 %v8721_v46, 0.0 }
 0x3cf   :  { %8349 = vmatpush3.bf16.msra.mxu1 %v9686_v63 }
 0x3d0   :  { %v12363_v47 = vpack.c.bf16 %v3149_v2, %v3148_v16  ;;  %8350 = vmatprep.subr.bf16.mxu1 %v14217_v55 }
 0x3d1   :  { %v3017_v49 = vpop.f32.mrb[88].mxu0 }
 0x3d2   :  { %v8722_v5 = vadd.f32 %v12317_v17, %v3017_v49  ;;  %v8280_v24 = vpop.f32.mrb[89].mxu0  ;;  %3431 = vmatmul.mubr.bf16.gmra.mrb[160].mxu1 %v12363_v47 }
 0x3d3   :  { %v3020_v36 = vpop.f32.mrb[90].mxu0  ;;  %3440 = vmatprep.mubr.bf16.mxu1 %v14330_v9  ;;  %8351 = vmatpush3.bf16.msra.mxu1 %v9690_v52 }
 0x3d4   :  { %v8723_v7 = vadd.f32 %v12317_v17, %v3020_v36  ;;  %v8281_v53 = vpop.f32.mrb[91].mxu0  ;;  %8352 = vmatprep.subr.bf16.mxu1 %v14217_v55  ;;  %v3150_v30 = vmax.f32 %v8722_v5, 0.0  ;;  %v9729_v36 = vld [vmem:[%s14116_s7 + $0x1e4] ss:$20 sps:$4 sm:$0xff]  }
 0x3d5   :  { %4776 = vmatprep.subr.bf16.mxu0 %v9729_v36 }
 0x3d6   :  { %v3151_v6 = vmax.f32 %v8723_v7, 0.0  ;;  %4777 = vmatpush1.bf16.msra.mxu0 %v9727_v56 }
 0x3d7   :  { %8353 = vmatpush3.bf16.msra.mxu1 %v9697_v13  ;;  %4778 = vmatprep.subr.bf16.mxu0 %v9732_v19 }
 0x3d8   :  { %v12389_v27 = vpack.c.bf16 %v3151_v6, %v3150_v30  ;;  %8354 = vmatprep.subr.bf16.mxu1 %v14217_v55 }
 0x3d9   :  { %v3025_v1 = vpop.f32.mrb[92].mxu0 }
 0x3da   :  { %v8724_v59 = vadd.f32 %v12317_v17, %v3025_v1  ;;  %v8284_v20 = vpop.f32.mrb[93].mxu0  ;;  %3441 = vmatmul.mubr.bf16.gmra.mrb[164].mxu1 %v12389_v27 }
 0x3db   :  { %v3028_v21 = vpop.f32.mrb[94].mxu0  ;;  %3450 = vmatprep.mubr.bf16.mxu1 %v14330_v9  ;;  %8355 = vmatpush3.bf16.msra.mxu1 %v9704_v44  ;;  %v9730_v20 = vld [vmem:[%s14116_s7 + $0x208] ss:$20 sps:$4 sm:$0xff]  }
 0x3dc   :  { %v8725_v28 = vadd.f32 %v12317_v17, %v3028_v21  ;;  %v8285_v38 = vpop.f32.mrb[95].mxu0  ;;  %8356 = vmatprep.subr.bf16.mxu1 %v14217_v55  ;;  %v3152_v41 = vmax.f32 %v8724_v59, 0.0  ;;  %4779 = vmatpush1.bf16.msra.mxu0 %v9730_v20 }
 0x3dd   :  { %4780 = vmatprep.subr.bf16.mxu0 %v9735_v51 }
 0x3de   :  { %v3153_v34 = vmax.f32 %v8725_v28, 0.0 }
 0x3df   :  { %8357 = vmatpush3.bf16.msra.mxu1 %v9711_v11 }
 0x3e0   :  { %v12406_v26 = vpack.c.bf16 %v3153_v34, %v3152_v41 }
 0x3e1   :  { %v3033_v39 = vpop.f32.mrb[96].mxu0 }
 0x3e2   :  { %v8726_v57 = vadd.f32 %v12317_v17, %v3033_v39  ;;  %v8288_v14 = vpop.f32.mrb[97].mxu0  ;;  %3451 = vmatmul.mubr.bf16.gmra.mrb[168].mxu1 %v12406_v26 }
 0x3e3   :  { %v3036_v25 = vpop.f32.mrb[98].mxu0  ;;  %3460 = vmatprep.mubr.bf16.mxu1 %v14330_v9  ;;  %v9733_v14 = vld [vmem:[%s14116_s7 + $0x230] ss:$20 sps:$4 sm:$0xff]  }
 0x3e4   :  { %v8727_v4 = vadd.f32 %v12317_v17, %v3036_v25  ;;  %v8289_v29 = vpop.f32.mrb[99].mxu0  ;;  %v3154_v45 = vmax.f32 %v8726_v57, 0.0  ;;  %4781 = vmatpush1.bf16.msra.mxu0 %v9733_v14 }
 0x3e6   :  { %v3155_v50 = vmax.f32 %v8727_v4, 0.0 }
 0x3e8   :  { %v12418_v12 = vpack.c.bf16 %v3155_v50, %v3154_v45 }
 0x3e9   :  { %v3041_v15 = vpop.f32.mrb[100].mxu0 }
 0x3ea   :  { %v8728_v61 = vadd.f32 %v12317_v17, %v3041_v15  ;;  %v8292_v62 = vpop.f32.mrb[101].mxu0  ;;  %3461 = vmatmul.mubr.bf16.gmra.mrb[172].mxu1 %v12418_v12 }
 0x3eb   :  { %v3044_v42 = vpop.f32.mrb[102].mxu0  ;;  %3470 = vmatprep.mubr.bf16.mxu1 %v14330_v9 }
 0x3ec   :  { %v8729_v54 = vadd.f32 %v12317_v17, %v3044_v42  ;;  %v8293_v10 = vpop.f32.mrb[103].mxu0  ;;  %v3156_v0 = vmax.f32 %v8728_v61, 0.0 }
 0x3ee   :  { %v3157_v18 = vmax.f32 %v8729_v54, 0.0 }
 0x3f0   :  { %v12430_v32 = vpack.c.bf16 %v3157_v18, %v3156_v0 }
 0x3f1   :  { %v3049_v37 = vpop.f32.mrb[104].mxu0 }
 0x3f2   :  { %v8730_v63 = vadd.f32 %v12317_v17, %v3049_v37  ;;  %v8296_v46 = vpop.f32.mrb[105].mxu0  ;;  %3471 = vmatmul.mubr.bf16.gmra.mrb[176].mxu1 %v12430_v32 }
 0x3f3   :  { %v3052_v23 = vpop.f32.mrb[106].mxu0  ;;  %3480 = vmatprep.mubr.bf16.mxu1 %v14330_v9  ;;  %v9738_v46 = vld [vmem:[%s14116_s7 + $0x25c] ss:$20 sps:$4 sm:$0xff]  }
 0x3f4   :  { %v8731_v16 = vadd.f32 %v12317_v17, %v3052_v23  ;;  %v8297_v2 = vpop.f32.mrb[107].mxu0  ;;  %v3158_v52 = vmax.f32 %v8730_v63, 0.0  ;;  %4782 = vmatprep.subr.bf16.mxu0 %v9738_v46 }
 0x3f6   :  { %v3159_v33 = vmax.f32 %v8731_v16, 0.0  ;;  %v9736_v16 = vld [vmem:[%s14116_s7 + $0x258] ss:$20 sps:$4 sm:$0xff]  }
 0x3f7   :  { %4783 = vmatpush1.bf16.msra.mxu0 %v9736_v16 }
 0x3f8   :  { %v12436_v35 = vpack.c.bf16 %v3159_v33, %v3158_v52 }
 0x3f9   :  { %v3057_v49 = vpop.f32.mrb[108].mxu0 }
 0x3fa   :  { %v8732_v5 = vadd.f32 %v12317_v17, %v3057_v49  ;;  %v8300_v24 = vpop.f32.mrb[109].mxu0  ;;  %3481 = vmatmul.mubr.bf16.gmra.mrb[180].mxu1 %v12436_v35 }
 0x3fb   :  { %v3060_v13 = vpop.f32.mrb[110].mxu0  ;;  %3490 = vmatprep.mubr.bf16.mxu1 %v14330_v9 }
 0x3fc   :  { %v8733_v7 = vadd.f32 %v12317_v17, %v3060_v13  ;;  %v8301_v53 = vpop.f32.mrb[111].mxu0  ;;  %v3160_v58 = vmax.f32 %v8732_v5, 0.0 }
 0x3fe   :  { %v3161_v30 = vmax.f32 %v8733_v7, 0.0 }
 0x400   :  { %v12448_v6 = vpack.c.bf16 %v3161_v30, %v3160_v58  ;;  %v9741_v58 = vld [vmem:[%s14116_s7 + $0x284] ss:$20 sps:$4 sm:$0xff]  }
 0x401   :  { %v3065_v44 = vpop.f32.mrb[112].mxu0  ;;  %4975 = vmatprep.subr.bf16.mxu0 %v9741_v58 }
 0x402   :  { %v8734_v1 = vadd.f32 %v12317_v17, %v3065_v44  ;;  %v8304_v59 = vpop.f32.mrb[113].mxu0  ;;  %3491 = vmatmul.mubr.bf16.gmra.mrb[184].mxu1 %v12448_v6 }
 0x403   :  { %v3068_v3 = vpop.f32.mrb[114].mxu0  ;;  %3500 = vmatprep.mubr.bf16.mxu1 %v14330_v9 }
 0x404   :  { %v8735_v21 = vadd.f32 %v12317_v17, %v3068_v3  ;;  %v8305_v11 = vpop.f32.mrb[115].mxu0  ;;  %v3162_v28 = vmax.f32 %v8734_v1, 0.0 }
 0x406   :  { %v3163_v38 = vmax.f32 %v8735_v21, 0.0 }
 0x408   :  { %v12460_v41 = vpack.c.bf16 %v3163_v38, %v3162_v28 }
 0x409   :  { %v3073_v34 = vpop.f32.mrb[116].mxu0 }
 0x40a   :  { %v8736_v39 = vadd.f32 %v12317_v17, %v3073_v34  ;;  %v8308_v57 = vpop.f32.mrb[117].mxu0  ;;  %3501 = vmatmul.mubr.bf16.gmra.mrb[188].mxu1 %v12460_v41 }
 0x40b   :  { %v3076_v31 = vpop.f32.mrb[118].mxu0  ;;  %3510 = vmatprep.mubr.bf16.mxu1 %v14330_v9 }
 0x40c   :  { %v8737_v25 = vadd.f32 %v12317_v17, %v3076_v31  ;;  %v8309_v4 = vpop.f32.mrb[119].mxu0  ;;  %v3164_v29 = vmax.f32 %v8736_v39, 0.0  ;;  %v9744_v39 = vld [vmem:[%s14116_s7 + $0xc] ss:$20 sps:$4 sm:$0xff]  }
 0x40d   :  { %5198 = vmatprep.subr.bf16.mxu1 %v9744_v39  ;;  %v9763_v39 = vld [vmem:[%s14116_s7 + $0xd0] ss:$20 sps:$4 sm:$0xff]  }
 0x40e   :  { %v3165_v45 = vmax.f32 %v8737_v25, 0.0 }
 0x410   :  { %v12472_v50 = vpack.c.bf16 %v3165_v45, %v3164_v29 }
 0x411   :  { %v3081_v15 = vpop.f32.mrb[120].mxu0 }
 0x412   :  { %v8738_v61 = vadd.f32 %v12317_v17, %v3081_v15  ;;  %v8312_v62 = vpop.f32.mrb[121].mxu0  ;;  %3511 = vmatmul.mubr.bf16.gmra.mrb[192].mxu1 %v12472_v50 }
 0x413   :  { %v3084_v42 = vpop.f32.mrb[122].mxu0  ;;  %3520 = vmatprep.mubr.bf16.mxu1 %v14330_v9 }
 0x414   :  { %v8739_v40 = vadd.f32 %v12317_v17, %v3084_v42  ;;  %v8313_v48 = vpop.f32.mrb[123].mxu0  ;;  %v3166_v54 = vmax.f32 %v8738_v61, 0.0 }
 0x416   :  { %v3167_v10 = vmax.f32 %v8739_v40, 0.0 }
 0x418   :  { %v12478_v0 = vpack.c.bf16 %v3167_v10, %v3166_v54 }
 0x419   :  { %v3089_v18 = vpop.f32.mrb[124].mxu0 }
 0x41a   :  { %v8740_v37 = vadd.f32 %v12317_v17, %v3089_v18  ;;  %v8316_v63 = vpop.f32.mrb[125].mxu0  ;;  %3521 = vmatmul.mubr.bf16.gmra.mrb[196].mxu1 %v12478_v0 }
 0x41b   :  { %v3092_v23 = vpop.f32.mrb[126].mxu0  ;;  %3530 = vmatprep.mubr.bf16.mxu1 %v14330_v9 }
 0x41c   :  { %v8741_v2 = vadd.f32 %v12317_v17, %v3092_v23  ;;  %v8317_v52 = vpop.f32.mrb[127].mxu0  ;;  %v3168_v33 = vmax.f32 %v8740_v37, 0.0 }
 0x41e   :  { %v3169_v49 = vmax.f32 %v8741_v2, 0.0 }
 0x420   :  { %v12490_v5 = vpack.c.bf16 %v3169_v49, %v3168_v33 }
 0x421   :  { %v3097_v24 = vpop.f32.mrb[128].mxu0 }
 0x422   :  { %v8742_v56 = vadd.f32 %v12317_v17, %v3097_v24  ;;  %v8320_v36 = vpop.f32.mrb[129].mxu0  ;;  %3531 = vmatmul.mubr.bf16.gmra.mrb[200].mxu1 %v12490_v5 }
 0x423   :  { %v3100_v13 = vpop.f32.mrb[130].mxu0  ;;  %3540 = vmatprep.mubr.bf16.mxu1 %v14330_v9 }
 0x424   :  { %v8743_v7 = vadd.f32 %v12317_v17, %v3100_v13  ;;  %v8321_v53 = vpop.f32.mrb[131].mxu0  ;;  %v3170_v30 = vmax.f32 %v8742_v56, 0.0 }
 0x426   :  { %v3171_v44 = vmax.f32 %v8743_v7, 0.0 }
 0x428   :  { %v12499_v1 = vpack.c.bf16 %v3171_v44, %v3170_v30 }
 0x429   :  { %v3105_v59 = vpop.f32.mrb[132].mxu0 }
 0x42a   :  { %v8744_v20 = vadd.f32 %v12317_v17, %v3105_v59  ;;  %v8324_v19 = vpop.f32.mrb[133].mxu0  ;;  %3541 = vmatmul.mubr.bf16.gmra.mrb[204].mxu1 %v12499_v1 }
 0x42b   :  { %v3108_v3 = vpop.f32.mrb[134].mxu0  ;;  %3550 = vmatprep.mubr.bf16.mxu1 %v14330_v9  ;;  %v9750_v19 = vld [vmem:[%s14116_s7 + $0x34] ss:$20 sps:$4 sm:$0xff]  }
 0x42c   :  { %v8745_v21 = vadd.f32 %v12317_v17, %v3108_v3  ;;  %v8325_v11 = vpop.f32.mrb[135].mxu0  ;;  %v3172_v28 = vmax.f32 %v8744_v20, 0.0  ;;  %v9742_v20 = vld [vmem:[%s14116_s7 + $0x8] ss:$20 sps:$4 sm:$0xff]  }
 0x42d   :  { %v9753_v3 = vld [vmem:[%s14116_s7 + $0x5c] ss:$20 sps:$4 sm:$0xff]   ;;  %v9754_v11 = vld [vmem:[%s14116_s7 + $0x80] ss:$20 sps:$4 sm:$0xff]  }
 0x42e   :  { %v3173_v38 = vmax.f32 %v8745_v21, 0.0  ;;  %v9751_v21 = vld [vmem:[%s14116_s7 + $0x58] ss:$20 sps:$4 sm:$0xff]  }
 0x430   :  { %v12505_v34 = vpack.c.bf16 %v3173_v38, %v3172_v28  ;;  %v9759_v28 = vld [vmem:[%s14116_s7 + $0xac] ss:$20 sps:$4 sm:$0xff]   ;;  %v9757_v38 = vld [vmem:[%s14116_s7 + $0xa8] ss:$20 sps:$4 sm:$0xff]  }
 0x431   :  { %v3113_v57 = vpop.f32.mrb[136].mxu0 }
 0x432   :  { %v8746_v14 = vadd.f32 %v12317_v17, %v3113_v57  ;;  %v8328_v51 = vpop.f32.mrb[137].mxu0  ;;  %3551 = vmatmul.mubr.bf16.gmra.mrb[208].mxu1 %v12505_v34  ;;  %v9768_v57 = vld [vmem:[%s14116_s7 + $0xfc] ss:$20 sps:$4 sm:$0xff]  }
 0x433   :  { %v3116_v31 = vpop.f32.mrb[138].mxu0  ;;  %3560 = vmatprep.mubr.bf16.mxu1 %v14330_v9  ;;  %v9769_v51 = vld [vmem:[%s14116_s7 + $0x120] ss:$20 sps:$4 sm:$0xff]  }
 0x434   :  { %v8747_v25 = vadd.f32 %v12317_v17, %v3116_v31  ;;  %v8329_v4 = vpop.f32.mrb[139].mxu0  ;;  %v3174_v29 = vmax.f32 %v8746_v14, 0.0  ;;  %v9766_v14 = vld [vmem:[%s14116_s7 + $0xf8] ss:$20 sps:$4 sm:$0xff]  }
 0x435   :  { %v9774_v31 = vld [vmem:[%s14116_s7 + $0x14c] ss:$20 sps:$4 sm:$0xff]   ;;  %v9775_v4 = vld [vmem:[%s14116_s7 + $0x170] ss:$20 sps:$4 sm:$0xff]  }
 0x436   :  { %v3175_v45 = vmax.f32 %v8747_v25, 0.0  ;;  %v9772_v25 = vld [vmem:[%s14116_s7 + $0x148] ss:$20 sps:$4 sm:$0xff]  }
 0x438   :  { %v12514_v15 = vpack.c.bf16 %v3175_v45, %v3174_v29  ;;  %v9783_v29 = vld [vmem:[%s14116_s7 + $0x19c] ss:$20 sps:$4 sm:$0xff]   ;;  %v9781_v45 = vld [vmem:[%s14116_s7 + $0x198] ss:$20 sps:$4 sm:$0xff]  }
 0x439   :  { %v3121_v61 = vpop.f32.mrb[140].mxu0 }
 0x43a   :  { %v8748_v62 = vadd.f32 %v12317_v17, %v3121_v61  ;;  %v8332_v42 = vpop.f32.mrb[141].mxu0  ;;  %3561 = vmatmul.mubr.bf16.gmra.mrb[212].mxu1 %v12514_v15  ;;  %v9784_v61 = vld [vmem:[%s14116_s7 + $0x1c0] ss:$20 sps:$4 sm:$0xff]  }
 0x43b   :  { %v3124_v40 = vpop.f32.mrb[142].mxu0  ;;  %3570 = vmatprep.mubr.bf16.mxu1 %v14330_v9  ;;  %v9787_v42 = vld [vmem:[%s14116_s7 + $0x1e8] ss:$20 sps:$4 sm:$0xff]  }
 0x43c   :  { %v8749_v48 = vadd.f32 %v12317_v17, %v3124_v40  ;;  %v8333_v54 = vpop.f32.mrb[143].mxu0  ;;  %v3176_v10 = vmax.f32 %v8748_v62, 0.0  ;;  %v9789_v62 = vld [vmem:[%s14116_s7 + $0x1ec] ss:$20 sps:$4 sm:$0xff]   ;;  %v9790_v40 = vld [vmem:[%s14116_s7 + $0x210] ss:$20 sps:$4 sm:$0xff]  }
 0x43d   :  { %v12645_v54 = vld [vmem:[%s14118_s6] sm:$0x7] }
 0x43e   :  { %v3177_v18 = vmax.f32 %v8749_v48, 0.0  ;;  %v9795_v48 = vld [vmem:[%s14116_s7 + $0x23c] ss:$20 sps:$4 sm:$0xff]  }
 0x440   :  { %v12520_v37 = vpack.c.bf16 %v3177_v18, %v3176_v10  ;;  %v9801_v10 = vld [vmem:[%s14116_s7 + $0x264] ss:$20 sps:$4 sm:$0xff]   ;;  %v14333_v18 = vld [vmem:[#allocation71_spill] sm:$0xff] }
 0x441   :  { %v3129_v63 = vpop.f32.mrb[144].mxu0 }
 0x442   :  { %v8750_v46 = vadd.f32 %v12317_v17, %v3129_v63  ;;  %v8336_v23 = vpop.f32.mrb[145].mxu0  ;;  %3571 = vmatmul.mubr.bf16.gmra.mrb[216].mxu1 %v12520_v37  ;;  %v12656_v63 = vrot.slane %v12645_v54, %v14333_v18 }
 0x443   :  { %v3132_v16 = vpop.f32.mrb[146].mxu0  ;;  %3580 = vmatprep.mubr.bf16.mxu1 %v14330_v9 }
 0x444   :  { %v8751_v2 = vadd.f32 %v12317_v17, %v3132_v16  ;;  %v8337_v52 = vpop.f32.mrb[147].mxu0  ;;  %v3178_v33 = vmax.f32 %v8750_v46, 0.0  ;;  %v14334_v46 = vld [vmem:[#allocation72_spill] sm:$0xff] }
 0x445   :  { %v12660_v23 = vrot.slane %v12645_v54, %v14334_v46  ;;  %v9799_v16 = vld [vmem:[%s14116_s7 + $0x260] ss:$20 sps:$4 sm:$0xff]  }
 0x446   :  { %v3179_v49 = vmax.f32 %v8751_v2, 0.0 }
 0x448   :  { %v12526_v24 = vpack.c.bf16 %v3179_v49, %v3178_v33 }
 0x449   :  { %v3137_v56 = vpop.f32.mrb[148].mxu0 }
 0x44a   :  { %v8752_v36 = vadd.f32 %v12317_v17, %v3137_v56  ;;  %v8340_v13 = vpop.f32.mrb[149].mxu0  ;;  %3581 = vmatmul.mubr.bf16.gmra.mrb[220].mxu1 %v12526_v24 }
 0x44b   :  { %v3140_v7 = vpop.f32.mrb[150].mxu0  ;;  %3590 = vmatprep.mubr.bf16.mxu1 %v14330_v9 }
 0x44c   :  { %v8753_v53 = vadd.f32 %v12317_v17, %v3140_v7  ;;  %v8341_v58 = vpop.f32.mrb[151].mxu0  ;;  %v3180_v30 = vmax.f32 %v8752_v36, 0.0  ;;  %v9748_v17 = vld [vmem:[%s14116_s7 + $0x30] ss:$20 sps:$4 sm:$0xff]  }
 0x44e   :  { %v3181_v44 = vmax.f32 %v8753_v53, 0.0 }
 0x450   :  { %v12532_v59 = vpack.c.bf16 %v3181_v44, %v3180_v30 }
 0x452   :  { %3591 = vmatmul.mubr.bf16.gmra.mrb[224].mxu1 %v12532_v59 }
 0x453   :  { %8358 = vmatprep.mubr.msk.bf16.mxu1 %vm10243_vm2, %v14217_v55 }
 0x45a   :  { %8359 = vmatmul.mubr.bf16.vlgmr.msra.gmra.mrb[228].mxu1 %v12330_v60  ;;  %v9756_v60 = vld [vmem:[%s14116_s7 + $0x84] ss:$20 sps:$4 sm:$0xff]  }
 0x45b   :  { %8362 = vmatprep.mubr.msk.bf16.mxu1 %vm10243_vm2, %v14217_v55  ;;  %5199 = vmatpush1.bf16.msra.mxu1 %v9742_v20 }
 0x45c   :  { %5200 = vmatprep.subr.bf16.mxu1 %v9750_v19 }
 0x45f   :  { %5201 = vmatpush1.bf16.msra.mxu1 %v9748_v17  ;;  %v9739_v17 = vld [vmem:[%s14116_s7 + $0x280] ss:$20 sps:$4 sm:$0xff]  }
 0x460   :  { %5202 = vmatprep.subr.bf16.mxu1 %v9753_v3 }
 0x462   :  { %8363 = vmatmul.mubr.bf16.gmra.mrb[232].mxu1 %v12349_v8  ;;  %v9765_v8 = vld [vmem:[%s14116_s7 + $0xd4] ss:$20 sps:$4 sm:$0xff]  }
 0x463   :  { %8366 = vmatprep.mubr.msk.bf16.mxu1 %vm10243_vm2, %v14217_v55  ;;  %5203 = vmatpush1.bf16.msra.mxu1 %v9751_v21 }
 0x464   :  { %5204 = vmatprep.subr.bf16.mxu1 %v9756_v60 }
 0x467   :  { %5205 = vmatpush1.bf16.msra.mxu1 %v9754_v11 }
 0x468   :  { %5206 = vmatprep.subr.bf16.mxu1 %v9759_v28 }
 0x46a   :  { %8367 = vmatmul.mubr.bf16.gmra.mrb[236].mxu1 %v12363_v47  ;;  %v9771_v47 = vld [vmem:[%s14116_s7 + $0x124] ss:$20 sps:$4 sm:$0xff]  }
 0x46b   :  { %8370 = vmatprep.mubr.msk.bf16.mxu1 %vm10243_vm2, %v14217_v55  ;;  %5207 = vmatpush1.bf16.msra.mxu1 %v9757_v38 }
 0x46c   :  { %5208 = vmatprep.subr.bf16.mxu1 %v9765_v8 }
 0x46f   :  { %5209 = vmatpush1.bf16.msra.mxu1 %v9763_v39  ;;  %v9745_v39 = vld [vmem:[%s14116_s7 + $0x2a8] ss:$20 sps:$4 sm:$0xff]  }
 0x470   :  { %5210 = vmatprep.subr.bf16.mxu1 %v9768_v57 }
 0x472   :  { %8371 = vmatmul.mubr.bf16.gmra.mrb[240].mxu1 %v12389_v27  ;;  %v9777_v27 = vld [vmem:[%s14116_s7 + $0x174] ss:$20 sps:$4 sm:$0xff]  }
 0x473   :  { %8374 = vmatprep.mubr.msk.bf16.mxu1 %vm10243_vm2, %v14217_v55  ;;  %5211 = vmatpush1.bf16.msra.mxu1 %v9766_v14 }
 0x474   :  { %5212 = vmatprep.subr.bf16.mxu1 %v9771_v47  ;;  %v9762_v47 = vld [vmem:[%s14116_s7 + $0x2d4] ss:$20 sps:$4 sm:$0xff]  }
 0x477   :  { %5213 = vmatpush1.bf16.msra.mxu1 %v9769_v51 }
 0x478   :  { %5214 = vmatprep.subr.bf16.mxu1 %v9774_v31 }
 0x47a   :  { %8375 = vmatmul.mubr.bf16.gmra.mrb[244].mxu1 %v12406_v26  ;;  %v9786_v26 = vld [vmem:[%s14116_s7 + $0x1c4] ss:$20 sps:$4 sm:$0xff]  }
 0x47b   :  { %8378 = vmatprep.mubr.msk.bf16.mxu1 %vm10243_vm2, %v14217_v55  ;;  %5215 = vmatpush1.bf16.msra.mxu1 %v9772_v25 }
 0x47c   :  { %5216 = vmatprep.subr.bf16.mxu1 %v9777_v27 }
 0x47f   :  { %5217 = vmatpush1.bf16.msra.mxu1 %v9775_v4 }
 0x480   :  { %5218 = vmatprep.subr.bf16.mxu1 %v9783_v29 }
 0x482   :  { %8379 = vmatmul.mubr.bf16.gmra.mrb[248].mxu1 %v12418_v12  ;;  %v9792_v12 = vld [vmem:[%s14116_s7 + $0x214] ss:$20 sps:$4 sm:$0xff]  }
 0x483   :  { %8382 = vmatprep.mubr.msk.bf16.mxu1 %vm10243_vm2, %v14217_v55  ;;  %5219 = vmatpush1.bf16.msra.mxu1 %v9781_v45 }
 0x484   :  { %5220 = vmatprep.subr.bf16.mxu1 %v9786_v26  ;;  %v9780_v26 = vld [vmem:[%s14116_s7 + $0x2fc] ss:$20 sps:$4 sm:$0xff]  }
 0x487   :  { %5221 = vmatpush1.bf16.msra.mxu1 %v9784_v61 }
 0x488   :  { %5222 = vmatprep.subr.bf16.mxu1 %v9789_v62 }
 0x48a   :  { %8383 = vmatmul.mubr.bf16.gmra.mrb[252].mxu1 %v12430_v32  ;;  %v9793_v32 = vld [vmem:[%s14116_s7 + $0x238] ss:$20 sps:$4 sm:$0xff]  }
 0x48b   :  { %8386 = vmatprep.mubr.msk.bf16.mxu1 %vm10243_vm2, %v14217_v55  ;;  %5223 = vmatpush1.bf16.msra.mxu1 %v9787_v42 }
 0x48c   :  { %5224 = vmatprep.subr.bf16.mxu1 %v9792_v12 }
 0x48f   :  { %5225 = vmatpush1.bf16.msra.mxu1 %v9790_v40 }
 0x490   :  { %5226 = vmatprep.subr.bf16.mxu1 %v9795_v48  ;;  %v9778_v48 = vld [vmem:[%s14116_s7 + $0x2f8] ss:$20 sps:$4 sm:$0xff]  }
 0x492   :  { %8387 = vmatmul.mubr.bf16.gmra.mrb[0].mxu1 %v12436_v35 }
 0x493   :  { %8390 = vmatprep.mubr.msk.bf16.mxu1 %vm10243_vm2, %v14217_v55  ;;  %5227 = vmatpush1.bf16.msra.mxu1 %v9793_v32 }
 0x494   :  { %5228 = vmatprep.subr.bf16.mxu1 %v9801_v10 }
 0x495   :  { %v3412_v2 = vpop.f32.mrb[152].mxu1 }
 0x496   :  { %v3413_v35 = vadd.f32 %v3412_v2, %v12656_v63  ;;  %v3414_v52 = vpop.f32.mrb[153].mxu1 }
 0x497   :  { %v3415_v33 = vadd.f32 %v3414_v52, %v12660_v23  ;;  %v3416_v49 = vpop.f32.mrb[154].mxu1  ;;  %5229 = vmatpush1.bf16.msra.mxu1 %v9799_v16  ;;  %v9798_v16 = vld [vmem:[%s14116_s7 + $0x324] ss:$20 sps:$4 sm:$0xff]  }
 0x498   :  { %v3417_v56 = vadd.f32 %v3416_v49, %v12656_v63  ;;  %v3418_v36 = vpop.f32.mrb[155].mxu1  ;;  %v3786_v7 = vmax.f32 %v3413_v35, 0.0 }
 0x499   :  { %v3419_v13 = vadd.f32 %v3418_v36, %v12660_v23  ;;  %v3787_v58 = vmax.f32 %v3415_v33, 0.0 }
 0x49a   :  { %v3789_v53 = vmax.f32 %v3417_v56, 0.0  ;;  %8391 = vmatmul.mubr.bf16.gmra.mrb[4].mxu1 %v12448_v6  ;;  %v9747_v6 = vld [vmem:[%s14116_s7 + $0x2ac] ss:$20 sps:$4 sm:$0xff]  }
 0x49b   :  { %v3790_v30 = vmax.f32 %v3419_v13, 0.0  ;;  %8394 = vmatprep.mubr.msk.bf16.mxu1 %vm10243_vm2, %v14217_v55  ;;  %v9804_v13 = vld [vmem:[%s14116_s7 + $0x34c] ss:$20 sps:$4 sm:$0xff]  }
 0x49c   :  { %v12674_v44 = vpack.c.bf16 %v3789_v53, %v3786_v7 }
 0x49d   :  { %v12676_v20 = vpack.c.bf16 %v3790_v30, %v3787_v58  ;;  %v3422_v19 = vpop.f32.mrb[156].mxu1 }
 0x49e   :  { %v3423_v3 = vadd.f32 %v3422_v19, %v12656_v63  ;;  %v3424_v21 = vpop.f32.mrb[157].mxu1 }
 0x49f   :  { %v3425_v60 = vadd.f32 %v3424_v21, %v12660_v23  ;;  %v3426_v11 = vpop.f32.mrb[158].mxu1  ;;  %4784 = vmatprep.mubr.bf16.mxu0 %v12676_v20 }
 0x4a0   :  { %v3427_v28 = vadd.f32 %v3426_v11, %v12656_v63  ;;  %v3428_v38 = vpop.f32.mrb[159].mxu1  ;;  %4785 = vmatmul.mubr.bf16.vlgmr.msra.gmra.mrb[152].mxu0 %v12674_v44  ;;  %v3792_v57 = vmax.f32 %v3423_v3, 0.0 }
 0x4a1   :  { %v3429_v8 = vadd.f32 %v3428_v38, %v12660_v23  ;;  %4976 = vmatpush1.bf16.msra.mxu0 %v9739_v17  ;;  %v3793_v51 = vmax.f32 %v3425_v60, 0.0  ;;  %v9802_v17 = vld [vmem:[%s14116_s7 + $0x348] ss:$20 sps:$4 sm:$0xff]  }
 0x4a2   :  { %v3795_v14 = vmax.f32 %v3427_v28, 0.0  ;;  %8395 = vmatmul.mubr.bf16.gmra.mrb[8].mxu1 %v12460_v41  ;;  %4977 = vmatprep.subr.bf16.mxu0 %v9747_v6  ;;  %v9760_v41 = vld [vmem:[%s14116_s7 + $0x2d0] ss:$20 sps:$4 sm:$0xff]   ;;  %v9807_v6 = vld [vmem:[%s14116_s7 + $0x374] ss:$20 sps:$4 sm:$0xff]  }
 0x4a3   :  { %v3796_v31 = vmax.f32 %v3429_v8, 0.0  ;;  %8398 = vmatprep.mubr.msk.bf16.mxu1 %vm10243_vm2, %v14217_v55 }
 0x4a4   :  { %v12699_v25 = vpack.c.bf16 %v3795_v14, %v3792_v57  ;;  %v9810_v14 = vld [vmem:[%s14116_s7 + $0x39c] ss:$20 sps:$4 sm:$0xff]  }
 0x4a5   :  { %v12701_v27 = vpack.c.bf16 %v3796_v31, %v3793_v51  ;;  %v3432_v4 = vpop.f32.mrb[160].mxu1  ;;  %4978 = vmatpush1.bf16.msra.mxu0 %v9745_v39 }
 0x4a6   :  { %v3433_v29 = vadd.f32 %v3432_v4, %v12656_v63  ;;  %v3434_v45 = vpop.f32.mrb[161].mxu1  ;;  %4979 = vmatprep.subr.bf16.mxu0 %v9762_v47 }
 0x4a7   :  { %v3435_v61 = vadd.f32 %v3434_v45, %v12660_v23  ;;  %v3436_v62 = vpop.f32.mrb[162].mxu1  ;;  %4794 = vmatprep.mubr.bf16.mxu0 %v12701_v27 }
 0x4a8   :  { %v3437_v42 = vadd.f32 %v3436_v62, %v12656_v63  ;;  %v3438_v12 = vpop.f32.mrb[163].mxu1  ;;  %4795 = vmatmul.mubr.bf16.gmra.mrb[156].mxu0 %v12699_v25  ;;  %v3798_v32 = vmax.f32 %v3433_v29, 0.0  ;;  %v9808_v29 = vld [vmem:[%s14116_s7 + $0x398] ss:$20 sps:$4 sm:$0xff]  }
 0x4a9   :  { %v3439_v40 = vadd.f32 %v3438_v12, %v12660_v23  ;;  %4980 = vmatpush1.bf16.msra.mxu0 %v9760_v41  ;;  %v3799_v2 = vmax.f32 %v3435_v61, 0.0 }
 0x4aa   :  { %v3801_v10 = vmax.f32 %v3437_v42, 0.0  ;;  %8399 = vmatmul.mubr.bf16.gmra.mrb[12].mxu1 %v12472_v50  ;;  %4981 = vmatprep.subr.bf16.mxu0 %v9780_v26  ;;  %v9796_v50 = vld [vmem:[%s14116_s7 + $0x320] ss:$20 sps:$4 sm:$0xff]  }
 0x4ab   :  { %v3802_v35 = vmax.f32 %v3439_v40, 0.0  ;;  %8402 = vmatprep.mubr.msk.bf16.mxu1 %vm10243_vm2, %v14217_v55 }
 0x4ac   :  { %v12724_v52 = vpack.c.bf16 %v3801_v10, %v3798_v32 }
 0x4ad   :  { %v12726_v33 = vpack.c.bf16 %v3802_v35, %v3799_v2  ;;  %v3442_v49 = vpop.f32.mrb[164].mxu1  ;;  %4982 = vmatpush1.bf16.msra.mxu0 %v9778_v48 }
 0x4ae   :  { %v3443_v56 = vadd.f32 %v3442_v49, %v12656_v63  ;;  %v3444_v36 = vpop.f32.mrb[165].mxu1  ;;  %4983 = vmatprep.subr.bf16.mxu0 %v9798_v16 }
 0x4af   :  { %v3445_v7 = vadd.f32 %v3444_v36, %v12660_v23  ;;  %v3446_v53 = vpop.f32.mrb[166].mxu1  ;;  %4804 = vmatprep.mubr.bf16.mxu0 %v12726_v33 }
 0x4b0   :  { %v3447_v58 = vadd.f32 %v3446_v53, %v12656_v63  ;;  %v3448_v30 = vpop.f32.mrb[167].mxu1  ;;  %4805 = vmatmul.mubr.bf16.gmra.mrb[160].mxu0 %v12724_v52  ;;  %v3804_v3 = vmax.f32 %v3443_v56, 0.0 }
 0x4b1   :  { %v3449_v19 = vadd.f32 %v3448_v30, %v12660_v23  ;;  %4984 = vmatpush1.bf16.msra.mxu0 %v9796_v50  ;;  %v3805_v60 = vmax.f32 %v3445_v7, 0.0 }
 0x4b2   :  { %v3807_v21 = vmax.f32 %v3447_v58, 0.0  ;;  %8403 = vmatmul.mubr.bf16.gmra.mrb[16].mxu1 %v12478_v0  ;;  %4985 = vmatprep.subr.bf16.mxu0 %v9804_v13  ;;  %v9805_v0 = vld [vmem:[%s14116_s7 + $0x370] ss:$20 sps:$4 sm:$0xff]  }
 0x4b3   :  { %v3808_v11 = vmax.f32 %v3449_v19, 0.0  ;;  %8406 = vmatprep.mubr.msk.bf16.mxu1 %vm10243_vm2, %v14217_v55 }
 0x4b4   :  { %v12749_v28 = vpack.c.bf16 %v3807_v21, %v3804_v3 }
 0x4b5   :  { %v12751_v38 = vpack.c.bf16 %v3808_v11, %v3805_v60  ;;  %v3452_v8 = vpop.f32.mrb[168].mxu1  ;;  %4986 = vmatpush1.bf16.msra.mxu0 %v9802_v17 }
 0x4b6   :  { %v3453_v39 = vadd.f32 %v3452_v8, %v12656_v63  ;;  %v3454_v57 = vpop.f32.mrb[169].mxu1  ;;  %4987 = vmatprep.subr.bf16.mxu0 %v9807_v6 }
 0x4b7   :  { %v3455_v47 = vadd.f32 %v3454_v57, %v12660_v23  ;;  %v3456_v51 = vpop.f32.mrb[170].mxu1  ;;  %4814 = vmatprep.mubr.bf16.mxu0 %v12751_v38 }
 0x4b8   :  { %v3457_v31 = vadd.f32 %v3456_v51, %v12656_v63  ;;  %v3458_v4 = vpop.f32.mrb[171].mxu1  ;;  %4815 = vmatmul.mubr.bf16.gmra.mrb[164].mxu0 %v12749_v28  ;;  %v3810_v45 = vmax.f32 %v3453_v39, 0.0 }
 0x4b9   :  { %v3459_v41 = vadd.f32 %v3458_v4, %v12660_v23  ;;  %4988 = vmatpush1.bf16.msra.mxu0 %v9805_v0  ;;  %v3811_v61 = vmax.f32 %v3455_v47, 0.0 }
 0x4ba   :  { %v3813_v26 = vmax.f32 %v3457_v31, 0.0  ;;  %8407 = vmatmul.mubr.bf16.gmra.mrb[20].mxu1 %v12490_v5  ;;  %4989 = vmatprep.subr.bf16.mxu0 %v9810_v14 }
 0x4bb   :  { %v3814_v62 = vmax.f32 %v3459_v41, 0.0  ;;  %8410 = vmatprep.mubr.msk.bf16.mxu1 %vm10243_vm2, %v14217_v55 }
 0x4bc   :  { %v12771_v42 = vpack.c.bf16 %v3813_v26, %v3810_v45 }
 0x4bd   :  { %v12773_v12 = vpack.c.bf16 %v3814_v62, %v3811_v61  ;;  %v3462_v40 = vpop.f32.mrb[172].mxu1  ;;  %4990 = vmatpush1.bf16.msra.mxu0 %v9808_v29 }
 0x4be   :  { %v3463_v48 = vadd.f32 %v3462_v40, %v12656_v63  ;;  %v3464_v32 = vpop.f32.mrb[173].mxu1  ;;  %5644 = vmatprep.subr.bf16.mxu0 %v14330_v9 }
 0x4bf   :  { %v3465_v10 = vadd.f32 %v3464_v32, %v12660_v23  ;;  %v3466_v5 = vpop.f32.mrb[174].mxu1  ;;  %4824 = vmatprep.mubr.bf16.mxu0 %v12773_v12 }
 0x4c0   :  { %v3467_v16 = vadd.f32 %v3466_v5, %v12656_v63  ;;  %v3468_v2 = vpop.f32.mrb[175].mxu1  ;;  %4825 = vmatmul.mubr.bf16.gmra.mrb[168].mxu0 %v12771_v42  ;;  %v3816_v49 = vmax.f32 %v3463_v48, 0.0 }
 0x4c1   :  { %v3469_v35 = vadd.f32 %v3468_v2, %v12660_v23  ;;  %v3817_v56 = vmax.f32 %v3465_v10, 0.0 }
 0x4c2   :  { %v3819_v50 = vmax.f32 %v3467_v16, 0.0  ;;  %8411 = vmatmul.mubr.bf16.gmra.mrb[24].mxu1 %v12499_v1 }
 0x4c3   :  { %v3820_v36 = vmax.f32 %v3469_v35, 0.0  ;;  %8414 = vmatprep.mubr.msk.bf16.mxu1 %vm10243_vm2, %v14217_v55 }
 0x4c4   :  { %v12785_v13 = vpack.c.bf16 %v3819_v50, %v3816_v49 }
 0x4c5   :  { %v12787_v7 = vpack.c.bf16 %v3820_v36, %v3817_v56  ;;  %v3472_v53 = vpop.f32.mrb[176].mxu1 }
 0x4c6   :  { %v3473_v58 = vadd.f32 %v3472_v53, %v12656_v63  ;;  %v3474_v30 = vpop.f32.mrb[177].mxu1 }
 0x4c7   :  { %v3475_v19 = vadd.f32 %v3474_v30, %v12660_v23  ;;  %v3476_v17 = vpop.f32.mrb[178].mxu1  ;;  %4834 = vmatprep.mubr.bf16.mxu0 %v12787_v7 }
 0x4c8   :  { %v3477_v1 = vadd.f32 %v3476_v17, %v12656_v63  ;;  %v3478_v3 = vpop.f32.mrb[179].mxu1  ;;  %4835 = vmatmul.mubr.bf16.gmra.mrb[172].mxu0 %v12785_v13  ;;  %v3822_v6 = vmax.f32 %v3473_v58, 0.0 }
 0x4c9   :  { %v3479_v21 = vadd.f32 %v3478_v3, %v12660_v23  ;;  %v3823_v11 = vmax.f32 %v3475_v19, 0.0 }
 0x4ca   :  { %v3825_v60 = vmax.f32 %v3477_v1, 0.0  ;;  %8415 = vmatmul.mubr.bf16.gmra.mrb[28].mxu1 %v12505_v34 }
 0x4cb   :  { %v3826_v8 = vmax.f32 %v3479_v21, 0.0  ;;  %8418 = vmatprep.mubr.msk.bf16.mxu1 %vm10243_vm2, %v14217_v55 }
 0x4cc   :  { %v12798_v0 = vpack.c.bf16 %v3825_v60, %v3822_v6 }
 0x4cd   :  { %v12800_v39 = vpack.c.bf16 %v3826_v8, %v3823_v11  ;;  %v3482_v57 = vpop.f32.mrb[180].mxu1 }
 0x4ce   :  { %v3483_v14 = vadd.f32 %v3482_v57, %v12656_v63  ;;  %v3484_v47 = vpop.f32.mrb[181].mxu1 }
 0x4cf   :  { %v3485_v51 = vadd.f32 %v3484_v47, %v12660_v23  ;;  %v3486_v31 = vpop.f32.mrb[182].mxu1  ;;  %4844 = vmatprep.mubr.bf16.mxu0 %v12800_v39 }
 0x4d0   :  { %v3487_v34 = vadd.f32 %v3486_v31, %v12656_v63  ;;  %v3488_v4 = vpop.f32.mrb[183].mxu1  ;;  %4845 = vmatmul.mubr.bf16.gmra.mrb[176].mxu0 %v12798_v0  ;;  %v3828_v29 = vmax.f32 %v3483_v14, 0.0 }
 0x4d1   :  { %v3489_v41 = vadd.f32 %v3488_v4, %v12660_v23  ;;  %v3829_v26 = vmax.f32 %v3485_v51, 0.0 }
 0x4d2   :  { %v3831_v45 = vmax.f32 %v3487_v34, 0.0  ;;  %8419 = vmatmul.mubr.bf16.gmra.mrb[32].mxu1 %v12514_v15 }
 0x4d3   :  { %v3832_v61 = vmax.f32 %v3489_v41, 0.0  ;;  %8422 = vmatprep.mubr.msk.bf16.mxu1 %vm10243_vm2, %v14217_v55 }
 0x4d4   :  { %v12811_v62 = vpack.c.bf16 %v3831_v45, %v3828_v29  ;;  %v9819_v45 = vld [vmem:[%s14116_s7 + $0x28c] ss:$20 sps:$4 sm:$0xff]  }
 0x4d5   :  { %v12813_v40 = vpack.c.bf16 %v3832_v61, %v3829_v26  ;;  %v3492_v48 = vpop.f32.mrb[184].mxu1  ;;  %5421 = vmatprep.subr.bf16.mxu1 %v9819_v45 }
 0x4d6   :  { %v3493_v32 = vadd.f32 %v3492_v48, %v12656_v63  ;;  %v3494_v10 = vpop.f32.mrb[185].mxu1 }
 0x4d7   :  { %v3495_v5 = vadd.f32 %v3494_v10, %v12660_v23  ;;  %v3496_v16 = vpop.f32.mrb[186].mxu1  ;;  %4854 = vmatprep.mubr.bf16.mxu0 %v12813_v40 }
 0x4d8   :  { %v3497_v15 = vadd.f32 %v3496_v16, %v12656_v63  ;;  %v3498_v2 = vpop.f32.mrb[187].mxu1  ;;  %4855 = vmatmul.mubr.bf16.gmra.mrb[180].mxu0 %v12811_v62  ;;  %v3834_v49 = vmax.f32 %v3493_v32, 0.0 }
 0x4d9   :  { %v3499_v35 = vadd.f32 %v3498_v2, %v12660_v23  ;;  %v3835_v56 = vmax.f32 %v3495_v5, 0.0 }
 0x4da   :  { %v3837_v50 = vmax.f32 %v3497_v15, 0.0  ;;  %8423 = vmatmul.mubr.bf16.gmra.mrb[36].mxu1 %v12520_v37 }
 0x4db   :  { %v3838_v36 = vmax.f32 %v3499_v35, 0.0  ;;  %8426 = vmatprep.mubr.msk.bf16.mxu1 %vm10243_vm2, %v14217_v55 }
 0x4dc   :  { %v12824_v53 = vpack.c.bf16 %v3837_v50, %v3834_v49 }
 0x4dd   :  { %v12826_v58 = vpack.c.bf16 %v3838_v36, %v3835_v56  ;;  %v3502_v30 = vpop.f32.mrb[188].mxu1 }
 0x4de   :  { %v3503_v19 = vadd.f32 %v3502_v30, %v12656_v63  ;;  %v3504_v17 = vpop.f32.mrb[189].mxu1  ;;  %v9822_v30 = vld [vmem:[%s14116_s7 + $0x2b4] ss:$20 sps:$4 sm:$0xff]  }
 0x4df   :  { %v3505_v1 = vadd.f32 %v3504_v17, %v12660_v23  ;;  %v3506_v3 = vpop.f32.mrb[190].mxu1  ;;  %4864 = vmatprep.mubr.bf16.mxu0 %v12826_v58 }
 0x4e0   :  { %v3507_v37 = vadd.f32 %v3506_v3, %v12656_v63  ;;  %v3508_v21 = vpop.f32.mrb[191].mxu1  ;;  %4865 = vmatmul.mubr.bf16.gmra.mrb[184].mxu0 %v12824_v53  ;;  %v3840_v60 = vmax.f32 %v3503_v19, 0.0 }
 0x4e1   :  { %v3509_v6 = vadd.f32 %v3508_v21, %v12660_v23  ;;  %v3841_v8 = vmax.f32 %v3505_v1, 0.0  ;;  %v9820_v21 = vld [vmem:[%s14116_s7 + $0x2b0] ss:$20 sps:$4 sm:$0xff]  }
 0x4e2   :  { %v3843_v11 = vmax.f32 %v3507_v37, 0.0  ;;  %8427 = vmatmul.mubr.bf16.gmra.mrb[40].mxu1 %v12526_v24 }
 0x4e3   :  { %v3844_v57 = vmax.f32 %v3509_v6, 0.0  ;;  %8430 = vmatprep.mubr.msk.bf16.mxu1 %vm10243_vm2, %v14217_v55 }
 0x4e4   :  { %v12837_v14 = vpack.c.bf16 %v3843_v11, %v3840_v60  ;;  %v9825_v60 = vld [vmem:[%s14116_s7 + $0x2dc] ss:$20 sps:$4 sm:$0xff]  }
 0x4e5   :  { %v12839_v47 = vpack.c.bf16 %v3844_v57, %v3841_v8  ;;  %v3512_v51 = vpop.f32.mrb[192].mxu1 }
 0x4e6   :  { %v3513_v31 = vadd.f32 %v3512_v51, %v12656_v63  ;;  %v3514_v34 = vpop.f32.mrb[193].mxu1 }
 0x4e7   :  { %v3515_v4 = vadd.f32 %v3514_v34, %v12660_v23  ;;  %v3516_v41 = vpop.f32.mrb[194].mxu1  ;;  %4874 = vmatprep.mubr.bf16.mxu0 %v12839_v47 }
 0x4e8   :  { %v3517_v24 = vadd.f32 %v3516_v41, %v12656_v63  ;;  %v3518_v29 = vpop.f32.mrb[195].mxu1  ;;  %4875 = vmatmul.mubr.bf16.gmra.mrb[188].mxu0 %v12837_v14  ;;  %v3846_v61 = vmax.f32 %v3513_v31, 0.0 }
 0x4e9   :  { %v3519_v26 = vadd.f32 %v3518_v29, %v12660_v23  ;;  %v3847_v32 = vmax.f32 %v3515_v4, 0.0  ;;  %v9823_v4 = vld [vmem:[%s14116_s7 + $0x2d8] ss:$20 sps:$4 sm:$0xff]  }
 0x4ea   :  { %v3849_v48 = vmax.f32 %v3517_v24, 0.0  ;;  %8431 = vmatmul.mubr.bf16.gmra.mrb[44].mxu1 %v12532_v59  ;;  %v9817_v59 = vld [vmem:[%s14116_s7 + $0x288] ss:$20 sps:$4 sm:$0xff]   ;;  %v9829_v29 = vld [vmem:[%s14116_s7 + $0x304] ss:$20 sps:$4 sm:$0xff]  }
 0x4eb   :  { %v3850_v10 = vmax.f32 %v3519_v26, 0.0  ;;  %5230 = vmatprep.mubr.bf16.mxu1 %v12676_v20 }
 0x4ec   :  { %v12852_v5 = vpack.c.bf16 %v3849_v48, %v3846_v61 }
 0x4ed   :  { %v12854_v16 = vpack.c.bf16 %v3850_v10, %v3847_v32  ;;  %v3522_v15 = vpop.f32.mrb[196].mxu1  ;;  %v9827_v10 = vld [vmem:[%s14116_s7 + $0x300] ss:$20 sps:$4 sm:$0xff]  }
 0x4ee   :  { %v3523_v2 = vadd.f32 %v3522_v15, %v12656_v63  ;;  %v3524_v35 = vpop.f32.mrb[197].mxu1 }
 0x4ef   :  { %v3525_v49 = vadd.f32 %v3524_v35, %v12660_v23  ;;  %v3526_v50 = vpop.f32.mrb[198].mxu1  ;;  %4884 = vmatprep.mubr.bf16.mxu0 %v12854_v16 }
 0x4f0   :  { %v3527_v56 = vadd.f32 %v3526_v50, %v12656_v63  ;;  %v3528_v36 = vpop.f32.mrb[199].mxu1  ;;  %4885 = vmatmul.mubr.bf16.gmra.mrb[192].mxu0 %v12852_v5  ;;  %v3852_v17 = vmax.f32 %v3523_v2, 0.0  ;;  %v9832_v2 = vld [vmem:[%s14116_s7 + $0x32c] ss:$20 sps:$4 sm:$0xff]  }
 0x4f1   :  { %v3529_v19 = vadd.f32 %v3528_v36, %v12660_v23  ;;  %v3853_v3 = vmax.f32 %v3525_v49, 0.0 }
 0x4f2   :  { %v3855_v1 = vmax.f32 %v3527_v56, 0.0  ;;  %5231 = vmatmul.mubr.bf16.vlgmr.msra.gmra.mrb[48].mxu1 %v12674_v44 }
 0x4f3   :  { %v3856_v37 = vmax.f32 %v3529_v19, 0.0  ;;  %5240 = vmatprep.mubr.bf16.mxu1 %v12701_v27  ;;  %5422 = vmatpush1.bf16.msra.mxu1 %v9817_v59 }
 0x4f4   :  { %v12873_v6 = vpack.c.bf16 %v3855_v1, %v3852_v17  ;;  %5423 = vmatprep.subr.bf16.mxu1 %v9822_v30  ;;  %v9830_v30 = vld [vmem:[%s14116_s7 + $0x328] ss:$20 sps:$4 sm:$0xff]  }
 0x4f5   :  { %v12878_v11 = vpack.c.bf16 %v3856_v37, %v3853_v3  ;;  %v3532_v8 = vpop.f32.mrb[200].mxu1  ;;  %v9836_v1 = vld [vmem:[%s14116_s7 + $0x354] ss:$20 sps:$4 sm:$0xff]  }
 0x4f6   :  { %v3533_v57 = vadd.f32 %v3532_v8, %v12656_v63  ;;  %v3534_v51 = vpop.f32.mrb[201].mxu1 }
 0x4f7   :  { %v3535_v31 = vadd.f32 %v3534_v51, %v12660_v23  ;;  %v3536_v34 = vpop.f32.mrb[202].mxu1  ;;  %4894 = vmatprep.mubr.bf16.mxu0 %v12878_v11  ;;  %5424 = vmatpush1.bf16.msra.mxu1 %v9820_v21 }
 0x4f8   :  { %v3537_v41 = vadd.f32 %v3536_v34, %v12656_v63  ;;  %v3538_v24 = vpop.f32.mrb[203].mxu1  ;;  %4895 = vmatmul.mubr.bf16.gmra.mrb[196].mxu0 %v12873_v6  ;;  %5425 = vmatprep.subr.bf16.mxu1 %v9825_v60  ;;  %v3858_v26 = vmax.f32 %v3533_v57, 0.0  ;;  %v9834_v57 = vld [vmem:[%s14116_s7 + $0x350] ss:$20 sps:$4 sm:$0xff]  }
 0x4f9   :  { %v3539_v45 = vadd.f32 %v3538_v24, %v12660_v23  ;;  %v3859_v48 = vmax.f32 %v3535_v31, 0.0  ;;  %v9839_v31 = vld [vmem:[%s14116_s7 + $0x37c] ss:$20 sps:$4 sm:$0xff]  }
 0x4fa   :  { %v3861_v61 = vmax.f32 %v3537_v41, 0.0  ;;  %5241 = vmatmul.mubr.bf16.gmra.mrb[52].mxu1 %v12699_v25 }
 0x4fb   :  { %v3862_v32 = vmax.f32 %v3539_v45, 0.0  ;;  %5250 = vmatprep.mubr.bf16.mxu1 %v12726_v33  ;;  %5426 = vmatpush1.bf16.msra.mxu1 %v9823_v4 }
 0x4fc   :  { %v12897_v15 = vpack.c.bf16 %v3861_v61, %v3858_v26  ;;  %5427 = vmatprep.subr.bf16.mxu1 %v9829_v29  ;;  %v9837_v26 = vld [vmem:[%s14116_s7 + $0x378] ss:$20 sps:$4 sm:$0xff]  }
 0x4fd   :  { %v12902_v35 = vpack.c.bf16 %v3862_v32, %v3859_v48  ;;  %v3542_v49 = vpop.f32.mrb[204].mxu1  ;;  %v9843_v32 = vld [vmem:[%s14116_s7 + $0x3a4] ss:$20 sps:$4 sm:$0xff]  }
 0x4fe   :  { %v3543_v50 = vadd.f32 %v3542_v49, %v12656_v63  ;;  %v3544_v59 = vpop.f32.mrb[205].mxu1 }
 0x4ff   :  { %v3545_v56 = vadd.f32 %v3544_v59, %v12660_v23  ;;  %v3546_v36 = vpop.f32.mrb[206].mxu1  ;;  %4904 = vmatprep.mubr.bf16.mxu0 %v12902_v35  ;;  %5428 = vmatpush1.bf16.msra.mxu1 %v9827_v10 }
 0x500   :  { %v3547_v19 = vadd.f32 %v3546_v36, %v12656_v63  ;;  %v3548_v17 = vpop.f32.mrb[207].mxu1  ;;  %4905 = vmatmul.mubr.bf16.gmra.mrb[200].mxu0 %v12897_v15  ;;  %5429 = vmatprep.subr.bf16.mxu1 %v9832_v2  ;;  %v3864_v37 = vmax.f32 %v3543_v50, 0.0 }
 0x501   :  { %v3549_v3 = vadd.f32 %v3548_v17, %v12660_v23  ;;  %v3865_v60 = vmax.f32 %v3545_v56, 0.0  ;;  %v9841_v56 = vld [vmem:[%s14116_s7 + $0x3a0] ss:$20 sps:$4 sm:$0xff]  }
 0x502   :  { %v3867_v21 = vmax.f32 %v3547_v19, 0.0  ;;  %5251 = vmatmul.mubr.bf16.gmra.mrb[56].mxu1 %v12724_v52 }
 0x503   :  { %v3868_v8 = vmax.f32 %v3549_v3, 0.0  ;;  %5260 = vmatprep.mubr.bf16.mxu1 %v12751_v38  ;;  %5430 = vmatpush1.bf16.msra.mxu1 %v9830_v30 }
 0x504   :  { %v12921_v51 = vpack.c.bf16 %v3867_v21, %v3864_v37  ;;  %5431 = vmatprep.subr.bf16.mxu1 %v9836_v1 }
 0x505   :  { %v12926_v34 = vpack.c.bf16 %v3868_v8, %v3865_v60  ;;  %v3552_v4 = vpop.f32.mrb[208].mxu1 }
 0x506   :  { %v3553_v41 = vadd.f32 %v3552_v4, %v12656_v63  ;;  %v3554_v24 = vpop.f32.mrb[209].mxu1 }
 0x507   :  { %v3555_v29 = vadd.f32 %v3554_v24, %v12660_v23  ;;  %v3556_v45 = vpop.f32.mrb[210].mxu1  ;;  %4914 = vmatprep.mubr.bf16.mxu0 %v12926_v34  ;;  %5432 = vmatpush1.bf16.msra.mxu1 %v9834_v57 }
 0x508   :  { %v3557_v61 = vadd.f32 %v3556_v45, %v12656_v63  ;;  %v3558_v48 = vpop.f32.mrb[211].mxu1  ;;  %4915 = vmatmul.mubr.bf16.gmra.mrb[204].mxu0 %v12921_v51  ;;  %5433 = vmatprep.subr.bf16.mxu1 %v9839_v31  ;;  %v3870_v2 = vmax.f32 %v3553_v41, 0.0 }
 0x509   :  { %v3559_v10 = vadd.f32 %v3558_v48, %v12660_v23  ;;  %v3871_v50 = vmax.f32 %v3555_v29, 0.0 }
 0x50a   :  { %v3873_v49 = vmax.f32 %v3557_v61, 0.0  ;;  %5261 = vmatmul.mubr.bf16.gmra.mrb[60].mxu1 %v12749_v28 }
 0x50b   :  { %v3874_v59 = vmax.f32 %v3559_v10, 0.0  ;;  %5270 = vmatprep.mubr.bf16.mxu1 %v12773_v12  ;;  %5434 = vmatpush1.bf16.msra.mxu1 %v9837_v26 }
 0x50c   :  { %v12945_v36 = vpack.c.bf16 %v3873_v49, %v3870_v2  ;;  %5435 = vmatprep.subr.bf16.mxu1 %v9843_v32 }
 0x50d   :  { %v12947_v30 = vpack.c.bf16 %v3874_v59, %v3871_v50  ;;  %v3562_v19 = vpop.f32.mrb[212].mxu1 }
 0x50e   :  { %v3563_v17 = vadd.f32 %v3562_v19, %v12656_v63  ;;  %v3564_v1 = vpop.f32.mrb[213].mxu1 }
 0x50f   :  { %v3565_v3 = vadd.f32 %v3564_v1, %v12660_v23  ;;  %v3566_v37 = vpop.f32.mrb[214].mxu1  ;;  %4924 = vmatprep.mubr.bf16.mxu0 %v12947_v30  ;;  %5436 = vmatpush1.bf16.msra.mxu1 %v9841_v56 }
 0x510   :  { %v3567_v21 = vadd.f32 %v3566_v37, %v12656_v63  ;;  %v3568_v60 = vpop.f32.mrb[215].mxu1  ;;  %4925 = vmatmul.mubr.bf16.gmra.mrb[208].mxu0 %v12945_v36  ;;  %v3876_v57 = vmax.f32 %v3563_v17, 0.0 }
 0x511   :  { %v3569_v8 = vadd.f32 %v3568_v60, %v12660_v23  ;;  %v3877_v4 = vmax.f32 %v3565_v3, 0.0 }
 0x512   :  { %v3879_v31 = vmax.f32 %v3567_v21, 0.0  ;;  %5271 = vmatmul.mubr.bf16.gmra.mrb[64].mxu1 %v12771_v42 }
 0x513   :  { %v3880_v41 = vmax.f32 %v3569_v8, 0.0  ;;  %5280 = vmatprep.mubr.bf16.mxu1 %v12787_v7 }
 0x514   :  { %v12957_v24 = vpack.c.bf16 %v3879_v31, %v3876_v57 }
 0x515   :  { %v12959_v29 = vpack.c.bf16 %v3880_v41, %v3877_v4  ;;  %v3572_v45 = vpop.f32.mrb[216].mxu1 }
 0x516   :  { %v3573_v26 = vadd.f32 %v3572_v45, %v12656_v63  ;;  %v3574_v61 = vpop.f32.mrb[217].mxu1 }
 0x517   :  { %v3575_v48 = vadd.f32 %v3574_v61, %v12660_v23  ;;  %v3576_v32 = vpop.f32.mrb[218].mxu1  ;;  %4934 = vmatprep.mubr.bf16.mxu0 %v12959_v29 }
 0x518   :  { %v3577_v10 = vadd.f32 %v3576_v32, %v12656_v63  ;;  %v3578_v2 = vpop.f32.mrb[219].mxu1  ;;  %4935 = vmatmul.mubr.bf16.gmra.mrb[212].mxu0 %v12957_v24  ;;  %v3882_v50 = vmax.f32 %v3573_v26, 0.0 }
 0x519   :  { %v3579_v49 = vadd.f32 %v3578_v2, %v12660_v23  ;;  %v3883_v56 = vmax.f32 %v3575_v48, 0.0 }
 0x51a   :  { %v3885_v59 = vmax.f32 %v3577_v10, 0.0  ;;  %5281 = vmatmul.mubr.bf16.gmra.mrb[68].mxu1 %v12785_v13 }
 0x51b   :  { %v3886_v19 = vmax.f32 %v3579_v49, 0.0  ;;  %5290 = vmatprep.mubr.bf16.mxu1 %v12800_v39 }
 0x51c   :  { %v12969_v17 = vpack.c.bf16 %v3885_v59, %v3882_v50 }
 0x51d   :  { %v12971_v1 = vpack.c.bf16 %v3886_v19, %v3883_v56  ;;  %v3582_v3 = vpop.f32.mrb[220].mxu1 }
 0x51e   :  { %v3583_v37 = vadd.f32 %v3582_v3, %v12656_v63  ;;  %v3584_v21 = vpop.f32.mrb[221].mxu1 }
 0x51f   :  { %v3585_v60 = vadd.f32 %v3584_v21, %v12660_v23  ;;  %v3586_v8 = vpop.f32.mrb[222].mxu1  ;;  %4944 = vmatprep.mubr.bf16.mxu0 %v12971_v1 }
 0x520   :  { %v3587_v57 = vadd.f32 %v3586_v8, %v12656_v63  ;;  %v3588_v31 = vpop.f32.mrb[223].mxu1  ;;  %4945 = vmatmul.mubr.bf16.gmra.mrb[216].mxu0 %v12969_v17  ;;  %v3888_v41 = vmax.f32 %v3583_v37, 0.0 }
 0x521   :  { %v3589_v4 = vadd.f32 %v3588_v31, %v12660_v23  ;;  %v3889_v26 = vmax.f32 %v3585_v60, 0.0  ;;  %v12994_v60 = vrot.slane %v12645_v54, %v12171_v22 }
 0x522   :  { %v3891_v45 = vmax.f32 %v3587_v57, 0.0  ;;  %5291 = vmatmul.mubr.bf16.gmra.mrb[72].mxu1 %v12798_v0 }
 0x523   :  { %v3892_v61 = vmax.f32 %v3589_v4, 0.0  ;;  %5300 = vmatprep.mubr.bf16.mxu1 %v12813_v40 }
 0x524   :  { %v12981_v48 = vpack.c.bf16 %v3891_v45, %v3888_v41 }
 0x525   :  { %v12983_v32 = vpack.c.bf16 %v3892_v61, %v3889_v26  ;;  %v3592_v10 = vpop.f32.mrb[224].mxu1 }
 0x526   :  { %v3593_v2 = vadd.f32 %v3592_v10, %v12656_v63  ;;  %v3594_v49 = vpop.f32.mrb[225].mxu1 }
 0x527   :  { %v3595_v50 = vadd.f32 %v3594_v49, %v12660_v23  ;;  %v3596_v59 = vpop.f32.mrb[226].mxu1  ;;  %4954 = vmatprep.mubr.bf16.mxu0 %v12983_v32 }
 0x528   :  { %v3597_v56 = vadd.f32 %v3596_v59, %v12656_v63  ;;  %v3598_v19 = vpop.f32.mrb[227].mxu1  ;;  %4955 = vmatmul.mubr.bf16.gmra.mrb[220].mxu0 %v12981_v48  ;;  %v3894_v37 = vmax.f32 %v3593_v2, 0.0 }
 0x529   :  { %v3599_v3 = vadd.f32 %v3598_v19, %v12660_v23  ;;  %v3895_v8 = vmax.f32 %v3595_v50, 0.0  ;;  %v9811_v50 = vld [vmem:[%s14116_s7 + $0x10] ss:$20 sps:$4 sm:$0xff]  }
 0x52a   :  { %v3897_v21 = vmax.f32 %v3597_v56, 0.0  ;;  %5301 = vmatmul.mubr.bf16.gmra.mrb[76].mxu1 %v12811_v62 }
 0x52b   :  { %v3898_v57 = vmax.f32 %v3599_v3, 0.0  ;;  %5310 = vmatprep.mubr.bf16.mxu1 %v12826_v58 }
 0x52c   :  { %v12997_v31 = vpack.c.bf16 %v3897_v21, %v3894_v37  ;;  %v9812_v21 = vld [vmem:[%s14116_s7 + $0x38] ss:$20 sps:$4 sm:$0xff]  }
 0x52d   :  { %v12999_v63 = vpack.c.bf16 %v3898_v57, %v3895_v8  ;;  %v3635_v4 = vpop.f32.mrb[228].mxu1 }
 0x52e   :  { %14335 = vst [vmem:[#allocation3_spill] sm:$0xff] %v12997_v31  ;;  %v3636_v41 = vadd.f32 %v3635_v4, %v12994_v60  ;;  %v8360_v23 = vpop.f32.mrb[229].mxu1 }
 0x52f   :  { %v3638_v45 = vpop.f32.mrb[230].mxu1  ;;  %4964 = vmatprep.mubr.bf16.mxu0 %v12999_v63  ;;  %v9813_v23 = vld [vmem:[%s14116_s7 + $0x60] ss:$20 sps:$4 sm:$0xff]  }
 0x530   :  { %v3639_v26 = vadd.f32 %v3638_v45, %v12994_v60  ;;  %v8361_v61 = vpop.f32.mrb[231].mxu1  ;;  %4965 = vmatmul.mubr.bf16.gmra.mrb[224].mxu0 %v12997_v31  ;;  %v3788_v54 = vmax.f32 %v3636_v41, 0.0 }
 0x531   :  { %5007 = vmatprep.mubr.bf16.mxu0 %v14330_v9 }
 0x532   :  { %v3791_v10 = vmax.f32 %v3639_v26, 0.0  ;;  %5311 = vmatmul.mubr.bf16.gmra.mrb[80].mxu1 %v12824_v53 }
 0x533   :  { %5320 = vmatprep.mubr.bf16.mxu1 %v12839_v47 }
 0x534   :  { %v13008_v2 = vpack.c.bf16 %v3791_v10, %v3788_v54 }
 0x535   :  { %v3643_v49 = vpop.f32.mrb[232].mxu1 }
 0x536   :  { %14336 = vst [vmem:[#allocation4_spill] sm:$0xff] %v13008_v2  ;;  %v3644_v59 = vadd.f32 %v3643_v49, %v12994_v60  ;;  %v8364_v56 = vpop.f32.mrb[233].mxu1  ;;  %v9814_v49 = vld [vmem:[%s14116_s7 + $0x88] ss:$20 sps:$4 sm:$0xff]  }
 0x537   :  { %v3646_v19 = vpop.f32.mrb[234].mxu1 }
 0x538   :  { %v3647_v3 = vadd.f32 %v3646_v19, %v12994_v60  ;;  %v8365_v37 = vpop.f32.mrb[235].mxu1  ;;  %5008 = vmatmul.mubr.bf16.vlgmr.msra.gmra.mrb[152].mxu0 %v13008_v2  ;;  %v3794_v8 = vmax.f32 %v3644_v59, 0.0 }
 0x539   :  { %5645 = vmatpush1.bf16.msra.mxu0 %v9811_v50  ;;  %5017 = vmatprep.mubr.bf16.mxu0 %v14330_v9 }
 0x53a   :  { %v3797_v57 = vmax.f32 %v3647_v3, 0.0  ;;  %5321 = vmatmul.mubr.bf16.gmra.mrb[84].mxu1 %v12837_v14  ;;  %5646 = vmatprep.subr.bf16.mxu0 %v14330_v9  ;;  %v9815_v3 = vld [vmem:[%s14116_s7 + $0xb0] ss:$20 sps:$4 sm:$0xff]  }
 0x53b   :  { %5330 = vmatprep.mubr.bf16.mxu1 %v12854_v16 }
 0x53c   :  { %v13023_v4 = vpack.c.bf16 %v3797_v57, %v3794_v8 }
 0x53d   :  { %v3651_v41 = vpop.f32.mrb[236].mxu1  ;;  %5647 = vmatpush1.bf16.msra.mxu0 %v9812_v21 }
 0x53e   :  { %14337 = vst [vmem:[#allocation5_spill] sm:$0xff] %v13023_v4  ;;  %v3652_v45 = vadd.f32 %v3651_v41, %v12994_v60  ;;  %v8368_v26 = vpop.f32.mrb[237].mxu1  ;;  %5648 = vmatprep.subr.bf16.mxu0 %v14330_v9 }
 0x53f   :  { %v3654_v61 = vpop.f32.mrb[238].mxu1 }
 0x540   :  { %v3655_v54 = vadd.f32 %v3654_v61, %v12994_v60  ;;  %v8369_v10 = vpop.f32.mrb[239].mxu1  ;;  %5018 = vmatmul.mubr.bf16.gmra.mrb[156].mxu0 %v13023_v4  ;;  %v3800_v50 = vmax.f32 %v3652_v45, 0.0 }
 0x541   :  { %5027 = vmatprep.mubr.bf16.mxu0 %v14330_v9  ;;  %5649 = vmatpush1.bf16.msra.mxu0 %v9813_v23  ;;  %v9816_v23 = vld [vmem:[%s14116_s7 + $0xd8] ss:$20 sps:$4 sm:$0xff]   ;;  %v9826_v10 = vld [vmem:[%s14116_s7 + $0x100] ss:$20 sps:$4 sm:$0xff]  }
 0x542   :  { %v3803_v59 = vmax.f32 %v3655_v54, 0.0  ;;  %5331 = vmatmul.mubr.bf16.gmra.mrb[88].mxu1 %v12852_v5  ;;  %5650 = vmatprep.subr.bf16.mxu0 %v14330_v9 }
 0x543   :  { %5340 = vmatprep.mubr.bf16.mxu1 %v12878_v11 }
 0x544   :  { %v13039_v56 = vpack.c.bf16 %v3803_v59, %v3800_v50 }
 0x545   :  { %v3659_v19 = vpop.f32.mrb[240].mxu1  ;;  %5651 = vmatpush1.bf16.msra.mxu0 %v9814_v49 }
 0x546   :  { %14338 = vst [vmem:[#allocation6_spill] sm:$0xff] %v13039_v56  ;;  %v3660_v37 = vadd.f32 %v3659_v19, %v12994_v60  ;;  %v8372_v21 = vpop.f32.mrb[241].mxu1  ;;  %5652 = vmatprep.subr.bf16.mxu0 %v14330_v9 }
 0x547   :  { %v3662_v8 = vpop.f32.mrb[242].mxu1 }
 0x548   :  { %v3663_v57 = vadd.f32 %v3662_v8, %v12994_v60  ;;  %v8373_v41 = vpop.f32.mrb[243].mxu1  ;;  %5028 = vmatmul.mubr.bf16.gmra.mrb[160].mxu0 %v13039_v56  ;;  %v3806_v45 = vmax.f32 %v3660_v37, 0.0  ;;  %v9833_v37 = vld [vmem:[%s14116_s7 + $0x128] ss:$20 sps:$4 sm:$0xff]  }
 0x549   :  { %5037 = vmatprep.mubr.bf16.mxu0 %v14330_v9  ;;  %5653 = vmatpush1.bf16.msra.mxu0 %v9815_v3 }
 0x54a   :  { %v3809_v26 = vmax.f32 %v3663_v57, 0.0  ;;  %5341 = vmatmul.mubr.bf16.gmra.mrb[92].mxu1 %v12873_v6  ;;  %5654 = vmatprep.subr.bf16.mxu0 %v14330_v9 }
 0x54b   :  { %5350 = vmatprep.mubr.bf16.mxu1 %v12902_v35 }
 0x54c   :  { %v13055_v61 = vpack.c.bf16 %v3809_v26, %v3806_v45 }
 0x54d   :  { %v3667_v54 = vpop.f32.mrb[244].mxu1  ;;  %5655 = vmatpush1.bf16.msra.mxu0 %v9816_v23  ;;  %v9840_v23 = vld [vmem:[%s14116_s7 + $0x150] ss:$20 sps:$4 sm:$0xff]  }
 0x54e   :  { %14339 = vst [vmem:[#allocation7_spill] sm:$0xff] %v13055_v61  ;;  %v3668_v49 = vadd.f32 %v3667_v54, %v12994_v60  ;;  %v8376_v50 = vpop.f32.mrb[245].mxu1  ;;  %5656 = vmatprep.subr.bf16.mxu0 %v14330_v9 }
 0x54f   :  { %v3670_v59 = vpop.f32.mrb[246].mxu1  ;;  %v9844_v50 = vld [vmem:[%s14116_s7 + $0x178] ss:$20 sps:$4 sm:$0xff]  }
 0x550   :  { %v3671_v19 = vadd.f32 %v3670_v59, %v12994_v60  ;;  %v8377_v3 = vpop.f32.mrb[247].mxu1  ;;  %5038 = vmatmul.mubr.bf16.gmra.mrb[164].mxu0 %v13055_v61  ;;  %v3812_v21 = vmax.f32 %v3668_v49, 0.0 }
 0x551   :  { %5047 = vmatprep.mubr.bf16.mxu0 %v14330_v9  ;;  %5657 = vmatpush1.bf16.msra.mxu0 %v9826_v10 }
 0x552   :  { %v3815_v8 = vmax.f32 %v3671_v19, 0.0  ;;  %5351 = vmatmul.mubr.bf16.gmra.mrb[96].mxu1 %v12897_v15  ;;  %5658 = vmatprep.subr.bf16.mxu0 %v14330_v9 }
 0x553   :  { %5360 = vmatprep.mubr.bf16.mxu1 %v12926_v34 }
 0x554   :  { %v13071_v57 = vpack.c.bf16 %v3815_v8, %v3812_v21  ;;  %v9845_v21 = vld [vmem:[%s14116_s7 + $0x1a0] ss:$20 sps:$4 sm:$0xff]  }
 0x555   :  { %v3675_v41 = vpop.f32.mrb[248].mxu1  ;;  %5659 = vmatpush1.bf16.msra.mxu0 %v9833_v37 }
 0x556   :  { %14340 = vst [vmem:[#allocation8_spill] sm:$0xff] %v13071_v57  ;;  %v3676_v45 = vadd.f32 %v3675_v41, %v12994_v60  ;;  %v8380_v26 = vpop.f32.mrb[249].mxu1  ;;  %5660 = vmatprep.subr.bf16.mxu0 %v14330_v9 }
 0x557   :  { %v3678_v54 = vpop.f32.mrb[250].mxu1 }
 0x558   :  { %v3679_v10 = vadd.f32 %v3678_v54, %v12994_v60  ;;  %v8381_v49 = vpop.f32.mrb[251].mxu1  ;;  %5048 = vmatmul.mubr.bf16.gmra.mrb[168].mxu0 %v13071_v57  ;;  %v3818_v59 = vmax.f32 %v3676_v45, 0.0  ;;  %v9846_v54 = vld [vmem:[%s14116_s7 + $0x1c8] ss:$20 sps:$4 sm:$0xff]  }
 0x559   :  { %5057 = vmatprep.mubr.bf16.mxu0 %v14330_v9  ;;  %5661 = vmatpush1.bf16.msra.mxu0 %v9840_v23 }
 0x55a   :  { %v3821_v19 = vmax.f32 %v3679_v10, 0.0  ;;  %5361 = vmatmul.mubr.bf16.gmra.mrb[100].mxu1 %v12921_v51  ;;  %5662 = vmatprep.subr.bf16.mxu0 %v14330_v9 }
 0x55b   :  { %5370 = vmatprep.mubr.bf16.mxu1 %v12947_v30 }
 0x55c   :  { %v13087_v3 = vpack.c.bf16 %v3821_v19, %v3818_v59  ;;  %v9847_v19 = vld [vmem:[%s14116_s7 + $0x1f0] ss:$20 sps:$4 sm:$0xff]  }
 0x55d   :  { %v3683_v37 = vpop.f32.mrb[252].mxu1  ;;  %5663 = vmatpush1.bf16.msra.mxu0 %v9844_v50 }
 0x55e   :  { %14341 = vst [vmem:[#allocation9_spill] sm:$0xff] %v13087_v3  ;;  %v3684_v8 = vadd.f32 %v3683_v37, %v12994_v60  ;;  %v8384_v41 = vpop.f32.mrb[253].mxu1  ;;  %5664 = vmatprep.subr.bf16.mxu0 %v14330_v9 }
 0x55f   :  { %v3686_v23 = vpop.f32.mrb[254].mxu1 }
 0x560   :  { %v3687_v45 = vadd.f32 %v3686_v23, %v12994_v60  ;;  %v8385_v26 = vpop.f32.mrb[255].mxu1  ;;  %5058 = vmatmul.mubr.bf16.gmra.mrb[172].mxu0 %v13087_v3  ;;  %v3824_v10 = vmax.f32 %v3684_v8, 0.0 }
 0x561   :  { %5067 = vmatprep.mubr.bf16.mxu0 %v14330_v9  ;;  %5665 = vmatpush1.bf16.msra.mxu0 %v9845_v21 }
 0x562   :  { %v3827_v49 = vmax.f32 %v3687_v45, 0.0  ;;  %5371 = vmatmul.mubr.bf16.gmra.mrb[104].mxu1 %v12945_v36  ;;  %5666 = vmatprep.subr.bf16.mxu0 %v14330_v9  ;;  %v9848_v45 = vld [vmem:[%s14116_s7 + $0x218] ss:$20 sps:$4 sm:$0xff]  }
 0x563   :  { %5380 = vmatprep.mubr.bf16.mxu1 %v12959_v29 }
 0x564   :  { %v13103_v50 = vpack.c.bf16 %v3827_v49, %v3824_v10 }
 0x565   :  { %v3691_v59 = vpop.f32.mrb[0].mxu1  ;;  %5667 = vmatpush1.bf16.msra.mxu0 %v9846_v54 }
 0x566   :  { %v3692_v37 = vadd.f32 %v3691_v59, %v12994_v60  ;;  %v8388_v21 = vpop.f32.mrb[1].mxu1  ;;  %5668 = vmatprep.subr.bf16.mxu0 %v14330_v9  ;;  %v9849_v59 = vld [vmem:[%s14116_s7 + $0x240] ss:$20 sps:$4 sm:$0xff]  }
 0x567   :  { %v3694_v8 = vpop.f32.mrb[2].mxu1 }
 0x568   :  { %v3695_v41 = vadd.f32 %v3694_v8, %v12994_v60  ;;  %v8389_v23 = vpop.f32.mrb[3].mxu1  ;;  %5068 = vmatmul.mubr.bf16.gmra.mrb[176].mxu0 %v13103_v50  ;;  %v3830_v26 = vmax.f32 %v3692_v37, 0.0 }
 0x569   :  { %5077 = vmatprep.mubr.bf16.mxu0 %v14330_v9  ;;  %5669 = vmatpush1.bf16.msra.mxu0 %v9847_v19  ;;  %v9850_v23 = vld [vmem:[%s14116_s7 + $0x268] ss:$20 sps:$4 sm:$0xff]  }
 0x56a   :  { %v3833_v54 = vmax.f32 %v3695_v41, 0.0  ;;  %5381 = vmatmul.mubr.bf16.gmra.mrb[108].mxu1 %v12957_v24  ;;  %5670 = vmatprep.subr.bf16.mxu0 %v14330_v9 }
 0x56b   :  { %5390 = vmatprep.mubr.bf16.mxu1 %v12971_v1 }
 0x56c   :  { %v13119_v10 = vpack.c.bf16 %v3833_v54, %v3830_v26 }
 0x56d   :  { %v3699_v49 = vpop.f32.mrb[4].mxu1  ;;  %5671 = vmatpush1.bf16.msra.mxu0 %v9848_v45 }
 0x56e   :  { %v3700_v19 = vadd.f32 %v3699_v49, %v12994_v60  ;;  %v8392_v21 = vpop.f32.mrb[5].mxu1  ;;  %5672 = vmatprep.subr.bf16.mxu0 %v14330_v9 }
 0x56f   :  { %v3702_v37 = vpop.f32.mrb[6].mxu1 }
 0x570   :  { %v3703_v8 = vadd.f32 %v3702_v37, %v12994_v60  ;;  %v8393_v41 = vpop.f32.mrb[7].mxu1  ;;  %5078 = vmatmul.mubr.bf16.gmra.mrb[180].mxu0 %v13119_v10  ;;  %v3836_v45 = vmax.f32 %v3700_v19, 0.0 }
 0x571   :  { %5087 = vmatprep.mubr.bf16.mxu0 %v14330_v9  ;;  %5673 = vmatpush1.bf16.msra.mxu0 %v9849_v59 }
 0x572   :  { %v3839_v26 = vmax.f32 %v3703_v8, 0.0  ;;  %5391 = vmatmul.mubr.bf16.gmra.mrb[112].mxu1 %v12969_v17  ;;  %5674 = vmatprep.subr.bf16.mxu0 %v14330_v9 }
 0x573   :  { %5400 = vmatprep.mubr.bf16.mxu1 %v12983_v32 }
 0x574   :  { %v13135_v54 = vpack.c.bf16 %v3839_v26, %v3836_v45 }
 0x575   :  { %v3707_v49 = vpop.f32.mrb[8].mxu1  ;;  %5675 = vmatpush1.bf16.msra.mxu0 %v9850_v23 }
 0x576   :  { %v3708_v21 = vadd.f32 %v3707_v49, %v12994_v60  ;;  %v8396_v37 = vpop.f32.mrb[9].mxu1  ;;  %8434 = vmatprep.subr.bf16.mxu0 %v14217_v55 }
 0x577   :  { %v3710_v59 = vpop.f32.mrb[10].mxu1 }
 0x578   :  { %v3711_v41 = vadd.f32 %v3710_v59, %v12994_v60  ;;  %v8397_v19 = vpop.f32.mrb[11].mxu1  ;;  %5088 = vmatmul.mubr.bf16.gmra.mrb[184].mxu0 %v13135_v54  ;;  %v3842_v8 = vmax.f32 %v3708_v21, 0.0 }
 0x579   :  { %5097 = vmatprep.mubr.bf16.mxu0 %v14330_v9 }
 0x57a   :  { %v3845_v22 = vmax.f32 %v3711_v41, 0.0  ;;  %5401 = vmatmul.mubr.bf16.gmra.mrb[116].mxu1 %v12981_v48 }
 0x57b   :  { %5410 = vmatprep.mubr.bf16.mxu1 %v12999_v63 }
 0x57c   :  { %v13144_v23 = vpack.c.bf16 %v3845_v22, %v3842_v8 }
 0x57d   :  { %v3715_v45 = vpop.f32.mrb[12].mxu1 }
 0x57e   :  { %v3716_v26 = vadd.f32 %v3715_v45, %v12994_v60  ;;  %v8400_v49 = vpop.f32.mrb[13].mxu1 }
 0x57f   :  { %v3718_v37 = vpop.f32.mrb[14].mxu1 }
 0x580   :  { %v3719_v59 = vadd.f32 %v3718_v37, %v12994_v60  ;;  %v8401_v19 = vpop.f32.mrb[15].mxu1  ;;  %5098 = vmatmul.mubr.bf16.gmra.mrb[188].mxu0 %v13144_v23  ;;  %v3848_v21 = vmax.f32 %v3716_v26, 0.0 }
 0x581   :  { %5107 = vmatprep.mubr.bf16.mxu0 %v14330_v9 }
 0x582   :  { %v3851_v41 = vmax.f32 %v3719_v59, 0.0  ;;  %5411 = vmatmul.mubr.bf16.gmra.mrb[120].mxu1 %v12997_v31 }
 0x583   :  { %5453 = vmatprep.mubr.bf16.mxu1 %v14330_v9 }
 0x584   :  { %v13152_v22 = vpack.c.bf16 %v3851_v41, %v3848_v21 }
 0x585   :  { %v3723_v8 = vpop.f32.mrb[16].mxu1 }
 0x586   :  { %v3724_v45 = vadd.f32 %v3723_v8, %v12994_v60  ;;  %v8404_v49 = vpop.f32.mrb[17].mxu1 }
 0x587   :  { %v3726_v43 = vpop.f32.mrb[18].mxu1 }
 0x588   :  { %v3727_v37 = vadd.f32 %v3726_v43, %v12994_v60  ;;  %v8405_v19 = vpop.f32.mrb[19].mxu1  ;;  %5108 = vmatmul.mubr.bf16.gmra.mrb[192].mxu0 %v13152_v22  ;;  %v3854_v26 = vmax.f32 %v3724_v45, 0.0 }
 0x589   :  { %5117 = vmatprep.mubr.bf16.mxu0 %v14330_v9 }
 0x58a   :  { %v3857_v59 = vmax.f32 %v3727_v37, 0.0  ;;  %5454 = vmatmul.mubr.bf16.vlgmr.msra.gmra.mrb[48].mxu1 %v13008_v2 }
 0x58b   :  { %5463 = vmatprep.mubr.bf16.mxu1 %v14330_v9 }
 0x58c   :  { %v13160_v21 = vpack.c.bf16 %v3857_v59, %v3854_v26 }
 0x58d   :  { %v3731_v41 = vpop.f32.mrb[20].mxu1 }
 0x58e   :  { %v3732_v8 = vadd.f32 %v3731_v41, %v12994_v60  ;;  %v8408_v49 = vpop.f32.mrb[21].mxu1 }
 0x58f   :  { %v3734_v31 = vpop.f32.mrb[22].mxu1 }
 0x590   :  { %v3735_v43 = vadd.f32 %v3734_v31, %v12994_v60  ;;  %v8409_v19 = vpop.f32.mrb[23].mxu1  ;;  %5118 = vmatmul.mubr.bf16.gmra.mrb[196].mxu0 %v13160_v21  ;;  %v3860_v45 = vmax.f32 %v3732_v8, 0.0 }
 0x591   :  { %5127 = vmatprep.mubr.bf16.mxu0 %v14330_v9 }
 0x592   :  { %v3863_v37 = vmax.f32 %v3735_v43, 0.0  ;;  %5464 = vmatmul.mubr.bf16.gmra.mrb[52].mxu1 %v13023_v4 }
 0x593   :  { %5473 = vmatprep.mubr.bf16.mxu1 %v14330_v9 }
 0x594   :  { %v13168_v26 = vpack.c.bf16 %v3863_v37, %v3860_v45 }
 0x595   :  { %v3739_v59 = vpop.f32.mrb[24].mxu1 }
 0x596   :  { %v3740_v41 = vadd.f32 %v3739_v59, %v12994_v60  ;;  %v8412_v49 = vpop.f32.mrb[25].mxu1 }
 0x597   :  { %v3742_v2 = vpop.f32.mrb[26].mxu1 }
 0x598   :  { %v3743_v31 = vadd.f32 %v3742_v2, %v12994_v60  ;;  %v8413_v19 = vpop.f32.mrb[27].mxu1  ;;  %5128 = vmatmul.mubr.bf16.gmra.mrb[200].mxu0 %v13168_v26  ;;  %v3866_v8 = vmax.f32 %v3740_v41, 0.0 }
 0x599   :  { %5137 = vmatprep.mubr.bf16.mxu0 %v14330_v9 }
 0x59a   :  { %v3869_v43 = vmax.f32 %v3743_v31, 0.0  ;;  %5474 = vmatmul.mubr.bf16.gmra.mrb[56].mxu1 %v13039_v56 }
 0x59b   :  { %5483 = vmatprep.mubr.bf16.mxu1 %v14330_v9 }
 0x59c   :  { %v13176_v45 = vpack.c.bf16 %v3869_v43, %v3866_v8 }
 0x59d   :  { %v3747_v37 = vpop.f32.mrb[28].mxu1 }
 0x59e   :  { %v3748_v59 = vadd.f32 %v3747_v37, %v12994_v60  ;;  %v8416_v49 = vpop.f32.mrb[29].mxu1 }
 0x59f   :  { %v3750_v4 = vpop.f32.mrb[30].mxu1 }
 0x5a0   :  { %v3751_v2 = vadd.f32 %v3750_v4, %v12994_v60  ;;  %v8417_v19 = vpop.f32.mrb[31].mxu1  ;;  %5138 = vmatmul.mubr.bf16.gmra.mrb[204].mxu0 %v13176_v45  ;;  %v3872_v41 = vmax.f32 %v3748_v59, 0.0 }
 0x5a1   :  { %5147 = vmatprep.mubr.bf16.mxu0 %v14330_v9 }
 0x5a2   :  { %v3875_v31 = vmax.f32 %v3751_v2, 0.0  ;;  %5484 = vmatmul.mubr.bf16.gmra.mrb[60].mxu1 %v13055_v61 }
 0x5a3   :  { %5493 = vmatprep.mubr.bf16.mxu1 %v14330_v9 }
 0x5a4   :  { %v13184_v8 = vpack.c.bf16 %v3875_v31, %v3872_v41 }
 0x5a5   :  { %v3755_v43 = vpop.f32.mrb[32].mxu1 }
 0x5a6   :  { %v3756_v37 = vadd.f32 %v3755_v43, %v12994_v60  ;;  %v8420_v49 = vpop.f32.mrb[33].mxu1 }
 0x5a7   :  { %v3758_v56 = vpop.f32.mrb[34].mxu1 }
 0x5a8   :  { %v3759_v4 = vadd.f32 %v3758_v56, %v12994_v60  ;;  %v8421_v19 = vpop.f32.mrb[35].mxu1  ;;  %5148 = vmatmul.mubr.bf16.gmra.mrb[208].mxu0 %v13184_v8  ;;  %v3878_v59 = vmax.f32 %v3756_v37, 0.0 }
 0x5a9   :  { %5157 = vmatprep.mubr.bf16.mxu0 %v14330_v9 }
 0x5aa   :  { %v3881_v2 = vmax.f32 %v3759_v4, 0.0  ;;  %5494 = vmatmul.mubr.bf16.gmra.mrb[64].mxu1 %v13071_v57 }
 0x5ab   :  { %5503 = vmatprep.mubr.bf16.mxu1 %v14330_v9 }
 0x5ac   :  { %v13192_v41 = vpack.c.bf16 %v3881_v2, %v3878_v59 }
 0x5ad   :  { %v3763_v31 = vpop.f32.mrb[36].mxu1 }
 0x5ae   :  { %v3764_v43 = vadd.f32 %v3763_v31, %v12994_v60  ;;  %v8424_v49 = vpop.f32.mrb[37].mxu1 }
 0x5af   :  { %v3766_v61 = vpop.f32.mrb[38].mxu1 }
 0x5b0   :  { %v3767_v56 = vadd.f32 %v3766_v61, %v12994_v60  ;;  %v8425_v19 = vpop.f32.mrb[39].mxu1  ;;  %5158 = vmatmul.mubr.bf16.gmra.mrb[212].mxu0 %v13192_v41  ;;  %v3884_v37 = vmax.f32 %v3764_v43, 0.0 }
 0x5b1   :  { %5167 = vmatprep.mubr.bf16.mxu0 %v14330_v9 }
 0x5b2   :  { %v3887_v4 = vmax.f32 %v3767_v56, 0.0  ;;  %5504 = vmatmul.mubr.bf16.gmra.mrb[68].mxu1 %v13087_v3 }
 0x5b3   :  { %5513 = vmatprep.mubr.bf16.mxu1 %v14330_v9 }
 0x5b4   :  { %v13200_v59 = vpack.c.bf16 %v3887_v4, %v3884_v37 }
 0x5b5   :  { %v3771_v2 = vpop.f32.mrb[40].mxu1 }
 0x5b6   :  { %v3772_v31 = vadd.f32 %v3771_v2, %v12994_v60  ;;  %v8428_v49 = vpop.f32.mrb[41].mxu1 }
 0x5b7   :  { %v3774_v57 = vpop.f32.mrb[42].mxu1 }
 0x5b8   :  { %v3775_v61 = vadd.f32 %v3774_v57, %v12994_v60  ;;  %v8429_v19 = vpop.f32.mrb[43].mxu1  ;;  %5168 = vmatmul.mubr.bf16.gmra.mrb[216].mxu0 %v13200_v59  ;;  %v3890_v43 = vmax.f32 %v3772_v31, 0.0 }
 0x5b9   :  { %5177 = vmatprep.mubr.bf16.mxu0 %v14330_v9 }
 0x5ba   :  { %v3893_v56 = vmax.f32 %v3775_v61, 0.0  ;;  %5514 = vmatmul.mubr.bf16.gmra.mrb[72].mxu1 %v13103_v50 }
 0x5bb   :  { %5523 = vmatprep.mubr.bf16.mxu1 %v14330_v9 }
 0x5bc   :  { %v13208_v37 = vpack.c.bf16 %v3893_v56, %v3890_v43 }
 0x5bd   :  { %v3779_v4 = vpop.f32.mrb[44].mxu1 }
 0x5be   :  { %v3780_v2 = vadd.f32 %v3779_v4, %v12994_v60  ;;  %v8432_v49 = vpop.f32.mrb[45].mxu1 }
 0x5bf   :  { %v3782_v3 = vpop.f32.mrb[46].mxu1 }
 0x5c0   :  { %v3783_v57 = vadd.f32 %v3782_v3, %v12994_v60  ;;  %v8433_v19 = vpop.f32.mrb[47].mxu1  ;;  %5178 = vmatmul.mubr.bf16.gmra.mrb[220].mxu0 %v13208_v37  ;;  %v3896_v31 = vmax.f32 %v3780_v2, 0.0  ;;  %v9851_v60 = vld [vmem:[%s14116_s7 + $0x290] ss:$20 sps:$4 sm:$0xff]   ;;  %v9852_v3 = vld [vmem:[%s14116_s7 + $0x2b8] ss:$20 sps:$4 sm:$0xff]  }
 0x5c1   :  { %5187 = vmatprep.mubr.bf16.mxu0 %v14330_v9 }
 0x5c2   :  { %v3899_v61 = vmax.f32 %v3783_v57, 0.0  ;;  %5524 = vmatmul.mubr.bf16.gmra.mrb[76].mxu1 %v13119_v10 }
 0x5c3   :  { %5533 = vmatprep.mubr.bf16.mxu1 %v14330_v9 }
 0x5c4   :  { %v13216_v43 = vpack.c.bf16 %v3899_v61, %v3896_v31 }
 0x5c8   :  { %5188 = vmatmul.mubr.bf16.gmra.mrb[224].mxu0 %v13216_v43 }
 0x5c9   :  { %5676 = vmatprep.mubr.bf16.mxu0 %v12676_v20  ;;  %v9853_v20 = vld [vmem:[%s14116_s7 + $0x2e0] ss:$20 sps:$4 sm:$0xff]  }
 0x5ca   :  { %5534 = vmatmul.mubr.bf16.gmra.mrb[80].mxu1 %v13135_v54 }
 0x5cb   :  { %5543 = vmatprep.mubr.bf16.mxu1 %v14330_v9 }
 0x5d0   :  { %5677 = vmatmul.mubr.bf16.vlgmr.msra.gmra.mrb[228].mxu0 %v12674_v44  ;;  %v9854_v44 = vld [vmem:[%s14116_s7 + $0x308] ss:$20 sps:$4 sm:$0xff]  }
 0x5d1   :  { %5684 = vmatprep.mubr.bf16.mxu0 %v12701_v27  ;;  %8435 = vmatpush3.bf16.msra.mxu0 %v9851_v60  ;;  %v9855_v27 = vld [vmem:[%s14116_s7 + $0x330] ss:$20 sps:$4 sm:$0xff]  }
 0x5d2   :  { %5544 = vmatmul.mubr.bf16.gmra.mrb[84].mxu1 %v13144_v23  ;;  %8436 = vmatprep.subr.bf16.mxu0 %v14217_v55 }
 0x5d3   :  { %5553 = vmatprep.mubr.bf16.mxu1 %v14330_v9 }
 0x5d5   :  { %8437 = vmatpush3.bf16.msra.mxu0 %v9852_v3 }
 0x5d6   :  { %8438 = vmatprep.subr.bf16.mxu0 %v14217_v55 }
 0x5d8   :  { %5685 = vmatmul.mubr.bf16.gmra.mrb[232].mxu0 %v12699_v25  ;;  %v9856_v25 = vld [vmem:[%s14116_s7 + $0x358] ss:$20 sps:$4 sm:$0xff]  }
 0x5d9   :  { %5692 = vmatprep.mubr.bf16.mxu0 %v12726_v33  ;;  %8439 = vmatpush3.bf16.msra.mxu0 %v9853_v20  ;;  %v9857_v33 = vld [vmem:[%s14116_s7 + $0x380] ss:$20 sps:$4 sm:$0xff]  }
 0x5da   :  { %5554 = vmatmul.mubr.bf16.gmra.mrb[88].mxu1 %v13152_v22  ;;  %8440 = vmatprep.subr.bf16.mxu0 %v14217_v55 }
 0x5db   :  { %5563 = vmatprep.mubr.bf16.mxu1 %v14330_v9 }
 0x5dd   :  { %8441 = vmatpush3.bf16.msra.mxu0 %v9854_v44 }
 0x5de   :  { %8442 = vmatprep.subr.bf16.mxu0 %v14217_v55 }
 0x5e0   :  { %5693 = vmatmul.mubr.bf16.gmra.mrb[236].mxu0 %v12724_v52  ;;  %v9858_v52 = vld [vmem:[%s14116_s7 + $0x3a8] ss:$20 sps:$4 sm:$0xff]  }
 0x5e1   :  { %5700 = vmatprep.mubr.bf16.mxu0 %v12751_v38  ;;  %8443 = vmatpush3.bf16.msra.mxu0 %v9855_v27 }
 0x5e2   :  { %5564 = vmatmul.mubr.bf16.gmra.mrb[92].mxu1 %v13160_v21  ;;  %8444 = vmatprep.subr.bf16.mxu0 %v14217_v55 }
 0x5e3   :  { %5573 = vmatprep.mubr.bf16.mxu1 %v14330_v9 }
 0x5e5   :  { %8445 = vmatpush3.bf16.msra.mxu0 %v9856_v25 }
 0x5e6   :  { %8446 = vmatprep.subr.bf16.mxu0 %v14217_v55 }
 0x5e8   :  { %5701 = vmatmul.mubr.bf16.gmra.mrb[240].mxu0 %v12749_v28  ;;  %v13284_v28 = vld [vmem:[%s14119_s8] sm:$0x1f] }
 0x5e9   :  { %5708 = vmatprep.mubr.bf16.mxu0 %v12773_v12  ;;  %8447 = vmatpush3.bf16.msra.mxu0 %v9857_v33  ;;  %v13289_v38 = vrot.slane %v13284_v28, %v14333_v18 }
 0x5ea   :  { %5574 = vmatmul.mubr.bf16.gmra.mrb[96].mxu1 %v13168_v26  ;;  %8448 = vmatprep.subr.bf16.mxu0 %v14217_v55 }
 0x5eb   :  { %5583 = vmatprep.mubr.bf16.mxu1 %v14330_v9 }
 0x5ed   :  { %8449 = vmatpush3.bf16.msra.mxu0 %v9858_v52 }
 0x5f0   :  { %5709 = vmatmul.mubr.bf16.gmra.mrb[244].mxu0 %v12771_v42  ;;  %v13294_v42 = vrot.slane %v13284_v28, %v14334_v46 }
 0x5f1   :  { %5716 = vmatprep.mubr.bf16.mxu0 %v12787_v7 }
 0x5f2   :  { %5584 = vmatmul.mubr.bf16.gmra.mrb[100].mxu1 %v13176_v45 }
 0x5f3   :  { %5593 = vmatprep.mubr.bf16.mxu1 %v14330_v9 }
 0x5f8   :  { %5717 = vmatmul.mubr.bf16.gmra.mrb[248].mxu0 %v12785_v13 }
 0x5f9   :  { %5724 = vmatprep.mubr.bf16.mxu0 %v12800_v39 }
 0x5fa   :  { %5594 = vmatmul.mubr.bf16.gmra.mrb[104].mxu1 %v13184_v8 }
 0x5fb   :  { %5603 = vmatprep.mubr.bf16.mxu1 %v14330_v9 }
 0x600   :  { %5725 = vmatmul.mubr.bf16.gmra.mrb[252].mxu0 %v12798_v0 }
 0x601   :  { %5732 = vmatprep.mubr.bf16.mxu0 %v12813_v40 }
 0x602   :  { %5604 = vmatmul.mubr.bf16.gmra.mrb[108].mxu1 %v13192_v41 }
 0x603   :  { %5613 = vmatprep.mubr.bf16.mxu1 %v14330_v9 }
 0x608   :  { %5733 = vmatmul.mubr.bf16.gmra.mrb[0].mxu0 %v12811_v62 }
 0x609   :  { %5740 = vmatprep.mubr.bf16.mxu0 %v12826_v58 }
 0x60a   :  { %5614 = vmatmul.mubr.bf16.gmra.mrb[112].mxu1 %v13200_v59 }
 0x60b   :  { %v5009_v12 = vpop.f32.mrb[152].mxu0  ;;  %5623 = vmatprep.mubr.bf16.mxu1 %v14330_v9 }
 0x60c   :  { %v8754_v13 = vadd.f32 %v5009_v12, %v13289_v38  ;;  %v5011_v7 = vpop.f32.mrb[153].mxu0 }
 0x60d   :  { %v8755_v0 = vadd.f32 %v5011_v7, %v13294_v42  ;;  %v5013_v39 = vpop.f32.mrb[154].mxu0 }
 0x60e   :  { %v6014_v62 = vmul.f32 0.5, %v8754_v13  ;;  %v8756_v18 = vadd.f32 %v5013_v39, %v13289_v38  ;;  %v5015_v40 = vpop.f32.mrb[155].mxu0 }
 0x60f   :  { %v6015_v58 = vmul.f32 0.5, %v8755_v0  ;;  %v8757_v56 = vadd.f32 %v5015_v40, %v13294_v42 }
 0x610   :  { %9859 = vtanh.f32 %v6014_v62  ;;  %v6019_v46 = vmul.f32 0.5, %v8756_v18  ;;  %5741 = vmatmul.mubr.bf16.gmra.mrb[4].mxu0 %v12824_v53 }
 0x611   :  { %9861 = vtanh.f32 %v6015_v58  ;;  %v6020_v4 = vmul.f32 0.5, %v8757_v56  ;;  %5748 = vmatprep.mubr.bf16.mxu0 %v12839_v47 }
 0x612   :  { %9863 = vtanh.f32 %v6019_v46  ;;  %5624 = vmatmul.mubr.bf16.gmra.mrb[116].mxu1 %v13208_v37 }
 0x613   :  { %9865 = vtanh.f32 %v6020_v4  ;;  %v5019_v2 = vpop.f32.mrb[156].mxu0  ;;  %5633 = vmatprep.mubr.bf16.mxu1 %v14330_v9 }
 0x614   :  { %v8758_v49 = vadd.f32 %v5019_v2, %v13289_v38  ;;  %v5021_v57 = vpop.f32.mrb[157].mxu0 }
 0x615   :  { %v8759_v19 = vadd.f32 %v5021_v57, %v13294_v42  ;;  %v5023_v31 = vpop.f32.mrb[158].mxu0 }
 0x616   :  { %v6024_v61 = vmul.f32 0.5, %v8758_v49  ;;  %v8760_v53 = vadd.f32 %v5023_v31, %v13289_v38  ;;  %v5025_v60 = vpop.f32.mrb[159].mxu0 }
 0x617   :  { %v6025_v3 = vmul.f32 0.5, %v8759_v19  ;;  %v8761_v47 = vadd.f32 %v5025_v60, %v13294_v42 }
 0x618   :  { %9867 = vtanh.f32 %v6024_v61  ;;  %v6029_v20 = vmul.f32 0.5, %v8760_v53  ;;  %5749 = vmatmul.mubr.bf16.gmra.mrb[8].mxu0 %v12837_v14 }
 0x619   :  { %9869 = vtanh.f32 %v6025_v3  ;;  %v6030_v44 = vmul.f32 0.5, %v8761_v47  ;;  %5756 = vmatprep.mubr.bf16.mxu0 %v12854_v16 }
 0x61a   :  { %v9860_v9 = vpop.eup %9859  ;;  %9871 = vtanh.f32 %v6029_v20  ;;  %5634 = vmatmul.mubr.bf16.gmra.mrb[120].mxu1 %v13216_v43 }
 0x61b   :  { %v9862_v27 = vpop.eup %9861  ;;  %v6394_v25 = vmul.f32 0.034906585, %v9860_v9  ;;  %9873 = vtanh.f32 %v6030_v44  ;;  %v5029_v33 = vpop.f32.mrb[160].mxu0 }
 0x61c   :  { %v9864_v52 = vpop.eup %9863  ;;  %v6395_v12 = vmul.f32 0.034906585, %v9862_v27  ;;  %v8762_v13 = vadd.f32 %v5029_v33, %v13289_v38  ;;  %v5031_v7 = vpop.f32.mrb[161].mxu0 }
 0x61d   :  { %v9866_v0 = vpop.eup %9865  ;;  %v6584_v39 = vadd.f32 0.06981317, %v6394_v25  ;;  %v6399_v14 = vmul.f32 0.034906585, %v9864_v52  ;;  %v8763_v62 = vadd.f32 %v5031_v7, %v13294_v42  ;;  %v5033_v18 = vpop.f32.mrb[162].mxu0 }
 0x61e   :  { %v6585_v16 = vadd.f32 0.06981317, %v6395_v12  ;;  %v6400_v40 = vmul.f32 0.034906585, %v9866_v0  ;;  %v6034_v58 = vmul.f32 0.5, %v8762_v13  ;;  %v8764_v56 = vadd.f32 %v5033_v18, %v13289_v38  ;;  %v5035_v46 = vpop.f32.mrb[163].mxu0 }
 0x61f   :  { %v6589_v4 = vadd.f32 0.06981317, %v6399_v14  ;;  %v6035_v2 = vmul.f32 0.5, %v8763_v62  ;;  %v8765_v49 = vadd.f32 %v5035_v46, %v13294_v42 }
 0x620   :  { %v7939_v57 = vpack.c.bf16 %v6585_v16, %v6584_v39  ;;  %v6590_v19 = vadd.f32 0.06981317, %v6400_v40  ;;  %9875 = vtanh.f32 %v6034_v58  ;;  %v6039_v31 = vmul.f32 0.5, %v8764_v56  ;;  %5757 = vmatmul.mubr.bf16.gmra.mrb[12].mxu0 %v12852_v5 }
 0x621   :  { %9877 = vtanh.f32 %v6035_v2  ;;  %v6040_v61 = vmul.f32 0.5, %v8765_v49  ;;  %5764 = vmatprep.mubr.bf16.mxu0 %v12878_v11 }
 0x622   :  { %v9868_v53 = vpop.eup %9867  ;;  %7382 = vst [vmem:[%s14120_s9] sm:$0xff] %v7939_v57  ;;  %v7942_v60 = vpack.c.bf16 %v6590_v19, %v6589_v4  ;;  %9879 = vtanh.f32 %v6039_v31 }
 0x623   :  { %v9870_v3 = vpop.eup %9869  ;;  %v6404_v47 = vmul.f32 0.034906585, %v9868_v53  ;;  %9881 = vtanh.f32 %v6040_v61  ;;  %v5039_v20 = vpop.f32.mrb[164].mxu0 }
 0x624   :  { %v9872_v44 = vpop.eup %9871  ;;  %7385 = vst [vmem:[%s14120_s9 + $0x14] sm:$0xff] %v7942_v60  ;;  %v6405_v5 = vmul.f32 0.034906585, %v9870_v3  ;;  %v8766_v9 = vadd.f32 %v5039_v20, %v13289_v38  ;;  %v5041_v11 = vpop.f32.mrb[165].mxu0 }
 0x625   :  { %v9874_v27 = vpop.eup %9873  ;;  %v6594_v25 = vadd.f32 0.06981317, %v6404_v47  ;;  %v6409_v33 = vmul.f32 0.034906585, %v9872_v44  ;;  %v8767_v52 = vadd.f32 %v5041_v11, %v13294_v42  ;;  %v5043_v12 = vpop.f32.mrb[166].mxu0 }
 0x626   :  { %v6595_v13 = vadd.f32 0.06981317, %v6405_v5  ;;  %v6410_v7 = vmul.f32 0.034906585, %v9874_v27  ;;  %v6044_v0 = vmul.f32 0.5, %v8766_v9  ;;  %v8768_v39 = vadd.f32 %v5043_v12, %v13289_v38  ;;  %v5045_v14 = vpop.f32.mrb[167].mxu0 }
 0x627   :  { %v6599_v62 = vadd.f32 0.06981317, %v6409_v33  ;;  %v6045_v18 = vmul.f32 0.5, %v8767_v52  ;;  %v8769_v16 = vadd.f32 %v5045_v14, %v13294_v42 }
 0x628   :  { %v7945_v40 = vpack.c.bf16 %v6595_v13, %v6594_v25  ;;  %v6600_v58 = vadd.f32 0.06981317, %v6410_v7  ;;  %9883 = vtanh.f32 %v6044_v0  ;;  %v6049_v56 = vmul.f32 0.5, %v8768_v39  ;;  %5765 = vmatmul.mubr.bf16.gmra.mrb[16].mxu0 %v12873_v6 }
 0x629   :  { %9885 = vtanh.f32 %v6045_v18  ;;  %v6050_v46 = vmul.f32 0.5, %v8769_v16  ;;  %5772 = vmatprep.mubr.bf16.mxu0 %v12902_v35 }
 0x62a   :  { %v9876_v4 = vpop.eup %9875  ;;  %7388 = vst [vmem:[%s14120_s9 + $0x28] sm:$0xff] %v7945_v40  ;;  %v7948_v2 = vpack.c.bf16 %v6600_v58, %v6599_v62  ;;  %9887 = vtanh.f32 %v6049_v56 }
 0x62b   :  { %v9878_v49 = vpop.eup %9877  ;;  %v6414_v57 = vmul.f32 0.034906585, %v9876_v4  ;;  %9889 = vtanh.f32 %v6050_v46  ;;  %v5049_v19 = vpop.f32.mrb[168].mxu0 }
 0x62c   :  { %v9880_v31 = vpop.eup %9879  ;;  %7391 = vst [vmem:[%s14120_s9 + $0x3c] sm:$0xff] %v7948_v2  ;;  %v6415_v6 = vmul.f32 0.034906585, %v9878_v49  ;;  %v8770_v61 = vadd.f32 %v5049_v19, %v13289_v38  ;;  %v5051_v35 = vpop.f32.mrb[169].mxu0 }
 0x62d   :  { %v9882_v53 = vpop.eup %9881  ;;  %v6604_v60 = vadd.f32 0.06981317, %v6414_v57  ;;  %v6419_v3 = vmul.f32 0.034906585, %v9880_v31  ;;  %v8771_v47 = vadd.f32 %v5051_v35, %v13294_v42  ;;  %v5053_v20 = vpop.f32.mrb[170].mxu0 }
 0x62e   :  { %v6605_v44 = vadd.f32 0.06981317, %v6415_v6  ;;  %v6420_v5 = vmul.f32 0.034906585, %v9882_v53  ;;  %v6054_v9 = vmul.f32 0.5, %v8770_v61  ;;  %v8772_v11 = vadd.f32 %v5053_v20, %v13289_v38  ;;  %v5055_v27 = vpop.f32.mrb[171].mxu0 }
 0x62f   :  { %v6609_v25 = vadd.f32 0.06981317, %v6419_v3  ;;  %v6055_v33 = vmul.f32 0.5, %v8771_v47  ;;  %v8773_v52 = vadd.f32 %v5055_v27, %v13294_v42 }
 0x630   :  { %v7951_v12 = vpack.c.bf16 %v6605_v44, %v6604_v60  ;;  %v6610_v13 = vadd.f32 0.06981317, %v6420_v5  ;;  %9891 = vtanh.f32 %v6054_v9  ;;  %v6059_v7 = vmul.f32 0.5, %v8772_v11  ;;  %5773 = vmatmul.mubr.bf16.gmra.mrb[20].mxu0 %v12897_v15 }
 0x631   :  { %9893 = vtanh.f32 %v6055_v33  ;;  %v6060_v0 = vmul.f32 0.5, %v8773_v52  ;;  %5780 = vmatprep.mubr.bf16.mxu0 %v12926_v34 }
 0x632   :  { %v9884_v39 = vpop.eup %9883  ;;  %7394 = vst [vmem:[%s14120_s9 + $0x50] sm:$0xff] %v7951_v12  ;;  %v7954_v14 = vpack.c.bf16 %v6610_v13, %v6609_v25  ;;  %9895 = vtanh.f32 %v6059_v7 }
 0x633   :  { %v9886_v62 = vpop.eup %9885  ;;  %v6424_v18 = vmul.f32 0.034906585, %v9884_v39  ;;  %9897 = vtanh.f32 %v6060_v0  ;;  %v5059_v16 = vpop.f32.mrb[172].mxu0 }
 0x634   :  { %v9888_v40 = vpop.eup %9887  ;;  %7397 = vst [vmem:[%s14120_s9 + $0x64] sm:$0xff] %v7954_v14  ;;  %v6425_v15 = vmul.f32 0.034906585, %v9886_v62  ;;  %v8774_v58 = vadd.f32 %v5059_v16, %v13289_v38  ;;  %v5061_v34 = vpop.f32.mrb[173].mxu0 }
 0x635   :  { %v9890_v56 = vpop.eup %9889  ;;  %v6614_v46 = vadd.f32 0.06981317, %v6424_v18  ;;  %v6429_v4 = vmul.f32 0.034906585, %v9888_v40  ;;  %v8775_v2 = vadd.f32 %v5061_v34, %v13294_v42  ;;  %v5063_v49 = vpop.f32.mrb[174].mxu0 }
 0x636   :  { %v6615_v57 = vadd.f32 0.06981317, %v6425_v15  ;;  %v6430_v19 = vmul.f32 0.034906585, %v9890_v56  ;;  %v6064_v31 = vmul.f32 0.5, %v8774_v58  ;;  %v8776_v6 = vadd.f32 %v5063_v49, %v13289_v38  ;;  %v5065_v61 = vpop.f32.mrb[175].mxu0 }
 0x637   :  { %v6619_v35 = vadd.f32 0.06981317, %v6429_v4  ;;  %v6065_v53 = vmul.f32 0.5, %v8775_v2  ;;  %v8777_v60 = vadd.f32 %v5065_v61, %v13294_v42 }
 0x638   :  { %v7957_v3 = vpack.c.bf16 %v6615_v57, %v6614_v46  ;;  %v6620_v47 = vadd.f32 0.06981317, %v6430_v19  ;;  %9899 = vtanh.f32 %v6064_v31  ;;  %v6069_v20 = vmul.f32 0.5, %v8776_v6  ;;  %5781 = vmatmul.mubr.bf16.gmra.mrb[24].mxu0 %v12921_v51 }
 0x639   :  { %9901 = vtanh.f32 %v6065_v53  ;;  %v6070_v44 = vmul.f32 0.5, %v8777_v60  ;;  %5788 = vmatprep.mubr.bf16.mxu0 %v12947_v30 }
 0x63a   :  { %v9892_v5 = vpop.eup %9891  ;;  %7400 = vst [vmem:[%s14120_s9 + $0x78] sm:$0xff] %v7957_v3  ;;  %v7960_v9 = vpack.c.bf16 %v6620_v47, %v6619_v35  ;;  %9903 = vtanh.f32 %v6069_v20 }
 0x63b   :  { %v9894_v11 = vpop.eup %9893  ;;  %v6434_v27 = vmul.f32 0.034906585, %v9892_v5  ;;  %9905 = vtanh.f32 %v6070_v44  ;;  %v5069_v25 = vpop.f32.mrb[176].mxu0 }
 0x63c   :  { %v9896_v33 = vpop.eup %9895  ;;  %7403 = vst [vmem:[%s14120_s9 + $0x8c] sm:$0xff] %v7960_v9  ;;  %v6435_v51 = vmul.f32 0.034906585, %v9894_v11  ;;  %v8778_v52 = vadd.f32 %v5069_v25, %v13289_v38  ;;  %v5071_v30 = vpop.f32.mrb[177].mxu0 }
 0x63d   :  { %v9898_v12 = vpop.eup %9897  ;;  %v6624_v13 = vadd.f32 0.06981317, %v6434_v27  ;;  %v6439_v7 = vmul.f32 0.034906585, %v9896_v33  ;;  %v8779_v0 = vadd.f32 %v5071_v30, %v13294_v42  ;;  %v5073_v39 = vpop.f32.mrb[178].mxu0 }
 0x63e   :  { %v6625_v14 = vadd.f32 0.06981317, %v6435_v51  ;;  %v6440_v62 = vmul.f32 0.034906585, %v9898_v12  ;;  %v6074_v18 = vmul.f32 0.5, %v8778_v52  ;;  %v8780_v16 = vadd.f32 %v5073_v39, %v13289_v38  ;;  %v5075_v40 = vpop.f32.mrb[179].mxu0 }
 0x63f   :  { %v6629_v15 = vadd.f32 0.06981317, %v6439_v7  ;;  %v6075_v58 = vmul.f32 0.5, %v8779_v0  ;;  %v8781_v34 = vadd.f32 %v5075_v40, %v13294_v42 }
 0x640   :  { %v7963_v56 = vpack.c.bf16 %v6625_v14, %v6624_v13  ;;  %v6630_v46 = vadd.f32 0.06981317, %v6440_v62  ;;  %9907 = vtanh.f32 %v6074_v18  ;;  %v6079_v4 = vmul.f32 0.5, %v8780_v16  ;;  %5789 = vmatmul.mubr.bf16.gmra.mrb[28].mxu0 %v12945_v36 }
 0x641   :  { %9909 = vtanh.f32 %v6075_v58  ;;  %v6080_v2 = vmul.f32 0.5, %v8781_v34  ;;  %5796 = vmatprep.mubr.bf16.mxu0 %v12959_v29 }
 0x642   :  { %v9900_v49 = vpop.eup %9899  ;;  %7406 = vst [vmem:[%s14120_s9 + $0xa0] sm:$0xff] %v7963_v56  ;;  %v7966_v57 = vpack.c.bf16 %v6630_v46, %v6629_v15  ;;  %9911 = vtanh.f32 %v6079_v4 }
 0x643   :  { %v9902_v19 = vpop.eup %9901  ;;  %v6444_v31 = vmul.f32 0.034906585, %v9900_v49  ;;  %9913 = vtanh.f32 %v6080_v2  ;;  %v5079_v6 = vpop.f32.mrb[180].mxu0 }
 0x644   :  { %v9904_v61 = vpop.eup %9903  ;;  %7409 = vst [vmem:[%s14120_s9 + $0xb4] sm:$0xff] %v7966_v57  ;;  %v6445_v36 = vmul.f32 0.034906585, %v9902_v19  ;;  %v8782_v35 = vadd.f32 %v5079_v6, %v13289_v38  ;;  %v5081_v29 = vpop.f32.mrb[181].mxu0 }
 0x645   :  { %v9906_v53 = vpop.eup %9905  ;;  %v6634_v60 = vadd.f32 0.06981317, %v6444_v31  ;;  %v6449_v3 = vmul.f32 0.034906585, %v9904_v61  ;;  %v8783_v47 = vadd.f32 %v5081_v29, %v13294_v42  ;;  %v5083_v20 = vpop.f32.mrb[182].mxu0 }
 0x646   :  { %v6635_v44 = vadd.f32 0.06981317, %v6445_v36  ;;  %v6450_v5 = vmul.f32 0.034906585, %v9906_v53  ;;  %v6084_v9 = vmul.f32 0.5, %v8782_v35  ;;  %v8784_v11 = vadd.f32 %v5083_v20, %v13289_v38  ;;  %v5085_v27 = vpop.f32.mrb[183].mxu0 }
 0x647   :  { %v6639_v25 = vadd.f32 0.06981317, %v6449_v3  ;;  %v6085_v33 = vmul.f32 0.5, %v8783_v47  ;;  %v8785_v51 = vadd.f32 %v5085_v27, %v13294_v42 }
 0x648   :  { %v7969_v52 = vpack.c.bf16 %v6635_v44, %v6634_v60  ;;  %v6640_v30 = vadd.f32 0.06981317, %v6450_v5  ;;  %9915 = vtanh.f32 %v6084_v9  ;;  %v6089_v12 = vmul.f32 0.5, %v8784_v11  ;;  %5797 = vmatmul.mubr.bf16.gmra.mrb[32].mxu0 %v12957_v24 }
 0x649   :  { %9917 = vtanh.f32 %v6085_v33  ;;  %v6090_v13 = vmul.f32 0.5, %v8785_v51  ;;  %5804 = vmatprep.mubr.bf16.mxu0 %v12971_v1 }
 0x64a   :  { %v9908_v7 = vpop.eup %9907  ;;  %7412 = vst [vmem:[%s14120_s9 + $0xc8] sm:$0xff] %v7969_v52  ;;  %v7972_v0 = vpack.c.bf16 %v6640_v30, %v6639_v25  ;;  %9919 = vtanh.f32 %v6089_v12 }
 0x64b   :  { %v9910_v39 = vpop.eup %9909  ;;  %v6454_v14 = vmul.f32 0.034906585, %v9908_v7  ;;  %9921 = vtanh.f32 %v6090_v13  ;;  %v5089_v62 = vpop.f32.mrb[184].mxu0 }
 0x64c   :  { %v9912_v18 = vpop.eup %9911  ;;  %7415 = vst [vmem:[%s14120_s9 + $0xdc] sm:$0xff] %v7972_v0  ;;  %v6455_v24 = vmul.f32 0.034906585, %v9910_v39  ;;  %v8786_v16 = vadd.f32 %v5089_v62, %v13289_v38  ;;  %v5091_v1 = vpop.f32.mrb[185].mxu0 }
 0x64d   :  { %v9914_v40 = vpop.eup %9913  ;;  %v6644_v15 = vadd.f32 0.06981317, %v6454_v14  ;;  %v6459_v58 = vmul.f32 0.034906585, %v9912_v18  ;;  %v8787_v34 = vadd.f32 %v5091_v1, %v13294_v42  ;;  %v5093_v56 = vpop.f32.mrb[186].mxu0 }
 0x64e   :  { %v6645_v46 = vadd.f32 0.06981317, %v6455_v24  ;;  %v6460_v4 = vmul.f32 0.034906585, %v9914_v40  ;;  %v6094_v2 = vmul.f32 0.5, %v8786_v16  ;;  %v8788_v49 = vadd.f32 %v5093_v56, %v13289_v38  ;;  %v5095_v57 = vpop.f32.mrb[187].mxu0 }
 0x64f   :  { %v6649_v19 = vadd.f32 0.06981317, %v6459_v58  ;;  %v6095_v31 = vmul.f32 0.5, %v8787_v34  ;;  %v8789_v6 = vadd.f32 %v5095_v57, %v13294_v42  ;;  %v14342_v16 = vld [vmem:[#allocation69_spill] sm:$0xff] }
 0x650   :  { %v7975_v61 = vpack.c.bf16 %v6645_v46, %v6644_v15  ;;  %v6650_v36 = vadd.f32 0.06981317, %v6460_v4  ;;  %9923 = vtanh.f32 %v6094_v2  ;;  %v6099_v35 = vmul.f32 0.5, %v8788_v49  ;;  %5805 = vmatmul.mubr.bf16.gmra.mrb[36].mxu0 %v12969_v17  ;;  %v14343_v46 = vld [vmem:[#allocation2_spill] sm:$0xff] }
 0x651   :  { %9925 = vtanh.f32 %v6095_v31  ;;  %v6100_v29 = vmul.f32 0.5, %v8789_v6  ;;  %5812 = vmatprep.mubr.bf16.mxu0 %v12983_v32  ;;  %v4117_v1 = vsub.s32 3, %v14342_v16 }
 0x652   :  { %v9916_v53 = vpop.eup %9915  ;;  %7418 = vst [vmem:[%s14120_s9 + $0xf0] sm:$0xff] %v7975_v61  ;;  %v7978_v60 = vpack.c.bf16 %v6650_v36, %v6649_v19  ;;  %9927 = vtanh.f32 %v6099_v35 }
 0x653   :  { %v9918_v3 = vpop.eup %9917  ;;  %v6464_v47 = vmul.f32 0.034906585, %v9916_v53  ;;  %9929 = vtanh.f32 %v6100_v29  ;;  %v5099_v20 = vpop.f32.mrb[188].mxu0  ;;  %v13417_v35 = vrot.slane %v13284_v28, %v4117_v1 }
 0x654   :  { %v9920_v44 = vpop.eup %9919  ;;  %7421 = vst [vmem:[%s14120_s9 + $0x104] sm:$0xff] %v7978_v60  ;;  %v6465_v17 = vmul.f32 0.034906585, %v9918_v3  ;;  %v8790_v5 = vadd.f32 %v5099_v20, %v13289_v38  ;;  %v5101_v32 = vpop.f32.mrb[189].mxu0 }
 0x655   :  { %v9922_v9 = vpop.eup %9921  ;;  %v6654_v11 = vadd.f32 0.06981317, %v6464_v47  ;;  %v6469_v27 = vmul.f32 0.034906585, %v9920_v44  ;;  %v8791_v25 = vadd.f32 %v5101_v32, %v13294_v42  ;;  %v5103_v33 = vpop.f32.mrb[190].mxu0 }
 0x656   :  { %v6655_v51 = vadd.f32 0.06981317, %v6465_v17  ;;  %v6470_v52 = vmul.f32 0.034906585, %v9922_v9  ;;  %v6104_v30 = vmul.f32 0.5, %v8790_v5  ;;  %v8792_v12 = vadd.f32 %v5103_v33, %v13289_v38  ;;  %v5105_v13 = vpop.f32.mrb[191].mxu0 }
 0x657   :  { %v6659_v7 = vadd.f32 0.06981317, %v6469_v27  ;;  %v6105_v0 = vmul.f32 0.5, %v8791_v25  ;;  %v8793_v39 = vadd.f32 %v5105_v13, %v13294_v42 }
 0x658   :  { %v7981_v14 = vpack.c.bf16 %v6655_v51, %v6654_v11  ;;  %v6660_v62 = vadd.f32 0.06981317, %v6470_v52  ;;  %9931 = vtanh.f32 %v6104_v30  ;;  %v6109_v18 = vmul.f32 0.5, %v8792_v12  ;;  %5813 = vmatmul.mubr.bf16.gmra.mrb[40].mxu0 %v12981_v48 }
 0x659   :  { %9933 = vtanh.f32 %v6105_v0  ;;  %v6110_v24 = vmul.f32 0.5, %v8793_v39  ;;  %5820 = vmatprep.mubr.bf16.mxu0 %v12999_v63  ;;  %v13409_v48 = vrot.slane %v13284_v28, %v14343_v46  ;;  %v14344_v28 = vld [vmem:[#allocation3_spill] sm:$0xff] }
 0x65a   :  { %v9924_v40 = vpop.eup %9923  ;;  %7424 = vst [vmem:[%s14120_s9 + $0x118] sm:$0xff] %v7981_v14  ;;  %v7984_v15 = vpack.c.bf16 %v6660_v62, %v6659_v7  ;;  %9935 = vtanh.f32 %v6109_v18 }
 0x65b   :  { %v9926_v58 = vpop.eup %9925  ;;  %v6474_v34 = vmul.f32 0.034906585, %v9924_v40  ;;  %9937 = vtanh.f32 %v6110_v24  ;;  %v5109_v56 = vpop.f32.mrb[192].mxu0 }
 0x65c   :  { %v9928_v4 = vpop.eup %9927  ;;  %7427 = vst [vmem:[%s14120_s9 + $0x12c] sm:$0xff] %v7984_v15  ;;  %v6475_v63 = vmul.f32 0.034906585, %v9926_v58  ;;  %v8794_v2 = vadd.f32 %v5109_v56, %v13289_v38  ;;  %v5111_v49 = vpop.f32.mrb[193].mxu0 }
 0x65d   :  { %v9930_v57 = vpop.eup %9929  ;;  %v6664_v19 = vadd.f32 0.06981317, %v6474_v34  ;;  %v6479_v31 = vmul.f32 0.034906585, %v9928_v4  ;;  %v8795_v6 = vadd.f32 %v5111_v49, %v13294_v42  ;;  %v5113_v61 = vpop.f32.mrb[194].mxu0 }
 0x65e   :  { %v5455_v36 = vpop.f32.mrb[48].mxu1  ;;  %v6665_v29 = vadd.f32 0.06981317, %v6475_v63  ;;  %v6480_v53 = vmul.f32 0.034906585, %v9930_v57  ;;  %v6114_v60 = vmul.f32 0.5, %v8794_v2  ;;  %v8796_v3 = vadd.f32 %v5113_v61, %v13289_v38 }
 0x65f   :  { %v5115_v47 = vpop.f32.mrb[195].mxu0  ;;  %v6669_v20 = vadd.f32 0.06981317, %v6479_v31  ;;  %v6115_v44 = vmul.f32 0.5, %v8795_v6  ;;  %v8830_v17 = vadd.f32 %v5455_v36, %v13409_v48  ;;  %v5457_v32 = vpop.f32.mrb[49].mxu1 }
 0x660   :  { %v8797_v5 = vadd.f32 %v5115_v47, %v13294_v42  ;;  %v7987_v9 = vpack.c.bf16 %v6665_v29, %v6664_v19  ;;  %v6670_v11 = vadd.f32 0.06981317, %v6480_v53  ;;  %9939 = vtanh.f32 %v6114_v60  ;;  %v5459_v25 = vpop.f32.mrb[50].mxu1  ;;  %5821 = vmatmul.mubr.bf16.gmra.mrb[44].mxu0 %v14344_v28 }
 0x661   :  { %v6119_v27 = vmul.f32 0.5, %v8796_v3  ;;  %9941 = vtanh.f32 %v6115_v44  ;;  %v6016_v33 = vmul.f32 0.5, %v8830_v17  ;;  %v8831_v52 = vadd.f32 %v5457_v32, %v13417_v35  ;;  %v5461_v30 = vpop.f32.mrb[51].mxu1  ;;  %8450 = vmatprep.mubr.msk.bf16.mxu0 %vm10243_vm2, %v14217_v55  ;;  %v14345_v17 = vld [vmem:[#allocation4_spill] sm:$0xff] }
 0x662   :  { %v6120_v51 = vmul.f32 0.5, %v8797_v5  ;;  %v9932_v12 = vpop.eup %9931  ;;  %7430 = vst [vmem:[%s14120_s9 + $0x140] sm:$0xff] %v7987_v9  ;;  %v7990_v13 = vpack.c.bf16 %v6670_v11, %v6669_v20  ;;  %v8832_v7 = vadd.f32 %v5459_v25, %v13409_v48  ;;  %v8833_v0 = vadd.f32 %v5461_v30, %v13417_v35 }
 0x663   :  { %9943 = vtanh.f32 %v6119_v27  ;;  %v9934_v39 = vpop.eup %9933  ;;  %v6484_v14 = vmul.f32 0.034906585, %v9932_v12  ;;  %v6017_v62 = vmul.f32 0.5, %v8831_v52  ;;  %v5119_v18 = vpop.f32.mrb[196].mxu0 }
 0x664   :  { %9945 = vtanh.f32 %v6016_v33  ;;  %v9936_v24 = vpop.eup %9935  ;;  %7433 = vst [vmem:[%s14120_s9 + $0x154] sm:$0xff] %v7990_v13  ;;  %v6485_v1 = vmul.f32 0.034906585, %v9934_v39  ;;  %v6021_v40 = vmul.f32 0.5, %v8832_v7  ;;  %v6022_v15 = vmul.f32 0.5, %v8833_v0  ;;  %v5121_v58 = vpop.f32.mrb[197].mxu0 }
 0x665   :  { %9947 = vtanh.f32 %v6120_v51  ;;  %v9938_v34 = vpop.eup %9937  ;;  %v6674_v56 = vadd.f32 0.06981317, %v6484_v14  ;;  %v6489_v46 = vmul.f32 0.034906585, %v9936_v24  ;;  %v8798_v4 = vadd.f32 %v5119_v18, %v13289_v38  ;;  %v5123_v63 = vpop.f32.mrb[198].mxu0 }
 0x666   :  { %9949 = vtanh.f32 %v6017_v62  ;;  %v5465_v2 = vpop.f32.mrb[52].mxu1  ;;  %v6675_v49 = vadd.f32 0.06981317, %v6485_v1  ;;  %v6490_v57 = vmul.f32 0.034906585, %v9938_v34  ;;  %v8799_v19 = vadd.f32 %v5121_v58, %v13294_v42  ;;  %v5125_v31 = vpop.f32.mrb[199].mxu0 }
 0x667   :  { %9951 = vtanh.f32 %v6021_v40  ;;  %v5467_v6 = vpop.f32.mrb[53].mxu1  ;;  %v6679_v61 = vadd.f32 0.06981317, %v6489_v46  ;;  %v6124_v36 = vmul.f32 0.5, %v8798_v4  ;;  %v8800_v29 = vadd.f32 %v5123_v63, %v13289_v38 }
 0x668   :  { %9953 = vtanh.f32 %v6022_v15  ;;  %v5469_v53 = vpop.f32.mrb[54].mxu1  ;;  %v7993_v60 = vpack.c.bf16 %v6675_v49, %v6674_v56  ;;  %v6680_v3 = vadd.f32 0.06981317, %v6490_v57  ;;  %v6125_v47 = vmul.f32 0.5, %v8799_v19  ;;  %8451 = vmatmul.mubr.bf16.vlgmr.msra.gmra.mrb[228].mxu0 %v14345_v17 }
 0x669   :  { %v8834_v20 = vadd.f32 %v5465_v2, %v13409_v48  ;;  %v5471_v44 = vpop.f32.mrb[55].mxu1  ;;  %9955 = vtanh.f32 %v6124_v36  ;;  %v6129_v5 = vmul.f32 0.5, %v8800_v29  ;;  %v8801_v32 = vadd.f32 %v5125_v31, %v13294_v42  ;;  %8454 = vmatprep.mubr.msk.bf16.mxu0 %vm10243_vm2, %v14217_v55 }
 0x66a   :  { %v8835_v9 = vadd.f32 %v5467_v6, %v13417_v35  ;;  %v9940_v11 = vpop.eup %9939  ;;  %7436 = vst [vmem:[%s14120_s9 + $0x168] sm:$0xff] %v7993_v60  ;;  %v7996_v27 = vpack.c.bf16 %v6680_v3, %v6679_v61  ;;  %9957 = vtanh.f32 %v6125_v47  ;;  %v8836_v28 = vadd.f32 %v5469_v53, %v13409_v48  ;;  %v14346_v53 = vld [vmem:[#allocation5_spill] sm:$0xff] }
 0x66b   :  { %v6026_v25 = vmul.f32 0.5, %v8834_v20  ;;  %v9942_v33 = vpop.eup %9941  ;;  %v6494_v51 = vmul.f32 0.034906585, %v9940_v11  ;;  %9959 = vtanh.f32 %v6129_v5  ;;  %v6130_v52 = vmul.f32 0.5, %v8801_v32  ;;  %v5129_v12 = vpop.f32.mrb[200].mxu0 }
 0x66c   :  { %v6027_v30 = vmul.f32 0.5, %v8835_v9  ;;  %7439 = vst [vmem:[%s14120_s9 + $0x17c] sm:$0xff] %v7996_v27  ;;  %v6495_v7 = vmul.f32 0.034906585, %v9942_v33  ;;  %v6031_v0 = vmul.f32 0.5, %v8836_v28  ;;  %v8837_v39 = vadd.f32 %v5471_v44, %v13417_v35  ;;  %v5131_v14 = vpop.f32.mrb[201].mxu0 }
 0x66d   :  { %v9944_v13 = vpop.eup %9943  ;;  %9961 = vtanh.f32 %v6026_v25  ;;  %v6684_v18 = vadd.f32 0.06981317, %v6494_v51  ;;  %v8802_v1 = vadd.f32 %v5129_v12, %v13289_v38  ;;  %v5133_v40 = vpop.f32.mrb[202].mxu0  ;;  %v8803_v20 = vadd.f32 %v5131_v14, %v13294_v42 }
 0x66e   :  { %v9946_v62 = vpop.eup %9945  ;;  %v6499_v24 = vmul.f32 0.034906585, %v9944_v13  ;;  %9963 = vtanh.f32 %v6130_v52  ;;  %v5475_v15 = vpop.f32.mrb[56].mxu1  ;;  %v6685_v34 = vadd.f32 0.06981317, %v6495_v7  ;;  %v6032_v46 = vmul.f32 0.5, %v8837_v39 }
 0x66f   :  { %v9948_v58 = vpop.eup %9947  ;;  %v6396_v56 = vmul.f32 0.034906585, %v9946_v62  ;;  %9965 = vtanh.f32 %v6027_v30  ;;  %v5135_v4 = vpop.f32.mrb[203].mxu0  ;;  %v6134_v57 = vmul.f32 0.5, %v8802_v1  ;;  %v8804_v32 = vadd.f32 %v5133_v40, %v13289_v38 }
 0x670   :  { %v9950_v63 = vpop.eup %9949  ;;  %v6689_v2 = vadd.f32 0.06981317, %v6499_v24  ;;  %v6500_v49 = vmul.f32 0.034906585, %v9948_v58  ;;  %9967 = vtanh.f32 %v6031_v0  ;;  %v5477_v19 = vpop.f32.mrb[57].mxu1  ;;  %v7999_v6 = vpack.c.bf16 %v6685_v34, %v6684_v18  ;;  %8455 = vmatmul.mubr.bf16.gmra.mrb[232].mxu0 %v14346_v53 }
 0x671   :  { %v9952_v31 = vpop.eup %9951  ;;  %v6586_v61 = vadd.f32 0.06981317, %v6396_v56  ;;  %v6397_v36 = vmul.f32 0.034906585, %v9950_v63  ;;  %9969 = vtanh.f32 %v6032_v46  ;;  %v5479_v29 = vpop.f32.mrb[58].mxu1  ;;  %8458 = vmatprep.mubr.msk.bf16.mxu0 %vm10243_vm2, %v14217_v55  ;;  %v8838_v9 = vadd.f32 %v5475_v15, %v13409_v48 }
 0x672   :  { %v9954_v60 = vpop.eup %9953  ;;  %v6690_v3 = vadd.f32 0.06981317, %v6500_v49  ;;  %v6401_v47 = vmul.f32 0.034906585, %v9952_v31  ;;  %9971 = vtanh.f32 %v6134_v57  ;;  %v5481_v44 = vpop.f32.mrb[59].mxu1  ;;  %7442 = vst [vmem:[%s14120_s9 + $0x190] sm:$0xff] %v7999_v6  ;;  %v8805_v33 = vadd.f32 %v5135_v4, %v13294_v42 }
 0x673   :  { %v6587_v17 = vadd.f32 0.06981317, %v6397_v36  ;;  %v6402_v5 = vmul.f32 0.034906585, %v9954_v60  ;;  %v9956_v11 = vpop.eup %9955  ;;  %v6135_v28 = vmul.f32 0.5, %v8803_v20  ;;  %v5139_v51 = vpop.f32.mrb[204].mxu0  ;;  %v8839_v49 = vadd.f32 %v5477_v19, %v13417_v35 }
 0x674   :  { %v8002_v27 = vpack.c.bf16 %v6690_v3, %v6689_v2  ;;  %v6591_v25 = vadd.f32 0.06981317, %v6401_v47  ;;  %v9958_v52 = vpop.eup %9957  ;;  %v6504_v13 = vmul.f32 0.034906585, %v9956_v11  ;;  %v6139_v7 = vmul.f32 0.5, %v8804_v32  ;;  %v5141_v0 = vpop.f32.mrb[205].mxu0 }
 0x675   :  { %v7940_v30 = vpack.c.bf16 %v6587_v17, %v6586_v61  ;;  %v6592_v12 = vadd.f32 0.06981317, %v6402_v5  ;;  %v9960_v39 = vpop.eup %9959  ;;  %v6505_v14 = vmul.f32 0.034906585, %v9958_v52  ;;  %9973 = vtanh.f32 %v6135_v28  ;;  %v5143_v24 = vpop.f32.mrb[206].mxu0  ;;  %v14347_v60 = vld [vmem:[#allocation6_spill] sm:$0xff] }
 0x676   :  { %7445 = vst [vmem:[%s14120_s9 + $0x1a4] sm:$0xff] %v8002_v27  ;;  %v6036_v62 = vmul.f32 0.5, %v8838_v9  ;;  %v6140_v18 = vmul.f32 0.5, %v8805_v33  ;;  %v5485_v1 = vpop.f32.mrb[60].mxu1  ;;  %v6694_v58 = vadd.f32 0.06981317, %v6504_v13  ;;  %9975 = vtanh.f32 %v6139_v7 }
 0x677   :  { %v9962_v40 = vpop.eup %9961  ;;  %7383 = vst [vmem:[%s14120_s9 + $0x8] sm:$0xff] %v7940_v30  ;;  %v7943_v15 = vpack.c.bf16 %v6592_v12, %v6591_v25  ;;  %v6509_v34 = vmul.f32 0.034906585, %v9960_v39  ;;  %v5145_v56 = vpop.f32.mrb[207].mxu0  ;;  %v6695_v63 = vadd.f32 0.06981317, %v6505_v14  ;;  %v8840_v36 = vadd.f32 %v5479_v29, %v13409_v48 }
 0x678   :  { %v5487_v46 = vpop.f32.mrb[61].mxu1  ;;  %v9964_v4 = vpop.eup %9963  ;;  %v6406_v2 = vmul.f32 0.034906585, %v9962_v40  ;;  %9977 = vtanh.f32 %v6036_v62  ;;  %8459 = vmatmul.mubr.bf16.gmra.mrb[236].mxu0 %v14347_v60  ;;  %v6037_v17 = vmul.f32 0.5, %v8839_v49  ;;  %v8841_v27 = vadd.f32 %v5481_v44, %v13417_v35 }
 0x679   :  { %v13469_v57 = vpop.f32.mrb[62].mxu1  ;;  %v9966_v31 = vpop.eup %9965  ;;  %7386 = vst [vmem:[%s14120_s9 + $0x1c] sm:$0xff] %v7943_v15  ;;  %v6699_v6 = vadd.f32 0.06981317, %v6509_v34  ;;  %v6510_v61 = vmul.f32 0.034906585, %v9964_v4  ;;  %9979 = vtanh.f32 %v6140_v18  ;;  %v8005_v47 = vpack.c.bf16 %v6695_v63, %v6694_v58  ;;  %8462 = vmatprep.mubr.msk.bf16.mxu0 %vm10243_vm2, %v14217_v55 }
 0x67a   :  { %v13475_v53 = vpop.f32.mrb[63].mxu1  ;;  %v9968_v3 = vpop.eup %9967  ;;  %v6596_v20 = vadd.f32 0.06981317, %v6406_v2  ;;  %v6407_v19 = vmul.f32 0.034906585, %v9966_v31  ;;  %v6041_v11 = vmul.f32 0.5, %v8840_v36  ;;  %9981 = vtanh.f32 %v6037_v17 }
 0x67b   :  { %v9970_v5 = vpop.eup %9969  ;;  %v6700_v32 = vadd.f32 0.06981317, %v6510_v61  ;;  %v6411_v9 = vmul.f32 0.034906585, %v9968_v3  ;;  %7448 = vst [vmem:[%s14120_s9 + $0x1b8] sm:$0xff] %v8005_v47  ;;  %v8806_v33 = vadd.f32 %v5139_v51, %v13289_v38  ;;  %v5149_v52 = vpop.f32.mrb[208].mxu0  ;;  %v8807_v51 = vadd.f32 %v5141_v0, %v13294_v42 }
 0x67c   :  { %v9972_v25 = vpop.eup %9971  ;;  %v6597_v29 = vadd.f32 0.06981317, %v6407_v19  ;;  %v6412_v28 = vmul.f32 0.034906585, %v9970_v5  ;;  %9983 = vtanh.f32 %v6041_v11  ;;  %v5151_v7 = vpop.f32.mrb[209].mxu0  ;;  %v6042_v62 = vmul.f32 0.5, %v8841_v27 }
 0x67d   :  { %v8008_v30 = vpack.c.bf16 %v6700_v32, %v6699_v6  ;;  %v6601_v12 = vadd.f32 0.06981317, %v6411_v9  ;;  %v6514_v13 = vmul.f32 0.034906585, %v9972_v25  ;;  %v6144_v44 = vmul.f32 0.5, %v8806_v33  ;;  %v5153_v18 = vpop.f32.mrb[210].mxu0 }
 0x67e   :  { %v7946_v39 = vpack.c.bf16 %v6597_v29, %v6596_v20  ;;  %v6602_v14 = vadd.f32 0.06981317, %v6412_v28  ;;  %v13485_v40 = vpop.f32.mrb[64].mxu1  ;;  %v8808_v58 = vadd.f32 %v5143_v24, %v13289_v38  ;;  %v8842_v34 = vadd.f32 %v5485_v1, %v13409_v48  ;;  %v13493_v4 = vpop.f32.mrb[211].mxu0  ;;  %v14348_v3 = vld [vmem:[#allocation7_spill] sm:$0xff] }
 0x67f   :  { %7451 = vst [vmem:[%s14120_s9 + $0x1cc] sm:$0xff] %v8008_v30  ;;  %v6704_v15 = vadd.f32 0.06981317, %v6514_v13  ;;  %v13495_v63 = vpop.f32.mrb[65].mxu1  ;;  %v9974_v2 = vpop.eup %9973  ;;  %9985 = vtanh.f32 %v6042_v62  ;;  %v8809_v31 = vadd.f32 %v5145_v56, %v13294_v42  ;;  %v8843_v6 = vadd.f32 %v5487_v46, %v13417_v35 }
 0x680   :  { %7389 = vst [vmem:[%s14120_s9 + $0x30] sm:$0xff] %v7946_v39  ;;  %v7949_v49 = vpack.c.bf16 %v6602_v14, %v6601_v12  ;;  %v13502_v0 = vpop.f32.mrb[66].mxu1  ;;  %v9976_v24 = vpop.eup %9975  ;;  %v6515_v61 = vmul.f32 0.034906585, %v9974_v2  ;;  %9987 = vtanh.f32 %v6144_v44  ;;  %v6145_v1 = vmul.f32 0.5, %v8807_v51  ;;  %8463 = vmatmul.mubr.bf16.gmra.mrb[240].mxu0 %v14348_v3  ;;  %v14349_v3 = vld [vmem:[#allocation8_spill] sm:$0xff] }
 0x681   :  { %v6149_v36 = vmul.f32 0.5, %v8808_v58  ;;  %v13504_v60 = vpop.f32.mrb[67].mxu1  ;;  %v6519_v20 = vmul.f32 0.034906585, %v9976_v24  ;;  %v6046_v56 = vmul.f32 0.5, %v8842_v34  ;;  %v6150_v19 = vmul.f32 0.5, %v8809_v31  ;;  %8466 = vmatprep.mubr.msk.bf16.mxu0 %vm10243_vm2, %v14217_v55 }
 0x682   :  { %v9978_v47 = vpop.eup %9977  ;;  %7392 = vst [vmem:[%s14120_s9 + $0x44] sm:$0xff] %v7949_v49  ;;  %v6047_v46 = vmul.f32 0.5, %v8843_v6  ;;  %v6705_v5 = vadd.f32 0.06981317, %v6515_v61  ;;  %9989 = vtanh.f32 %v6145_v1  ;;  %v8844_v9 = vadd.f32 %v13469_v57, %v13409_v48 }
 0x683   :  { %v9980_v17 = vpop.eup %9979  ;;  %v6416_v32 = vmul.f32 0.034906585, %v9978_v47  ;;  %v6709_v11 = vadd.f32 0.06981317, %v6519_v20  ;;  %9991 = vtanh.f32 %v6149_v36  ;;  %v8845_v25 = vadd.f32 %v13475_v53, %v13417_v35  ;;  %v5159_v29 = vpop.f32.mrb[212].mxu0 }
 0x684   :  { %v6520_v27 = vmul.f32 0.034906585, %v9980_v17  ;;  %v8011_v28 = vpack.c.bf16 %v6705_v5, %v6704_v15  ;;  %9993 = vtanh.f32 %v6046_v56  ;;  %v6051_v30 = vmul.f32 0.5, %v8844_v9  ;;  %v13516_v12 = vpop.f32.mrb[213].mxu0  ;;  %v9982_v13 = vpop.eup %9981 }
 0x685   :  { %v6606_v33 = vadd.f32 0.06981317, %v6416_v32  ;;  %9995 = vtanh.f32 %v6150_v19  ;;  %v6052_v14 = vmul.f32 0.5, %v8845_v25  ;;  %v8810_v62 = vadd.f32 %v5149_v52, %v13289_v38  ;;  %v13519_v57 = vpop.f32.mrb[214].mxu0  ;;  %v13521_v44 = vpop.f32.mrb[68].mxu1 }
 0x686   :  { %v6710_v39 = vadd.f32 0.06981317, %v6520_v27  ;;  %v9984_v51 = vpop.eup %9983  ;;  %7454 = vst [vmem:[%s14120_s9 + $0x1e0] sm:$0xff] %v8011_v28  ;;  %v6417_v53 = vmul.f32 0.034906585, %v9982_v13  ;;  %9997 = vtanh.f32 %v6047_v46  ;;  %v8811_v15 = vadd.f32 %v5151_v7, %v13294_v42  ;;  %v13528_v34 = vpop.f32.mrb[215].mxu0 }
 0x687   :  { %v8812_v58 = vadd.f32 %v5153_v18, %v13289_v38  ;;  %v13530_v2 = vpop.f32.mrb[69].mxu1  ;;  %v6421_v49 = vmul.f32 0.034906585, %v9984_v51  ;;  %9999 = vtanh.f32 %v6051_v30  ;;  %v6154_v31 = vmul.f32 0.5, %v8810_v62 }
 0x688   :  { %v8014_v52 = vpack.c.bf16 %v6710_v39, %v6709_v11  ;;  %v13532_v6 = vpop.f32.mrb[70].mxu1  ;;  %v6607_v24 = vadd.f32 0.06981317, %v6417_v53  ;;  %10001 = vtanh.f32 %v6052_v14  ;;  %v6155_v61 = vmul.f32 0.5, %v8811_v15  ;;  %8467 = vmatmul.mubr.bf16.gmra.mrb[244].mxu0 %v14349_v3 }
 0x689   :  { %v6159_v1 = vmul.f32 0.5, %v8812_v58  ;;  %v13534_v36 = vpop.f32.mrb[71].mxu1  ;;  %v9986_v7 = vpop.eup %9985  ;;  %v6611_v18 = vadd.f32 0.06981317, %v6421_v49  ;;  %10003 = vtanh.f32 %v6154_v31  ;;  %v8846_v47 = vadd.f32 %v13485_v40, %v13409_v48  ;;  %8470 = vmatprep.mubr.msk.bf16.mxu0 %vm10243_vm2, %v14217_v55 }
 0x68a   :  { %7457 = vst [vmem:[%s14120_s9 + $0x1f4] sm:$0xff] %v8014_v52  ;;  %v8813_v20 = vadd.f32 %v13493_v4, %v13294_v42  ;;  %v9988_v56 = vpop.eup %9987  ;;  %v7952_v19 = vpack.c.bf16 %v6607_v24, %v6606_v33  ;;  %v6422_v46 = vmul.f32 0.034906585, %v9986_v7  ;;  %10005 = vtanh.f32 %v6155_v61 }
 0x68b   :  { %v8847_v17 = vadd.f32 %v13495_v63, %v13417_v35  ;;  %v6524_v5 = vmul.f32 0.034906585, %v9988_v56  ;;  %10007 = vtanh.f32 %v6159_v1  ;;  %v6056_v32 = vmul.f32 0.5, %v8846_v47  ;;  %v13548_v11 = vpop.f32.mrb[216].mxu0  ;;  %v14350_v47 = vld [vmem:[#allocation9_spill] sm:$0xff] }
 0x68c   :  { %v6160_v9 = vmul.f32 0.5, %v8813_v20  ;;  %v9990_v40 = vpop.eup %9989  ;;  %7395 = vst [vmem:[%s14120_s9 + $0x58] sm:$0xff] %v7952_v19  ;;  %v6612_v4 = vadd.f32 0.06981317, %v6422_v46  ;;  %v8848_v25 = vadd.f32 %v13502_v0, %v13409_v48  ;;  %v8849_v28 = vadd.f32 %v13504_v60, %v13417_v35  ;;  %v13557_v63 = vpop.f32.mrb[217].mxu0 }
 0x68d   :  { %v6057_v27 = vmul.f32 0.5, %v8847_v17  ;;  %v9992_v33 = vpop.eup %9991  ;;  %v6714_v30 = vadd.f32 0.06981317, %v6524_v5  ;;  %v6525_v13 = vmul.f32 0.034906585, %v9990_v40  ;;  %10009 = vtanh.f32 %v6056_v32  ;;  %v13560_v14 = vpop.f32.mrb[218].mxu0 }
 0x68e   :  { %v8814_v39 = vadd.f32 %v5159_v29, %v13289_v38  ;;  %v13562_v62 = vpop.f32.mrb[72].mxu1  ;;  %v9994_v51 = vpop.eup %9993  ;;  %v7955_v53 = vpack.c.bf16 %v6612_v4, %v6611_v18  ;;  %v6529_v15 = vmul.f32 0.034906585, %v9992_v33  ;;  %10011 = vtanh.f32 %v6160_v9 }
 0x68f   :  { %v6061_v0 = vmul.f32 0.5, %v8848_v25  ;;  %v13564_v58 = vpop.f32.mrb[219].mxu0  ;;  %v13566_v60 = vpop.f32.mrb[73].mxu1  ;;  %v6715_v49 = vadd.f32 0.06981317, %v6525_v13  ;;  %10013 = vtanh.f32 %v6057_v27  ;;  %v6062_v24 = vmul.f32 0.5, %v8849_v28 }
 0x690   :  { %v9996_v52 = vpop.eup %9995  ;;  %v6426_v31 = vmul.f32 0.034906585, %v9994_v51  ;;  %v13568_v61 = vpop.f32.mrb[74].mxu1  ;;  %7398 = vst [vmem:[%s14120_s9 + $0x6c] sm:$0xff] %v7955_v53  ;;  %v6719_v1 = vadd.f32 0.06981317, %v6529_v15  ;;  %8471 = vmatmul.mubr.bf16.gmra.mrb[248].mxu0 %v14350_v47  ;;  %v8815_v9 = vadd.f32 %v13516_v12, %v13294_v42  ;;  %v8816_v25 = vadd.f32 %v13519_v57, %v13289_v38 }
 0x691   :  { %v9998_v29 = vpop.eup %9997  ;;  %v6530_v3 = vmul.f32 0.034906585, %v9996_v52  ;;  %10015 = vtanh.f32 %v6061_v0  ;;  %v6164_v7 = vmul.f32 0.5, %v8814_v39  ;;  %v13573_v18 = vpop.f32.mrb[75].mxu1  ;;  %v8017_v56 = vpack.c.bf16 %v6715_v49, %v6714_v30  ;;  %8474 = vmatprep.mubr.msk.bf16.mxu0 %vm10243_vm2, %v14217_v55 }
 0x692   :  { %v10000_v20 = vpop.eup %9999  ;;  %v6616_v19 = vadd.f32 0.06981317, %v6426_v31  ;;  %v6427_v46 = vmul.f32 0.034906585, %v9998_v29  ;;  %10017 = vtanh.f32 %v6062_v24  ;;  %v8850_v28 = vadd.f32 %v13521_v44, %v13409_v48 }
 0x693   :  { %v10002_v17 = vpop.eup %10001  ;;  %v6720_v5 = vadd.f32 0.06981317, %v6530_v3  ;;  %v6431_v32 = vmul.f32 0.034906585, %v10000_v20  ;;  %10019 = vtanh.f32 %v6164_v7  ;;  %7460 = vst [vmem:[%s14120_s9 + $0x208] sm:$0xff] %v8017_v56  ;;  %v13587_v33 = vpop.f32.mrb[220].mxu0  ;;  %v8817_v20 = vadd.f32 %v13528_v34, %v13294_v42 }
 0x694   :  { %v10004_v40 = vpop.eup %10003  ;;  %v6617_v4 = vadd.f32 0.06981317, %v6427_v46  ;;  %v6432_v27 = vmul.f32 0.034906585, %v10002_v17  ;;  %v6165_v12 = vmul.f32 0.5, %v8815_v9  ;;  %v13589_v53 = vpop.f32.mrb[221].mxu0 }
 0x695   :  { %v10006_v30 = vpop.eup %10005  ;;  %v8020_v13 = vpack.c.bf16 %v6720_v5, %v6719_v1  ;;  %v6621_v39 = vadd.f32 0.06981317, %v6431_v32  ;;  %v6534_v51 = vmul.f32 0.034906585, %v10004_v40  ;;  %v6169_v31 = vmul.f32 0.5, %v8816_v25  ;;  %v13591_v24 = vpop.f32.mrb[222].mxu0 }
 0x696   :  { %v10008_v15 = vpop.eup %10007  ;;  %v7958_v0 = vpack.c.bf16 %v6617_v4, %v6616_v19  ;;  %v6622_v52 = vadd.f32 0.06981317, %v6432_v27  ;;  %v6535_v49 = vmul.f32 0.034906585, %v10006_v30  ;;  %10021 = vtanh.f32 %v6165_v12  ;;  %v13596_v1 = vpop.f32.mrb[76].mxu1 }
 0x697   :  { %7463 = vst [vmem:[%s14120_s9 + $0x21c] sm:$0xff] %v8020_v13  ;;  %v6724_v57 = vadd.f32 0.06981317, %v6534_v51  ;;  %v6539_v44 = vmul.f32 0.034906585, %v10008_v15  ;;  %v6066_v29 = vmul.f32 0.5, %v8850_v28  ;;  %v10010_v3 = vpop.eup %10009  ;;  %10023 = vtanh.f32 %v6169_v31 }
 0x698   :  { %7401 = vst [vmem:[%s14120_s9 + $0x80] sm:$0xff] %v7958_v0  ;;  %v7961_v7 = vpack.c.bf16 %v6622_v52, %v6621_v39  ;;  %v6725_v47 = vadd.f32 0.06981317, %v6535_v49  ;;  %v13603_v56 = vpop.f32.mrb[223].mxu0  ;;  %v13605_v19 = vpop.f32.mrb[77].mxu1  ;;  %v8851_v32 = vadd.f32 %v13530_v2, %v13417_v35  ;;  %8475 = vmatmul.mubr.bf16.gmra.mrb[252].mxu0 %v13103_v50  ;;  %v6170_v27 = vmul.f32 0.5, %v8817_v20 }
 0x699   :  { %v10012_v46 = vpop.eup %10011  ;;  %v6729_v17 = vadd.f32 0.06981317, %v6539_v44  ;;  %v6436_v5 = vmul.f32 0.034906585, %v10010_v3  ;;  %10025 = vtanh.f32 %v6066_v29  ;;  %v13609_v9 = vpop.f32.mrb[78].mxu1  ;;  %v8852_v25 = vadd.f32 %v13532_v6, %v13409_v48  ;;  %8478 = vmatprep.mubr.msk.bf16.mxu0 %vm10243_vm2, %v14217_v55 }
 0x69a   :  { %v10014_v40 = vpop.eup %10013  ;;  %7404 = vst [vmem:[%s14120_s9 + $0x94] sm:$0xff] %v7961_v7  ;;  %v8023_v34 = vpack.c.bf16 %v6725_v47, %v6724_v57  ;;  %v6540_v4 = vmul.f32 0.034906585, %v10012_v46  ;;  %v13617_v28 = vpop.f32.mrb[79].mxu1  ;;  %v6067_v50 = vmul.f32 0.5, %v8851_v32  ;;  %v8853_v39 = vadd.f32 %v13534_v36, %v13417_v35 }
 0x69b   :  { %v10016_v2 = vpop.eup %10015  ;;  %v6626_v30 = vadd.f32 0.06981317, %v6436_v5  ;;  %v6437_v13 = vmul.f32 0.034906585, %v10014_v40  ;;  %10027 = vtanh.f32 %v6170_v27  ;;  %v6071_v6 = vmul.f32 0.5, %v8852_v25  ;;  %v13626_v0 = vpop.f32.mrb[224].mxu0 }
 0x69c   :  { %v10018_v51 = vpop.eup %10017  ;;  %7466 = vst [vmem:[%s14120_s9 + $0x230] sm:$0xff] %v8023_v34  ;;  %v6730_v12 = vadd.f32 0.06981317, %v6540_v4  ;;  %v6441_v15 = vmul.f32 0.034906585, %v10016_v2  ;;  %10029 = vtanh.f32 %v6067_v50  ;;  %v6072_v57 = vmul.f32 0.5, %v8853_v39 }
 0x69d   :  { %v10020_v52 = vpop.eup %10019  ;;  %v6627_v49 = vadd.f32 0.06981317, %v6437_v13  ;;  %v6442_v31 = vmul.f32 0.034906585, %v10018_v51  ;;  %v13628_v44 = vpop.f32.mrb[225].mxu0  ;;  %10031 = vtanh.f32 %v6071_v6  ;;  %v8818_v5 = vadd.f32 %v13548_v11, %v13289_v38 }
 0x69e   :  { %v8026_v29 = vpack.c.bf16 %v6730_v12, %v6729_v17  ;;  %v6631_v36 = vadd.f32 0.06981317, %v6441_v15  ;;  %v6544_v3 = vmul.f32 0.034906585, %v10020_v52  ;;  %v13630_v7 = vpop.f32.mrb[226].mxu0  ;;  %v13632_v47 = vpop.f32.mrb[80].mxu1  ;;  %10033 = vtanh.f32 %v6072_v57 }
 0x69f   :  { %v7964_v20 = vpack.c.bf16 %v6627_v49, %v6626_v30  ;;  %v6632_v46 = vadd.f32 0.06981317, %v6442_v31  ;;  %v13636_v32 = vpop.f32.mrb[227].mxu0  ;;  %v13638_v40 = vpop.f32.mrb[81].mxu1  ;;  %v8819_v34 = vadd.f32 %v13557_v63, %v13294_v42  ;;  %v8820_v4 = vadd.f32 %v13560_v14, %v13289_v38 }
 0x6a0   :  { %7469 = vst [vmem:[%s14120_s9 + $0x244] sm:$0xff] %v8026_v29  ;;  %v6734_v17 = vadd.f32 0.06981317, %v6544_v3  ;;  %v8854_v27 = vadd.f32 %v13562_v62, %v13409_v48  ;;  %v13649_v25 = vpop.f32.mrb[82].mxu1  ;;  %v10022_v11 = vpop.eup %10021  ;;  %v6174_v30 = vmul.f32 0.5, %v8818_v5  ;;  %v8821_v13 = vadd.f32 %v13564_v58, %v13294_v42  ;;  %8479 = vmatmul.mubr.bf16.gmra.mrb[0].mxu0 %v13119_v10 }
 0x6a1   :  { %7407 = vst [vmem:[%s14120_s9 + $0xa8] sm:$0xff] %v7964_v20  ;;  %v7967_v2 = vpack.c.bf16 %v6632_v46, %v6631_v36  ;;  %v8855_v63 = vadd.f32 %v13566_v60, %v13417_v35  ;;  %v13658_v50 = vpop.f32.mrb[83].mxu1  ;;  %v10024_v14 = vpop.eup %10023  ;;  %v6545_v62 = vmul.f32 0.034906585, %v10022_v11  ;;  %v6175_v39 = vmul.f32 0.5, %v8819_v34  ;;  %8482 = vmatprep.mubr.msk.bf16.mxu0 %vm10243_vm2, %v14217_v55 }
 0x6a2   :  { %v6179_v51 = vmul.f32 0.5, %v8820_v4  ;;  %v6076_v12 = vmul.f32 0.5, %v8854_v27  ;;  %v6549_v58 = vmul.f32 0.034906585, %v10024_v14  ;;  %10035 = vtanh.f32 %v6174_v30 }
 0x6a3   :  { %v10026_v15 = vpop.eup %10025  ;;  %7410 = vst [vmem:[%s14120_s9 + $0xbc] sm:$0xff] %v7967_v2  ;;  %v6180_v60 = vmul.f32 0.5, %v8821_v13  ;;  %v6077_v6 = vmul.f32 0.5, %v8855_v63  ;;  %v6735_v52 = vadd.f32 0.06981317, %v6545_v62  ;;  %10037 = vtanh.f32 %v6175_v39 }
 0x6a4   :  { %v6446_v49 = vmul.f32 0.034906585, %v10026_v15  ;;  %v8856_v10 = vadd.f32 %v13568_v61, %v13409_v48  ;;  %v6739_v31 = vadd.f32 0.06981317, %v6549_v58  ;;  %10039 = vtanh.f32 %v6179_v51 }
 0x6a5   :  { %v8857_v57 = vadd.f32 %v13573_v18, %v13417_v35  ;;  %v8822_v29 = vadd.f32 %v13587_v33, %v13289_v38  ;;  %v10028_v36 = vpop.eup %10027  ;;  %v8029_v3 = vpack.c.bf16 %v6735_v52, %v6734_v17  ;;  %10041 = vtanh.f32 %v6076_v12  ;;  %v13672_v5 = vpop.f32.mrb[84].mxu1 }
 0x6a6   :  { %v6636_v20 = vadd.f32 0.06981317, %v6446_v49  ;;  %v6081_v46 = vmul.f32 0.5, %v8856_v10  ;;  %v10030_v34 = vpop.eup %10029  ;;  %v6550_v4 = vmul.f32 0.034906585, %v10028_v36  ;;  %10043 = vtanh.f32 %v6180_v60  ;;  %v13674_v11 = vpop.f32.mrb[85].mxu1 }
 0x6a7   :  { %v6082_v27 = vmul.f32 0.5, %v8857_v57  ;;  %v6184_v61 = vmul.f32 0.5, %v8822_v29  ;;  %v10032_v2 = vpop.eup %10031  ;;  %7472 = vst [vmem:[%s14120_s9 + $0x258] sm:$0xff] %v8029_v3  ;;  %v6447_v18 = vmul.f32 0.034906585, %v10030_v34  ;;  %10045 = vtanh.f32 %v6077_v6  ;;  %v13683_v30 = vpop.f32.mrb[86].mxu1 }
 0x6a8   :  { %v8823_v33 = vadd.f32 %v13589_v53, %v13294_v42  ;;  %v8824_v17 = vadd.f32 %v13591_v24, %v13289_v38  ;;  %v10034_v13 = vpop.eup %10033  ;;  %v6740_v63 = vadd.f32 0.06981317, %v6550_v4  ;;  %v6451_v14 = vmul.f32 0.034906585, %v10032_v2  ;;  %v13687_v39 = vpop.f32.mrb[87].mxu1  ;;  %8483 = vmatmul.mubr.bf16.gmra.mrb[4].mxu0 %v13135_v54 }
 0x6a9   :  { %10047 = vtanh.f32 %v6081_v46  ;;  %v8858_v62 = vadd.f32 %v13596_v1, %v13409_v48  ;;  %v6637_v51 = vadd.f32 0.06981317, %v6447_v18  ;;  %v6452_v12 = vmul.f32 0.034906585, %v10034_v13  ;;  %8486 = vmatprep.mubr.msk.bf16.mxu0 %vm10243_vm2, %v14217_v55 }
 0x6aa   :  { %10049 = vtanh.f32 %v6082_v27  ;;  %v6185_v53 = vmul.f32 0.5, %v8823_v33  ;;  %v8032_v24 = vpack.c.bf16 %v6740_v63, %v6739_v31  ;;  %v6641_v15 = vadd.f32 0.06981317, %v6451_v14 }
 0x6ab   :  { %10051 = vtanh.f32 %v6184_v61  ;;  %v6189_v58 = vmul.f32 0.5, %v8824_v17  ;;  %v7970_v60 = vpack.c.bf16 %v6637_v51, %v6636_v20  ;;  %v6642_v6 = vadd.f32 0.06981317, %v6452_v12 }
 0x6ac   :  { %10053 = vtanh.f32 %v6185_v53  ;;  %v6086_v52 = vmul.f32 0.5, %v8858_v62  ;;  %v10036_v1 = vpop.eup %10035  ;;  %7475 = vst [vmem:[%s14120_s9 + $0x26c] sm:$0xff] %v8032_v24  ;;  %v8825_v54 = vadd.f32 %v13603_v56, %v13294_v42  ;;  %v8859_v49 = vadd.f32 %v13605_v19, %v13417_v35 }
 0x6ad   :  { %10055 = vtanh.f32 %v6189_v58  ;;  %v8860_v10 = vadd.f32 %v13609_v9, %v13409_v48  ;;  %v10038_v31 = vpop.eup %10037  ;;  %7413 = vst [vmem:[%s14120_s9 + $0xd0] sm:$0xff] %v7970_v60  ;;  %v7973_v57 = vpack.c.bf16 %v6642_v6, %v6641_v15  ;;  %v6554_v29 = vmul.f32 0.034906585, %v10036_v1  ;;  %v13706_v3 = vpop.f32.mrb[88].mxu1 }
 0x6ae   :  { %10057 = vtanh.f32 %v6086_v52  ;;  %v8861_v36 = vadd.f32 %v13617_v28, %v13417_v35  ;;  %v10040_v56 = vpop.eup %10039  ;;  %v6555_v20 = vmul.f32 0.034906585, %v10038_v31  ;;  %v6190_v46 = vmul.f32 0.5, %v8825_v54  ;;  %v13708_v4 = vpop.f32.mrb[89].mxu1 }
 0x6af   :  { %v6087_v19 = vmul.f32 0.5, %v8859_v49  ;;  %v6091_v34 = vmul.f32 0.5, %v8860_v10  ;;  %v10042_v9 = vpop.eup %10041  ;;  %7416 = vst [vmem:[%s14120_s9 + $0xe4] sm:$0xff] %v7973_v57  ;;  %v6744_v27 = vadd.f32 0.06981317, %v6554_v29  ;;  %v8826_v28 = vadd.f32 %v13626_v0, %v13289_v38  ;;  %v13715_v18 = vpop.f32.mrb[90].mxu1 }
 0x6b0   :  { %v6559_v61 = vmul.f32 0.034906585, %v10040_v56  ;;  %v6092_v2 = vmul.f32 0.5, %v8861_v36  ;;  %v10044_v33 = vpop.eup %10043  ;;  %v6745_v17 = vadd.f32 0.06981317, %v6555_v20  ;;  %10059 = vtanh.f32 %v6190_v46  ;;  %v13719_v14 = vpop.f32.mrb[91].mxu1  ;;  %8487 = vmatmul.mubr.bf16.gmra.mrb[8].mxu0 %v13144_v23 }
 0x6b1   :  { %v6456_v13 = vmul.f32 0.034906585, %v10042_v9  ;;  %v8827_v63 = vadd.f32 %v13628_v44, %v13294_v42  ;;  %v10046_v62 = vpop.eup %10045  ;;  %v6560_v12 = vmul.f32 0.034906585, %v10044_v33  ;;  %10061 = vtanh.f32 %v6087_v19  ;;  %8490 = vmatprep.mubr.msk.bf16.mxu0 %vm10243_vm2, %v14217_v55 }
 0x6b2   :  { %v6749_v51 = vadd.f32 0.06981317, %v6559_v61  ;;  %v6194_v53 = vmul.f32 0.5, %v8826_v28  ;;  %v8035_v24 = vpack.c.bf16 %v6745_v17, %v6744_v27  ;;  %v6457_v58 = vmul.f32 0.034906585, %v10046_v62 }
 0x6b3   :  { %v10048_v0 = vpop.eup %10047  ;;  %v6646_v15 = vadd.f32 0.06981317, %v6456_v13  ;;  %10063 = vtanh.f32 %v6091_v34  ;;  %v6750_v6 = vadd.f32 0.06981317, %v6560_v12  ;;  %v6195_v52 = vmul.f32 0.5, %v8827_v63 }
 0x6b4   :  { %v10050_v60 = vpop.eup %10049  ;;  %v6461_v44 = vmul.f32 0.034906585, %v10048_v0  ;;  %10065 = vtanh.f32 %v6092_v2  ;;  %7478 = vst [vmem:[%s14120_s9 + $0x280] sm:$0xff] %v8035_v24  ;;  %v6647_v23 = vadd.f32 0.06981317, %v6457_v58  ;;  %v8828_v49 = vadd.f32 %v13630_v7, %v13289_v38 }
 0x6b5   :  { %v10052_v1 = vpop.eup %10051  ;;  %v6462_v54 = vmul.f32 0.034906585, %v10050_v60  ;;  %10067 = vtanh.f32 %v6194_v53  ;;  %v8038_v31 = vpack.c.bf16 %v6750_v6, %v6749_v51  ;;  %v13729_v36 = vpop.f32.mrb[92].mxu1  ;;  %v8862_v61 = vadd.f32 %v13632_v47, %v13409_v48 }
 0x6b6   :  { %v10054_v10 = vpop.eup %10053  ;;  %v6651_v57 = vadd.f32 0.06981317, %v6461_v44  ;;  %v6564_v29 = vmul.f32 0.034906585, %v10052_v1  ;;  %10069 = vtanh.f32 %v6195_v52  ;;  %v7976_v20 = vpack.c.bf16 %v6647_v23, %v6646_v15  ;;  %v13731_v9 = vpop.f32.mrb[93].mxu1 }
 0x6b7   :  { %v10056_v56 = vpop.eup %10055  ;;  %v6652_v46 = vadd.f32 0.06981317, %v6462_v54  ;;  %v6565_v19 = vmul.f32 0.034906585, %v10054_v10  ;;  %v6199_v34 = vmul.f32 0.5, %v8828_v49  ;;  %7481 = vst [vmem:[%s14120_s9 + $0x294] sm:$0xff] %v8038_v31  ;;  %v8829_v2 = vadd.f32 %v13636_v32, %v13294_v42 }
 0x6b8   :  { %v10058_v27 = vpop.eup %10057  ;;  %v6754_v38 = vadd.f32 0.06981317, %v6564_v29  ;;  %v6569_v7 = vmul.f32 0.034906585, %v10056_v56  ;;  %v13740_v28 = vpop.f32.mrb[94].mxu1  ;;  %7419 = vst [vmem:[%s14120_s9 + $0xf8] sm:$0xff] %v7976_v20  ;;  %8491 = vmatmul.mubr.bf16.gmra.mrb[12].mxu0 %v13152_v22  ;;  %v8863_v42 = vadd.f32 %v13638_v40, %v13417_v35  ;;  %v8864_v0 = vadd.f32 %v13649_v25, %v13409_v48 }
 0x6b9   :  { %v7979_v33 = vpack.c.bf16 %v6652_v46, %v6651_v57  ;;  %v6755_v17 = vadd.f32 0.06981317, %v6565_v19  ;;  %v6466_v13 = vmul.f32 0.034906585, %v10058_v27  ;;  %10071 = vtanh.f32 %v6199_v34  ;;  %v13745_v63 = vpop.f32.mrb[95].mxu1  ;;  %8494 = vmatprep.mubr.msk.bf16.mxu0 %vm10243_vm2, %v14217_v55 }
 0x6ba   :  { %v6759_v62 = vadd.f32 0.06981317, %v6569_v7  ;;  %v6096_v51 = vmul.f32 0.5, %v8862_v61  ;;  %v6200_v47 = vmul.f32 0.5, %v8829_v2  ;;  %v10060_v32 = vpop.eup %10059  ;;  %v8865_v22 = vadd.f32 %v13658_v50, %v13417_v35 }
 0x6bb   :  { %7422 = vst [vmem:[%s14120_s9 + $0x10c] sm:$0xff] %v7979_v33  ;;  %v8041_v12 = vpack.c.bf16 %v6755_v17, %v6754_v38  ;;  %v6656_v53 = vadd.f32 0.06981317, %v6466_v13  ;;  %v10062_v24 = vpop.eup %10061  ;;  %v6570_v15 = vmul.f32 0.034906585, %v10060_v32  ;;  %v6097_v40 = vmul.f32 0.5, %v8863_v42 }
 0x6bc   :  { %10073 = vtanh.f32 %v6096_v51  ;;  %v8866_v58 = vadd.f32 %v13672_v5, %v13409_v48  ;;  %v6467_v6 = vmul.f32 0.034906585, %v10062_v24  ;;  %v6101_v44 = vmul.f32 0.5, %v8864_v0 }
 0x6bd   :  { %v10064_v60 = vpop.eup %10063  ;;  %7484 = vst [vmem:[%s14120_s9 + $0x2a8] sm:$0xff] %v8041_v12  ;;  %10075 = vtanh.f32 %v6200_v47  ;;  %v6102_v52 = vmul.f32 0.5, %v8865_v22  ;;  %v6760_v1 = vadd.f32 0.06981317, %v6570_v15  ;;  %v13764_v54 = vpop.f32.mrb[96].mxu1  ;;  %v8867_v5 = vadd.f32 %v13674_v11, %v13417_v35 }
 0x6be   :  { %v10066_v25 = vpop.eup %10065  ;;  %v6471_v23 = vmul.f32 0.034906585, %v10064_v60  ;;  %10077 = vtanh.f32 %v6097_v40  ;;  %v6106_v50 = vmul.f32 0.5, %v8866_v58  ;;  %v6657_v10 = vadd.f32 0.06981317, %v6467_v6  ;;  %v13768_v57 = vpop.f32.mrb[97].mxu1 }
 0x6bf   :  { %v10068_v49 = vpop.eup %10067  ;;  %v6472_v31 = vmul.f32 0.034906585, %v10066_v25  ;;  %10079 = vtanh.f32 %v6101_v44  ;;  %v8044_v56 = vpack.c.bf16 %v6760_v1, %v6759_v62  ;;  %v13770_v19 = vpop.f32.mrb[98].mxu1  ;;  %v6107_v61 = vmul.f32 0.5, %v8867_v5 }
 0x6c0   :  { %v10070_v29 = vpop.eup %10069  ;;  %v6661_v20 = vadd.f32 0.06981317, %v6471_v23  ;;  %v6574_v46 = vmul.f32 0.034906585, %v10068_v49  ;;  %10081 = vtanh.f32 %v6102_v52  ;;  %v7982_v34 = vpack.c.bf16 %v6657_v10, %v6656_v53  ;;  %v13772_v7 = vpop.f32.mrb[99].mxu1  ;;  %8495 = vmatmul.mubr.bf16.gmra.mrb[16].mxu0 %v13160_v21 }
 0x6c1   :  { %v6662_v27 = vadd.f32 0.06981317, %v6472_v31  ;;  %v6575_v38 = vmul.f32 0.034906585, %v10070_v29  ;;  %10083 = vtanh.f32 %v6106_v50  ;;  %7487 = vst [vmem:[%s14120_s9 + $0x2bc] sm:$0xff] %v8044_v56  ;;  %v8868_v2 = vadd.f32 %v13683_v30, %v13409_v48  ;;  %8498 = vmatprep.mubr.msk.bf16.mxu0 %vm10243_vm2, %v14217_v55 }
 0x6c2   :  { %v6764_v11 = vadd.f32 0.06981317, %v6574_v46  ;;  %v8869_v33 = vadd.f32 %v13687_v39, %v13417_v35  ;;  %7425 = vst [vmem:[%s14120_s9 + $0x120] sm:$0xff] %v7982_v34  ;;  %v8870_v62 = vadd.f32 %v13706_v3, %v13409_v48  ;;  %v8871_v51 = vadd.f32 %v13708_v4, %v13417_v35 }
 0x6c3   :  { %v10072_v17 = vpop.eup %10071  ;;  %v7985_v21 = vpack.c.bf16 %v6662_v27, %v6661_v20  ;;  %v6765_v13 = vadd.f32 0.06981317, %v6575_v38  ;;  %10085 = vtanh.f32 %v6107_v61  ;;  %v6111_v47 = vmul.f32 0.5, %v8868_v2 }
 0x6c4   :  { %v6579_v30 = vmul.f32 0.034906585, %v10072_v17  ;;  %v6112_v39 = vmul.f32 0.5, %v8869_v33  ;;  %v6116_v32 = vmul.f32 0.5, %v8870_v62  ;;  %v6117_v12 = vmul.f32 0.5, %v8871_v51 }
 0x6c5   :  { %7428 = vst [vmem:[%s14120_s9 + $0x134] sm:$0xff] %v7985_v21  ;;  %v8047_v42 = vpack.c.bf16 %v6765_v13, %v6764_v11  ;;  %v8872_v53 = vadd.f32 %v13715_v18, %v13409_v48  ;;  %10087 = vtanh.f32 %v6111_v47  ;;  %v8873_v3 = vadd.f32 %v13719_v14, %v13417_v35  ;;  %v13800_v24 = vpop.f32.mrb[100].mxu1 }
 0x6c6   :  { %v10074_v0 = vpop.eup %10073  ;;  %v6769_v22 = vadd.f32 0.06981317, %v6579_v30  ;;  %v8874_v4 = vadd.f32 %v13729_v36, %v13409_v48  ;;  %10089 = vtanh.f32 %v6112_v39  ;;  %v8875_v18 = vadd.f32 %v13731_v9, %v13417_v35  ;;  %v13807_v60 = vpop.f32.mrb[101].mxu1 }
 0x6c7   :  { %v10076_v15 = vpop.eup %10075  ;;  %7490 = vst [vmem:[%s14120_s9 + $0x2d0] sm:$0xff] %v8047_v42  ;;  %v6476_v40 = vmul.f32 0.034906585, %v10074_v0  ;;  %v6121_v58 = vmul.f32 0.5, %v8872_v53  ;;  %10091 = vtanh.f32 %v6116_v32  ;;  %v6122_v44 = vmul.f32 0.5, %v8873_v3  ;;  %v13809_v52 = vpop.f32.mrb[102].mxu1 }
 0x6c8   :  { %v10078_v6 = vpop.eup %10077  ;;  %v6580_v14 = vmul.f32 0.034906585, %v10076_v15  ;;  %v6126_v36 = vmul.f32 0.5, %v8874_v4  ;;  %10093 = vtanh.f32 %v6117_v12  ;;  %v6127_v50 = vmul.f32 0.5, %v8875_v18  ;;  %v13811_v49 = vpop.f32.mrb[103].mxu1  ;;  %8499 = vmatmul.mubr.bf16.gmra.mrb[20].mxu0 %v13168_v26 }
 0x6c9   :  { %v10080_v25 = vpop.eup %10079  ;;  %v6666_v1 = vadd.f32 0.06981317, %v6476_v40  ;;  %v6477_v23 = vmul.f32 0.034906585, %v10078_v6  ;;  %10095 = vtanh.f32 %v6121_v58  ;;  %v8876_v5 = vadd.f32 %v13740_v28, %v13409_v48  ;;  %8502 = vmatprep.mubr.msk.bf16.mxu0 %vm10243_vm2, %v14217_v55 }
 0x6ca   :  { %v10082_v10 = vpop.eup %10081  ;;  %v6770_v9 = vadd.f32 0.06981317, %v6580_v14  ;;  %v6481_v31 = vmul.f32 0.034906585, %v10080_v25  ;;  %10097 = vtanh.f32 %v6122_v44  ;;  %v8877_v46 = vadd.f32 %v13745_v63, %v13417_v35 }
 0x6cb   :  { %v10084_v29 = vpop.eup %10083  ;;  %v6667_v56 = vadd.f32 0.06981317, %v6477_v23  ;;  %v6482_v20 = vmul.f32 0.034906585, %v10082_v10  ;;  %10099 = vtanh.f32 %v6126_v36  ;;  %v6131_v61 = vmul.f32 0.5, %v8876_v5 }
 0x6cc   :  { %v8050_v34 = vpack.c.bf16 %v6770_v9, %v6769_v22  ;;  %v6671_v27 = vadd.f32 0.06981317, %v6481_v31  ;;  %v6486_v26 = vmul.f32 0.034906585, %v10084_v29  ;;  %10101 = vtanh.f32 %v6127_v50 }
 0x6cd   :  { %v7988_v38 = vpack.c.bf16 %v6667_v56, %v6666_v1  ;;  %v6672_v11 = vadd.f32 0.06981317, %v6482_v20  ;;  %v10086_v2 = vpop.eup %10085  ;;  %v6132_v33 = vmul.f32 0.5, %v8877_v46  ;;  %v8878_v17 = vadd.f32 %v13764_v54, %v13409_v48  ;;  %v13827_v21 = vpop.f32.mrb[104].mxu1 }
 0x6ce   :  { %7493 = vst [vmem:[%s14120_s9 + $0x2e4] sm:$0xff] %v8050_v34  ;;  %v6676_v28 = vadd.f32 0.06981317, %v6486_v26  ;;  %v8879_v63 = vadd.f32 %v13768_v57, %v13417_v35  ;;  %v6487_v62 = vmul.f32 0.034906585, %v10086_v2  ;;  %10103 = vtanh.f32 %v6131_v61  ;;  %v5597_v30 = vpop.f32.mrb[105].mxu1 }
 0x6cf   :  { %7431 = vst [vmem:[%s14120_s9 + $0x148] sm:$0xff] %v7988_v38  ;;  %v7991_v13 = vpack.c.bf16 %v6672_v11, %v6671_v27  ;;  %v8880_v51 = vadd.f32 %v13770_v19, %v13409_v48  ;;  %v10088_v47 = vpop.eup %10087  ;;  %10105 = vtanh.f32 %v6132_v33  ;;  %v6136_v39 = vmul.f32 0.5, %v8878_v17  ;;  %v13836_v42 = vpop.f32.mrb[106].mxu1 }
 0x6d0   :  { %v6137_v54 = vmul.f32 0.5, %v8879_v63  ;;  %v8881_v57 = vadd.f32 %v13772_v7, %v13417_v35  ;;  %v10090_v32 = vpop.eup %10089  ;;  %v6677_v12 = vadd.f32 0.06981317, %v6487_v62  ;;  %v6491_v53 = vmul.f32 0.034906585, %v10088_v47  ;;  %v13843_v22 = vpop.f32.mrb[107].mxu1  ;;  %8503 = vmatmul.mubr.bf16.gmra.mrb[24].mxu0 %v13176_v45 }
 0x6d1   :  { %7434 = vst [vmem:[%s14120_s9 + $0x15c] sm:$0xff] %v7991_v13  ;;  %v6141_v0 = vmul.f32 0.5, %v8880_v51  ;;  %v8882_v19 = vadd.f32 %v13800_v24, %v13409_v48  ;;  %v10092_v3 = vpop.eup %10091  ;;  %v6492_v4 = vmul.f32 0.034906585, %v10090_v32  ;;  %10107 = vtanh.f32 %v6136_v39  ;;  %8506 = vmatprep.mubr.msk.bf16.mxu0 %vm10243_vm2, %v14217_v55 }
 0x6d2   :  { %v6142_v7 = vmul.f32 0.5, %v8881_v57  ;;  %v8883_v15 = vadd.f32 %v13807_v60, %v13417_v35  ;;  %v10094_v40 = vpop.eup %10093  ;;  %v7994_v58 = vpack.c.bf16 %v6677_v12, %v6676_v28  ;;  %v6681_v18 = vadd.f32 0.06981317, %v6491_v53 }
 0x6d3   :  { %v6496_v6 = vmul.f32 0.034906585, %v10092_v3  ;;  %10109 = vtanh.f32 %v6137_v54  ;;  %v10096_v24 = vpop.eup %10095  ;;  %v6682_v14 = vadd.f32 0.06981317, %v6492_v4  ;;  %v6497_v44 = vmul.f32 0.034906585, %v10094_v40 }
 0x6d4   :  { %10111 = vtanh.f32 %v6141_v0  ;;  %v6146_v45 = vmul.f32 0.5, %v8882_v19  ;;  %v10098_v36 = vpop.eup %10097  ;;  %7437 = vst [vmem:[%s14120_s9 + $0x170] sm:$0xff] %v7994_v58  ;;  %v6501_v60 = vmul.f32 0.034906585, %v10096_v24  ;;  %v6147_v1 = vmul.f32 0.5, %v8883_v15 }
 0x6d5   :  { %v6686_v25 = vadd.f32 0.06981317, %v6496_v6  ;;  %10113 = vtanh.f32 %v6142_v7  ;;  %v10100_v23 = vpop.eup %10099  ;;  %v7997_v50 = vpack.c.bf16 %v6682_v14, %v6681_v18  ;;  %v6687_v10 = vadd.f32 0.06981317, %v6497_v44  ;;  %v5605_v31 = vpop.f32.mrb[108].mxu1 }
 0x6d6   :  { %v6502_v9 = vmul.f32 0.034906585, %v10098_v36  ;;  %10115 = vtanh.f32 %v6146_v45  ;;  %v10102_v5 = vpop.eup %10101  ;;  %v6691_v29 = vadd.f32 0.06981317, %v6501_v60  ;;  %v6506_v56 = vmul.f32 0.034906585, %v10100_v23 }
 0x6d7   :  { %10117 = vtanh.f32 %v6147_v1  ;;  %v8884_v20 = vadd.f32 %v13809_v52, %v13409_v48  ;;  %v5607_v46 = vpop.f32.mrb[109].mxu1  ;;  %7440 = vst [vmem:[%s14120_s9 + $0x184] sm:$0xff] %v7997_v50  ;;  %v8000_v34 = vpack.c.bf16 %v6687_v10, %v6686_v25  ;;  %v6507_v26 = vmul.f32 0.034906585, %v10102_v5 }
 0x6d8   :  { %v6692_v27 = vadd.f32 0.06981317, %v6502_v9  ;;  %v8885_v38 = vadd.f32 %v13811_v49, %v13417_v35  ;;  %v13860_v11 = vpop.f32.mrb[110].mxu1  ;;  %v10104_v61 = vpop.eup %10103  ;;  %v6696_v2 = vadd.f32 0.06981317, %v6506_v56  ;;  %v8886_v33 = vadd.f32 %v13827_v21, %v13409_v48  ;;  %8507 = vmatmul.mubr.bf16.gmra.mrb[28].mxu0 %v13184_v8 }
 0x6d9   :  { %v6151_v28 = vmul.f32 0.5, %v8884_v20  ;;  %v8887_v52 = vadd.f32 %v5597_v30, %v13417_v35  ;;  %v5611_v17 = vpop.f32.mrb[111].mxu1  ;;  %v10106_v63 = vpop.eup %10105  ;;  %7443 = vst [vmem:[%s14120_s9 + $0x198] sm:$0xff] %v8000_v34  ;;  %v6697_v49 = vadd.f32 0.06981317, %v6507_v26  ;;  %8510 = vmatprep.mubr.msk.bf16.mxu0 %vm10243_vm2, %v14217_v55  ;;  %v8888_v57 = vadd.f32 %v13836_v42, %v13409_v48 }
 0x6da   :  { %v8003_v13 = vpack.c.bf16 %v6692_v27, %v6691_v29  ;;  %v6511_v62 = vmul.f32 0.034906585, %v10104_v61  ;;  %v6152_v51 = vmul.f32 0.5, %v8885_v38  ;;  %v6512_v47 = vmul.f32 0.034906585, %v10106_v63 }
 0x6db   :  { %10119 = vtanh.f32 %v6151_v28  ;;  %v6156_v21 = vmul.f32 0.5, %v8886_v33  ;;  %v6157_v39 = vmul.f32 0.5, %v8887_v52  ;;  %v10108_v30 = vpop.eup %10107  ;;  %v8006_v8 = vpack.c.bf16 %v6697_v49, %v6696_v2 }
 0x6dc   :  { %7446 = vst [vmem:[%s14120_s9 + $0x1ac] sm:$0xff] %v8003_v13  ;;  %v6701_v54 = vadd.f32 0.06981317, %v6511_v62  ;;  %10121 = vtanh.f32 %v6152_v51  ;;  %v6702_v12 = vadd.f32 0.06981317, %v6512_v47  ;;  %v8889_v0 = vadd.f32 %v13843_v22, %v13417_v35 }
 0x6dd   :  { %v10110_v32 = vpop.eup %10109  ;;  %v6516_v53 = vmul.f32 0.034906585, %v10108_v30  ;;  %10123 = vtanh.f32 %v6156_v21  ;;  %7449 = vst [vmem:[%s14120_s9 + $0x1c0] sm:$0xff] %v8006_v8  ;;  %v6161_v4 = vmul.f32 0.5, %v8888_v57  ;;  %v8890_v7 = vadd.f32 %v5605_v31, %v13409_v48  ;;  %v5615_v15 = vpop.f32.mrb[112].mxu1 }
 0x6de   :  { %v10112_v19 = vpop.eup %10111  ;;  %v6517_v3 = vmul.f32 0.034906585, %v10110_v32  ;;  %10125 = vtanh.f32 %v6157_v39  ;;  %v8009_v42 = vpack.c.bf16 %v6702_v12, %v6701_v54  ;;  %v6162_v6 = vmul.f32 0.5, %v8889_v0  ;;  %v5617_v24 = vpop.f32.mrb[113].mxu1 }
 0x6df   :  { %v10114_v40 = vpop.eup %10113  ;;  %v6706_v58 = vadd.f32 0.06981317, %v6516_v53  ;;  %v6521_v18 = vmul.f32 0.034906585, %v10112_v19  ;;  %10127 = vtanh.f32 %v6161_v4  ;;  %v6166_v45 = vmul.f32 0.5, %v8890_v7  ;;  %v5619_v36 = vpop.f32.mrb[114].mxu1 }
 0x6e0   :  { %v10116_v14 = vpop.eup %10115  ;;  %v6707_v44 = vadd.f32 0.06981317, %v6517_v3  ;;  %v6522_v22 = vmul.f32 0.034906585, %v10114_v40  ;;  %7452 = vst [vmem:[%s14120_s9 + $0x1d4] sm:$0xff] %v8009_v42  ;;  %10129 = vtanh.f32 %v6162_v6  ;;  %v8891_v23 = vadd.f32 %v5607_v46, %v13417_v35  ;;  %v5621_v50 = vpop.f32.mrb[115].mxu1  ;;  %8511 = vmatmul.mubr.bf16.gmra.mrb[32].mxu0 %v13192_v41 }
 0x6e1   :  { %v10118_v25 = vpop.eup %10117  ;;  %v6711_v60 = vadd.f32 0.06981317, %v6521_v18  ;;  %v6526_v1 = vmul.f32 0.034906585, %v10116_v14  ;;  %10131 = vtanh.f32 %v6166_v45  ;;  %8514 = vmatprep.mubr.msk.bf16.mxu0 %vm10243_vm2, %v14217_v55  ;;  %v8892_v56 = vadd.f32 %v13860_v11, %v13409_v48 }
 0x6e2   :  { %v8012_v10 = vpack.c.bf16 %v6707_v44, %v6706_v58  ;;  %v6712_v9 = vadd.f32 0.06981317, %v6522_v22  ;;  %v6527_v31 = vmul.f32 0.034906585, %v10118_v25  ;;  %v6167_v29 = vmul.f32 0.5, %v8891_v23 }
 0x6e3   :  { %v6716_v5 = vadd.f32 0.06981317, %v6526_v1  ;;  %v8893_v20 = vadd.f32 %v5611_v17, %v13417_v35  ;;  %v8894_v34 = vadd.f32 %v5615_v15, %v13409_v48  ;;  %v8895_v27 = vadd.f32 %v5617_v24, %v13417_v35 }
 0x6e4   :  { %7455 = vst [vmem:[%s14120_s9 + $0x1e8] sm:$0xff] %v8012_v10  ;;  %v8015_v46 = vpack.c.bf16 %v6712_v9, %v6711_v60  ;;  %v6717_v41 = vadd.f32 0.06981317, %v6527_v31  ;;  %10133 = vtanh.f32 %v6167_v29  ;;  %v6171_v38 = vmul.f32 0.5, %v8892_v56 }
 0x6e5   :  { %v10120_v26 = vpop.eup %10119  ;;  %v6172_v61 = vmul.f32 0.5, %v8893_v20  ;;  %v8896_v2 = vadd.f32 %v5619_v36, %v13409_v48  ;;  %v6176_v52 = vmul.f32 0.5, %v8894_v34  ;;  %v6177_v17 = vmul.f32 0.5, %v8895_v27  ;;  %v5625_v63 = vpop.f32.mrb[116].mxu1 }
 0x6e6   :  { %v10122_v28 = vpop.eup %10121  ;;  %7458 = vst [vmem:[%s14120_s9 + $0x1fc] sm:$0xff] %v8015_v46  ;;  %v8018_v11 = vpack.c.bf16 %v6717_v41, %v6716_v5  ;;  %v6531_v33 = vmul.f32 0.034906585, %v10120_v26  ;;  %10135 = vtanh.f32 %v6171_v38  ;;  %v8897_v51 = vadd.f32 %v5621_v50, %v13417_v35  ;;  %v5627_v47 = vpop.f32.mrb[117].mxu1 }
 0x6e7   :  { %v10124_v13 = vpop.eup %10123  ;;  %v6532_v49 = vmul.f32 0.034906585, %v10122_v28  ;;  %v6181_v62 = vmul.f32 0.5, %v8896_v2  ;;  %10137 = vtanh.f32 %v6172_v61  ;;  %v8898_v8 = vadd.f32 %v5625_v63, %v13409_v48  ;;  %v5629_v54 = vpop.f32.mrb[118].mxu1 }
 0x6e8   :  { %v10126_v21 = vpop.eup %10125  ;;  %7461 = vst [vmem:[%s14120_s9 + $0x210] sm:$0xff] %v8018_v11  ;;  %v6721_v39 = vadd.f32 0.06981317, %v6531_v33  ;;  %v6536_v30 = vmul.f32 0.034906585, %v10124_v13  ;;  %10139 = vtanh.f32 %v6176_v52  ;;  %v6182_v12 = vmul.f32 0.5, %v8897_v51  ;;  %8515 = vmatmul.mubr.bf16.gmra.mrb[36].mxu0 %v13200_v59 }
 0x6e9   :  { %v6722_v57 = vadd.f32 0.06981317, %v6532_v49  ;;  %v6537_v32 = vmul.f32 0.034906585, %v10126_v21  ;;  %v5631_v53 = vpop.f32.mrb[119].mxu1  ;;  %v10128_v0 = vpop.eup %10127  ;;  %10141 = vtanh.f32 %v6177_v17  ;;  %v6186_v3 = vmul.f32 0.5, %v8898_v8  ;;  %8518 = vmatprep.mubr.msk.bf16.mxu0 %vm10243_vm2, %v14217_v55 }
 0x6ea   :  { %v6726_v19 = vadd.f32 0.06981317, %v6536_v30  ;;  %v8899_v4 = vadd.f32 %v5627_v47, %v13417_v35  ;;  %v10130_v7 = vpop.eup %10129  ;;  %v6541_v42 = vmul.f32 0.034906585, %v10128_v0  ;;  %10143 = vtanh.f32 %v6181_v62 }
 0x6eb   :  { %v8021_v15 = vpack.c.bf16 %v6722_v57, %v6721_v39  ;;  %v6727_v40 = vadd.f32 0.06981317, %v6537_v32  ;;  %v10132_v58 = vpop.eup %10131  ;;  %v6542_v18 = vmul.f32 0.034906585, %v10130_v7  ;;  %10145 = vtanh.f32 %v6182_v12 }
 0x6ec   :  { %v6187_v6 = vmul.f32 0.5, %v8899_v4  ;;  %v8900_v59 = vadd.f32 %v5629_v54, %v13409_v48  ;;  %v6731_v14 = vadd.f32 0.06981317, %v6541_v42  ;;  %v6546_v44 = vmul.f32 0.034906585, %v10132_v58 }
 0x6ed   :  { %7464 = vst [vmem:[%s14120_s9 + $0x224] sm:$0xff] %v8021_v15  ;;  %v8024_v24 = vpack.c.bf16 %v6727_v40, %v6726_v19  ;;  %10147 = vtanh.f32 %v6186_v3  ;;  %v6732_v22 = vadd.f32 0.06981317, %v6542_v18  ;;  %v8901_v36 = vadd.f32 %v5631_v53, %v13417_v35  ;;  %v5635_v25 = vpop.f32.mrb[120].mxu1 }
 0x6ee   :  { %10149 = vtanh.f32 %v6187_v6  ;;  %v6191_v45 = vmul.f32 0.5, %v8900_v59  ;;  %v10134_v60 = vpop.eup %10133  ;;  %v6736_v1 = vadd.f32 0.06981317, %v6546_v44  ;;  %v8902_v23 = vadd.f32 %v5635_v25, %v13409_v48  ;;  %v5637_v50 = vpop.f32.mrb[121].mxu1 }
 0x6ef   :  { %7467 = vst [vmem:[%s14120_s9 + $0x238] sm:$0xff] %v8024_v24  ;;  %v8027_v10 = vpack.c.bf16 %v6732_v22, %v6731_v14  ;;  %v6547_v9 = vmul.f32 0.034906585, %v10134_v60  ;;  %v6192_v31 = vmul.f32 0.5, %v8901_v36  ;;  %v5639_v5 = vpop.f32.mrb[122].mxu1  ;;  %v8903_v20 = vadd.f32 %v5637_v50, %v13417_v35 }
 0x6f0   :  { %10151 = vtanh.f32 %v6191_v45  ;;  %v10136_v29 = vpop.eup %10135  ;;  %v6196_v56 = vmul.f32 0.5, %v8902_v23  ;;  %v8904_v46 = vadd.f32 %v5639_v5, %v13409_v48  ;;  %v5641_v41 = vpop.f32.mrb[123].mxu1  ;;  %8519 = vmatmul.mubr.bf16.gmra.mrb[40].mxu0 %v13208_v37 }
 0x6f1   :  { %v10138_v34 = vpop.eup %10137  ;;  %7470 = vst [vmem:[%s14120_s9 + $0x24c] sm:$0xff] %v8027_v10  ;;  %v6737_v27 = vadd.f32 0.06981317, %v6547_v9  ;;  %v6551_v26 = vmul.f32 0.034906585, %v10136_v29  ;;  %10153 = vtanh.f32 %v6192_v31  ;;  %v8905_v38 = vadd.f32 %v5641_v41, %v13417_v35  ;;  %8522 = vmatprep.mubr.msk.bf16.mxu0 %vm10243_vm2, %v14217_v55 }
 0x6f2   :  { %v10140_v61 = vpop.eup %10139  ;;  %v6552_v2 = vmul.f32 0.034906585, %v10138_v34  ;;  %10155 = vtanh.f32 %v6196_v56  ;;  %v6197_v48 = vmul.f32 0.5, %v8903_v20  ;;  %v6201_v28 = vmul.f32 0.5, %v8904_v46  ;;  %v10240_v9 = vld [vmem:[%s14119_s8] sm:$0x1f] }
 0x6f3   :  { %v10142_v11 = vpop.eup %10141  ;;  %v8030_v37 = vpack.c.bf16 %v6737_v27, %v6736_v1  ;;  %v6741_v33 = vadd.f32 0.06981317, %v6551_v26  ;;  %v6556_v52 = vmul.f32 0.034906585, %v10140_v61  ;;  %v6202_v17 = vmul.f32 0.5, %v8905_v38 }
 0x6f4   :  { %v10144_v63 = vpop.eup %10143  ;;  %v6742_v13 = vadd.f32 0.06981317, %v6552_v2  ;;  %v6557_v49 = vmul.f32 0.034906585, %v10142_v11  ;;  %10157 = vtanh.f32 %v6197_v48  ;;  %v4121_v10 = vsub.s32 4, %v14342_v16 }
 0x6f5   :  { %v10146_v62 = vpop.eup %10145  ;;  %7473 = vst [vmem:[%s14120_s9 + $0x260] sm:$0xff] %v8030_v37  ;;  %v6746_v55 = vadd.f32 0.06981317, %v6556_v52  ;;  %v6561_v35 = vmul.f32 0.034906585, %v10144_v63  ;;  %10159 = vtanh.f32 %v6201_v28 }
 0x6f6   :  { %v8033_v47 = vpack.c.bf16 %v6742_v13, %v6741_v33  ;;  %v6747_v21 = vadd.f32 0.06981317, %v6557_v49  ;;  %v6562_v39 = vmul.f32 0.034906585, %v10146_v62  ;;  %10161 = vtanh.f32 %v6202_v17 }
 0x6f7   :  { %v10148_v51 = vpop.eup %10147  ;;  %v6751_v8 = vadd.f32 0.06981317, %v6561_v35  ;;  %v13957_v31 = vrot.slane %v10240_v9, %v4121_v10 }
 0x6f8   :  { %v10150_v30 = vpop.eup %10149  ;;  %v6566_v54 = vmul.f32 0.034906585, %v10148_v51  ;;  %7476 = vst [vmem:[%s14120_s9 + $0x274] sm:$0xff] %v8033_v47  ;;  %v8036_v57 = vpack.c.bf16 %v6747_v21, %v6746_v55  ;;  %v6752_v32 = vadd.f32 0.06981317, %v6562_v39  ;;  %8523 = vmatmul.mubr.bf16.gmra.mrb[44].mxu0 %v13216_v43 }
 0x6f9   :  { %v6567_v12 = vmul.f32 0.034906585, %v10150_v30 }
 0x6fa   :  { %v10152_v53 = vpop.eup %10151  ;;  %v6756_v0 = vadd.f32 0.06981317, %v6566_v54  ;;  %7479 = vst [vmem:[%s14120_s9 + $0x288] sm:$0xff] %v8036_v57  ;;  %v8039_v19 = vpack.c.bf16 %v6752_v32, %v6751_v8 }
 0x6fb   :  { %v6757_v3 = vadd.f32 0.06981317, %v6567_v12  ;;  %v6571_v4 = vmul.f32 0.034906585, %v10152_v53  ;;  %v10154_v7 = vpop.eup %10153 }
 0x6fc   :  { %v10156_v15 = vpop.eup %10155  ;;  %7482 = vst [vmem:[%s14120_s9 + $0x29c] sm:$0xff] %v8039_v19  ;;  %v6572_v58 = vmul.f32 0.034906585, %v10154_v7 }
 0x6fd   :  { %v8042_v40 = vpack.c.bf16 %v6757_v3, %v6756_v0  ;;  %v6761_v42 = vadd.f32 0.06981317, %v6571_v4  ;;  %v6576_v18 = vmul.f32 0.034906585, %v10156_v15 }
 0x6fe   :  { %v10158_v43 = vpop.eup %10157  ;;  %v6762_v6 = vadd.f32 0.06981317, %v6572_v58 }
 0x6ff   :  { %7485 = vst [vmem:[%s14120_s9 + $0x2b0] sm:$0xff] %v8042_v40  ;;  %v10160_v59 = vpop.eup %10159  ;;  %v6766_v24 = vadd.f32 0.06981317, %v6576_v18  ;;  %v6577_v14 = vmul.f32 0.034906585, %v10158_v43 }
 0x700   :  { %v10162_v44 = vpop.eup %10161  ;;  %v8045_v22 = vpack.c.bf16 %v6762_v6, %v6761_v42  ;;  %v6581_v45 = vmul.f32 0.034906585, %v10160_v59 }
 0x701   :  { %v6767_v36 = vadd.f32 0.06981317, %v6577_v14  ;;  %v6582_v25 = vmul.f32 0.034906585, %v10162_v44 }
 0x702   :  { %7488 = vst [vmem:[%s14120_s9 + $0x2c4] sm:$0xff] %v8045_v22  ;;  %v6771_v60 = vadd.f32 0.06981317, %v6581_v45 }
 0x703   :  { %v8048_v1 = vpack.c.bf16 %v6767_v36, %v6766_v24  ;;  %v6772_v23 = vadd.f32 0.06981317, %v6582_v25 }
 0x705   :  { %7491 = vst [vmem:[%s14120_s9 + $0x2d8] sm:$0xff] %v8048_v1  ;;  %v8051_v50 = vpack.c.bf16 %v6772_v23, %v6771_v60 }
 0x707   :  { %7494 = vst [vmem:[%s14120_s9 + $0x2ec] sm:$0xff] %v8051_v50 }
 0x73b   :  { %v5863_v5 = vpop.f32.mrb[228].mxu0 }
 0x73c   :  { %v8906_v29 = vadd.f32 %v5863_v5, %v13957_v31  ;;  %v8452_v56 = vpop.f32.mrb[229].mxu0 }
 0x73d   :  { %v5866_v20 = vpop.f32.mrb[230].mxu0 }
 0x73e   :  { %v6018_v46 = vmul.f32 0.5, %v8906_v29  ;;  %v8907_v41 = vadd.f32 %v5866_v20, %v13957_v31  ;;  %v8453_v34 = vpop.f32.mrb[231].mxu0 }
 0x740   :  { %10163 = vtanh.f32 %v6018_v46  ;;  %v6023_v27 = vmul.f32 0.5, %v8907_v41 }
 0x742   :  { %10165 = vtanh.f32 %v6023_v27 }
 0x743   :  { %v5871_v26 = vpop.f32.mrb[232].mxu0 }
 0x744   :  { %v8908_v16 = vadd.f32 %v5871_v26, %v13957_v31  ;;  %v8456_v38 = vpop.f32.mrb[233].mxu0 }
 0x745   :  { %v5874_v61 = vpop.f32.mrb[234].mxu0 }
 0x746   :  { %v6028_v2 = vmul.f32 0.5, %v8908_v16  ;;  %v8909_v48 = vadd.f32 %v5874_v61, %v13957_v31  ;;  %v8457_v28 = vpop.f32.mrb[235].mxu0 }
 0x748   :  { %10167 = vtanh.f32 %v6028_v2  ;;  %v6033_v11 = vmul.f32 0.5, %v8909_v48 }
 0x74a   :  { %v10164_v37 = vpop.eup %10163  ;;  %10169 = vtanh.f32 %v6033_v11 }
 0x74b   :  { %v6398_v33 = vmul.f32 0.034906585, %v10164_v37  ;;  %v5879_v52 = vpop.f32.mrb[236].mxu0 }
 0x74c   :  { %v10166_v17 = vpop.eup %10165  ;;  %v8910_v63 = vadd.f32 %v5879_v52, %v13957_v31  ;;  %v8460_v13 = vpop.f32.mrb[237].mxu0 }
 0x74d   :  { %v6588_v49 = vadd.f32 0.06981317, %v6398_v33  ;;  %v6403_v62 = vmul.f32 0.034906585, %v10166_v17  ;;  %v5882_v55 = vpop.f32.mrb[238].mxu0 }
 0x74e   :  { %v6038_v35 = vmul.f32 0.5, %v8910_v63  ;;  %v8911_v51 = vadd.f32 %v5882_v55, %v13957_v31  ;;  %v8461_v47 = vpop.f32.mrb[239].mxu0 }
 0x74f   :  { %v7941_v21 = vpack.c.bf16 %v6588_v49, %v6588_v49  ;;  %v6593_v39 = vadd.f32 0.06981317, %v6403_v62 }
 0x750   :  { %10171 = vtanh.f32 %v6038_v35  ;;  %v6043_v30 = vmul.f32 0.5, %v8911_v51 }
 0x751   :  { %7384 = vst [vmem:[%s14120_s9 + $0x10] sm:$0xf] %v7941_v21  ;;  %v7944_v8 = vpack.c.bf16 %v6593_v39, %v6593_v39 }
 0x752   :  { %v10168_v54 = vpop.eup %10167  ;;  %10173 = vtanh.f32 %v6043_v30 }
 0x753   :  { %7387 = vst [vmem:[%s14120_s9 + $0x24] sm:$0xf] %v7944_v8  ;;  %v6408_v57 = vmul.f32 0.034906585, %v10168_v54  ;;  %v5887_v32 = vpop.f32.mrb[240].mxu0 }
 0x754   :  { %v10170_v12 = vpop.eup %10169  ;;  %v8912_v53 = vadd.f32 %v5887_v32, %v13957_v31  ;;  %v8464_v0 = vpop.f32.mrb[241].mxu0 }
 0x755   :  { %v6598_v19 = vadd.f32 0.06981317, %v6408_v57  ;;  %v6413_v3 = vmul.f32 0.034906585, %v10170_v12  ;;  %v5890_v4 = vpop.f32.mrb[242].mxu0 }
 0x756   :  { %v6048_v7 = vmul.f32 0.5, %v8912_v53  ;;  %v8913_v15 = vadd.f32 %v5890_v4, %v13957_v31  ;;  %v8465_v40 = vpop.f32.mrb[243].mxu0 }
 0x757   :  { %v7947_v42 = vpack.c.bf16 %v6598_v19, %v6598_v19  ;;  %v6603_v58 = vadd.f32 0.06981317, %v6413_v3 }
 0x758   :  { %10175 = vtanh.f32 %v6048_v7  ;;  %v6053_v18 = vmul.f32 0.5, %v8913_v15 }
 0x759   :  { %7390 = vst [vmem:[%s14120_s9 + $0x38] sm:$0xf] %v7947_v42  ;;  %v7950_v43 = vpack.c.bf16 %v6603_v58, %v6603_v58 }
 0x75a   :  { %v10172_v6 = vpop.eup %10171  ;;  %10177 = vtanh.f32 %v6053_v18 }
 0x75b   :  { %7393 = vst [vmem:[%s14120_s9 + $0x4c] sm:$0xf] %v7950_v43  ;;  %v6418_v59 = vmul.f32 0.034906585, %v10172_v6  ;;  %v5895_v24 = vpop.f32.mrb[244].mxu0 }
 0x75c   :  { %v10174_v14 = vpop.eup %10173  ;;  %v8914_v44 = vadd.f32 %v5895_v24, %v13957_v31  ;;  %v8468_v22 = vpop.f32.mrb[245].mxu0 }
 0x75d   :  { %v6608_v45 = vadd.f32 0.06981317, %v6418_v59  ;;  %v6423_v36 = vmul.f32 0.034906585, %v10174_v14  ;;  %v5898_v25 = vpop.f32.mrb[246].mxu0 }
 0x75e   :  { %v6058_v60 = vmul.f32 0.5, %v8914_v44  ;;  %v8915_v1 = vadd.f32 %v5898_v25, %v13957_v31  ;;  %v8469_v23 = vpop.f32.mrb[247].mxu0 }
 0x75f   :  { %v7953_v50 = vpack.c.bf16 %v6608_v45, %v6608_v45  ;;  %v6613_v10 = vadd.f32 0.06981317, %v6423_v36 }
 0x760   :  { %10179 = vtanh.f32 %v6058_v60  ;;  %v6063_v9 = vmul.f32 0.5, %v8915_v1 }
 0x761   :  { %7396 = vst [vmem:[%s14120_s9 + $0x60] sm:$0xf] %v7953_v50  ;;  %v7956_v5 = vpack.c.bf16 %v6613_v10, %v6613_v10 }
 0x762   :  { %v10176_v29 = vpop.eup %10175  ;;  %10181 = vtanh.f32 %v6063_v9 }
 0x763   :  { %7399 = vst [vmem:[%s14120_s9 + $0x74] sm:$0xf] %v7956_v5  ;;  %v6428_v56 = vmul.f32 0.034906585, %v10176_v29  ;;  %v5903_v20 = vpop.f32.mrb[248].mxu0 }
 0x764   :  { %v10178_v46 = vpop.eup %10177  ;;  %v8916_v41 = vadd.f32 %v5903_v20, %v13957_v31  ;;  %v8472_v34 = vpop.f32.mrb[249].mxu0 }
 0x765   :  { %v6618_v27 = vadd.f32 0.06981317, %v6428_v56  ;;  %v6433_v26 = vmul.f32 0.034906585, %v10178_v46  ;;  %v5906_v16 = vpop.f32.mrb[250].mxu0 }
 0x766   :  { %v6068_v38 = vmul.f32 0.5, %v8916_v41  ;;  %v8917_v61 = vadd.f32 %v5906_v16, %v13957_v31  ;;  %v8473_v2 = vpop.f32.mrb[251].mxu0 }
 0x767   :  { %v7959_v48 = vpack.c.bf16 %v6618_v27, %v6618_v27  ;;  %v6623_v28 = vadd.f32 0.06981317, %v6433_v26 }
 0x768   :  { %10183 = vtanh.f32 %v6068_v38  ;;  %v6073_v11 = vmul.f32 0.5, %v8917_v61 }
 0x769   :  { %7402 = vst [vmem:[%s14120_s9 + $0x88] sm:$0xf] %v7959_v48  ;;  %v7962_v37 = vpack.c.bf16 %v6623_v28, %v6623_v28 }
 0x76a   :  { %v10180_v33 = vpop.eup %10179  ;;  %10185 = vtanh.f32 %v6073_v11 }
 0x76b   :  { %7405 = vst [vmem:[%s14120_s9 + $0x9c] sm:$0xf] %v7962_v37  ;;  %v6438_v52 = vmul.f32 0.034906585, %v10180_v33  ;;  %v5911_v17 = vpop.f32.mrb[252].mxu0 }
 0x76c   :  { %v10182_v63 = vpop.eup %10181  ;;  %v8918_v13 = vadd.f32 %v5911_v17, %v13957_v31  ;;  %v8476_v49 = vpop.f32.mrb[253].mxu0 }
 0x76d   :  { %v6628_v62 = vadd.f32 0.06981317, %v6438_v52  ;;  %v6443_v55 = vmul.f32 0.034906585, %v10182_v63  ;;  %v5914_v35 = vpop.f32.mrb[254].mxu0 }
 0x76e   :  { %v6078_v51 = vmul.f32 0.5, %v8918_v13  ;;  %v8919_v47 = vadd.f32 %v5914_v35, %v13957_v31  ;;  %v8477_v21 = vpop.f32.mrb[255].mxu0 }
 0x76f   :  { %v7965_v39 = vpack.c.bf16 %v6628_v62, %v6628_v62  ;;  %v6633_v30 = vadd.f32 0.06981317, %v6443_v55 }
 0x770   :  { %10187 = vtanh.f32 %v6078_v51  ;;  %v6083_v8 = vmul.f32 0.5, %v8919_v47 }
 0x771   :  { %7408 = vst [vmem:[%s14120_s9 + $0xb0] sm:$0xf] %v7965_v39  ;;  %v7968_v54 = vpack.c.bf16 %v6633_v30, %v6633_v30 }
 0x772   :  { %v10184_v57 = vpop.eup %10183  ;;  %10189 = vtanh.f32 %v6083_v8 }
 0x773   :  { %7411 = vst [vmem:[%s14120_s9 + $0xc4] sm:$0xf] %v7968_v54  ;;  %v6448_v32 = vmul.f32 0.034906585, %v10184_v57  ;;  %v5919_v12 = vpop.f32.mrb[0].mxu0 }
 0x774   :  { %v10186_v53 = vpop.eup %10185  ;;  %v8920_v0 = vadd.f32 %v5919_v12, %v13957_v31  ;;  %v8480_v19 = vpop.f32.mrb[1].mxu0 }
 0x775   :  { %v6638_v3 = vadd.f32 0.06981317, %v6448_v32  ;;  %v6453_v4 = vmul.f32 0.034906585, %v10186_v53  ;;  %v5922_v7 = vpop.f32.mrb[2].mxu0 }
 0x776   :  { %v6088_v15 = vmul.f32 0.5, %v8920_v0  ;;  %v8921_v40 = vadd.f32 %v5922_v7, %v13957_v31  ;;  %v8481_v42 = vpop.f32.mrb[3].mxu0 }
 0x777   :  { %v7971_v58 = vpack.c.bf16 %v6638_v3, %v6638_v3  ;;  %v6643_v18 = vadd.f32 0.06981317, %v6453_v4 }
 0x778   :  { %10191 = vtanh.f32 %v6088_v15  ;;  %v6093_v43 = vmul.f32 0.5, %v8921_v40 }
 0x779   :  { %7414 = vst [vmem:[%s14120_s9 + $0xd8] sm:$0xf] %v7971_v58  ;;  %v7974_v6 = vpack.c.bf16 %v6643_v18, %v6643_v18 }
 0x77a   :  { %v10188_v59 = vpop.eup %10187  ;;  %10193 = vtanh.f32 %v6093_v43 }
 0x77b   :  { %7417 = vst [vmem:[%s14120_s9 + $0xec] sm:$0xf] %v7974_v6  ;;  %v6458_v24 = vmul.f32 0.034906585, %v10188_v59  ;;  %v5927_v14 = vpop.f32.mrb[4].mxu0 }
 0x77c   :  { %v10190_v44 = vpop.eup %10189  ;;  %v8922_v22 = vadd.f32 %v5927_v14, %v13957_v31  ;;  %v8484_v45 = vpop.f32.mrb[5].mxu0 }
 0x77d   :  { %v6648_v36 = vadd.f32 0.06981317, %v6458_v24  ;;  %v6463_v25 = vmul.f32 0.034906585, %v10190_v44  ;;  %v5930_v60 = vpop.f32.mrb[6].mxu0 }
 0x77e   :  { %v6098_v1 = vmul.f32 0.5, %v8922_v22  ;;  %v8923_v23 = vadd.f32 %v5930_v60, %v13957_v31  ;;  %v8485_v50 = vpop.f32.mrb[7].mxu0 }
 0x77f   :  { %v7977_v10 = vpack.c.bf16 %v6648_v36, %v6648_v36  ;;  %v6653_v9 = vadd.f32 0.06981317, %v6463_v25 }
 0x780   :  { %10195 = vtanh.f32 %v6098_v1  ;;  %v6103_v5 = vmul.f32 0.5, %v8923_v23 }
 0x781   :  { %7420 = vst [vmem:[%s14120_s9 + $0x100] sm:$0xf] %v7977_v10  ;;  %v7980_v29 = vpack.c.bf16 %v6653_v9, %v6653_v9 }
 0x782   :  { %v10192_v56 = vpop.eup %10191  ;;  %10197 = vtanh.f32 %v6103_v5 }
 0x783   :  { %7423 = vst [vmem:[%s14120_s9 + $0x114] sm:$0xf] %v7980_v29  ;;  %v6468_v20 = vmul.f32 0.034906585, %v10192_v56  ;;  %v5935_v46 = vpop.f32.mrb[8].mxu0 }
 0x784   :  { %v10194_v41 = vpop.eup %10193  ;;  %v8924_v34 = vadd.f32 %v5935_v46, %v13957_v31  ;;  %v8488_v27 = vpop.f32.mrb[9].mxu0 }
 0x785   :  { %v6658_v26 = vadd.f32 0.06981317, %v6468_v20  ;;  %v6473_v16 = vmul.f32 0.034906585, %v10194_v41  ;;  %v5938_v38 = vpop.f32.mrb[10].mxu0 }
 0x786   :  { %v6108_v61 = vmul.f32 0.5, %v8924_v34  ;;  %v8925_v2 = vadd.f32 %v5938_v38, %v13957_v31  ;;  %v8489_v48 = vpop.f32.mrb[11].mxu0 }
 0x787   :  { %v7983_v28 = vpack.c.bf16 %v6658_v26, %v6658_v26  ;;  %v6663_v11 = vadd.f32 0.06981317, %v6473_v16 }
 0x788   :  { %10199 = vtanh.f32 %v6108_v61  ;;  %v6113_v37 = vmul.f32 0.5, %v8925_v2 }
 0x789   :  { %7426 = vst [vmem:[%s14120_s9 + $0x128] sm:$0xf] %v7983_v28  ;;  %v7986_v33 = vpack.c.bf16 %v6663_v11, %v6663_v11 }
 0x78a   :  { %v10196_v52 = vpop.eup %10195  ;;  %10201 = vtanh.f32 %v6113_v37 }
 0x78b   :  { %7429 = vst [vmem:[%s14120_s9 + $0x13c] sm:$0xf] %v7986_v33  ;;  %v6478_v17 = vmul.f32 0.034906585, %v10196_v52  ;;  %v5943_v63 = vpop.f32.mrb[12].mxu0 }
 0x78c   :  { %v10198_v13 = vpop.eup %10197  ;;  %v8926_v49 = vadd.f32 %v5943_v63, %v13957_v31  ;;  %v8492_v62 = vpop.f32.mrb[13].mxu0 }
 0x78d   :  { %v6668_v55 = vadd.f32 0.06981317, %v6478_v17  ;;  %v6483_v35 = vmul.f32 0.034906585, %v10198_v13  ;;  %v5946_v51 = vpop.f32.mrb[14].mxu0 }
 0x78e   :  { %v6118_v47 = vmul.f32 0.5, %v8926_v49  ;;  %v8927_v21 = vadd.f32 %v5946_v51, %v13957_v31  ;;  %v8493_v39 = vpop.f32.mrb[15].mxu0 }
 0x78f   :  { %v7989_v30 = vpack.c.bf16 %v6668_v55, %v6668_v55  ;;  %v6673_v8 = vadd.f32 0.06981317, %v6483_v35 }
 0x790   :  { %10203 = vtanh.f32 %v6118_v47  ;;  %v6123_v54 = vmul.f32 0.5, %v8927_v21 }
 0x791   :  { %7432 = vst [vmem:[%s14120_s9 + $0x150] sm:$0xf] %v7989_v30  ;;  %v7992_v57 = vpack.c.bf16 %v6673_v8, %v6673_v8 }
 0x792   :  { %v10200_v32 = vpop.eup %10199  ;;  %10205 = vtanh.f32 %v6123_v54 }
 0x793   :  { %7435 = vst [vmem:[%s14120_s9 + $0x164] sm:$0xf] %v7992_v57  ;;  %v6488_v12 = vmul.f32 0.034906585, %v10200_v32  ;;  %v5951_v53 = vpop.f32.mrb[16].mxu0 }
 0x794   :  { %v10202_v0 = vpop.eup %10201  ;;  %v8928_v19 = vadd.f32 %v5951_v53, %v13957_v31  ;;  %v8496_v3 = vpop.f32.mrb[17].mxu0 }
 0x795   :  { %v6678_v4 = vadd.f32 0.06981317, %v6488_v12  ;;  %v6493_v7 = vmul.f32 0.034906585, %v10202_v0  ;;  %v5954_v15 = vpop.f32.mrb[18].mxu0 }
 0x796   :  { %v6128_v40 = vmul.f32 0.5, %v8928_v19  ;;  %v8929_v42 = vadd.f32 %v5954_v15, %v13957_v31  ;;  %v8497_v58 = vpop.f32.mrb[19].mxu0 }
 0x797   :  { %v7995_v18 = vpack.c.bf16 %v6678_v4, %v6678_v4  ;;  %v6683_v43 = vadd.f32 0.06981317, %v6493_v7 }
 0x798   :  { %10207 = vtanh.f32 %v6128_v40  ;;  %v6133_v6 = vmul.f32 0.5, %v8929_v42 }
 0x799   :  { %7438 = vst [vmem:[%s14120_s9 + $0x178] sm:$0xf] %v7995_v18  ;;  %v7998_v59 = vpack.c.bf16 %v6683_v43, %v6683_v43 }
 0x79a   :  { %v10204_v24 = vpop.eup %10203  ;;  %10209 = vtanh.f32 %v6133_v6 }
 0x79b   :  { %7441 = vst [vmem:[%s14120_s9 + $0x18c] sm:$0xf] %v7998_v59  ;;  %v6498_v14 = vmul.f32 0.034906585, %v10204_v24  ;;  %v5959_v44 = vpop.f32.mrb[20].mxu0 }
 0x79c   :  { %v10206_v22 = vpop.eup %10205  ;;  %v8930_v45 = vadd.f32 %v5959_v44, %v13957_v31  ;;  %v8500_v36 = vpop.f32.mrb[21].mxu0 }
 0x79d   :  { %v6688_v25 = vadd.f32 0.06981317, %v6498_v14  ;;  %v6503_v60 = vmul.f32 0.034906585, %v10206_v22  ;;  %v5962_v1 = vpop.f32.mrb[22].mxu0 }
 0x79e   :  { %v6138_v23 = vmul.f32 0.5, %v8930_v45  ;;  %v8931_v50 = vadd.f32 %v5962_v1, %v13957_v31  ;;  %v8501_v10 = vpop.f32.mrb[23].mxu0 }
 0x79f   :  { %v8001_v9 = vpack.c.bf16 %v6688_v25, %v6688_v25  ;;  %v6693_v5 = vadd.f32 0.06981317, %v6503_v60 }
 0x7a0   :  { %10211 = vtanh.f32 %v6138_v23  ;;  %v6143_v29 = vmul.f32 0.5, %v8931_v50 }
 0x7a1   :  { %7444 = vst [vmem:[%s14120_s9 + $0x1a0] sm:$0xf] %v8001_v9  ;;  %v8004_v56 = vpack.c.bf16 %v6693_v5, %v6693_v5 }
 0x7a2   :  { %v10208_v20 = vpop.eup %10207  ;;  %10213 = vtanh.f32 %v6143_v29 }
 0x7a3   :  { %7447 = vst [vmem:[%s14120_s9 + $0x1b4] sm:$0xf] %v8004_v56  ;;  %v6508_v46 = vmul.f32 0.034906585, %v10208_v20  ;;  %v5967_v41 = vpop.f32.mrb[24].mxu0 }
 0x7a4   :  { %v10210_v34 = vpop.eup %10209  ;;  %v8932_v27 = vadd.f32 %v5967_v41, %v13957_v31  ;;  %v8504_v26 = vpop.f32.mrb[25].mxu0 }
 0x7a5   :  { %v6698_v16 = vadd.f32 0.06981317, %v6508_v46  ;;  %v6513_v38 = vmul.f32 0.034906585, %v10210_v34  ;;  %v5970_v61 = vpop.f32.mrb[26].mxu0 }
 0x7a6   :  { %v6148_v2 = vmul.f32 0.5, %v8932_v27  ;;  %v8933_v48 = vadd.f32 %v5970_v61, %v13957_v31  ;;  %v8505_v28 = vpop.f32.mrb[27].mxu0 }
 0x7a7   :  { %v8007_v11 = vpack.c.bf16 %v6698_v16, %v6698_v16  ;;  %v6703_v37 = vadd.f32 0.06981317, %v6513_v38 }
 0x7a8   :  { %10215 = vtanh.f32 %v6148_v2  ;;  %v6153_v33 = vmul.f32 0.5, %v8933_v48 }
 0x7a9   :  { %7450 = vst [vmem:[%s14120_s9 + $0x1c8] sm:$0xf] %v8007_v11  ;;  %v8010_v52 = vpack.c.bf16 %v6703_v37, %v6703_v37 }
 0x7aa   :  { %v10212_v17 = vpop.eup %10211  ;;  %10217 = vtanh.f32 %v6153_v33 }
 0x7ab   :  { %7453 = vst [vmem:[%s14120_s9 + $0x1dc] sm:$0xf] %v8010_v52  ;;  %v6518_v63 = vmul.f32 0.034906585, %v10212_v17  ;;  %v5975_v13 = vpop.f32.mrb[28].mxu0 }
 0x7ac   :  { %v10214_v49 = vpop.eup %10213  ;;  %v8934_v62 = vadd.f32 %v5975_v13, %v13957_v31  ;;  %v8508_v55 = vpop.f32.mrb[29].mxu0 }
 0x7ad   :  { %v6708_v35 = vadd.f32 0.06981317, %v6518_v63  ;;  %v6523_v51 = vmul.f32 0.034906585, %v10214_v49  ;;  %v5978_v47 = vpop.f32.mrb[30].mxu0 }
 0x7ae   :  { %v6158_v21 = vmul.f32 0.5, %v8934_v62  ;;  %v8935_v39 = vadd.f32 %v5978_v47, %v13957_v31  ;;  %v8509_v30 = vpop.f32.mrb[31].mxu0 }
 0x7af   :  { %v8013_v8 = vpack.c.bf16 %v6708_v35, %v6708_v35  ;;  %v6713_v54 = vadd.f32 0.06981317, %v6523_v51 }
 0x7b0   :  { %10219 = vtanh.f32 %v6158_v21  ;;  %v6163_v57 = vmul.f32 0.5, %v8935_v39 }
 0x7b1   :  { %7456 = vst [vmem:[%s14120_s9 + $0x1f0] sm:$0xf] %v8013_v8  ;;  %v8016_v32 = vpack.c.bf16 %v6713_v54, %v6713_v54 }
 0x7b2   :  { %v10216_v12 = vpop.eup %10215  ;;  %10221 = vtanh.f32 %v6163_v57 }
 0x7b3   :  { %7459 = vst [vmem:[%s14120_s9 + $0x204] sm:$0xf] %v8016_v32  ;;  %v6528_v53 = vmul.f32 0.034906585, %v10216_v12  ;;  %v5983_v0 = vpop.f32.mrb[32].mxu0 }
 0x7b4   :  { %v10218_v19 = vpop.eup %10217  ;;  %v8936_v3 = vadd.f32 %v5983_v0, %v13957_v31  ;;  %v8512_v4 = vpop.f32.mrb[33].mxu0 }
 0x7b5   :  { %v6718_v7 = vadd.f32 0.06981317, %v6528_v53  ;;  %v6533_v15 = vmul.f32 0.034906585, %v10218_v19  ;;  %v5986_v40 = vpop.f32.mrb[34].mxu0 }
 0x7b6   :  { %v6168_v42 = vmul.f32 0.5, %v8936_v3  ;;  %v8937_v58 = vadd.f32 %v5986_v40, %v13957_v31  ;;  %v8513_v18 = vpop.f32.mrb[35].mxu0 }
 0x7b7   :  { %v8019_v43 = vpack.c.bf16 %v6718_v7, %v6718_v7  ;;  %v6723_v6 = vadd.f32 0.06981317, %v6533_v15 }
 0x7b8   :  { %10223 = vtanh.f32 %v6168_v42  ;;  %v6173_v59 = vmul.f32 0.5, %v8937_v58 }
 0x7b9   :  { %7462 = vst [vmem:[%s14120_s9 + $0x218] sm:$0xf] %v8019_v43  ;;  %v8022_v24 = vpack.c.bf16 %v6723_v6, %v6723_v6 }
 0x7ba   :  { %v10220_v14 = vpop.eup %10219  ;;  %10225 = vtanh.f32 %v6173_v59 }
 0x7bb   :  { %7465 = vst [vmem:[%s14120_s9 + $0x22c] sm:$0xf] %v8022_v24  ;;  %v6538_v44 = vmul.f32 0.034906585, %v10220_v14  ;;  %v5991_v22 = vpop.f32.mrb[36].mxu0 }
 0x7bc   :  { %v10222_v45 = vpop.eup %10221  ;;  %v8938_v36 = vadd.f32 %v5991_v22, %v13957_v31  ;;  %v8516_v25 = vpop.f32.mrb[37].mxu0 }
 0x7bd   :  { %v6728_v60 = vadd.f32 0.06981317, %v6538_v44  ;;  %v6543_v1 = vmul.f32 0.034906585, %v10222_v45  ;;  %v5994_v23 = vpop.f32.mrb[38].mxu0 }
 0x7be   :  { %v6178_v50 = vmul.f32 0.5, %v8938_v36  ;;  %v8939_v10 = vadd.f32 %v5994_v23, %v13957_v31  ;;  %v8517_v9 = vpop.f32.mrb[39].mxu0 }
 0x7bf   :  { %v8025_v5 = vpack.c.bf16 %v6728_v60, %v6728_v60  ;;  %v6733_v29 = vadd.f32 0.06981317, %v6543_v1 }
 0x7c0   :  { %10227 = vtanh.f32 %v6178_v50  ;;  %v6183_v56 = vmul.f32 0.5, %v8939_v10 }
 0x7c1   :  { %7468 = vst [vmem:[%s14120_s9 + $0x240] sm:$0xf] %v8025_v5  ;;  %v8028_v20 = vpack.c.bf16 %v6733_v29, %v6733_v29 }
 0x7c2   :  { %v10224_v46 = vpop.eup %10223  ;;  %10229 = vtanh.f32 %v6183_v56 }
 0x7c3   :  { %7471 = vst [vmem:[%s14120_s9 + $0x254] sm:$0xf] %v8028_v20  ;;  %v6548_v41 = vmul.f32 0.034906585, %v10224_v46  ;;  %v5999_v34 = vpop.f32.mrb[40].mxu0 }
 0x7c4   :  { %v10226_v27 = vpop.eup %10225  ;;  %v8940_v26 = vadd.f32 %v5999_v34, %v13957_v31  ;;  %v8520_v16 = vpop.f32.mrb[41].mxu0 }
 0x7c5   :  { %v6738_v38 = vadd.f32 0.06981317, %v6548_v41  ;;  %v6553_v61 = vmul.f32 0.034906585, %v10226_v27  ;;  %v6002_v2 = vpop.f32.mrb[42].mxu0 }
 0x7c6   :  { %v6188_v48 = vmul.f32 0.5, %v8940_v26  ;;  %v8941_v28 = vadd.f32 %v6002_v2, %v13957_v31  ;;  %v8521_v11 = vpop.f32.mrb[43].mxu0 }
 0x7c7   :  { %v8031_v37 = vpack.c.bf16 %v6738_v38, %v6738_v38  ;;  %v6743_v33 = vadd.f32 0.06981317, %v6553_v61 }
 0x7c8   :  { %10231 = vtanh.f32 %v6188_v48  ;;  %v6193_v52 = vmul.f32 0.5, %v8941_v28 }
 0x7c9   :  { %7474 = vst [vmem:[%s14120_s9 + $0x268] sm:$0xf] %v8031_v37  ;;  %v8034_v17 = vpack.c.bf16 %v6743_v33, %v6743_v33 }
 0x7ca   :  { %v10228_v63 = vpop.eup %10227  ;;  %10233 = vtanh.f32 %v6193_v52 }
 0x7cb   :  { %7477 = vst [vmem:[%s14120_s9 + $0x27c] sm:$0xf] %v8034_v17  ;;  %v6558_v13 = vmul.f32 0.034906585, %v10228_v63  ;;  %v6007_v49 = vpop.f32.mrb[44].mxu0 }
 0x7cc   :  { %v10230_v62 = vpop.eup %10229  ;;  %v8942_v55 = vadd.f32 %v6007_v49, %v13957_v31  ;;  %v8524_v35 = vpop.f32.mrb[45].mxu0 }
 0x7cd   :  { %v6748_v51 = vadd.f32 0.06981317, %v6558_v13  ;;  %v6563_v47 = vmul.f32 0.034906585, %v10230_v62  ;;  %v6010_v21 = vpop.f32.mrb[46].mxu0 }
 0x7ce   :  { %v6198_v39 = vmul.f32 0.5, %v8942_v55  ;;  %v8943_v30 = vadd.f32 %v6010_v21, %v13957_v31  ;;  %v8525_v8 = vpop.f32.mrb[47].mxu0 }
 0x7cf   :  { %v8037_v54 = vpack.c.bf16 %v6748_v51, %v6748_v51  ;;  %v6753_v57 = vadd.f32 0.06981317, %v6563_v47 }
 0x7d0   :  { %10235 = vtanh.f32 %v6198_v39  ;;  %v6203_v32 = vmul.f32 0.5, %v8943_v30 }
 0x7d1   :  { %7480 = vst [vmem:[%s14120_s9 + $0x290] sm:$0xf] %v8037_v54  ;;  %v8040_v12 = vpack.c.bf16 %v6753_v57, %v6753_v57 }
 0x7d2   :  { %v10232_v53 = vpop.eup %10231  ;;  %10237 = vtanh.f32 %v6203_v32 }
 0x7d3   :  { %7483 = vst [vmem:[%s14120_s9 + $0x2a4] sm:$0xf] %v8040_v12  ;;  %v6568_v0 = vmul.f32 0.034906585, %v10232_v53 }
 0x7d4   :  { %v10234_v19 = vpop.eup %10233 }
 0x7d5   :  { %v6758_v3 = vadd.f32 0.06981317, %v6568_v0  ;;  %v6573_v31 = vmul.f32 0.034906585, %v10234_v19 }
 0x7d7   :  { %v8043_v4 = vpack.c.bf16 %v6758_v3, %v6758_v3  ;;  %v6763_v7 = vadd.f32 0.06981317, %v6573_v31 }
 0x7d9   :  { %7486 = vst [vmem:[%s14120_s9 + $0x2b8] sm:$0xf] %v8043_v4  ;;  %v8046_v15 = vpack.c.bf16 %v6763_v7, %v6763_v7 }
 0x7da   :  { %v10236_v40 = vpop.eup %10235 }
 0x7db   :  { %7489 = vst [vmem:[%s14120_s9 + $0x2cc] sm:$0xf] %v8046_v15  ;;  %v6578_v42 = vmul.f32 0.034906585, %v10236_v40 }
 0x7dc   :  { %v10238_v58 = vpop.eup %10237 }
 0x7dd   :  { %v6768_v18 = vadd.f32 0.06981317, %v6578_v42  ;;  %v6583_v43 = vmul.f32 0.034906585, %v10238_v58 }
 0x7df   :  { %v8049_v6 = vpack.c.bf16 %v6768_v18, %v6768_v18  ;;  %v6773_v59 = vadd.f32 0.06981317, %v6583_v43 }
 0x7e1   :  { %7492 = vst [vmem:[%s14120_s9 + $0x2e0] sm:$0xf] %v8049_v6  ;;  %v8052_v24 = vpack.c.bf16 %v6773_v59, %v6773_v59 }
 0x7e3   :  { %7495 = vst [vmem:[%s14120_s9 + $0x2f4] sm:$0xf] %v8052_v24 }

</bundles_post_ra>
